<compile_context>
chip_gen: v7x
topology: tpu7x:2x2x1
jax: 0.10.0
libtpu: 0.0.40
codegen_flags: <defaults>
</compile_context>

<pallas_src>
import numpy as np
import jax
import jax.numpy as jnp
from jax import lax
from jax.experimental import pallas as pl
from jax.experimental.pallas import tpu as pltpu

PAIR = 2   # images folded into the matmul M dimension per grid step


# ----------------------------- host-side packing ----------------------------

def pack_params(p, eps=1e-5):
    """Fold BN (eval mode) into the conv weights and pack everything into
    MXU-friendly banded / selection matrices (numpy, done once)."""
    def npf(a):
        return np.asarray(a, dtype=np.float32)

    def fold(conv_b, bn):
        gamma, beta, mean, var = (npf(t) for t in bn)
        scale = gamma / np.sqrt(var + eps)
        bias = (npf(conv_b) - mean) * scale + beta
        return scale, bias

    def banded(w, scale, wout, k_pad, n_pad, shift):
        # w: (Cout, Cin, 5, 5).  Contraction lane = pw*Cin + cin (pw = padded
        # input column); output lane = (ow + shift)*Cout + k.  shift=1 bakes
        # the next layer's left zero-pad column into the output lane layout.
        w = npf(w)
        cout, cin, kh, kw = w.shape
        ws = w * scale[:, None, None, None]
        bw = np.zeros((kh, k_pad, n_pad), np.float32)
        for di in range(kh):
            for ow in range(wout):
                for dj in range(kw):
                    pw = ow + dj
                    bw[di,
                       pw * cin:(pw + 1) * cin,
                       (ow + shift) * cout:(ow + shift + 1) * cout] = ws[:, :, di, dj].T
        return bw

    def bias_row(bias, wout, cout, n_pad, shift):
        row = np.zeros((1, n_pad), np.float32)
        for ow in range(wout):
            row[0, (ow + shift) * cout:(ow + shift + 1) * cout] = bias
        return row

    s1, c1 = fold(p['conv1_b'], p['bn1'])
    s2, c2 = fold(p['conv2_b'], p['bn2'])
    s4, c4 = fold(p['conv4_b'], p['bn4'])
    s5, c5 = fold(p['conv5_b'], p['bn5'])

    # layer geometry: 28->26->24 -pool-> 12->10->8
    bw1 = banded(p['conv1_w'], s1, 26, 128, 384, 1)
    b1 = bias_row(c1, 26, 12, 384, 1)
    bw2 = banded(p['conv2_w'], s2, 24, 384, 384, 0)
    b2 = bias_row(c2, 24, 12, 384, 0)
    bw4 = banded(p['conv4_w'], s4, 10, 256, 384, 1)
    b4 = bias_row(c4, 10, 24, 384, 1)
    bw5 = banded(p['conv5_w'], s5, 8, 384, 256, 0)
    b5 = bias_row(c5, 8, 24, 256, 0)

    # 2x2 max-pool lane selectors (horizontal pair selection, conv4's left
    # zero-pad column folded into destination lanes): act2 lanes ow*12+k ->
    # lanes (j+1)*12+k for pooled column j, column parities s = 0/1.
    selR = np.zeros((2, 384, 256), np.float32)
    eye12 = np.eye(12, dtype=np.float32)
    for s in range(2):
        for j in range(12):
            selR[s, (2 * j + s) * 12:(2 * j + s) * 12 + 12,
                    (1 + j) * 12:(1 + j) * 12 + 12] = eye12

    # Pool row placement (vertical): u has 46 interleaved rows, u[4*ph + b] is
    # the pooled value of image b, pooled row ph; scatter to conv4's padded
    # input row 2*(ph+1)+b.  Ring rows (0,1,26,27) stay exactly zero.
    selC = np.zeros((28, 46), np.float32)
    for ph in range(12):
        for b in range(PAIR):
            selC[2 + 2 * ph + b, 4 * ph + b] = 1.0

    # FC head as matmuls:
    #   Wp[w*24+c, m*8+h] = fc_w[m, c*64 + h*8 + w]  ->  p = act5 @ Wp (16,128)
    #   maskD picks the h == row//2 diagonal, Ssel sums rows per image,
    #   G sums the 8 h-lanes of each logit group.
    fcw = npf(p['fc1_w']).reshape(3, 24, 8, 8)            # (m, c, h, w)
    wp = np.zeros((256, 128), np.float32)
    wp[:192, :24] = fcw.transpose(3, 1, 0, 2).reshape(192, 24)
    maskd = np.zeros((16, 128), np.float32)
    for row in range(16):
        for m in range(3):
            maskd[row, m * 8 + row // 2] = 1.0
    ssel = np.zeros((8, 16), np.float32)
    for b in range(PAIR):
        for h in range(8):
            ssel[b, 2 * h + b] = 1.0
    gmat = np.zeros((128, 128), np.float32)
    for m in range(3):
        gmat[m * 8:(m + 1) * 8, m] = 1.0
    bfc = np.zeros((1, 128), np.float32)
    bfc[0, :3] = npf(p['fc1_b'])

    bf16, f32 = jnp.bfloat16, jnp.float32
    return (jnp.asarray(bw1, bf16), jnp.asarray(b1, f32),
            jnp.asarray(bw2, bf16), jnp.asarray(b2, f32),
            jnp.asarray(selR, bf16), jnp.asarray(selC, bf16),
            jnp.asarray(bw4, bf16), jnp.asarray(b4, f32),
            jnp.asarray(bw5, bf16), jnp.asarray(b5, f32),
            jnp.asarray(wp, bf16), jnp.asarray(maskd, f32),
            jnp.asarray(ssel, f32), jnp.asarray(gmat, f32),
            jnp.asarray(bfc, f32))


# --------------------------------- kernel -----------------------------------

def _network_kernel(x_ref, bw1, b1, bw2, b2, selr, selc, bw4, b4, bw5, b5,
                    wp, maskd, ssel, gmat, bfc, o_ref):
    f32 = jnp.float32
    bf16 = jnp.bfloat16

    def conv_bn_relu(src_bf16, w_ref, bias_ref, m_rows):
        # src: padded input with 2 images row-interleaved (row = 2*h + b),
        # lanes = pw*Cin + cin.  5 row-shifted bf16 MXU matmuls accumulate the
        # 5 vertical taps in f32; horizontal taps + BN scale live inside the
        # banded weight.  M = 2*Hout (both images share each weight push).
        acc = jnp.dot(src_bf16[0:m_rows], w_ref[0], preferred_element_type=f32)
        for di in range(1, 5):
            acc = acc + jnp.dot(src_bf16[2 * di:2 * di + m_rows], w_ref[di],
                                preferred_element_type=f32)
        return jnp.maximum(acc + bias_ref[...], 0.0)

    x0 = x_ref[0]                                             # (60, 128) bf16
    z2 = jnp.zeros((2, 384), f32)

    # conv1 + bn1 + relu -> (52, 384), lanes (ow+1)*12 + k (conv2 padded cols)
    act1 = conv_bn_relu(x0, bw1, b1, 52)
    # vertical zero-pad (row concat, off the MXU chain) -> (56, 384)
    in2 = jnp.concatenate([z2, act1, z2], axis=0).astype(bf16)

    # conv2 + bn2 + relu -> (48, 384), lanes ow*12 + k
    act2 = conv_bn_relu(in2, bw2, b2, 48).astype(bf16)

    # fused 2x2 max-pool:
    #   lane (horizontal) pair max via two selR matmuls (running max),
    #   vertical pair max via a shifted elementwise max,
    #   single tiny 0/1 scatter matmul places pooled rows into conv4's padded
    #   input (28, 256) with exact-zero ring rows/lanes.
    h = jnp.maximum(
        jnp.dot(act2, selr[0], preferred_element_type=f32),
        jnp.dot(act2, selr[1], preferred_element_type=f32))   # (48, 256)
    u = jnp.maximum(h[0:46], h[2:48]).astype(bf16)            # (46, 256)
    in4 = jnp.dot(selc[...], u, preferred_element_type=f32).astype(bf16)

    # conv4 + bn4 + relu -> (20, 384), lanes (ow+1)*24 + k
    act4 = conv_bn_relu(in4, bw4, b4, 20)
    # vertical zero-pad -> conv5 padded input (24, 384)
    in5 = jnp.concatenate([z2, act4, z2], axis=0).astype(bf16)

    # conv5 + bn5 + relu -> (16, 256), lanes ow*24 + k
    act5 = conv_bn_relu(in5, bw5, b5, 16).astype(bf16)

    # TODO(synk): the original forward's print(output.shape) is omitted so that
    # stdout is exactly "KERNEL_OK" on success (shape here: (N, 24, 8, 8) NCHW).

    # FC head: one bf16 MXU matmul over the feature slab, then tiny selection
    # matmuls (diagonal mask, per-image row sum, lane-group sum) + bias.
    p = jnp.dot(act5, wp[...], preferred_element_type=f32)    # (16, 128)
    masked = p * maskd[...]                                   # keep h == row//2
    per_img = jnp.dot(ssel[...], masked,
                      preferred_element_type=f32)             # (8, 128)
    logits = jnp.dot(per_img, gmat[...],
                     preferred_element_type=f32) + bfc[...]   # (8, 128)
    o_ref[0] = logits


# ------------------------------ wrapper --------------------------------------

def network_forward(x_nchw, packed):
    n = x_nchw.shape[0]
    n2 = ((n + PAIR - 1) // PAIR) * PAIR
    # NCHW -> padded NHWC packed as (N, 30, pw*3+c), lanes zero-padded to 128,
    # then interleave image pairs at the row level (row = 2*r + b) so the
    # batch rides the matmul M dimension inside the kernel.
    x = jnp.transpose(x_nchw, (0, 2, 3, 1)).astype(jnp.float32)
    x = jnp.pad(x, ((0, n2 - n), (1, 1), (1, 1), (0, 0)))     # (n2, 30, 30, 3)
    x = x.reshape(n2, 30, 90)
    x = jnp.pad(x, ((0, 0), (0, 0), (0, 128 - 90)))           # (n2, 30, 128)
    x = x.reshape(n2 // PAIR, PAIR, 30, 128).transpose(0, 2, 1, 3)
    x = x.reshape(n2 // PAIR, 60, 128).astype(jnp.bfloat16)

    steps = n2 // PAIR

    def const_spec(a):
        zeros = (0,) * a.ndim
        return pl.BlockSpec(a.shape, lambda i: zeros)

    out = pl.pallas_call(
        _network_kernel,
        out_shape=jax.ShapeDtypeStruct((steps, 8, 128), jnp.float32),
        grid_spec=pltpu.PrefetchScalarGridSpec(
            num_scalar_prefetch=0,
            grid=(steps,),
            in_specs=[pl.BlockSpec((1, 60, 128), lambda i: (i, 0, 0))]
                     + [const_spec(a) for a in packed],
            out_specs=pl.BlockSpec((1, 8, 128), lambda i: (i, 0, 0)),
        ),
        compiler_params=pltpu.CompilerParams(
            dimension_semantics=("parallel",),
            vmem_limit_bytes=32 * 1024 * 1024),
    )(x, *packed)
    # row b of each step holds image step*2 + b; logits at lanes 0..2
    return out[:, :PAIR, :3].reshape(steps * PAIR, 3)[:n]


# ----------------------------- params & reference ---------------------------

def init_params(key):
    keys = jax.random.split(key, 26)
    ki = iter(range(26))

    def norm(shape, s=0.1):
        return s * jax.random.normal(keys[next(ki)], shape, dtype=jnp.float32)

    def bn(c):
        gamma = 1.0 + 0.1 * jax.random.normal(keys[next(ki)], (c,), dtype=jnp.float32)
        beta = 0.1 * jax.random.normal(keys[next(ki)], (c,), dtype=jnp.float32)
        mean = 0.1 * jax.random.normal(keys[next(ki)], (c,), dtype=jnp.float32)
        var = jax.random.uniform(keys[next(ki)], (c,), dtype=jnp.float32,
                                 minval=0.5, maxval=1.5)
        return (gamma, beta, mean, var)

    p = {}
    p['conv1_w'] = norm((12, 3, 5, 5));  p['conv1_b'] = norm((12,))
    p['bn1'] = bn(12)
    p['conv2_w'] = norm((12, 12, 5, 5)); p['conv2_b'] = norm((12,))
    p['bn2'] = bn(12)
    p['conv4_w'] = norm((24, 12, 5, 5)); p['conv4_b'] = norm((24,))
    p['bn4'] = bn(24)
    p['conv5_w'] = norm((24, 24, 5, 5)); p['conv5_b'] = norm((24,))
    p['bn5'] = bn(24)
    p['fc1_w'] = norm((3, 24 * 8 * 8));  p['fc1_b'] = norm((3,))
    return p


def reference_forward(x, p, eps=1e-5):
    # TODO(synk): BatchNorm implemented in eval mode (running stats); the
    # training-mode batch statistics of nn.BatchNorm2d are not computed.
    def conv(x, w, b):
        out = lax.conv_general_dilated(
            x, w, window_strides=(1, 1), padding=[(1, 1), (1, 1)],
            dimension_numbers=('NCHW', 'OIHW', 'NCHW'))
        return out + b[None, :, None, None]

    def bn(x, g, bta, m, v):
        return ((x - m[None, :, None, None])
                / jnp.sqrt(v[None, :, None, None] + eps)
                * g[None, :, None, None] + bta[None, :, None, None])

    x = jax.nn.relu(bn(conv(x, p['conv1_w'], p['conv1_b']), *p['bn1']))
    x = jax.nn.relu(bn(conv(x, p['conv2_w'], p['conv2_b']), *p['bn2']))
    x = lax.reduce_window(x, -jnp.inf, lax.max, (1, 1, 2, 2), (1, 1, 2, 2), 'VALID')
    x = jax.nn.relu(bn(conv(x, p['conv4_w'], p['conv4_b']), *p['bn4']))
    x = jax.nn.relu(bn(conv(x, p['conv5_w'], p['conv5_b']), *p['bn5']))
    flat = x.reshape(x.shape[0], -1)
    return flat @ p['fc1_w'].T + p['fc1_b']


if __name__ == "__main__":
    key = jax.random.PRNGKey(0)
    kx, kp = jax.random.split(key)
    params = init_params(kp)
    packed = pack_params(params)
    # fc1 expects 24*8*8 features, which implies a 28x28 spatial input (NCHW).
    x = jax.random.normal(kx, (2, 3, 28, 28), dtype=jnp.float32)

    fwd = jax.jit(network_forward)
    out = jax.block_until_ready(fwd(x, packed))
    assert out.shape == (2, 3), out.shape

    ref = reference_forward(x, params)
    # bf16 matmul operands (f32 accumulation) through 4 conv layers + fc:
    # tolerance relaxed accordingly (logits are O(1-5); layout bugs would be O(1)+).
    np.testing.assert_allclose(np.asarray(out), np.asarray(ref),
                               atol=1e-1, rtol=1e-1)
    print("KERNEL_OK")
</pallas_src>

<mosaic_0001>
module attributes {stable_mosaic.version = 11 : i64} {
  func.func @_network_kernel(%arg0: i32, %arg1: memref<1x60x128xbf16, #tpu.memory_space<vmem>>, %arg2: memref<5x128x384xbf16, #tpu.memory_space<vmem>>, %arg3: memref<1x384xf32, #tpu.memory_space<vmem>>, %arg4: memref<5x384x384xbf16, #tpu.memory_space<vmem>>, %arg5: memref<1x384xf32, #tpu.memory_space<vmem>>, %arg6: memref<2x384x256xbf16, #tpu.memory_space<vmem>>, %arg7: memref<28x46xbf16, #tpu.memory_space<vmem>>, %arg8: memref<5x256x384xbf16, #tpu.memory_space<vmem>>, %arg9: memref<1x384xf32, #tpu.memory_space<vmem>>, %arg10: memref<5x384x256xbf16, #tpu.memory_space<vmem>>, %arg11: memref<1x256xf32, #tpu.memory_space<vmem>>, %arg12: memref<256x128xbf16, #tpu.memory_space<vmem>>, %arg13: memref<16x128xf32, #tpu.memory_space<vmem>>, %arg14: memref<8x16xf32, #tpu.memory_space<vmem>>, %arg15: memref<128x128xf32, #tpu.memory_space<vmem>>, %arg16: memref<1x128xf32, #tpu.memory_space<vmem>>, %arg17: memref<1x8x128xf32, #tpu.memory_space<vmem>>) attributes {dimension_semantics = [#tpu.dimension_semantics<parallel>], iteration_bounds = array<i64: 1>, scalar_prefetch = 0 : i64, scratch_operands = 0 : i64, tpu.core_type = #tpu.core_type<tc>, window_params = [{transform_indices = @transform_0, window_bounds = array<i64: 1, 60, 128>}, {pipeline_mode = #tpu.pipeline_mode<synchronous>, transform_indices = @transform_1, window_bounds = array<i64: 5, 128, 384>}, {pipeline_mode = #tpu.pipeline_mode<synchronous>, transform_indices = @transform_2, window_bounds = array<i64: 1, 384>}, {pipeline_mode = #tpu.pipeline_mode<synchronous>, transform_indices = @transform_3, window_bounds = array<i64: 5, 384, 384>}, {pipeline_mode = #tpu.pipeline_mode<synchronous>, transform_indices = @transform_4, window_bounds = array<i64: 1, 384>}, {pipeline_mode = #tpu.pipeline_mode<synchronous>, transform_indices = @transform_5, window_bounds = array<i64: 2, 384, 256>}, {pipeline_mode = #tpu.pipeline_mode<synchronous>, transform_indices = @transform_6, window_bounds = array<i64: 28, 46>}, {pipeline_mode = #tpu.pipeline_mode<synchronous>, transform_indices = @transform_7, window_bounds = array<i64: 5, 256, 384>}, {pipeline_mode = #tpu.pipeline_mode<synchronous>, transform_indices = @transform_8, window_bounds = array<i64: 1, 384>}, {pipeline_mode = #tpu.pipeline_mode<synchronous>, transform_indices = @transform_9, window_bounds = array<i64: 5, 384, 256>}, {pipeline_mode = #tpu.pipeline_mode<synchronous>, transform_indices = @transform_10, window_bounds = array<i64: 1, 256>}, {pipeline_mode = #tpu.pipeline_mode<synchronous>, transform_indices = @transform_11, window_bounds = array<i64: 256, 128>}, {pipeline_mode = #tpu.pipeline_mode<synchronous>, transform_indices = @transform_12, window_bounds = array<i64: 16, 128>}, {pipeline_mode = #tpu.pipeline_mode<synchronous>, transform_indices = @transform_13, window_bounds = array<i64: 8, 16>}, {pipeline_mode = #tpu.pipeline_mode<synchronous>, transform_indices = @transform_14, window_bounds = array<i64: 128, 128>}, {pipeline_mode = #tpu.pipeline_mode<synchronous>, transform_indices = @transform_15, window_bounds = array<i64: 1, 128>}, {transform_indices = @transform_16, window_bounds = array<i64: 1, 8, 128>}]} {
    %c0 = arith.constant 0 : index
    %c0_0 = arith.constant 0 : index
    %c0_1 = arith.constant 0 : index
    %0 = vector.load %arg1[%c0, %c0_0, %c0_1] : memref<1x60x128xbf16, #tpu.memory_space<vmem>>, vector<1x60x128xbf16>
    %1 = vector.shape_cast %0 : vector<1x60x128xbf16> to vector<60x128xbf16>
    %cst = arith.constant 0.000000e+00 : f32
    %2 = vector.broadcast %cst : f32 to vector<2x384xf32>
    %3 = vector.extract_strided_slice %1 {offsets = [0, 0], sizes = [52, 128], strides = [1, 1]} : vector<60x128xbf16> to vector<52x128xbf16>
    %c0_2 = arith.constant 0 : index
    %c0_3 = arith.constant 0 : index
    %c0_4 = arith.constant 0 : index
    %4 = vector.load %arg2[%c0_2, %c0_3, %c0_4] : memref<5x128x384xbf16, #tpu.memory_space<vmem>>, vector<1x128x384xbf16>
    %5 = vector.shape_cast %4 : vector<1x128x384xbf16> to vector<128x384xbf16>
    %cst_5 = arith.constant dense<0.000000e+00> : vector<52x384xf32>
    %6 = tpu.matmul %3, %5, %cst_5 {dimension_numbers = #tpu.dot_dimension_numbers<[1], [0], [0], [1], [0, 0, 1, 1], [], []>} : vector<52x128xbf16>, vector<128x384xbf16>, vector<52x384xf32> -> vector<52x384xf32>
    %7 = vector.extract_strided_slice %1 {offsets = [2, 0], sizes = [52, 128], strides = [1, 1]} : vector<60x128xbf16> to vector<52x128xbf16>
    %c1 = arith.constant 1 : index
    %c0_6 = arith.constant 0 : index
    %c0_7 = arith.constant 0 : index
    %8 = vector.load %arg2[%c1, %c0_6, %c0_7] : memref<5x128x384xbf16, #tpu.memory_space<vmem>>, vector<1x128x384xbf16>
    %9 = vector.shape_cast %8 : vector<1x128x384xbf16> to vector<128x384xbf16>
    %cst_8 = arith.constant dense<0.000000e+00> : vector<52x384xf32>
    %10 = tpu.matmul %7, %9, %cst_8 {dimension_numbers = #tpu.dot_dimension_numbers<[1], [0], [0], [1], [0, 0, 1, 1], [], []>} : vector<52x128xbf16>, vector<128x384xbf16>, vector<52x384xf32> -> vector<52x384xf32>
    %11 = arith.addf %6, %10 : vector<52x384xf32>
    %12 = vector.extract_strided_slice %1 {offsets = [4, 0], sizes = [52, 128], strides = [1, 1]} : vector<60x128xbf16> to vector<52x128xbf16>
    %c2 = arith.constant 2 : index
    %c0_9 = arith.constant 0 : index
    %c0_10 = arith.constant 0 : index
    %13 = vector.load %arg2[%c2, %c0_9, %c0_10] : memref<5x128x384xbf16, #tpu.memory_space<vmem>>, vector<1x128x384xbf16>
    %14 = vector.shape_cast %13 : vector<1x128x384xbf16> to vector<128x384xbf16>
    %cst_11 = arith.constant dense<0.000000e+00> : vector<52x384xf32>
    %15 = tpu.matmul %12, %14, %cst_11 {dimension_numbers = #tpu.dot_dimension_numbers<[1], [0], [0], [1], [0, 0, 1, 1], [], []>} : vector<52x128xbf16>, vector<128x384xbf16>, vector<52x384xf32> -> vector<52x384xf32>
    %16 = arith.addf %11, %15 : vector<52x384xf32>
    %17 = vector.extract_strided_slice %1 {offsets = [6, 0], sizes = [52, 128], strides = [1, 1]} : vector<60x128xbf16> to vector<52x128xbf16>
    %c3 = arith.constant 3 : index
    %c0_12 = arith.constant 0 : index
    %c0_13 = arith.constant 0 : index
    %18 = vector.load %arg2[%c3, %c0_12, %c0_13] : memref<5x128x384xbf16, #tpu.memory_space<vmem>>, vector<1x128x384xbf16>
    %19 = vector.shape_cast %18 : vector<1x128x384xbf16> to vector<128x384xbf16>
    %cst_14 = arith.constant dense<0.000000e+00> : vector<52x384xf32>
    %20 = tpu.matmul %17, %19, %cst_14 {dimension_numbers = #tpu.dot_dimension_numbers<[1], [0], [0], [1], [0, 0, 1, 1], [], []>} : vector<52x128xbf16>, vector<128x384xbf16>, vector<52x384xf32> -> vector<52x384xf32>
    %21 = arith.addf %16, %20 : vector<52x384xf32>
    %22 = vector.extract_strided_slice %1 {offsets = [8, 0], sizes = [52, 128], strides = [1, 1]} : vector<60x128xbf16> to vector<52x128xbf16>
    %c4 = arith.constant 4 : index
    %c0_15 = arith.constant 0 : index
    %c0_16 = arith.constant 0 : index
    %23 = vector.load %arg2[%c4, %c0_15, %c0_16] : memref<5x128x384xbf16, #tpu.memory_space<vmem>>, vector<1x128x384xbf16>
    %24 = vector.shape_cast %23 : vector<1x128x384xbf16> to vector<128x384xbf16>
    %cst_17 = arith.constant dense<0.000000e+00> : vector<52x384xf32>
    %25 = tpu.matmul %22, %24, %cst_17 {dimension_numbers = #tpu.dot_dimension_numbers<[1], [0], [0], [1], [0, 0, 1, 1], [], []>} : vector<52x128xbf16>, vector<128x384xbf16>, vector<52x384xf32> -> vector<52x384xf32>
    %26 = arith.addf %21, %25 : vector<52x384xf32>
    %c0_18 = arith.constant 0 : index
    %c0_19 = arith.constant 0 : index
    %27 = vector.load %arg3[%c0_18, %c0_19] : memref<1x384xf32, #tpu.memory_space<vmem>>, vector<1x384xf32>
    %28 = vector.broadcast %27 : vector<1x384xf32> to vector<52x384xf32>
    %29 = arith.addf %26, %28 : vector<52x384xf32>
    %cst_20 = arith.constant 0.000000e+00 : f32
    %30 = vector.broadcast %cst_20 : f32 to vector<52x384xf32>
    %31 = arith.maximumf %29, %30 : vector<52x384xf32>
    %32 = tpu.concatenate %2, %31, %2 in 0 : vector<2x384xf32>, vector<52x384xf32>, vector<2x384xf32> -> vector<56x384xf32>
    %33 = arith.truncf %32 : vector<56x384xf32> to vector<56x384xbf16>
    %34 = vector.extract_strided_slice %33 {offsets = [0, 0], sizes = [48, 384], strides = [1, 1]} : vector<56x384xbf16> to vector<48x384xbf16>
    %c0_21 = arith.constant 0 : index
    %c0_22 = arith.constant 0 : index
    %c0_23 = arith.constant 0 : index
    %35 = vector.load %arg4[%c0_21, %c0_22, %c0_23] : memref<5x384x384xbf16, #tpu.memory_space<vmem>>, vector<1x384x384xbf16>
    %36 = vector.shape_cast %35 : vector<1x384x384xbf16> to vector<384x384xbf16>
    %cst_24 = arith.constant dense<0.000000e+00> : vector<48x384xf32>
    %37 = tpu.matmul %34, %36, %cst_24 {dimension_numbers = #tpu.dot_dimension_numbers<[1], [0], [0], [1], [0, 0, 1, 1], [], []>} : vector<48x384xbf16>, vector<384x384xbf16>, vector<48x384xf32> -> vector<48x384xf32>
    %38 = vector.extract_strided_slice %33 {offsets = [2, 0], sizes = [48, 384], strides = [1, 1]} : vector<56x384xbf16> to vector<48x384xbf16>
    %c1_25 = arith.constant 1 : index
    %c0_26 = arith.constant 0 : index
    %c0_27 = arith.constant 0 : index
    %39 = vector.load %arg4[%c1_25, %c0_26, %c0_27] : memref<5x384x384xbf16, #tpu.memory_space<vmem>>, vector<1x384x384xbf16>
    %40 = vector.shape_cast %39 : vector<1x384x384xbf16> to vector<384x384xbf16>
    %cst_28 = arith.constant dense<0.000000e+00> : vector<48x384xf32>
    %41 = tpu.matmul %38, %40, %cst_28 {dimension_numbers = #tpu.dot_dimension_numbers<[1], [0], [0], [1], [0, 0, 1, 1], [], []>} : vector<48x384xbf16>, vector<384x384xbf16>, vector<48x384xf32> -> vector<48x384xf32>
    %42 = arith.addf %37, %41 : vector<48x384xf32>
    %43 = vector.extract_strided_slice %33 {offsets = [4, 0], sizes = [48, 384], strides = [1, 1]} : vector<56x384xbf16> to vector<48x384xbf16>
    %c2_29 = arith.constant 2 : index
    %c0_30 = arith.constant 0 : index
    %c0_31 = arith.constant 0 : index
    %44 = vector.load %arg4[%c2_29, %c0_30, %c0_31] : memref<5x384x384xbf16, #tpu.memory_space<vmem>>, vector<1x384x384xbf16>
    %45 = vector.shape_cast %44 : vector<1x384x384xbf16> to vector<384x384xbf16>
    %cst_32 = arith.constant dense<0.000000e+00> : vector<48x384xf32>
    %46 = tpu.matmul %43, %45, %cst_32 {dimension_numbers = #tpu.dot_dimension_numbers<[1], [0], [0], [1], [0, 0, 1, 1], [], []>} : vector<48x384xbf16>, vector<384x384xbf16>, vector<48x384xf32> -> vector<48x384xf32>
    %47 = arith.addf %42, %46 : vector<48x384xf32>
    %48 = vector.extract_strided_slice %33 {offsets = [6, 0], sizes = [48, 384], strides = [1, 1]} : vector<56x384xbf16> to vector<48x384xbf16>
    %c3_33 = arith.constant 3 : index
    %c0_34 = arith.constant 0 : index
    %c0_35 = arith.constant 0 : index
    %49 = vector.load %arg4[%c3_33, %c0_34, %c0_35] : memref<5x384x384xbf16, #tpu.memory_space<vmem>>, vector<1x384x384xbf16>
    %50 = vector.shape_cast %49 : vector<1x384x384xbf16> to vector<384x384xbf16>
    %cst_36 = arith.constant dense<0.000000e+00> : vector<48x384xf32>
    %51 = tpu.matmul %48, %50, %cst_36 {dimension_numbers = #tpu.dot_dimension_numbers<[1], [0], [0], [1], [0, 0, 1, 1], [], []>} : vector<48x384xbf16>, vector<384x384xbf16>, vector<48x384xf32> -> vector<48x384xf32>
    %52 = arith.addf %47, %51 : vector<48x384xf32>
    %53 = vector.extract_strided_slice %33 {offsets = [8, 0], sizes = [48, 384], strides = [1, 1]} : vector<56x384xbf16> to vector<48x384xbf16>
    %c4_37 = arith.constant 4 : index
    %c0_38 = arith.constant 0 : index
    %c0_39 = arith.constant 0 : index
    %54 = vector.load %arg4[%c4_37, %c0_38, %c0_39] : memref<5x384x384xbf16, #tpu.memory_space<vmem>>, vector<1x384x384xbf16>
    %55 = vector.shape_cast %54 : vector<1x384x384xbf16> to vector<384x384xbf16>
    %cst_40 = arith.constant dense<0.000000e+00> : vector<48x384xf32>
    %56 = tpu.matmul %53, %55, %cst_40 {dimension_numbers = #tpu.dot_dimension_numbers<[1], [0], [0], [1], [0, 0, 1, 1], [], []>} : vector<48x384xbf16>, vector<384x384xbf16>, vector<48x384xf32> -> vector<48x384xf32>
    %57 = arith.addf %52, %56 : vector<48x384xf32>
    %c0_41 = arith.constant 0 : index
    %c0_42 = arith.constant 0 : index
    %58 = vector.load %arg5[%c0_41, %c0_42] : memref<1x384xf32, #tpu.memory_space<vmem>>, vector<1x384xf32>
    %59 = vector.broadcast %58 : vector<1x384xf32> to vector<48x384xf32>
    %60 = arith.addf %57, %59 : vector<48x384xf32>
    %cst_43 = arith.constant 0.000000e+00 : f32
    %61 = vector.broadcast %cst_43 : f32 to vector<48x384xf32>
    %62 = arith.maximumf %60, %61 : vector<48x384xf32>
    %63 = arith.truncf %62 : vector<48x384xf32> to vector<48x384xbf16>
    %c0_44 = arith.constant 0 : index
    %c0_45 = arith.constant 0 : index
    %c0_46 = arith.constant 0 : index
    %64 = vector.load %arg6[%c0_44, %c0_45, %c0_46] : memref<2x384x256xbf16, #tpu.memory_space<vmem>>, vector<1x384x256xbf16>
    %65 = vector.shape_cast %64 : vector<1x384x256xbf16> to vector<384x256xbf16>
    %cst_47 = arith.constant dense<0.000000e+00> : vector<48x256xf32>
    %66 = tpu.matmul %63, %65, %cst_47 {dimension_numbers = #tpu.dot_dimension_numbers<[1], [0], [0], [1], [0, 0, 1, 1], [], []>} : vector<48x384xbf16>, vector<384x256xbf16>, vector<48x256xf32> -> vector<48x256xf32>
    %c1_48 = arith.constant 1 : index
    %c0_49 = arith.constant 0 : index
    %c0_50 = arith.constant 0 : index
    %67 = vector.load %arg6[%c1_48, %c0_49, %c0_50] : memref<2x384x256xbf16, #tpu.memory_space<vmem>>, vector<1x384x256xbf16>
    %68 = vector.shape_cast %67 : vector<1x384x256xbf16> to vector<384x256xbf16>
    %cst_51 = arith.constant dense<0.000000e+00> : vector<48x256xf32>
    %69 = tpu.matmul %63, %68, %cst_51 {dimension_numbers = #tpu.dot_dimension_numbers<[1], [0], [0], [1], [0, 0, 1, 1], [], []>} : vector<48x384xbf16>, vector<384x256xbf16>, vector<48x256xf32> -> vector<48x256xf32>
    %70 = arith.maximumf %66, %69 : vector<48x256xf32>
    %71 = vector.extract_strided_slice %70 {offsets = [0, 0], sizes = [46, 256], strides = [1, 1]} : vector<48x256xf32> to vector<46x256xf32>
    %72 = vector.extract_strided_slice %70 {offsets = [2, 0], sizes = [46, 256], strides = [1, 1]} : vector<48x256xf32> to vector<46x256xf32>
    %73 = arith.maximumf %71, %72 : vector<46x256xf32>
    %74 = arith.truncf %73 : vector<46x256xf32> to vector<46x256xbf16>
    %c0_52 = arith.constant 0 : index
    %c0_53 = arith.constant 0 : index
    %75 = vector.load %arg7[%c0_52, %c0_53] : memref<28x46xbf16, #tpu.memory_space<vmem>>, vector<28x46xbf16>
    %cst_54 = arith.constant dense<0.000000e+00> : vector<28x256xf32>
    %76 = tpu.matmul %75, %74, %cst_54 {dimension_numbers = #tpu.dot_dimension_numbers<[1], [0], [0], [1], [0, 0, 1, 1], [], []>} : vector<28x46xbf16>, vector<46x256xbf16>, vector<28x256xf32> -> vector<28x256xf32>
    %77 = arith.truncf %76 : vector<28x256xf32> to vector<28x256xbf16>
    %78 = vector.extract_strided_slice %77 {offsets = [0, 0], sizes = [20, 256], strides = [1, 1]} : vector<28x256xbf16> to vector<20x256xbf16>
    %c0_55 = arith.constant 0 : index
    %c0_56 = arith.constant 0 : index
    %c0_57 = arith.constant 0 : index
    %79 = vector.load %arg8[%c0_55, %c0_56, %c0_57] : memref<5x256x384xbf16, #tpu.memory_space<vmem>>, vector<1x256x384xbf16>
    %80 = vector.shape_cast %79 : vector<1x256x384xbf16> to vector<256x384xbf16>
    %cst_58 = arith.constant dense<0.000000e+00> : vector<20x384xf32>
    %81 = tpu.matmul %78, %80, %cst_58 {dimension_numbers = #tpu.dot_dimension_numbers<[1], [0], [0], [1], [0, 0, 1, 1], [], []>} : vector<20x256xbf16>, vector<256x384xbf16>, vector<20x384xf32> -> vector<20x384xf32>
    %82 = vector.extract_strided_slice %77 {offsets = [2, 0], sizes = [20, 256], strides = [1, 1]} : vector<28x256xbf16> to vector<20x256xbf16>
    %c1_59 = arith.constant 1 : index
    %c0_60 = arith.constant 0 : index
    %c0_61 = arith.constant 0 : index
    %83 = vector.load %arg8[%c1_59, %c0_60, %c0_61] : memref<5x256x384xbf16, #tpu.memory_space<vmem>>, vector<1x256x384xbf16>
    %84 = vector.shape_cast %83 : vector<1x256x384xbf16> to vector<256x384xbf16>
    %cst_62 = arith.constant dense<0.000000e+00> : vector<20x384xf32>
    %85 = tpu.matmul %82, %84, %cst_62 {dimension_numbers = #tpu.dot_dimension_numbers<[1], [0], [0], [1], [0, 0, 1, 1], [], []>} : vector<20x256xbf16>, vector<256x384xbf16>, vector<20x384xf32> -> vector<20x384xf32>
    %86 = arith.addf %81, %85 : vector<20x384xf32>
    %87 = vector.extract_strided_slice %77 {offsets = [4, 0], sizes = [20, 256], strides = [1, 1]} : vector<28x256xbf16> to vector<20x256xbf16>
    %c2_63 = arith.constant 2 : index
    %c0_64 = arith.constant 0 : index
    %c0_65 = arith.constant 0 : index
    %88 = vector.load %arg8[%c2_63, %c0_64, %c0_65] : memref<5x256x384xbf16, #tpu.memory_space<vmem>>, vector<1x256x384xbf16>
    %89 = vector.shape_cast %88 : vector<1x256x384xbf16> to vector<256x384xbf16>
    %cst_66 = arith.constant dense<0.000000e+00> : vector<20x384xf32>
    %90 = tpu.matmul %87, %89, %cst_66 {dimension_numbers = #tpu.dot_dimension_numbers<[1], [0], [0], [1], [0, 0, 1, 1], [], []>} : vector<20x256xbf16>, vector<256x384xbf16>, vector<20x384xf32> -> vector<20x384xf32>
    %91 = arith.addf %86, %90 : vector<20x384xf32>
    %92 = vector.extract_strided_slice %77 {offsets = [6, 0], sizes = [20, 256], strides = [1, 1]} : vector<28x256xbf16> to vector<20x256xbf16>
    %c3_67 = arith.constant 3 : index
    %c0_68 = arith.constant 0 : index
    %c0_69 = arith.constant 0 : index
    %93 = vector.load %arg8[%c3_67, %c0_68, %c0_69] : memref<5x256x384xbf16, #tpu.memory_space<vmem>>, vector<1x256x384xbf16>
    %94 = vector.shape_cast %93 : vector<1x256x384xbf16> to vector<256x384xbf16>
    %cst_70 = arith.constant dense<0.000000e+00> : vector<20x384xf32>
    %95 = tpu.matmul %92, %94, %cst_70 {dimension_numbers = #tpu.dot_dimension_numbers<[1], [0], [0], [1], [0, 0, 1, 1], [], []>} : vector<20x256xbf16>, vector<256x384xbf16>, vector<20x384xf32> -> vector<20x384xf32>
    %96 = arith.addf %91, %95 : vector<20x384xf32>
    %97 = vector.extract_strided_slice %77 {offsets = [8, 0], sizes = [20, 256], strides = [1, 1]} : vector<28x256xbf16> to vector<20x256xbf16>
    %c4_71 = arith.constant 4 : index
    %c0_72 = arith.constant 0 : index
    %c0_73 = arith.constant 0 : index
    %98 = vector.load %arg8[%c4_71, %c0_72, %c0_73] : memref<5x256x384xbf16, #tpu.memory_space<vmem>>, vector<1x256x384xbf16>
    %99 = vector.shape_cast %98 : vector<1x256x384xbf16> to vector<256x384xbf16>
    %cst_74 = arith.constant dense<0.000000e+00> : vector<20x384xf32>
    %100 = tpu.matmul %97, %99, %cst_74 {dimension_numbers = #tpu.dot_dimension_numbers<[1], [0], [0], [1], [0, 0, 1, 1], [], []>} : vector<20x256xbf16>, vector<256x384xbf16>, vector<20x384xf32> -> vector<20x384xf32>
    %101 = arith.addf %96, %100 : vector<20x384xf32>
    %c0_75 = arith.constant 0 : index
    %c0_76 = arith.constant 0 : index
    %102 = vector.load %arg9[%c0_75, %c0_76] : memref<1x384xf32, #tpu.memory_space<vmem>>, vector<1x384xf32>
    %103 = vector.broadcast %102 : vector<1x384xf32> to vector<20x384xf32>
    %104 = arith.addf %101, %103 : vector<20x384xf32>
    %cst_77 = arith.constant 0.000000e+00 : f32
    %105 = vector.broadcast %cst_77 : f32 to vector<20x384xf32>
    %106 = arith.maximumf %104, %105 : vector<20x384xf32>
    %107 = tpu.concatenate %2, %106, %2 in 0 : vector<2x384xf32>, vector<20x384xf32>, vector<2x384xf32> -> vector<24x384xf32>
    %108 = arith.truncf %107 : vector<24x384xf32> to vector<24x384xbf16>
    %109 = vector.extract_strided_slice %108 {offsets = [0, 0], sizes = [16, 384], strides = [1, 1]} : vector<24x384xbf16> to vector<16x384xbf16>
    %c0_78 = arith.constant 0 : index
    %c0_79 = arith.constant 0 : index
    %c0_80 = arith.constant 0 : index
    %110 = vector.load %arg10[%c0_78, %c0_79, %c0_80] : memref<5x384x256xbf16, #tpu.memory_space<vmem>>, vector<1x384x256xbf16>
    %111 = vector.shape_cast %110 : vector<1x384x256xbf16> to vector<384x256xbf16>
    %cst_81 = arith.constant dense<0.000000e+00> : vector<16x256xf32>
    %112 = tpu.matmul %109, %111, %cst_81 {dimension_numbers = #tpu.dot_dimension_numbers<[1], [0], [0], [1], [0, 0, 1, 1], [], []>} : vector<16x384xbf16>, vector<384x256xbf16>, vector<16x256xf32> -> vector<16x256xf32>
    %113 = vector.extract_strided_slice %108 {offsets = [2, 0], sizes = [16, 384], strides = [1, 1]} : vector<24x384xbf16> to vector<16x384xbf16>
    %c1_82 = arith.constant 1 : index
    %c0_83 = arith.constant 0 : index
    %c0_84 = arith.constant 0 : index
    %114 = vector.load %arg10[%c1_82, %c0_83, %c0_84] : memref<5x384x256xbf16, #tpu.memory_space<vmem>>, vector<1x384x256xbf16>
    %115 = vector.shape_cast %114 : vector<1x384x256xbf16> to vector<384x256xbf16>
    %cst_85 = arith.constant dense<0.000000e+00> : vector<16x256xf32>
    %116 = tpu.matmul %113, %115, %cst_85 {dimension_numbers = #tpu.dot_dimension_numbers<[1], [0], [0], [1], [0, 0, 1, 1], [], []>} : vector<16x384xbf16>, vector<384x256xbf16>, vector<16x256xf32> -> vector<16x256xf32>
    %117 = arith.addf %112, %116 : vector<16x256xf32>
    %118 = vector.extract_strided_slice %108 {offsets = [4, 0], sizes = [16, 384], strides = [1, 1]} : vector<24x384xbf16> to vector<16x384xbf16>
    %c2_86 = arith.constant 2 : index
    %c0_87 = arith.constant 0 : index
    %c0_88 = arith.constant 0 : index
    %119 = vector.load %arg10[%c2_86, %c0_87, %c0_88] : memref<5x384x256xbf16, #tpu.memory_space<vmem>>, vector<1x384x256xbf16>
    %120 = vector.shape_cast %119 : vector<1x384x256xbf16> to vector<384x256xbf16>
    %cst_89 = arith.constant dense<0.000000e+00> : vector<16x256xf32>
    %121 = tpu.matmul %118, %120, %cst_89 {dimension_numbers = #tpu.dot_dimension_numbers<[1], [0], [0], [1], [0, 0, 1, 1], [], []>} : vector<16x384xbf16>, vector<384x256xbf16>, vector<16x256xf32> -> vector<16x256xf32>
    %122 = arith.addf %117, %121 : vector<16x256xf32>
    %123 = vector.extract_strided_slice %108 {offsets = [6, 0], sizes = [16, 384], strides = [1, 1]} : vector<24x384xbf16> to vector<16x384xbf16>
    %c3_90 = arith.constant 3 : index
    %c0_91 = arith.constant 0 : index
    %c0_92 = arith.constant 0 : index
    %124 = vector.load %arg10[%c3_90, %c0_91, %c0_92] : memref<5x384x256xbf16, #tpu.memory_space<vmem>>, vector<1x384x256xbf16>
    %125 = vector.shape_cast %124 : vector<1x384x256xbf16> to vector<384x256xbf16>
    %cst_93 = arith.constant dense<0.000000e+00> : vector<16x256xf32>
    %126 = tpu.matmul %123, %125, %cst_93 {dimension_numbers = #tpu.dot_dimension_numbers<[1], [0], [0], [1], [0, 0, 1, 1], [], []>} : vector<16x384xbf16>, vector<384x256xbf16>, vector<16x256xf32> -> vector<16x256xf32>
    %127 = arith.addf %122, %126 : vector<16x256xf32>
    %128 = vector.extract_strided_slice %108 {offsets = [8, 0], sizes = [16, 384], strides = [1, 1]} : vector<24x384xbf16> to vector<16x384xbf16>
    %c4_94 = arith.constant 4 : index
    %c0_95 = arith.constant 0 : index
    %c0_96 = arith.constant 0 : index
    %129 = vector.load %arg10[%c4_94, %c0_95, %c0_96] : memref<5x384x256xbf16, #tpu.memory_space<vmem>>, vector<1x384x256xbf16>
    %130 = vector.shape_cast %129 : vector<1x384x256xbf16> to vector<384x256xbf16>
    %cst_97 = arith.constant dense<0.000000e+00> : vector<16x256xf32>
    %131 = tpu.matmul %128, %130, %cst_97 {dimension_numbers = #tpu.dot_dimension_numbers<[1], [0], [0], [1], [0, 0, 1, 1], [], []>} : vector<16x384xbf16>, vector<384x256xbf16>, vector<16x256xf32> -> vector<16x256xf32>
    %132 = arith.addf %127, %131 : vector<16x256xf32>
    %c0_98 = arith.constant 0 : index
    %c0_99 = arith.constant 0 : index
    %133 = vector.load %arg11[%c0_98, %c0_99] : memref<1x256xf32, #tpu.memory_space<vmem>>, vector<1x256xf32>
    %134 = vector.broadcast %133 : vector<1x256xf32> to vector<16x256xf32>
    %135 = arith.addf %132, %134 : vector<16x256xf32>
    %cst_100 = arith.constant 0.000000e+00 : f32
    %136 = vector.broadcast %cst_100 : f32 to vector<16x256xf32>
    %137 = arith.maximumf %135, %136 : vector<16x256xf32>
    %138 = arith.truncf %137 : vector<16x256xf32> to vector<16x256xbf16>
    %c0_101 = arith.constant 0 : index
    %c0_102 = arith.constant 0 : index
    %139 = vector.load %arg12[%c0_101, %c0_102] : memref<256x128xbf16, #tpu.memory_space<vmem>>, vector<256x128xbf16>
    %cst_103 = arith.constant dense<0.000000e+00> : vector<16x128xf32>
    %140 = tpu.matmul %138, %139, %cst_103 {dimension_numbers = #tpu.dot_dimension_numbers<[1], [0], [0], [1], [0, 0, 1, 1], [], []>} : vector<16x256xbf16>, vector<256x128xbf16>, vector<16x128xf32> -> vector<16x128xf32>
    %c0_104 = arith.constant 0 : index
    %c0_105 = arith.constant 0 : index
    %141 = vector.load %arg13[%c0_104, %c0_105] : memref<16x128xf32, #tpu.memory_space<vmem>>, vector<16x128xf32>
    %142 = arith.mulf %140, %141 : vector<16x128xf32>
    %c0_106 = arith.constant 0 : index
    %c0_107 = arith.constant 0 : index
    %143 = vector.load %arg14[%c0_106, %c0_107] : memref<8x16xf32, #tpu.memory_space<vmem>>, vector<8x16xf32>
    %cst_108 = arith.constant dense<0.000000e+00> : vector<8x128xf32>
    %144 = tpu.matmul %143, %142, %cst_108 {dimension_numbers = #tpu.dot_dimension_numbers<[1], [0], [0], [1], [0, 0, 1, 1], [], []>} : vector<8x16xf32>, vector<16x128xf32>, vector<8x128xf32> -> vector<8x128xf32>
    %c0_109 = arith.constant 0 : index
    %c0_110 = arith.constant 0 : index
    %145 = vector.load %arg15[%c0_109, %c0_110] : memref<128x128xf32, #tpu.memory_space<vmem>>, vector<128x128xf32>
    %cst_111 = arith.constant dense<0.000000e+00> : vector<8x128xf32>
    %146 = tpu.matmul %144, %145, %cst_111 {dimension_numbers = #tpu.dot_dimension_numbers<[1], [0], [0], [1], [0, 0, 1, 1], [], []>} : vector<8x128xf32>, vector<128x128xf32>, vector<8x128xf32> -> vector<8x128xf32>
    %c0_112 = arith.constant 0 : index
    %c0_113 = arith.constant 0 : index
    %147 = vector.load %arg16[%c0_112, %c0_113] : memref<1x128xf32, #tpu.memory_space<vmem>>, vector<1x128xf32>
    %148 = vector.broadcast %147 : vector<1x128xf32> to vector<8x128xf32>
    %149 = arith.addf %146, %148 : vector<8x128xf32>
    %c0_114 = arith.constant 0 : index
    %c0_115 = arith.constant 0 : index
    %c0_116 = arith.constant 0 : index
    %150 = vector.load %arg17[%c0_114, %c0_115, %c0_116] : memref<1x8x128xf32, #tpu.memory_space<vmem>>, vector<1x8x128xf32>
    %151 = vector.shape_cast %150 : vector<1x8x128xf32> to vector<8x128xf32>
    %152 = vector.shape_cast %149 : vector<8x128xf32> to vector<1x8x128xf32>
    tpu.vector_store %arg17[%c0_114, %c0_115, %c0_116], %152 {strides = array<i32>} : memref<1x8x128xf32, #tpu.memory_space<vmem>>, vector<1x8x128xf32>,
    return
  }
  func.func @transform_0(%arg0: i32) -> (i32, i32, i32) {
    %c0_i32 = arith.constant 0 : i32
    %c0_i32_0 = arith.constant 0 : i32
    %c0_i32_1 = arith.constant 0 : i32
    return %arg0, %c0_i32, %c0_i32_0 : i32, i32, i32
  }
  func.func @transform_1(%arg0: i32) -> (i32, i32, i32) {
    %c0_i32 = arith.constant 0 : i32
    %c0_i32_0 = arith.constant 0 : i32
    %c0_i32_1 = arith.constant 0 : i32
    %c0_i32_2 = arith.constant 0 : i32
    return %c0_i32, %c0_i32_0, %c0_i32_1 : i32, i32, i32
  }
  func.func @transform_2(%arg0: i32) -> (i32, i32) {
    %c0_i32 = arith.constant 0 : i32
    %c0_i32_0 = arith.constant 0 : i32
    %c0_i32_1 = arith.constant 0 : i32
    return %c0_i32, %c0_i32_0 : i32, i32
  }
  func.func @transform_3(%arg0: i32) -> (i32, i32, i32) {
    %c0_i32 = arith.constant 0 : i32
    %c0_i32_0 = arith.constant 0 : i32
    %c0_i32_1 = arith.constant 0 : i32
    %c0_i32_2 = arith.constant 0 : i32
    return %c0_i32, %c0_i32_0, %c0_i32_1 : i32, i32, i32
  }
  func.func @transform_4(%arg0: i32) -> (i32, i32) {
    %c0_i32 = arith.constant 0 : i32
    %c0_i32_0 = arith.constant 0 : i32
    %c0_i32_1 = arith.constant 0 : i32
    return %c0_i32, %c0_i32_0 : i32, i32
  }
  func.func @transform_5(%arg0: i32) -> (i32, i32, i32) {
    %c0_i32 = arith.constant 0 : i32
    %c0_i32_0 = arith.constant 0 : i32
    %c0_i32_1 = arith.constant 0 : i32
    %c0_i32_2 = arith.constant 0 : i32
    return %c0_i32, %c0_i32_0, %c0_i32_1 : i32, i32, i32
  }
  func.func @transform_6(%arg0: i32) -> (i32, i32) {
    %c0_i32 = arith.constant 0 : i32
    %c0_i32_0 = arith.constant 0 : i32
    %c0_i32_1 = arith.constant 0 : i32
    return %c0_i32, %c0_i32_0 : i32, i32
  }
  func.func @transform_7(%arg0: i32) -> (i32, i32, i32) {
    %c0_i32 = arith.constant 0 : i32
    %c0_i32_0 = arith.constant 0 : i32
    %c0_i32_1 = arith.constant 0 : i32
    %c0_i32_2 = arith.constant 0 : i32
    return %c0_i32, %c0_i32_0, %c0_i32_1 : i32, i32, i32
  }
  func.func @transform_8(%arg0: i32) -> (i32, i32) {
    %c0_i32 = arith.constant 0 : i32
    %c0_i32_0 = arith.constant 0 : i32
    %c0_i32_1 = arith.constant 0 : i32
    return %c0_i32, %c0_i32_0 : i32, i32
  }
  func.func @transform_9(%arg0: i32) -> (i32, i32, i32) {
    %c0_i32 = arith.constant 0 : i32
    %c0_i32_0 = arith.constant 0 : i32
    %c0_i32_1 = arith.constant 0 : i32
    %c0_i32_2 = arith.constant 0 : i32
    return %c0_i32, %c0_i32_0, %c0_i32_1 : i32, i32, i32
  }
  func.func @transform_10(%arg0: i32) -> (i32, i32) {
    %c0_i32 = arith.constant 0 : i32
    %c0_i32_0 = arith.constant 0 : i32
    %c0_i32_1 = arith.constant 0 : i32
    return %c0_i32, %c0_i32_0 : i32, i32
  }
  func.func @transform_11(%arg0: i32) -> (i32, i32) {
    %c0_i32 = arith.constant 0 : i32
    %c0_i32_0 = arith.constant 0 : i32
    %c0_i32_1 = arith.constant 0 : i32
    return %c0_i32, %c0_i32_0 : i32, i32
  }
  func.func @transform_12(%arg0: i32) -> (i32, i32) {
    %c0_i32 = arith.constant 0 : i32
    %c0_i32_0 = arith.constant 0 : i32
    %c0_i32_1 = arith.constant 0 : i32
    return %c0_i32, %c0_i32_0 : i32, i32
  }
  func.func @transform_13(%arg0: i32) -> (i32, i32) {
    %c0_i32 = arith.constant 0 : i32
    %c0_i32_0 = arith.constant 0 : i32
    %c0_i32_1 = arith.constant 0 : i32
    return %c0_i32, %c0_i32_0 : i32, i32
  }
  func.func @transform_14(%arg0: i32) -> (i32, i32) {
    %c0_i32 = arith.constant 0 : i32
    %c0_i32_0 = arith.constant 0 : i32
    %c0_i32_1 = arith.constant 0 : i32
    return %c0_i32, %c0_i32_0 : i32, i32
  }
  func.func @transform_15(%arg0: i32) -> (i32, i32) {
    %c0_i32 = arith.constant 0 : i32
    %c0_i32_0 = arith.constant 0 : i32
    %c0_i32_1 = arith.constant 0 : i32
    return %c0_i32, %c0_i32_0 : i32, i32
  }
  func.func @transform_16(%arg0: i32) -> (i32, i32, i32) {
    %c0_i32 = arith.constant 0 : i32
    %c0_i32_0 = arith.constant 0 : i32
    %c0_i32_1 = arith.constant 0 : i32
    return %arg0, %c0_i32, %c0_i32_0 : i32, i32, i32
  }
}

</mosaic_0001>

<bundles_post_ra>
// kernel: network_forward.1
= control target key start
LH: loop header
LB: loop body
LE: loop exit
PB: predicated region body
PF: predicated region fallthrough
CT: control target
= control target key end

     0   :  { %s16759_s0 = inlined_call_operand.vmem [shape: bf16[1,60,128], index: 0, kind: input, shape index: {}]   ;;  %s16760_s1 = inlined_call_operand.hbm [shape: bf16[5,128,384], index: 1, kind: input, shape index: {}]   ;;  %s16761_s2 = inlined_call_operand.hbm [shape: f32[1,384], index: 2, kind: input, shape index: {}]   ;;  %s16762_s3 = inlined_call_operand.hbm [shape: bf16[5,384,384], index: 3, kind: input, shape index: {}]   ;;  %s16763_s4 = inlined_call_operand.hbm [shape: f32[1,384], index: 4, kind: input, shape index: {}]   ;;  %s16764_s5 = inlined_call_operand.hbm [shape: bf16[2,384,256], index: 5, kind: input, shape index: {}]   ;;  %s16765_s6 = inlined_call_operand.hbm [shape: bf16[28,46], index: 6, kind: input, shape index: {}]   ;;  %s16766_s7 = inlined_call_operand.hbm [shape: bf16[5,256,384], index: 7, kind: input, shape index: {}]   ;;  %s16767_s8 = inlined_call_operand.hbm [shape: f32[1,384], index: 8, kind: input, shape index: {}]   ;;  %s16768_s9 = inlined_call_operand.hbm [shape: bf16[5,384,256], index: 9, kind: input, shape index: {}]   ;;  %s16769_s10 = inlined_call_operand.hbm [shape: f32[1,256], index: 10, kind: input, shape index: {}]   ;;  %s16770_s11 = inlined_call_operand.hbm [shape: bf16[256,128], index: 11, kind: input, shape index: {}]   ;;  %s16771_s12 = inlined_call_operand.hbm [shape: f32[16,128], index: 12, kind: input, shape index: {}]   ;;  %s16772_s13 = inlined_call_operand.hbm [shape: f32[8,16], index: 13, kind: input, shape index: {}]   ;;  %s16773_s14 = inlined_call_operand.hbm [shape: f32[128,128], index: 14, kind: input, shape index: {}]   ;;  %s16774_s15 = inlined_call_operand.hbm [shape: f32[1,128], index: 15, kind: input, shape index: {}]   ;;  %s16775_s16 = inlined_call_operand.vmem [shape: f32[1,8,128], index: 16, kind: output, shape index: {}]  }
   0x1   :  { %16777 = sst [smem:[#allocation33_spill]] %s16759_s0 }
   0x2   :  { %21 = vsyncpa [#allocation3], 0 }
   0x3   :  { %22 = vsyncpa [#allocation5], 0 }
   0x4   :  { %23 = vsyncpa [#allocation8], 0 }
   0x5   :  { %24 = vsyncpa [#allocation11], 0 }
   0x6   :  { %25 = vsyncpa [#allocation14], 0 }
   0x7   :  { %26 = vsyncpa [#allocation17], 0 }
   0x8   :  { %27 = vsyncpa [#allocation20], 0 }
   0x9   :  { %28 = vsyncpa [#allocation23], 0  ;;  %s15464_s21 = smov [#allocation4]   ;;  %s15465_s23 = smov [#allocation7]  }
   0xa   :  { %s49_s22 = sshll.u32 %s15464_s21, 4  ;;  %s71_s24 = sshll.u32 %s15465_s23, 4  ;;  %s50_s22 = int_to_ptr.vmem [resolvable:$true] %s49_s22  ;;  %s72_s24 = int_to_ptr.vmem [resolvable:$true] %s71_s24 }
   0xb   :  { %s15118_s27 = scalar_lea.hbm %s16761_s2, 48 }
   0xc   :  { %p15119_p0 = scmp.ne.s32.totalorder %s16761_s2, %s15118_s27  ;;  %p15122_p1 = scmp.lt.u32.totalorder %s15118_s27, %s16761_s2 }
   0xe   :  { %p15124_p2 = pnand %p15122_p1, %p15119_p0 }
  0x10   :  { %15127 = shalt.err (!%p15124_p2)
}
  0x11   :  { %s15128_s17 = scalar_lea.vmem %s50_s22, 48  ;;  %s15132_s18 = scalar_lea.vmem %s50_s22, 64 }
  0x12   :  { %p15129_p3 = scmp.ne.s32.totalorder %s50_s22, %s15128_s17  ;;  %p15133_p4 = scmp.lt.s32.totalorder %s50_s22, %s50_s22 }
  0x13   :  { %p15134_p5 = scmp.lt.s32.totalorder %s15132_s18, %s15128_s17 }
  0x15   :  { %p15135_p6 = por %p15134_p5, %p15133_p4 }
  0x17   :  { %p15136_p7 = pnand %p15135_p6, %p15129_p3 }
  0x19   :  { %15139 = shalt.err (!%p15136_p7)
}
  0x1a   :  { %52 = dma.hbm_to_vmem [thread:$0]  %s16761_s2, 48, %s50_s22, [#allocation5]  }
  0x1b   :  { %s15140_s25 = scalar_lea.hbm %s16763_s4, 48 }
  0x1c   :  { %p15141_p8 = scmp.ne.s32.totalorder %s16763_s4, %s15140_s25  ;;  %p15144_p9 = scmp.lt.u32.totalorder %s15140_s25, %s16763_s4 }
  0x1e   :  { %p15146_p10 = pnand %p15144_p9, %p15141_p8 }
  0x20   :  { %15149 = shalt.err (!%p15146_p10)
}
  0x21   :  { %s15150_s30 = scalar_lea.vmem %s72_s24, 48  ;;  %s15154_s0 = scalar_lea.vmem %s72_s24, 64 }
  0x22   :  { %p15151_p11 = scmp.ne.s32.totalorder %s72_s24, %s15150_s30  ;;  %p15155_p12 = scmp.lt.s32.totalorder %s72_s24, %s72_s24 }
  0x23   :  { %p15156_p13 = scmp.lt.s32.totalorder %s15154_s0, %s15150_s30 }
  0x25   :  { %p15157_p0 = por %p15156_p13, %p15155_p12 }
  0x27   :  { %p15158_p1 = pnand %p15157_p0, %p15151_p11 }
  0x29   :  { %15161 = shalt.err (!%p15158_p1)
}
  0x2a   :  { %74 = dma.hbm_to_vmem [thread:$0]  %s16763_s4, 48, %s72_s24, [#allocation8]  }
  0x2b   :  { %s15466_s17 = smov [#allocation10]   ;;  %s15162_s21 = scalar_lea.hbm %s16765_s6, 256 }
  0x2c   :  { %s92_s18 = sshll.u32 %s15466_s17, 4  ;;  %p15163_p2 = scmp.ne.s32.totalorder %s16765_s6, %s15162_s21  ;;  %s93_s18 = int_to_ptr.vmem [resolvable:$true] %s92_s18 }
  0x2d   :  { %p15166_p3 = scmp.lt.u32.totalorder %s15162_s21, %s16765_s6 }
  0x2f   :  { %p15168_p4 = pnand %p15166_p3, %p15163_p2 }
  0x31   :  { %15171 = shalt.err (!%p15168_p4)
}
  0x32   :  { %s15172_s28 = scalar_lea.vmem %s93_s18, 256  ;;  %p15177_p6 = scmp.lt.s32.totalorder %s93_s18, %s93_s18 }
  0x33   :  { %p15173_p5 = scmp.ne.s32.totalorder %s93_s18, %s15172_s28  ;;  %p15178_p7 = scmp.lt.s32.totalorder %s15172_s28, %s15172_s28 }
  0x35   :  { %p15179_p8 = por %p15178_p7, %p15177_p6 }
  0x37   :  { %p15180_p9 = pnand %p15179_p8, %p15173_p5 }
  0x39   :  { %15183 = shalt.err (!%p15180_p9)
}
  0x3a   :  { %s15467_s4 = smov 64   ;;  %s15468_s24 = smov 4  }
  0x3b   :  { %98 = dma.hbm_to_vmem [thread:$0]  %s16765_s6, 256, %s93_s18, [#allocation11], %s15467_s4, %s15467_s4, %s15468_s24  }
  0x3c   :  { %s15469_s0 = smov [#allocation13]   ;;  %s15470_s22 = smov [#allocation16]  }
  0x3d   :  { %s117_s2 = sshll.u32 %s15469_s0, 4  ;;  %s139_s17 = sshll.u32 %s15470_s22, 4  ;;  %s118_s2 = int_to_ptr.vmem [resolvable:$true] %s117_s2  ;;  %s140_s17 = int_to_ptr.vmem [resolvable:$true] %s139_s17 }
  0x3e   :  { %s15184_s21 = scalar_lea.hbm %s16767_s8, 48 }
  0x3f   :  { %p15185_p10 = scmp.ne.s32.totalorder %s16767_s8, %s15184_s21  ;;  %p15188_p11 = scmp.lt.u32.totalorder %s15184_s21, %s16767_s8 }
  0x41   :  { %p15190_p12 = pnand %p15188_p11, %p15185_p10 }
  0x43   :  { %15193 = shalt.err (!%p15190_p12)
}
  0x44   :  { %s15194_s6 = scalar_lea.vmem %s118_s2, 48  ;;  %s15198_s18 = scalar_lea.vmem %s118_s2, 64 }
  0x45   :  { %p15195_p13 = scmp.ne.s32.totalorder %s118_s2, %s15194_s6  ;;  %p15199_p0 = scmp.lt.s32.totalorder %s118_s2, %s118_s2 }
  0x46   :  { %p15200_p1 = scmp.lt.s32.totalorder %s15198_s18, %s15194_s6 }
  0x48   :  { %p15201_p2 = por %p15200_p1, %p15199_p0 }
  0x4a   :  { %p15202_p3 = pnand %p15201_p2, %p15195_p13 }
  0x4c   :  { %15205 = shalt.err (!%p15202_p3)
}
  0x4d   :  { %120 = dma.hbm_to_vmem [thread:$0]  %s16767_s8, 48, %s118_s2, [#allocation14]  }
  0x4e   :  { %s15206_s22 = scalar_lea.hbm %s16769_s10, 32 }
  0x4f   :  { %p15207_p4 = scmp.ne.s32.totalorder %s16769_s10, %s15206_s22  ;;  %p15210_p5 = scmp.lt.u32.totalorder %s15206_s22, %s16769_s10 }
  0x51   :  { %p15212_p6 = pnand %p15210_p5, %p15207_p4 }
  0x53   :  { %15215 = shalt.err (!%p15212_p6)
}
  0x54   :  { %s15216_s25 = scalar_lea.vmem %s140_s17, 32  ;;  %p15221_p8 = scmp.lt.s32.totalorder %s140_s17, %s140_s17 }
  0x55   :  { %p15217_p7 = scmp.ne.s32.totalorder %s140_s17, %s15216_s25  ;;  %p15222_p9 = scmp.lt.s32.totalorder %s15216_s25, %s15216_s25 }
  0x57   :  { %p15223_p10 = por %p15222_p9, %p15221_p8 }
  0x59   :  { %p15224_p11 = pnand %p15223_p10, %p15217_p7 }
  0x5b   :  { %15227 = shalt.err (!%p15224_p11)
}
  0x5c   :  { %142 = dma.hbm_to_vmem [thread:$0]  %s16769_s10, 32, %s140_s17, [#allocation17]  }
  0x5d   :  { %s15471_s26 = smov [#allocation19]   ;;  %s15472_s6 = smov [#allocation22]  }
  0x5e   :  { %s160_s27 = sshll.u32 %s15471_s26, 4  ;;  %s182_s18 = sshll.u32 %s15472_s6, 4  ;;  %s161_s27 = int_to_ptr.vmem [resolvable:$true] %s160_s27  ;;  %s183_s18 = int_to_ptr.vmem [resolvable:$true] %s182_s18 }
  0x5f   :  { %s15228_s30 = scalar_lea.hbm %s16771_s12, 256 }
  0x60   :  { %p15229_p12 = scmp.ne.s32.totalorder %s16771_s12, %s15228_s30  ;;  %p15232_p13 = scmp.lt.u32.totalorder %s15228_s30, %s16771_s12 }
  0x62   :  { %p15234_p0 = pnand %p15232_p13, %p15229_p12 }
  0x64   :  { %15237 = shalt.err (!%p15234_p0)
}
  0x65   :  { %s15238_s10 = scalar_lea.vmem %s161_s27, 256  ;;  %p15243_p2 = scmp.lt.s32.totalorder %s161_s27, %s161_s27 }
  0x66   :  { %p15239_p1 = scmp.ne.s32.totalorder %s161_s27, %s15238_s10  ;;  %p15244_p3 = scmp.lt.s32.totalorder %s15238_s10, %s15238_s10 }
  0x68   :  { %p15245_p4 = por %p15244_p3, %p15243_p2 }
  0x6a   :  { %p15246_p5 = pnand %p15245_p4, %p15239_p1 }
  0x6c   :  { %15249 = shalt.err (!%p15246_p5)
}
  0x6d   :  { %s15473_s17 = smov 128   ;;  %s15474_s21 = smov 8  }
  0x6e   :  { %166 = dma.hbm_to_vmem [thread:$0]  %s16771_s12, 256, %s161_s27, [#allocation20], %s15473_s17, %s15473_s17, %s15474_s21  }
  0x6f   :  { %s15250_s26 = scalar_lea.hbm %s16773_s14, 2048 }
  0x70   :  { %p15251_p6 = scmp.ne.s32.totalorder %s16773_s14, %s15250_s26  ;;  %p15254_p7 = scmp.lt.u32.totalorder %s15250_s26, %s16773_s14 }
  0x72   :  { %p15256_p8 = pnand %p15254_p7, %p15251_p6 }
  0x74   :  { %15259 = shalt.err (!%p15256_p8)
}
  0x75   :  { %s15260_s0 = scalar_lea.vmem %s183_s18, 2048  ;;  %p15265_p10 = scmp.lt.s32.totalorder %s183_s18, %s183_s18 }
  0x76   :  { %p15261_p9 = scmp.ne.s32.totalorder %s183_s18, %s15260_s0  ;;  %p15266_p11 = scmp.lt.s32.totalorder %s15260_s0, %s15260_s0 }
  0x78   :  { %p15267_p12 = por %p15266_p11, %p15265_p10 }
  0x7a   :  { %p15268_p13 = pnand %p15267_p12, %p15261_p9 }
  0x7c   :  { %15271 = shalt.err (!%p15268_p13)
}
  0x7d   :  { %188 = dma.hbm_to_vmem [thread:$0]  %s16773_s14, 2048, %s183_s18, [#allocation23], %s15473_s17, %s15473_s17, %s15474_s21  }
  0x7e   :  { %s15475_s22 = smov [#allocation2]   ;;  %s15272_s23 = scalar_lea.hbm %s16760_s1, 15360 }
  0x7f   :  { %s36_s19 = sshll.u32 %s15475_s22, 4  ;;  %p15273_p0 = scmp.ne.s32.totalorder %s16760_s1, %s15272_s23  ;;  %s37_s19 = int_to_ptr.vmem [resolvable:$true] %s36_s19 }
  0x80   :  { %p15276_p1 = scmp.lt.u32.totalorder %s15272_s23, %s16760_s1 }
  0x82   :  { %p15278_p2 = pnand %p15276_p1, %p15273_p0 }
  0x84   :  { %15281 = shalt.err (!%p15278_p2)
}
  0x85   :  { %s15282_s6 = scalar_lea.vmem %s37_s19, 15360  ;;  %p15287_p4 = scmp.lt.s32.totalorder %s37_s19, %s37_s19 }
  0x86   :  { %p15283_p3 = scmp.ne.s32.totalorder %s37_s19, %s15282_s6  ;;  %p15288_p5 = scmp.lt.s32.totalorder %s15282_s6, %s15282_s6 }
  0x88   :  { %p15289_p6 = por %p15288_p5, %p15287_p4 }
  0x8a   :  { %p15290_p7 = pnand %p15289_p6, %p15283_p3 }
  0x8c   :  { %15293 = shalt.err (!%p15290_p7)
}
  0x8d   :  { %s15476_s14 = smov 192   ;;  %s15477_s18 = smov 12  }
  0x8e   :  { %42 = dma.hbm_to_vmem [thread:$0]  %s16760_s1, 15360, %s37_s19, [#allocation3], %s15476_s14, %s15476_s14, %s15477_s18  }
  0x8f   :  { %s15478_s30 = smov [#allocation6]   ;;  %s15479_s12 = smov [#allocation9]  }
  0x90   :  { %s58_s0 = sshll.u32 %s15478_s30, 4  ;;  %s80_s27 = sshll.u32 %s15479_s12, 4  ;;  %s59_s0 = int_to_ptr.vmem [resolvable:$true] %s58_s0  ;;  %s15683_s27 = int_to_ptr.vmem [resolvable:$true] %s80_s27 }
  0x91   :  { %s15294_s10 = scalar_lea.hbm %s16762_s3, 46080 }
  0x92   :  { %p15295_p8 = scmp.ne.s32.totalorder %s16762_s3, %s15294_s10  ;;  %p15298_p9 = scmp.lt.u32.totalorder %s15294_s10, %s16762_s3 }
  0x94   :  { %p15300_p10 = pnand %p15298_p9, %p15295_p8 }
  0x96   :  { %15303 = shalt.err (!%p15300_p10)
}
  0x97   :  { %s15304_s1 = scalar_lea.vmem %s59_s0, 46080  ;;  %p15309_p12 = scmp.lt.s32.totalorder %s59_s0, %s59_s0 }
  0x98   :  { %p15305_p11 = scmp.ne.s32.totalorder %s59_s0, %s15304_s1  ;;  %p15310_p13 = scmp.lt.s32.totalorder %s15304_s1, %s15304_s1 }
  0x9a   :  { %p15311_p0 = por %p15310_p13, %p15309_p12 }
  0x9c   :  { %p15312_p1 = pnand %p15311_p0, %p15305_p11 }
  0x9e   :  { %15315 = shalt.err (!%p15312_p1)
}
  0x9f   :  { %64 = dma.hbm_to_vmem [thread:$0]  %s16762_s3, 46080, %s59_s0, [#allocation5], %s15476_s14, %s15476_s14, %s15477_s18  }
  0xa0   :  { %s15316_s29 = scalar_lea.hbm %s16764_s5, 12288 }
  0xa1   :  { %p15317_p2 = scmp.ne.s32.totalorder %s16764_s5, %s15316_s29  ;;  %p15320_p3 = scmp.lt.u32.totalorder %s15316_s29, %s16764_s5 }
  0xa3   :  { %p15322_p4 = pnand %p15320_p3, %p15317_p2 }
  0xa5   :  { %15325 = shalt.err (!%p15322_p4)
}
  0xa6   :  { %s15326_s10 = scalar_lea.vmem %s15683_s27, 12288  ;;  %p15331_p6 = scmp.lt.s32.totalorder %s15683_s27, %s15683_s27 }
  0xa7   :  { %p15327_p5 = scmp.ne.s32.totalorder %s15683_s27, %s15326_s10  ;;  %p15332_p7 = scmp.lt.s32.totalorder %s15326_s10, %s15326_s10 }
  0xa9   :  { %p15333_p8 = por %p15332_p7, %p15331_p6 }
  0xab   :  { %p15334_p9 = pnand %p15333_p8, %p15327_p5 }
  0xad   :  { %15337 = shalt.err (!%p15334_p9)
}
  0xae   :  { %86 = dma.hbm_to_vmem [thread:$0]  %s16764_s5, 12288, %s15683_s27, [#allocation8], %s15473_s17, %s15473_s17, %s15474_s21  }
  0xaf   :  { %s15480_s23 = smov [#allocation12]   ;;  %s15481_s8 = smov [#allocation15]  }
  0xb0   :  { %s104_s25 = sshll.u32 %s15480_s23, 4  ;;  %s126_s2 = sshll.u32 %s15481_s8, 4  ;;  %s105_s25 = int_to_ptr.vmem [resolvable:$true] %s104_s25  ;;  %s15720_s2 = int_to_ptr.vmem [resolvable:$true] %s126_s2 }
  0xb1   :  { %s15338_s26 = scalar_lea.hbm %s16766_s7, 30720 }
  0xb2   :  { %p15339_p10 = scmp.ne.s32.totalorder %s16766_s7, %s15338_s26  ;;  %p15342_p11 = scmp.lt.u32.totalorder %s15338_s26, %s16766_s7 }
  0xb4   :  { %p15344_p12 = pnand %p15342_p11, %p15339_p10 }
  0xb6   :  { %15347 = shalt.err (!%p15344_p12)
}
  0xb7   :  { %s15348_s5 = scalar_lea.vmem %s105_s25, 30720  ;;  %p15353_p0 = scmp.lt.s32.totalorder %s105_s25, %s105_s25 }
  0xb8   :  { %p15349_p13 = scmp.ne.s32.totalorder %s105_s25, %s15348_s5  ;;  %p15354_p1 = scmp.lt.s32.totalorder %s15348_s5, %s15348_s5 }
  0xba   :  { %p15355_p2 = por %p15354_p1, %p15353_p0 }
  0xbc   :  { %p15356_p3 = pnand %p15355_p2, %p15349_p13 }
  0xbe   :  { %15359 = shalt.err (!%p15356_p3)
}
  0xbf   :  { %110 = dma.hbm_to_vmem [thread:$0]  %s16766_s7, 30720, %s105_s25, [#allocation11], %s15476_s14, %s15476_s14, %s15477_s18  }
  0xc0   :  { %s15360_s10 = scalar_lea.hbm %s16768_s9, 30720 }
  0xc1   :  { %p15361_p4 = scmp.ne.s32.totalorder %s16768_s9, %s15360_s10  ;;  %p15364_p5 = scmp.lt.u32.totalorder %s15360_s10, %s16768_s9 }
  0xc3   :  { %p15366_p6 = pnand %p15364_p5, %p15361_p4 }
  0xc5   :  { %15369 = shalt.err (!%p15366_p6)
}
  0xc6   :  { %s15370_s1 = scalar_lea.vmem %s15720_s2, 30720  ;;  %p15375_p8 = scmp.lt.s32.totalorder %s15720_s2, %s15720_s2 }
  0xc7   :  { %p15371_p7 = scmp.ne.s32.totalorder %s15720_s2, %s15370_s1  ;;  %p15376_p9 = scmp.lt.s32.totalorder %s15370_s1, %s15370_s1 }
  0xc9   :  { %p15377_p10 = por %p15376_p9, %p15375_p8 }
  0xcb   :  { %p15378_p11 = pnand %p15377_p10, %p15371_p7 }
  0xcd   :  { %15381 = shalt.err (!%p15378_p11)
}
  0xce   :  { %132 = dma.hbm_to_vmem [thread:$0]  %s16768_s9, 30720, %s15720_s2, [#allocation14], %s15473_s17, %s15473_s17, %s15474_s21  }
  0xcf   :  { %s15482_s18 = smov [#allocation18]   ;;  %s15483_s19 = smov [#allocation21]  }
  0xd0   :  { %s148_s25 = sshll.u32 %s15482_s18, 4  ;;  %s173_s26 = sshll.u32 %s15483_s19, 4  ;;  %s149_s25 = int_to_ptr.vmem [resolvable:$true] %s148_s25  ;;  %s174_s26 = int_to_ptr.vmem [resolvable:$true] %s173_s26 }
  0xd1   :  { %s15382_s29 = scalar_lea.hbm %s16770_s11, 2048 }
  0xd2   :  { %p15383_p12 = scmp.ne.s32.totalorder %s16770_s11, %s15382_s29  ;;  %p15386_p13 = scmp.lt.u32.totalorder %s15382_s29, %s16770_s11 }
  0xd4   :  { %p15388_p0 = pnand %p15386_p13, %p15383_p12 }
  0xd6   :  { %15391 = shalt.err (!%p15388_p0)
}
  0xd7   :  { %s15392_s9 = scalar_lea.vmem %s149_s25, 2048  ;;  %p15397_p2 = scmp.lt.s32.totalorder %s149_s25, %s149_s25 }
  0xd8   :  { %p15393_p1 = scmp.ne.s32.totalorder %s149_s25, %s15392_s9  ;;  %p15398_p3 = scmp.lt.s32.totalorder %s15392_s9, %s15392_s9 }
  0xda   :  { %p15399_p4 = por %p15398_p3, %p15397_p2 }
  0xdc   :  { %p15400_p5 = pnand %p15399_p4, %p15393_p1 }
  0xde   :  { %15403 = shalt.err (!%p15400_p5)
}
  0xdf   :  { %154 = dma.hbm_to_vmem [thread:$0]  %s16770_s11, 2048, %s149_s25, [#allocation17], %s15467_s4, %s15467_s4, %s15468_s24  }
  0xe0   :  { %s15404_s20 = scalar_lea.hbm %s16772_s13, 128 }
  0xe1   :  { %p15405_p6 = scmp.ne.s32.totalorder %s16772_s13, %s15404_s20  ;;  %p15408_p7 = scmp.lt.u32.totalorder %s15404_s20, %s16772_s13 }
  0xe3   :  { %p15410_p8 = pnand %p15408_p7, %p15405_p6 }
  0xe5   :  { %15413 = shalt.err (!%p15410_p8)
}
  0xe6   :  { %s15414_s8 = scalar_lea.vmem %s174_s26, 128  ;;  %p15419_p10 = scmp.lt.s32.totalorder %s174_s26, %s174_s26 }
  0xe7   :  { %p15415_p9 = scmp.ne.s32.totalorder %s174_s26, %s15414_s8  ;;  %p15420_p11 = scmp.lt.s32.totalorder %s15414_s8, %s15414_s8 }
  0xe9   :  { %p15421_p12 = por %p15420_p11, %p15419_p10 }
  0xeb   :  { %p15422_p13 = pnand %p15421_p12, %p15415_p9 }
  0xed   :  { %15425 = shalt.err (!%p15422_p13)
}
  0xee   :  { %176 = dma.hbm_to_vmem [thread:$0]  %s16772_s13, 128, %s174_s26, [#allocation20]  }
  0xef   :  { %s15484_s24 = smov [#allocation24]   ;;  %s15426_s18 = scalar_lea.hbm %s16774_s15, 16 }
  0xf0   :  { %s195_s1 = sshll.u32 %s15484_s24, 4  ;;  %p15427_p0 = scmp.ne.s32.totalorder %s16774_s15, %s15426_s18  ;;  %s196_s1 = int_to_ptr.vmem [resolvable:$true] %s195_s1 }
  0xf1   :  { %p15430_p1 = scmp.lt.u32.totalorder %s15426_s18, %s16774_s15 }
  0xf3   :  { %p15432_p2 = pnand %p15430_p1, %p15427_p0 }
  0xf5   :  { %15435 = shalt.err (!%p15432_p2)
}
  0xf6   :  { %s15436_s29 = scalar_lea.vmem %s196_s1, 16  ;;  %s15440_s13 = scalar_lea.vmem %s196_s1, 32 }
  0xf7   :  { %p15437_p3 = scmp.ne.s32.totalorder %s196_s1, %s15436_s29  ;;  %p15441_p4 = scmp.lt.s32.totalorder %s196_s1, %s196_s1 }
  0xf8   :  { %p15442_p5 = scmp.lt.s32.totalorder %s15440_s13, %s15436_s29 }
  0xfa   :  { %p15443_p6 = por %p15442_p5, %p15441_p4 }
  0xfc   :  { %p15444_p7 = pnand %p15443_p6, %p15437_p3 }
  0xfe   :  { %15447 = shalt.err (!%p15444_p7)
}
  0xff   :  { %198 = dma.hbm_to_vmem [thread:$0]  %s16774_s15, 16, %s196_s1, [#allocation23]  }
 0x100   :  { %15448 = dma.done.wait [#allocation3], 15360  }
 0x101   :  { %15449 = vsyncadd [#allocation3], 4294951936 }
 0x102   :  { %15450 = dma.done.wait [#allocation5], 46128  }
 0x103   :  { %15451 = vsyncadd [#allocation5], 4294921168 }
 0x104   :  { %15452 = dma.done.wait [#allocation8], 12336  }
 0x105   :  { %15453 = vsyncadd [#allocation8], 4294954960 }
 0x106   :  { %15454 = dma.done.wait [#allocation11], 30976  }
 0x107   :  { %15455 = vsyncadd [#allocation11], 4294936320 }
 0x108   :  { %15456 = dma.done.wait [#allocation14], 30768  }
 0x109   :  { %15457 = vsyncadd [#allocation14], 4294936528 }
 0x10a   :  { %15458 = dma.done.wait [#allocation17], 2080  }
 0x10b   :  { %15459 = vsyncadd [#allocation17], 4294965216 }
 0x10c   :  { %15460 = dma.done.wait [#allocation20], 384  }
 0x10d   :  { %15461 = vsyncadd [#allocation20], 4294966912 }
 0x10e   :  { %15462 = dma.done.wait [#allocation23], 2064  }
 0x10f   :  { %15463 = vsyncadd [#allocation23], 4294965232  ;;  %v15485_v0 = vmov 0   ;;  %v13627_v1 = vld [vmem:[#allocation2 + $0xc4] ss:$12 sps:$4 sm:$0xff]   ;;  %s16778_s27 = sld [smem:[#allocation33_spill]] }
 0x110   :  { %508 = vmatprep.mubr.bf16.mxu0 %v15485_v0  ;;  %v13629_v2 = vld [vmem:[#allocation2 + $0xc8] ss:$12 sps:$4 sm:$0xff]   ;;  %476 = vmatprep.subr.bf16.mxu0 %v13627_v1  ;;  %v13630_v3 = vld [vmem:[#allocation2 + $0xc0] ss:$12 sps:$4 sm:$0xff]   ;;  %v13634_v6 = vld [vmem:[#allocation2 + $0xd8] ss:$12 sps:$4 sm:$0xff]  }
 0x111   :  { %13024 = vmatprep.subr.bf16.mxu1 %v13629_v2  ;;  %v13631_v4 = vld [vmem:[#allocation2 + $0xdc] ss:$12 sps:$4 sm:$0xff]   ;;  %477 = vmatpush1.bf16.msra.mxu0 %v13630_v3  ;;  %v13633_v5 = vld [vmem:[#allocation2 + $0xe0] ss:$12 sps:$4 sm:$0xff]   ;;  %v13637_v8 = vld [vmem:[#allocation2 + $0xf8] ss:$12 sps:$4 sm:$0xff]  }
 0x112   :  { %13025 = vmatpush3.bf16.msra.mxu1 %v13629_v2  ;;  %478 = vmatprep.subr.bf16.mxu0 %v13631_v4  ;;  %v13635_v7 = vld [vmem:[#allocation2 + $0xf4] ss:$12 sps:$4 sm:$0xff]   ;;  %v13638_v9 = vld [vmem:[#allocation2 + $0xf0] ss:$12 sps:$4 sm:$0xff]   ;;  %v13639_v10 = vld [vmem:[#allocation2 + $0x10c] ss:$12 sps:$4 sm:$0xff]  }
 0x113   :  { %13026 = vmatprep.subr.bf16.mxu1 %v13633_v5  ;;  %v13641_v11 = vld [vmem:[#allocation2 + $0x110] ss:$12 sps:$4 sm:$0xff]   ;;  %v13642_v12 = vld [vmem:[#allocation2 + $0x108] ss:$12 sps:$4 sm:$0xff]   ;;  %v13646_v15 = vld [vmem:[#allocation2 + $0x120] ss:$12 sps:$4 sm:$0xff]  }
 0x114   :  { %v13643_v13 = vld [vmem:[#allocation2 + $0x124] ss:$12 sps:$4 sm:$0xff]   ;;  %v13645_v14 = vld [vmem:[#allocation2 + $0x128] ss:$12 sps:$4 sm:$0xff]   ;;  %v13649_v17 = vld [vmem:[#allocation2 + $0x140] ss:$12 sps:$4 sm:$0xff]  }
 0x115   :  { %479 = vmatpush1.bf16.msra.mxu0 %v13634_v6  ;;  %v13647_v16 = vld [vmem:[#allocation2 + $0x13c] ss:$12 sps:$4 sm:$0xff]   ;;  %v13650_v18 = vld [vmem:[#allocation2 + $0x138] ss:$12 sps:$4 sm:$0xff]   ;;  %v245_v19 = vld [vmem:[%s16778_s27] sm:$0xf] }
 0x116   :  { %13027 = vmatpush3.bf16.msra.mxu1 %v13633_v5  ;;  %480 = vmatprep.subr.bf16.mxu0 %v13635_v7  ;;  %v246_v20 = vld [vmem:[%s16778_s27 + $0x4] sm:$0xf]  ;;  %v247_v21 = vld [vmem:[%s16778_s27 + $0x8] sm:$0xf]  ;;  %v248_v22 = vld [vmem:[%s16778_s27 + $0xc] sm:$0xf] }
 0x117   :  { %13028 = vmatprep.subr.bf16.mxu1 %v13637_v8  ;;  %v13651_v23 = vld [vmem:[#allocation2 + $0x154] ss:$12 sps:$4 sm:$0xff]   ;;  %v15809_v24 = vcombine.low %v245_v19, %v246_v20  ;;  %v15811_v25 = vcombine.low %v247_v21, %v248_v22  ;;  %vm336_vm0 = vcmask 1046528   ;;  %v13653_v26 = vld [vmem:[#allocation2 + $0x158] ss:$12 sps:$4 sm:$0xff]   ;;  %vm1243_vm1 = vcmask 1044480  }
 0x118   :  { %v249_v29 = vld [vmem:[%s16778_s27 + $0x10] sm:$0xf]  ;;  %v250_v30 = vld [vmem:[%s16778_s27 + $0x14] sm:$0xf]  ;;  %v13655_v32 = vld [vmem:[#allocation2 + $0x16c] ss:$12 sps:$4 sm:$0xff]   ;;  %v15846_v51 = vcombine.low %v246_v20, %v247_v21 }
 0x119   :  { %481 = vmatpush1.bf16.msra.mxu0 %v13638_v9  ;;  %v337_v27 = vrot.slane %v15809_v24, 1  ;;  %v338_v28 = vrot.slane %v15811_v25, 1  ;;  %v13654_v31 = vld [vmem:[#allocation2 + $0x150] ss:$12 sps:$4 sm:$0xff]   ;;  %v15822_v34 = vcombine.low %v249_v29, %v250_v30  ;;  %v1244_v36 = vrot.slane %v15809_v24, 3 }
 0x11a   :  { %13029 = vmatpush3.bf16.msra.mxu1 %v13637_v8  ;;  %482 = vmatprep.subr.bf16.mxu0 %v13639_v10  ;;  %v13657_v35 = vld [vmem:[#allocation2 + $0x170] ss:$12 sps:$4 sm:$0xff]   ;;  %v13658_v37 = vld [vmem:[#allocation2 + $0x168] ss:$12 sps:$4 sm:$0xff]   ;;  %v1245_v40 = vrot.slane %v15811_v25, 3  ;;  %v15853_v55 = vcombine.low %v248_v22, %v249_v29  ;;  %vm911_vm2 = vcmask 1045504  }
 0x11b   :  { %13030 = vmatprep.subr.bf16.mxu1 %v13641_v11  ;;  %v339_v33 = vsel %vm336_vm0, %v337_v27, %v338_v28  ;;  %v13663_v38 = vld [vmem:[#allocation2 + $0x4] ss:$12 sps:$4 sm:$0xff]   ;;  %v340_v39 = vrot.slane %v15822_v34, 1  ;;  %v13664_v41 = vld [vmem:[#allocation2 + $0x8] ss:$12 sps:$4 sm:$0xff]   ;;  %v1247_v44 = vrot.slane %v15822_v34, 3 }
 0x11c   :  { %13040 = vmatprep.mubr.bf16.mxu1 %v339_v33  ;;  %v15830_v42 = vld [vmem:[%s16778_s27 + $0x18] sm:$0xf]  ;;  %v15833_v43 = vsel %vm1243_vm1, %v1244_v36, %v1245_v40  ;;  %v13661_v45 = vld [vmem:[#allocation2] ss:$12 sps:$4 sm:$0xff]   ;;  %v13668_v46 = vld [vmem:[#allocation2 + $0x1c] ss:$12 sps:$4 sm:$0xff]  }
 0x11d   :  { %483 = vmatpush1.bf16.msra.mxu0 %v13642_v12  ;;  %v15838_v47 = vcombine.low %v15830_v42, %v15830_v42  ;;  %v341_v48 = vsel %vm336_vm0, %v338_v28, %v340_v39  ;;  %v13669_v49 = vld [vmem:[#allocation2 + $0x20] ss:$12 sps:$4 sm:$0xff]   ;;  %v15844_v50 = vsel %vm1243_vm1, %v1245_v40, %v1247_v44  ;;  %v915_v53 = vrot.slane %v15822_v34, 2  ;;  %v13666_v57 = vld [vmem:[#allocation2 + $0x18] ss:$12 sps:$4 sm:$0xff]  }
 0x11e   :  { %13031 = vmatpush3.bf16.msra.mxu1 %v13641_v11  ;;  %484 = vmatprep.subr.bf16.mxu0 %v13643_v13  ;;  %v13672_v58 = vld [vmem:[#allocation2 + $0x34] ss:$12 sps:$4 sm:$0xff]   ;;  %v15862_v59 = vcombine.low %v250_v30, %v15830_v42  ;;  %v13673_v60 = vld [vmem:[#allocation2 + $0x38] ss:$12 sps:$4 sm:$0xff]   ;;  %v13670_v62 = vld [vmem:[#allocation2 + $0x30] ss:$12 sps:$4 sm:$0xff]  }
 0x11f   :  { %13032 = vmatprep.subr.bf16.mxu1 %v13645_v14  ;;  %v342_v52 = vrot.slane %v15838_v47, 1  ;;  %v15851_v54 = vrot.slane %v15838_v47, 2  ;;  %v13676_v63 = vld [vmem:[#allocation2 + $0x4c] ss:$12 sps:$4 sm:$0xff]   ;;  %v13677_v1 = vld [vmem:[#allocation2 + $0x50] ss:$12 sps:$4 sm:$0xff]  }
 0x120   :  { %v13674_v2 = vld [vmem:[#allocation2 + $0x48] ss:$12 sps:$4 sm:$0xff]   ;;  %v13681_v3 = vld [vmem:[#allocation2 + $0x64] ss:$12 sps:$4 sm:$0xff]   ;;  %v13679_v5 = vld [vmem:[#allocation2 + $0x60] ss:$12 sps:$4 sm:$0xff]  }
 0x121   :  { %485 = vmatpush1.bf16.msra.mxu0 %v13646_v15  ;;  %v15859_v56 = vsel %vm911_vm2, %v915_v53, %v15851_v54  ;;  %v343_v61 = vsel %vm336_vm0, %v340_v39, %v342_v52  ;;  %v13682_v4 = vld [vmem:[#allocation2 + $0x68] ss:$12 sps:$4 sm:$0xff]   ;;  %v13686_v7 = vld [vmem:[#allocation2 + $0x80] ss:$12 sps:$4 sm:$0xff]   ;;  %v13683_v8 = vld [vmem:[#allocation2 + $0x78] ss:$12 sps:$4 sm:$0xff]  }
 0x122   :  { %13033 = vmatpush3.bf16.msra.mxu1 %v13645_v14  ;;  %486 = vmatprep.subr.bf16.mxu0 %v13647_v16  ;;  %v13685_v6 = vld [vmem:[#allocation2 + $0x7c] ss:$12 sps:$4 sm:$0xff]   ;;  %v13689_v9 = vld [vmem:[#allocation2 + $0x94] ss:$12 sps:$4 sm:$0xff]   ;;  %v13690_v10 = vld [vmem:[#allocation2 + $0x98] ss:$12 sps:$4 sm:$0xff]  }
 0x123   :  { %13034 = vmatprep.subr.bf16.mxu1 %v13649_v17  ;;  %v13687_v11 = vld [vmem:[#allocation2 + $0x90] ss:$12 sps:$4 sm:$0xff]   ;;  %v13693_v12 = vld [vmem:[#allocation2 + $0xac] ss:$12 sps:$4 sm:$0xff]   ;;  %v13691_v14 = vld [vmem:[#allocation2 + $0xa8] ss:$12 sps:$4 sm:$0xff]  }
 0x124   :  { %v13694_v13 = vld [vmem:[#allocation2 + $0xb0] ss:$12 sps:$4 sm:$0xff]   ;;  %v13698_v16 = vld [vmem:[#allocation2 + $0x188] ss:$12 sps:$4 sm:$0xff]   ;;  %v13702_v19 = vld [vmem:[#allocation2 + $0x1a0] ss:$12 sps:$4 sm:$0xff]  }
 0x125   :  { %487 = vmatpush1.bf16.msra.mxu0 %v13650_v18  ;;  %v13697_v15 = vld [vmem:[#allocation2 + $0x184] ss:$12 sps:$4 sm:$0xff]   ;;  %v13701_v18 = vld [vmem:[#allocation2 + $0x19c] ss:$12 sps:$4 sm:$0xff]   ;;  %v13705_v21 = vld [vmem:[#allocation2 + $0x1b4] ss:$12 sps:$4 sm:$0xff]  }
 0x126   :  { %13035 = vmatpush3.bf16.msra.mxu1 %v13649_v17  ;;  %488 = vmatprep.subr.bf16.mxu0 %v13651_v23  ;;  %v13695_v17 = vld [vmem:[#allocation2 + $0x180] ss:$12 sps:$4 sm:$0xff]   ;;  %v13699_v20 = vld [vmem:[#allocation2 + $0x198] ss:$12 sps:$4 sm:$0xff]   ;;  %v912_v23 = vrot.slane %v15809_v24, 2  ;;  %vm1944_vm3 = vcmask 1041408  }
 0x127   :  { %13036 = vmatprep.subr.bf16.mxu1 %v13653_v26  ;;  %v13706_v22 = vld [vmem:[#allocation2 + $0x1b8] ss:$12 sps:$4 sm:$0xff]   ;;  %v13703_v27 = vld [vmem:[#allocation2 + $0x1b0] ss:$12 sps:$4 sm:$0xff]   ;;  %v13707_v30 = vld [vmem:[#allocation2 + $0x1c8] ss:$12 sps:$4 sm:$0xff]  }
 0x128   :  { %v13709_v28 = vld [vmem:[#allocation2 + $0x1cc] ss:$12 sps:$4 sm:$0xff]   ;;  %v13710_v29 = vld [vmem:[#allocation2 + $0x1d0] ss:$12 sps:$4 sm:$0xff]   ;;  %v13721_v39 = vld [vmem:[#allocation2 + $0x214] ss:$12 sps:$4 sm:$0xff]  }
 0x129   :  { %489 = vmatpush1.bf16.msra.mxu0 %v13654_v31  ;;  %v15883_v36 = vld [vmem:[%s16778_s27 + $0x1c] sm:$0x3]  ;;  %v13722_v40 = vld [vmem:[#allocation2 + $0x218] ss:$12 sps:$4 sm:$0xff]   ;;  %vm15487_vm4 = vmmov 0   ;;  %vm11706_vm5 = vmneg %vm1944_vm3  ;;  %vm15488_vm6 = vmmov 1  }
 0x12a   :  { %13037 = vmatpush3.bf16.msra.mxu1 %v13653_v26  ;;  %490 = vmatprep.subr.bf16.mxu0 %v13655_v32  ;;  %v913_v26 = vrot.slane %v15811_v25, 2  ;;  %v13713_v32 = vld [vmem:[#allocation2 + $0x1e4] ss:$12 sps:$4 sm:$0xff]   ;;  %vm16080_vm7 = vmpackc.low %vm15488_vm6, %vm11706_vm5  ;;  %vm5142_vm8 = vcmask 1043456   ;;  %vm6796_vm9 = vcmask 375808   ;;  %vm11253_vm10 = vcmask 130048  }
 0x12b   :  { %13038 = vmatprep.subr.bf16.mxu1 %v13657_v35 }
 0x12c   :  { %v914_v31 = vsel %vm911_vm2, %v912_v23, %v913_v26  ;;  %v13775_v23 = vld [vmem:[#allocation2 + $0x350] ss:$12 sps:$4 sm:$0xff]  }
 0x12d   :  { %491 = vmatpush1.bf16.msra.mxu0 %v13658_v37  ;;  %v11509_v37 = vcombine.low %v15830_v42, %v15883_v36  ;;  %v13725_v42 = vld [vmem:[#allocation2 + $0x22c] ss:$12 sps:$4 sm:$0xff]  }
 0x12e   :  { %13039 = vmatpush3.bf16.msra.mxu1 %v13657_v35  ;;  %743 = vmatprep.subr.bf16.mxu0 %v13663_v38  ;;  %v13717_v35 = vld [vmem:[#allocation2 + $0x1fc] ss:$12 sps:$4 sm:$0xff]   ;;  %v13715_v38 = vld [vmem:[#allocation2 + $0x1f8] ss:$12 sps:$4 sm:$0xff]  }
 0x12f   :  { %13048 = vmatprep.subr.bf16.mxu1 %v13664_v41 }
 0x130   :  { %509 = vmatmul.mubr.bf16.vlgmr.msra.gmra.mrb[0].mxu0 %v339_v33  ;;  %v13711_v33 = vld [vmem:[#allocation2 + $0x1e0] ss:$12 sps:$4 sm:$0xff]  }
 0x131   :  { %13041 = vmatmul.mubr.bf16.vlgmr.msra.gmra.mrb[0].mxu1 %v341_v48  ;;  %744 = vmatpush1.bf16.msra.mxu0 %v13661_v45  ;;  %v13719_v45 = vld [vmem:[#allocation2 + $0x210] ss:$12 sps:$4 sm:$0xff]  }
 0x132   :  { %13049 = vmatpush3.bf16.msra.mxu1 %v13664_v41  ;;  %745 = vmatprep.subr.bf16.mxu0 %v13668_v46  ;;  %v15888_v41 = vrot.slane %v11509_v37, 3  ;;  %v11537_v37 = vcombine.low %v15883_v36, %v15883_v36  ;;  %v13807_v36 = vld [vmem:[#allocation6 + $0x28c] ss:$12 sps:$4 sm:$0xff]  }
 0x133   :  { %13050 = vmatprep.subr.bf16.mxu1 %v13669_v49  ;;  %518 = vmatprep.mubr.bf16.mxu0 %v15485_v0 }
 0x134   :  { %13044 = vmatprep.mubr.bf16.mxu1 %v343_v61  ;;  %v15895_v46 = vsel %vm1243_vm1, %v1247_v44, %v15888_v41  ;;  %v13733_v44 = vld [vmem:[#allocation2 + $0x25c] ss:$12 sps:$4 sm:$0xff]  }
 0x135   :  { %746 = vmatpush1.bf16.msra.mxu0 %v13666_v57  ;;  %v13730_v57 = vld [vmem:[#allocation2 + $0x248] ss:$12 sps:$4 sm:$0xff]  }
 0x136   :  { %13051 = vmatpush3.bf16.msra.mxu1 %v13669_v49  ;;  %747 = vmatprep.subr.bf16.mxu0 %v13672_v58  ;;  %v13723_v49 = vld [vmem:[#allocation2 + $0x228] ss:$12 sps:$4 sm:$0xff]   ;;  %v13727_v58 = vld [vmem:[#allocation2 + $0x240] ss:$12 sps:$4 sm:$0xff]  }
 0x137   :  { %13052 = vmatprep.subr.bf16.mxu1 %v13673_v60 }
 0x138   :  { %519 = vmatmul.mubr.bf16.gmra.mrb[4].mxu0 %v341_v48  ;;  %v13726_v48 = vld [vmem:[#allocation2 + $0x230] ss:$12 sps:$4 sm:$0xff]  }
 0x139   :  { %13045 = vmatmul.mubr.bf16.gmra.mrb[4].mxu1 %v342_v52  ;;  %748 = vmatpush1.bf16.msra.mxu0 %v13670_v62  ;;  %v13737_v62 = vld [vmem:[#allocation2 + $0x274] ss:$12 sps:$4 sm:$0xff]  }
 0x13a   :  { %13053 = vmatpush3.bf16.msra.mxu1 %v13673_v60  ;;  %749 = vmatprep.subr.bf16.mxu0 %v13676_v63  ;;  %v916_v60 = vsel %vm911_vm2, %v913_v26, %v915_v53  ;;  %v13738_v63 = vld [vmem:[#allocation2 + $0x278] ss:$12 sps:$4 sm:$0xff]   ;;  %v13739_v53 = vld [vmem:[#allocation2 + $0x288] ss:$12 sps:$4 sm:$0xff]  }
 0x13b   :  { %13054 = vmatprep.subr.bf16.mxu1 %v13677_v1  ;;  %528 = vmatprep.mubr.bf16.mxu0 %v15485_v0  ;;  %v13778_v26 = vld [vmem:[#allocation2 + $0x364] ss:$12 sps:$4 sm:$0xff]  }
 0x13c   :  { %13064 = vmatprep.mubr.bf16.mxu1 %v15809_v24 }
 0x13d   :  { %750 = vmatpush1.bf16.msra.mxu0 %v13674_v2  ;;  %v13742_v2 = vld [vmem:[#allocation2 + $0x290] ss:$12 sps:$4 sm:$0xff]  }
 0x13e   :  { %13055 = vmatpush3.bf16.msra.mxu1 %v13677_v1  ;;  %751 = vmatprep.subr.bf16.mxu0 %v13681_v3  ;;  %v13735_v1 = vld [vmem:[#allocation2 + $0x270] ss:$12 sps:$4 sm:$0xff]  }
 0x13f   :  { %13056 = vmatprep.subr.bf16.mxu1 %v13682_v4  ;;  %v13745_v3 = vld [vmem:[#allocation2 + $0x2a4] ss:$12 sps:$4 sm:$0xff]  }
 0x140   :  { %529 = vmatmul.mubr.bf16.gmra.mrb[8].mxu0 %v343_v61  ;;  %v13734_v61 = vld [vmem:[#allocation2 + $0x260] ss:$12 sps:$4 sm:$0xff]  }
 0x141   :  { %752 = vmatpush1.bf16.msra.mxu0 %v13679_v5  ;;  %538 = vmatprep.mubr.bf16.mxu0 %v15485_v0  ;;  %v13743_v5 = vld [vmem:[#allocation2 + $0x2a0] ss:$12 sps:$4 sm:$0xff]  }
 0x142   :  { %13057 = vmatpush3.bf16.msra.mxu1 %v13682_v4  ;;  %753 = vmatprep.subr.bf16.mxu0 %v13685_v6  ;;  %v13746_v4 = vld [vmem:[#allocation2 + $0x2a8] ss:$12 sps:$4 sm:$0xff]  }
 0x143   :  { %13058 = vmatprep.subr.bf16.mxu1 %v13686_v7  ;;  %v13749_v6 = vld [vmem:[#allocation2 + $0x2bc] ss:$12 sps:$4 sm:$0xff]  }
 0x145   :  { %754 = vmatpush1.bf16.msra.mxu0 %v13683_v8  ;;  %v13747_v8 = vld [vmem:[#allocation2 + $0x2b8] ss:$12 sps:$4 sm:$0xff]  }
 0x146   :  { %13059 = vmatpush3.bf16.msra.mxu1 %v13686_v7  ;;  %755 = vmatprep.subr.bf16.mxu0 %v13689_v9  ;;  %v13750_v7 = vld [vmem:[#allocation2 + $0x2c0] ss:$12 sps:$4 sm:$0xff]  }
 0x147   :  { %13060 = vmatprep.subr.bf16.mxu1 %v13690_v10  ;;  %v13753_v9 = vld [vmem:[#allocation2 + $0x2d4] ss:$12 sps:$4 sm:$0xff]  }
 0x148   :  { %539 = vmatmul.mubr.bf16.gmra.mrb[12].mxu0 %v342_v52  ;;  %v13729_v52 = vld [vmem:[#allocation2 + $0x244] ss:$12 sps:$4 sm:$0xff]  }
 0x149   :  { %756 = vmatpush1.bf16.msra.mxu0 %v13687_v11  ;;  %775 = vmatprep.mubr.bf16.mxu0 %v15485_v0  ;;  %v13751_v11 = vld [vmem:[#allocation2 + $0x2d0] ss:$12 sps:$4 sm:$0xff]  }
 0x14a   :  { %13061 = vmatpush3.bf16.msra.mxu1 %v13690_v10  ;;  %757 = vmatprep.subr.bf16.mxu0 %v13693_v12  ;;  %v13754_v10 = vld [vmem:[#allocation2 + $0x2d8] ss:$12 sps:$4 sm:$0xff]  }
 0x14b   :  { %13062 = vmatprep.subr.bf16.mxu1 %v13694_v13  ;;  %v13757_v12 = vld [vmem:[#allocation2 + $0x2ec] ss:$12 sps:$4 sm:$0xff]  }
 0x14d   :  { %758 = vmatpush1.bf16.msra.mxu0 %v13691_v14  ;;  %v13755_v14 = vld [vmem:[#allocation2 + $0x2e8] ss:$12 sps:$4 sm:$0xff]  }
 0x14e   :  { %13063 = vmatpush3.bf16.msra.mxu1 %v13694_v13  ;;  %1051 = vmatprep.subr.bf16.mxu0 %v13697_v15  ;;  %v13758_v13 = vld [vmem:[#allocation2 + $0x2f0] ss:$12 sps:$4 sm:$0xff]  }
 0x14f   :  { %13072 = vmatprep.subr.bf16.mxu1 %v13698_v16  ;;  %v13761_v15 = vld [vmem:[#allocation2 + $0x304] ss:$12 sps:$4 sm:$0xff]  }
 0x150   :  { %776 = vmatmul.mubr.bf16.vlgmr.msra.gmra.mrb[0].mxu0 %v15809_v24  ;;  %v13714_v24 = vld [vmem:[#allocation2 + $0x1e8] ss:$12 sps:$4 sm:$0xff]  }
 0x151   :  { %13065 = vmatmul.mubr.bf16.vlgmr.msra.gmra.mrb[0].mxu1 %v15811_v25  ;;  %1052 = vmatpush1.bf16.msra.mxu0 %v13695_v17  ;;  %v13765_v17 = vld [vmem:[#allocation2 + $0x31c] ss:$12 sps:$4 sm:$0xff]  }
 0x152   :  { %13073 = vmatpush3.bf16.msra.mxu1 %v13698_v16  ;;  %1053 = vmatprep.subr.bf16.mxu0 %v13701_v18  ;;  %v13759_v16 = vld [vmem:[#allocation2 + $0x300] ss:$12 sps:$4 sm:$0xff]  }
 0x153   :  { %13074 = vmatprep.subr.bf16.mxu1 %v13702_v19  ;;  %785 = vmatprep.mubr.bf16.mxu0 %v15485_v0  ;;  %v13766_v18 = vld [vmem:[#allocation2 + $0x320] ss:$12 sps:$4 sm:$0xff]  }
 0x154   :  { %13068 = vmatprep.mubr.bf16.mxu1 %v15822_v34 }
 0x155   :  { %1054 = vmatpush1.bf16.msra.mxu0 %v13699_v20  ;;  %v13771_v20 = vld [vmem:[#allocation2 + $0x338] ss:$12 sps:$4 sm:$0xff]  }
 0x156   :  { %13075 = vmatpush3.bf16.msra.mxu1 %v13702_v19  ;;  %1055 = vmatprep.subr.bf16.mxu0 %v13705_v21  ;;  %v13763_v19 = vld [vmem:[#allocation2 + $0x318] ss:$12 sps:$4 sm:$0xff]   ;;  %v13768_v21 = vld [vmem:[#allocation2 + $0x330] ss:$12 sps:$4 sm:$0xff]  }
 0x157   :  { %13076 = vmatprep.subr.bf16.mxu1 %v13706_v22 }
 0x158   :  { %786 = vmatmul.mubr.bf16.gmra.mrb[4].mxu0 %v15811_v25  ;;  %v13718_v25 = vld [vmem:[#allocation2 + $0x200] ss:$12 sps:$4 sm:$0xff]  }
 0x159   :  { %13069 = vmatmul.mubr.bf16.gmra.mrb[8].mxu1 %v15838_v47  ;;  %1056 = vmatpush1.bf16.msra.mxu0 %v13703_v27  ;;  %v13779_v27 = vld [vmem:[#allocation2 + $0x368] ss:$12 sps:$4 sm:$0xff]  }
 0x15a   :  { %13077 = vmatpush3.bf16.msra.mxu1 %v13706_v22  ;;  %1057 = vmatprep.subr.bf16.mxu0 %v13709_v28  ;;  %v13774_v22 = vld [vmem:[#allocation2 + $0x34c] ss:$12 sps:$4 sm:$0xff]  }
 0x15b   :  { %13078 = vmatprep.subr.bf16.mxu1 %v13710_v29  ;;  %795 = vmatprep.mubr.bf16.mxu0 %v15485_v0  ;;  %v13776_v28 = vld [vmem:[#allocation2 + $0x360] ss:$12 sps:$4 sm:$0xff]  }
 0x15c   :  { %13088 = vmatprep.mubr.bf16.mxu1 %v914_v31 }
 0x15d   :  { %1058 = vmatpush1.bf16.msra.mxu0 %v13707_v30  ;;  %v13783_v30 = vld [vmem:[#allocation2 + $0x380] ss:$12 sps:$4 sm:$0xff]  }
 0x15e   :  { %13079 = vmatpush3.bf16.msra.mxu1 %v13710_v29  ;;  %1059 = vmatprep.subr.bf16.mxu0 %v13713_v32  ;;  %v13782_v29 = vld [vmem:[#allocation2 + $0x37c] ss:$12 sps:$4 sm:$0xff]   ;;  %v13787_v32 = vld [vmem:[#allocation2 + $0x398] ss:$12 sps:$4 sm:$0xff]  }
 0x15f   :  { %13080 = vmatprep.subr.bf16.mxu1 %v13714_v24 }
 0x160   :  { %796 = vmatmul.mubr.bf16.gmra.mrb[8].mxu0 %v15822_v34  ;;  %v13741_v34 = vld [vmem:[#allocation2 + $0x28c] ss:$12 sps:$4 sm:$0xff]  }
 0x161   :  { %1060 = vmatpush1.bf16.msra.mxu0 %v13711_v33  ;;  %805 = vmatprep.mubr.bf16.mxu0 %v15485_v0  ;;  %v13790_v33 = vld [vmem:[#allocation2 + $0x3ac] ss:$12 sps:$4 sm:$0xff]  }
 0x162   :  { %13081 = vmatpush3.bf16.msra.mxu1 %v13714_v24  ;;  %1061 = vmatprep.subr.bf16.mxu0 %v13717_v35  ;;  %v13784_v24 = vld [vmem:[#allocation2 + $0x390] ss:$12 sps:$4 sm:$0xff]  }
 0x163   :  { %13082 = vmatprep.subr.bf16.mxu1 %v13718_v25  ;;  %v13791_v35 = vld [vmem:[#allocation2 + $0x3b0] ss:$12 sps:$4 sm:$0xff]  }
 0x165   :  { %1062 = vmatpush1.bf16.msra.mxu0 %v13715_v38  ;;  %v13796_v38 = vld [vmem:[#allocation6 + $0x240] ss:$12 sps:$4 sm:$0xff]  }
 0x166   :  { %13083 = vmatpush3.bf16.msra.mxu1 %v13718_v25  ;;  %1063 = vmatprep.subr.bf16.mxu0 %v13721_v39  ;;  %v13788_v25 = vld [vmem:[#allocation2 + $0x3a8] ss:$12 sps:$4 sm:$0xff]   ;;  %v13801_v39 = vld [vmem:[#allocation6 + $0x25c] ss:$12 sps:$4 sm:$0xff]  }
 0x167   :  { %13084 = vmatprep.subr.bf16.mxu1 %v13722_v40 }
 0x168   :  { %806 = vmatmul.mubr.bf16.gmra.mrb[16].mxu0 %v15838_v47  ;;  %v13731_v47 = vld [vmem:[#allocation2 + $0x258] ss:$12 sps:$4 sm:$0xff]  }
 0x169   :  { %1064 = vmatpush1.bf16.msra.mxu0 %v13719_v45  ;;  %1083 = vmatprep.mubr.bf16.mxu0 %v15485_v0  ;;  %v13802_v45 = vld [vmem:[#allocation6 + $0x270] ss:$12 sps:$4 sm:$0xff]  }
 0x16a   :  { %13085 = vmatpush3.bf16.msra.mxu1 %v13722_v40  ;;  %1065 = vmatprep.subr.bf16.mxu0 %v13725_v42  ;;  %v13799_v40 = vld [vmem:[#allocation6 + $0x258] ss:$12 sps:$4 sm:$0xff]   ;;  %v13813_v42 = vld [vmem:[#allocation6 + $0x2bc] ss:$12 sps:$4 sm:$0xff]  }
 0x16b   :  { %13086 = vmatprep.subr.bf16.mxu1 %v13726_v48 }
 0x16d   :  { %1066 = vmatpush1.bf16.msra.mxu0 %v13723_v49  ;;  %v13814_v49 = vld [vmem:[#allocation6 + $0x2d0] ss:$12 sps:$4 sm:$0xff]  }
 0x16e   :  { %13087 = vmatpush3.bf16.msra.mxu1 %v13726_v48  ;;  %1383 = vmatprep.subr.bf16.mxu0 %v13729_v52  ;;  %v13811_v48 = vld [vmem:[#allocation6 + $0x2b8] ss:$12 sps:$4 sm:$0xff]   ;;  %v13816_v52 = vld [vmem:[#allocation6 + $0x2d4] ss:$12 sps:$4 sm:$0xff]  }
 0x16f   :  { %13096 = vmatprep.subr.bf16.mxu1 %v13730_v57 }
 0x170   :  { %1084 = vmatmul.mubr.bf16.vlgmr.msra.gmra.mrb[0].mxu0 %v914_v31  ;;  %v13786_v31 = vld [vmem:[#allocation2 + $0x394] ss:$12 sps:$4 sm:$0xff]  }
 0x171   :  { %13089 = vmatmul.mubr.bf16.vlgmr.msra.gmra.mrb[0].mxu1 %v916_v60  ;;  %1384 = vmatpush1.bf16.msra.mxu0 %v13727_v58  ;;  %v13817_v58 = vld [vmem:[#allocation6 + $0x2e8] ss:$12 sps:$4 sm:$0xff]  }
 0x172   :  { %13097 = vmatpush3.bf16.msra.mxu1 %v13730_v57  ;;  %1385 = vmatprep.subr.bf16.mxu0 %v13733_v44  ;;  %v13819_v57 = vld [vmem:[#allocation6 + $0x2ec] ss:$12 sps:$4 sm:$0xff]   ;;  %v13822_v44 = vld [vmem:[#allocation6 + $0x304] ss:$12 sps:$4 sm:$0xff]  }
 0x173   :  { %13098 = vmatprep.subr.bf16.mxu1 %v13734_v61  ;;  %1093 = vmatprep.mubr.bf16.mxu0 %v15485_v0 }
 0x174   :  { %13092 = vmatprep.mubr.bf16.mxu1 %v15859_v56 }
 0x175   :  { %1386 = vmatpush1.bf16.msra.mxu0 %v13731_v47  ;;  %v13824_v47 = vld [vmem:[#allocation6 + $0x248] ss:$12 sps:$4 sm:$0xff]  }
 0x176   :  { %13099 = vmatpush3.bf16.msra.mxu1 %v13734_v61  ;;  %1387 = vmatprep.subr.bf16.mxu0 %v13737_v62  ;;  %v13820_v61 = vld [vmem:[#allocation6 + $0x300] ss:$12 sps:$4 sm:$0xff]   ;;  %v13827_v62 = vld [vmem:[#allocation6 + $0x31c] ss:$12 sps:$4 sm:$0xff]  }
 0x177   :  { %13100 = vmatprep.subr.bf16.mxu1 %v13738_v63 }
 0x178   :  { %1094 = vmatmul.mubr.bf16.gmra.mrb[4].mxu0 %v916_v60  ;;  %v13823_v60 = vld [vmem:[#allocation6 + $0x308] ss:$12 sps:$4 sm:$0xff]  }
 0x179   :  { %13093 = vmatmul.mubr.bf16.gmra.mrb[12].mxu1 %v15851_v54  ;;  %1388 = vmatpush1.bf16.msra.mxu0 %v13735_v1  ;;  %v13825_v1 = vld [vmem:[#allocation6 + $0x318] ss:$12 sps:$4 sm:$0xff]  }
 0x17a   :  { %13101 = vmatpush3.bf16.msra.mxu1 %v13738_v63  ;;  %1389 = vmatprep.subr.bf16.mxu0 %v13741_v34  ;;  %v13828_v63 = vld [vmem:[#allocation6 + $0x320] ss:$12 sps:$4 sm:$0xff]  }
 0x17b   :  { %13102 = vmatprep.subr.bf16.mxu1 %v13742_v2  ;;  %1103 = vmatprep.mubr.bf16.mxu0 %v15485_v0  ;;  %v13829_v34 = vld [vmem:[#allocation6 + $0x260] ss:$12 sps:$4 sm:$0xff]  }
 0x17c   :  { %13112 = vmatprep.mubr.bf16.mxu1 %v15833_v43 }
 0x17d   :  { %1390 = vmatpush1.bf16.msra.mxu0 %v13739_v53  ;;  %v13833_v53 = vld [vmem:[#allocation6 + $0x338] ss:$12 sps:$4 sm:$0xff]  }
 0x17e   :  { %13103 = vmatpush3.bf16.msra.mxu1 %v13742_v2  ;;  %1391 = vmatprep.subr.bf16.mxu0 %v13745_v3  ;;  %v13832_v2 = vld [vmem:[#allocation6 + $0x334] ss:$12 sps:$4 sm:$0xff]   ;;  %v13830_v3 = vld [vmem:[#allocation6 + $0x330] ss:$12 sps:$4 sm:$0xff]  }
 0x17f   :  { %13104 = vmatprep.subr.bf16.mxu1 %v13746_v4 }
 0x180   :  { %1104 = vmatmul.mubr.bf16.gmra.mrb[8].mxu0 %v15859_v56  ;;  %v13762_v56 = vld [vmem:[#allocation2 + $0x308] ss:$12 sps:$4 sm:$0xff]  }
 0x181   :  { %1392 = vmatpush1.bf16.msra.mxu0 %v13743_v5  ;;  %1113 = vmatprep.mubr.bf16.mxu0 %v15485_v0  ;;  %v13837_v5 = vld [vmem:[#allocation6 + $0x34c] ss:$12 sps:$4 sm:$0xff]  }
 0x182   :  { %13105 = vmatpush3.bf16.msra.mxu1 %v13746_v4  ;;  %1393 = vmatprep.subr.bf16.mxu0 %v13749_v6  ;;  %v13834_v4 = vld [vmem:[#allocation6 + $0x278] ss:$12 sps:$4 sm:$0xff]   ;;  %v13838_v6 = vld [vmem:[#allocation6 + $0x350] ss:$12 sps:$4 sm:$0xff]  }
 0x183   :  { %13106 = vmatprep.subr.bf16.mxu1 %v13750_v7 }
 0x185   :  { %1394 = vmatpush1.bf16.msra.mxu0 %v13747_v8  ;;  %v13839_v8 = vld [vmem:[#allocation6 + $0x290] ss:$12 sps:$4 sm:$0xff]  }
 0x186   :  { %13107 = vmatpush3.bf16.msra.mxu1 %v13750_v7  ;;  %1395 = vmatprep.subr.bf16.mxu0 %v13753_v9  ;;  %v13835_v7 = vld [vmem:[#allocation6 + $0x348] ss:$12 sps:$4 sm:$0xff]   ;;  %v13842_v9 = vld [vmem:[#allocation6 + $0x364] ss:$12 sps:$4 sm:$0xff]  }
 0x187   :  { %13108 = vmatprep.subr.bf16.mxu1 %v13754_v10 }
 0x188   :  { %1114 = vmatmul.mubr.bf16.gmra.mrb[20].mxu0 %v15851_v54  ;;  %v13770_v54 = vld [vmem:[#allocation2 + $0x334] ss:$12 sps:$4 sm:$0xff]  }
 0x189   :  { %1396 = vmatpush1.bf16.msra.mxu0 %v13751_v11  ;;  %1415 = vmatprep.mubr.bf16.mxu0 %v15485_v0 }
 0x18a   :  { %13109 = vmatpush3.bf16.msra.mxu1 %v13754_v10  ;;  %1397 = vmatprep.subr.bf16.mxu0 %v13757_v12  ;;  %v13843_v10 = vld [vmem:[#allocation6 + $0x368] ss:$12 sps:$4 sm:$0xff]   ;;  %v13840_v12 = vld [vmem:[#allocation6 + $0x360] ss:$12 sps:$4 sm:$0xff]  }
 0x18b   :  { %13110 = vmatprep.subr.bf16.mxu1 %v13758_v13 }
 0x18d   :  { %1398 = vmatpush1.bf16.msra.mxu0 %v13755_v14 }
 0x18e   :  { %13111 = vmatpush3.bf16.msra.mxu1 %v13758_v13  ;;  %1708 = vmatprep.subr.bf16.mxu0 %v13761_v15  ;;  %v13844_v15 = vld [vmem:[#allocation6 + $0x2a8] ss:$12 sps:$4 sm:$0xff]  }
 0x18f   :  { %13120 = vmatprep.subr.bf16.mxu1 %v13762_v56 }
 0x190   :  { %1416 = vmatmul.mubr.bf16.vlgmr.msra.gmra.mrb[0].mxu0 %v15833_v43  ;;  %v13772_v43 = vld [vmem:[#allocation2 + $0x348] ss:$12 sps:$4 sm:$0xff]  }
 0x191   :  { %13113 = vmatmul.mubr.bf16.vlgmr.msra.gmra.mrb[0].mxu1 %v15844_v50  ;;  %1709 = vmatpush1.bf16.msra.mxu0 %v13759_v16  ;;  %v13847_v16 = vld [vmem:[#allocation6 + $0x37c] ss:$12 sps:$4 sm:$0xff]  }
 0x192   :  { %13121 = vmatpush3.bf16.msra.mxu1 %v13762_v56  ;;  %1710 = vmatprep.subr.bf16.mxu0 %v13765_v17  ;;  %v13848_v17 = vld [vmem:[#allocation6 + $0x380] ss:$12 sps:$4 sm:$0xff]  }
 0x193   :  { %13122 = vmatprep.subr.bf16.mxu1 %v13766_v18  ;;  %1425 = vmatprep.mubr.bf16.mxu0 %v15485_v0 }
 0x194   :  { %13116 = vmatprep.mubr.bf16.mxu1 %v15895_v46 }
 0x195   :  { %1711 = vmatpush1.bf16.msra.mxu0 %v13763_v19  ;;  %v13849_v19 = vld [vmem:[#allocation6 + $0x2c0] ss:$12 sps:$4 sm:$0xff]  }
 0x196   :  { %13123 = vmatpush3.bf16.msra.mxu1 %v13766_v18  ;;  %1712 = vmatprep.subr.bf16.mxu0 %v13770_v54  ;;  %v13845_v18 = vld [vmem:[#allocation6 + $0x378] ss:$12 sps:$4 sm:$0xff]   ;;  %v13852_v54 = vld [vmem:[#allocation6 + $0x394] ss:$12 sps:$4 sm:$0xff]  }
 0x197   :  { %13124 = vmatprep.subr.bf16.mxu1 %v13771_v20 }
 0x198   :  { %1426 = vmatmul.mubr.bf16.gmra.mrb[4].mxu0 %v15844_v50  ;;  %v13780_v50 = vld [vmem:[#allocation2 + $0x378] ss:$12 sps:$4 sm:$0xff]  }
 0x199   :  { %13117 = vmatmul.mubr.bf16.gmra.mrb[16].mxu1 %v15888_v41  ;;  %1713 = vmatpush1.bf16.msra.mxu0 %v13768_v21  ;;  %v13850_v21 = vld [vmem:[#allocation6 + $0x390] ss:$12 sps:$4 sm:$0xff]  }
 0x19a   :  { %13125 = vmatpush3.bf16.msra.mxu1 %v13771_v20  ;;  %1714 = vmatprep.subr.bf16.mxu0 %v13774_v22  ;;  %v13853_v20 = vld [vmem:[#allocation6 + $0x398] ss:$12 sps:$4 sm:$0xff]  }
 0x19b   :  { %13126 = vmatprep.subr.bf16.mxu1 %v13775_v23  ;;  %1435 = vmatprep.mubr.bf16.mxu0 %v15485_v0  ;;  %v13854_v22 = vld [vmem:[#allocation6 + $0x2d8] ss:$12 sps:$4 sm:$0xff]  }
 0x19c   :  { %13136 = vmatprep.mubr.bf16.mxu1 %v15846_v51 }
 0x19d   :  { %1715 = vmatpush1.bf16.msra.mxu0 %v13772_v43  ;;  %v13858_v43 = vld [vmem:[#allocation6 + $0x3b0] ss:$12 sps:$4 sm:$0xff]  }
 0x19e   :  { %13127 = vmatpush3.bf16.msra.mxu1 %v13775_v23  ;;  %1716 = vmatprep.subr.bf16.mxu0 %v13778_v26  ;;  %v13857_v23 = vld [vmem:[#allocation6 + $0x3ac] ss:$12 sps:$4 sm:$0xff]   ;;  %v13855_v26 = vld [vmem:[#allocation6 + $0x3a8] ss:$12 sps:$4 sm:$0xff]  }
 0x19f   :  { %13128 = vmatprep.subr.bf16.mxu1 %v13779_v27 }
 0x1a0   :  { %1436 = vmatmul.mubr.bf16.gmra.mrb[8].mxu0 %v15895_v46  ;;  %v13808_v46 = vld [vmem:[#allocation6 + $0x2a0] ss:$12 sps:$4 sm:$0xff]  }
 0x1a1   :  { %1717 = vmatpush1.bf16.msra.mxu0 %v13776_v28  ;;  %1445 = vmatprep.mubr.bf16.mxu0 %v15485_v0 }
 0x1a2   :  { %13129 = vmatpush3.bf16.msra.mxu1 %v13779_v27  ;;  %1718 = vmatprep.subr.bf16.mxu0 %v13782_v29  ;;  %v13859_v27 = vld [vmem:[#allocation6 + $0x2f0] ss:$12 sps:$4 sm:$0xff]  }
 0x1a3   :  { %13130 = vmatprep.subr.bf16.mxu1 %v13783_v30 }
 0x1a5   :  { %1719 = vmatpush1.bf16.msra.mxu0 %v13780_v50 }
 0x1a6   :  { %13131 = vmatpush3.bf16.msra.mxu1 %v13783_v30  ;;  %1720 = vmatprep.subr.bf16.mxu0 %v13786_v31  ;;  %v13862_v30 = vld [vmem:[#allocation6 + $0x3c4] ss:$12 sps:$4 sm:$0xff]  }
 0x1a7   :  { %13132 = vmatprep.subr.bf16.mxu1 %v13787_v32 }
 0x1a8   :  { %1446 = vmatmul.mubr.bf16.gmra.mrb[24].mxu0 %v15888_v41  ;;  %v13804_v41 = vld [vmem:[#allocation6 + $0x274] ss:$12 sps:$4 sm:$0xff]  }
 0x1a9   :  { %1721 = vmatpush1.bf16.msra.mxu0 %v13784_v24  ;;  %1740 = vmatprep.mubr.bf16.mxu0 %v15485_v0 }
 0x1aa   :  { %13133 = vmatpush3.bf16.msra.mxu1 %v13787_v32  ;;  %1722 = vmatprep.subr.bf16.mxu0 %v13790_v33  ;;  %v15486_v32 = vmov 0.0  }
 0x1ab   :  { %13134 = vmatprep.subr.bf16.mxu1 %v13791_v35 }
 0x1ad   :  { %1723 = vmatpush1.bf16.msra.mxu0 %v13788_v25 }
 0x1ae   :  { %13135 = vmatpush3.bf16.msra.mxu1 %v13791_v35 }
 0x1af   :  { %12617 = vmatprep.subr.bf16.mxu1 %v13823_v60 }
 0x1b0   :  { %1741 = vmatmul.mubr.bf16.vlgmr.msra.gmra.mrb[0].mxu0 %v15846_v51  ;;  %v13798_v51 = vld [vmem:[#allocation6 + $0x244] ss:$12 sps:$4 sm:$0xff]  }
 0x1b1   :  { %13137 = vmatmul.mubr.bf16.vlgmr.msra.gmra.mrb[0].mxu1 %v15853_v55  ;;  %1750 = vmatprep.mubr.bf16.mxu0 %v15485_v0 }
 0x1b2   :  { %13140 = vmatprep.mubr.bf16.mxu1 %v15862_v59  ;;  %2643 = vmatprep.subr.bf16.mxu0 %v13798_v51 }
 0x1b3   :  { %2644 = vmatpush1.bf16.msra.mxu0 %v13796_v38  ;;  %12618 = vmatpush3.bf16.msra.mxu1 %v13824_v47 }
 0x1b4   :  { %2645 = vmatprep.subr.bf16.mxu0 %v13801_v39  ;;  %12619 = vmatprep.subr.bf16.mxu1 %v13828_v63 }
 0x1b7   :  { %2646 = vmatpush1.bf16.msra.mxu0 %v13799_v40  ;;  %12620 = vmatpush3.bf16.msra.mxu1 %v13829_v34 }
 0x1b8   :  { %1751 = vmatmul.mubr.bf16.gmra.mrb[4].mxu0 %v15853_v55  ;;  %2647 = vmatprep.subr.bf16.mxu0 %v13804_v41  ;;  %v13805_v55 = vld [vmem:[#allocation6 + $0x288] ss:$12 sps:$4 sm:$0xff]  }
 0x1b9   :  { %13141 = vmatmul.mubr.bf16.gmra.mrb[20].mxu1 %v11537_v37  ;;  %1760 = vmatprep.mubr.bf16.mxu0 %v15485_v0 }
 0x1ba   :  { %12621 = vmatprep.subr.bf16.mxu1 %v13833_v53 }
 0x1bb   :  { %2648 = vmatpush1.bf16.msra.mxu0 %v13802_v45  ;;  %12622 = vmatpush3.bf16.msra.mxu1 %v13834_v4 }
 0x1bc   :  { %2649 = vmatprep.subr.bf16.mxu0 %v13807_v36  ;;  %12623 = vmatprep.subr.bf16.mxu1 %v13838_v6 }
 0x1bf   :  { %2650 = vmatpush1.bf16.msra.mxu0 %v13805_v55  ;;  %12624 = vmatpush3.bf16.msra.mxu1 %v13839_v8  ;;  %v1864_v8 = vld [vmem:[#allocation4] sm:$0x7] }
 0x1c0   :  { %1761 = vmatmul.mubr.bf16.gmra.mrb[8].mxu0 %v15862_v59  ;;  %v13810_v59 = vld [vmem:[#allocation6 + $0x2a4] ss:$12 sps:$4 sm:$0xff]   ;;  %12625 = vmatprep.subr.bf16.mxu1 %v13843_v10 }
 0x1c1   :  { %1770 = vmatprep.mubr.bf16.mxu0 %v15485_v0  ;;  %2651 = vmatprep.subr.bf16.mxu0 %v13810_v59 }
 0x1c3   :  { %2652 = vmatpush1.bf16.msra.mxu0 %v13808_v46  ;;  %12626 = vmatpush3.bf16.msra.mxu1 %v13844_v15 }
 0x1c4   :  { %2653 = vmatprep.subr.bf16.mxu0 %v13813_v42  ;;  %12627 = vmatprep.subr.bf16.mxu1 %v13848_v17 }
 0x1c7   :  { %2654 = vmatpush1.bf16.msra.mxu0 %v13811_v48  ;;  %12628 = vmatpush3.bf16.msra.mxu1 %v13849_v19 }
 0x1c8   :  { %1771 = vmatmul.mubr.bf16.gmra.mrb[28].mxu0 %v11537_v37  ;;  %2655 = vmatprep.subr.bf16.mxu0 %v13816_v52 }
 0x1c9   :  { %12629 = vmatprep.subr.bf16.mxu1 %v13853_v20 }
 0x1cb   :  { %2656 = vmatpush1.bf16.msra.mxu0 %v13814_v49  ;;  %12630 = vmatpush3.bf16.msra.mxu1 %v13854_v22 }
 0x1cc   :  { %2657 = vmatprep.subr.bf16.mxu0 %v13819_v57  ;;  %12631 = vmatprep.subr.bf16.mxu1 %v13858_v43 }
 0x1cf   :  { %2658 = vmatpush1.bf16.msra.mxu0 %v13817_v58  ;;  %12632 = vmatpush3.bf16.msra.mxu1 %v13859_v27 }
 0x1d0   :  { %2659 = vmatprep.subr.bf16.mxu0 %v13822_v44  ;;  %13144 = vmatprep.subr.bf16.mxu1 %v15486_v32 }
 0x1d3   :  { %2660 = vmatpush1.bf16.msra.mxu0 %v13820_v61 }
 0x1d4   :  { %2661 = vmatprep.subr.bf16.mxu0 %v13827_v62 }
 0x1d7   :  { %2662 = vmatpush1.bf16.msra.mxu0 %v13825_v1 }
 0x1d8   :  { %2663 = vmatprep.subr.bf16.mxu0 %v13832_v2 }
 0x1db   :  { %2664 = vmatpush1.bf16.msra.mxu0 %v13830_v3 }
 0x1dc   :  { %2665 = vmatprep.subr.bf16.mxu0 %v13837_v5  ;;  %v1866_v5 = vlaneseq }
 0x1de   :  { %v1867_v6 = vshrl.u32 %v1866_v5, 7 }
 0x1df   :  { %2666 = vmatpush1.bf16.msra.mxu0 %v13835_v7 }
 0x1e0   :  { %2667 = vmatprep.subr.bf16.mxu0 %v13842_v9  ;;  %v15938_v9 = vsub.s32 0, %v1867_v6 }
 0x1e3   :  { %2668 = vmatpush1.bf16.msra.mxu0 %v13840_v12  ;;  %v15942_v12 = vsub.s32 2, %v1867_v6 }
 0x1e4   :  { %2669 = vmatprep.subr.bf16.mxu0 %v13847_v16  ;;  %v15949_v16 = vrot.slane %v1864_v8, %v15938_v9 }
 0x1e5   :  { %v15952_v17 = vrot.slane %v1864_v8, %v15942_v12 }
 0x1e7   :  { %2670 = vmatpush1.bf16.msra.mxu0 %v13845_v18 }
 0x1e8   :  { %2671 = vmatprep.subr.bf16.mxu0 %v13852_v54 }
 0x1eb   :  { %2672 = vmatpush1.bf16.msra.mxu0 %v13850_v21 }
 0x1ec   :  { %2673 = vmatprep.subr.bf16.mxu0 %v13857_v23 }
 0x1ef   :  { %2674 = vmatpush1.bf16.msra.mxu0 %v13855_v26 }
 0x1f0   :  { %2706 = vmatprep.subr.bf16.mxu0 %v13862_v30 }
 0x20c   :  { %v13046_v11 = vpop.f32.mrb[4].mxu1 }
 0x20d   :  { %v597_v13 = vpop.f32.mrb[5].mxu1 }
 0x20e   :  { %v13047_v14 = vpop.f32.mrb[6].mxu1 }
 0x20f   :  { %v600_v56 = vpop.f32.mrb[7].mxu1 }
 0x21b   :  { %v540_v28 = vpop.f32.mrb[12].mxu0 }
 0x21c   :  { %v542_v29 = vpop.f32.mrb[13].mxu0 }
 0x21d   :  { %v544_v50 = vpop.f32.mrb[14].mxu0 }
 0x21e   :  { %v545_v31 = vpop.f32.mrb[15].mxu0 }
 0x22c   :  { %v13070_v24 = vpop.f32.mrb[8].mxu1 }
 0x22d   :  { %v873_v33 = vadd.f32 %v13070_v24, %v13046_v11  ;;  %v864_v35 = vpop.f32.mrb[9].mxu1 }
 0x22e   :  { %v865_v25 = vadd.f32 %v864_v35, %v597_v13  ;;  %v13071_v37 = vpop.f32.mrb[10].mxu1  ;;  %v15944_v13 = vsub.s32 1, %v1867_v6 }
 0x22f   :  { %v867_v51 = vpop.f32.mrb[11].mxu1 }
 0x230   :  { %v868_v38 = vadd.f32 %v867_v51, %v600_v56  ;;  %v15955_v18 = vrot.slane %v1864_v8, %v15944_v13 }
 0x23b   :  { %v807_v39 = vpop.f32.mrb[16].mxu0 }
 0x23c   :  { %v808_v40 = vadd.f32 %v807_v39, %v540_v28  ;;  %v809_v41 = vpop.f32.mrb[17].mxu0 }
 0x23d   :  { %v810_v45 = vadd.f32 %v809_v41, %v542_v29  ;;  %v811_v36 = vpop.f32.mrb[18].mxu0 }
 0x23e   :  { %v812_v55 = vpop.f32.mrb[19].mxu0 }
 0x24c   :  { %v13094_v59 = vpop.f32.mrb[12].mxu1 }
 0x24d   :  { %v1206_v46 = vadd.f32 %v13094_v59, %v873_v33  ;;  %v1172_v42 = vpop.f32.mrb[13].mxu1 }
 0x24e   :  { %v1200_v48 = vadd.f32 %v1172_v42, %v865_v25  ;;  %v13095_v49 = vpop.f32.mrb[14].mxu1 }
 0x24f   :  { %v1175_v52 = vpop.f32.mrb[15].mxu1 }
 0x250   :  { %v1203_v57 = vadd.f32 %v1175_v52, %v868_v38 }
 0x25b   :  { %v1115_v58 = vpop.f32.mrb[20].mxu0 }
 0x25c   :  { %v1204_v44 = vadd.f32 %v1115_v58, %v808_v40  ;;  %v1117_v60 = vpop.f32.mrb[21].mxu0 }
 0x25d   :  { %v1205_v61 = vadd.f32 %v1117_v60, %v810_v45  ;;  %v1119_v47 = vpop.f32.mrb[22].mxu0 }
 0x25e   :  { %v1120_v62 = vpop.f32.mrb[23].mxu0 }
 0x26c   :  { %v13118_v63 = vpop.f32.mrb[16].mxu1 }
 0x26d   :  { %v1538_v1 = vadd.f32 %v13118_v63, %v1206_v46  ;;  %v1504_v34 = vpop.f32.mrb[17].mxu1 }
 0x26e   :  { %v15934_v2 = vadd.f32 %v1504_v34, %v1200_v48  ;;  %v13119_v53 = vpop.f32.mrb[18].mxu1 }
 0x26f   :  { %v1507_v3 = vpop.f32.mrb[19].mxu1 }
 0x270   :  { %v15936_v4 = vadd.f32 %v1507_v3, %v1203_v57 }
 0x27b   :  { %v1447_v7 = vpop.f32.mrb[24].mxu0 }
 0x27c   :  { %v15940_v10 = vadd.f32 %v1447_v7, %v1204_v44  ;;  %v1449_v11 = vpop.f32.mrb[25].mxu0 }
 0x27d   :  { %v15946_v14 = vadd.f32 %v1449_v11, %v1205_v61  ;;  %v1451_v15 = vpop.f32.mrb[26].mxu0 }
 0x27e   :  { %v1452_v56 = vpop.f32.mrb[27].mxu0 }
 0x283   :  { %v1742_v19 = vpop.f32.mrb[0].mxu0 }
 0x284   :  { %v13138_v54 = vpop.f32.mrb[0].mxu1  ;;  %v1881_v20 = vadd.f32 %v15949_v16, %v1742_v19  ;;  %v1744_v22 = vpop.f32.mrb[1].mxu0 }
 0x285   :  { %v1889_v21 = vadd.f32 %v13138_v54, %v15952_v17  ;;  %v1813_v23 = vpop.f32.mrb[1].mxu1  ;;  %v1882_v43 = vadd.f32 %v15955_v18, %v1744_v22  ;;  %v1746_v27 = vpop.f32.mrb[2].mxu0 }
 0x286   :  { %v1883_v26 = vadd.f32 %v15952_v17, %v1813_v23  ;;  %v13139_v28 = vpop.f32.mrb[2].mxu1  ;;  %v1902_v29 = vmax.f32 %v1881_v20, 0.0  ;;  %v1884_v50 = vadd.f32 %v15949_v16, %v1746_v27  ;;  %v1748_v24 = vpop.f32.mrb[3].mxu0 }
 0x287   :  { %v1910_v30 = vmax.f32 %v1889_v21, 0.0  ;;  %v1892_v31 = vadd.f32 %v13139_v28, %v15952_v17  ;;  %v1816_v33 = vpop.f32.mrb[3].mxu1  ;;  %v1903_v35 = vmax.f32 %v1882_v43, 0.0  ;;  %v1885_v37 = vadd.f32 %v15955_v18, %v1748_v24 }
 0x288   :  { %v1904_v25 = vmax.f32 %v1883_v26, 0.0  ;;  %v1886_v51 = vadd.f32 %v15952_v17, %v1816_v33  ;;  %v1945_v38 = vrot.slane %v1902_v29, 6  ;;  %v1905_v39 = vmax.f32 %v1884_v50, 0.0 }
 0x289   :  { %v1913_v40 = vmax.f32 %v1892_v31, 0.0  ;;  %v1946_v41 = vrot.slane %v1903_v35, 6  ;;  %v1906_v36 = vmax.f32 %v1885_v37, 0.0  ;;  %v1958_v46 = vrot.slane %v1910_v30, 6 }
 0x28a   :  { %v1947_v45 = vrot.slane %v1904_v25, 6  ;;  %v1907_v55 = vmax.f32 %v1886_v51, 0.0  ;;  %v2005_v59 = vsel %vm1944_vm3, 0.0, %v1945_v38  ;;  %v1948_v42 = vrot.slane %v1905_v39, 6 }
 0x28b   :  { %v15966_v48 = vrot.slane %v1913_v40, 6  ;;  %v2006_v49 = vsel %vm1944_vm3, 0.0, %v1946_v41  ;;  %v1950_v57 = vrot.slane %v1906_v36, 6  ;;  %v1752_v44 = vpop.f32.mrb[4].mxu0 }
 0x28c   :  { %v2007_v52 = vsel %vm1944_vm3, 0.0, %v1947_v45  ;;  %v1952_v58 = vrot.slane %v1907_v55, 6  ;;  %v13142_v60 = vpop.f32.mrb[20].mxu1  ;;  %v1949_v61 = vsel %vm1944_vm3, %v1945_v38, %v1948_v42  ;;  %v1887_v62 = vadd.f32 %v15949_v16, %v1752_v44  ;;  %v1754_v34 = vpop.f32.mrb[5].mxu0 }
 0x28d   :  { %v1965_v47 = vsel %vm1944_vm3, %v1958_v46, %v15966_v48  ;;  %v1863_v63 = vadd.f32 %v13142_v60, %v1538_v1  ;;  %v1829_v53 = vpop.f32.mrb[21].mxu1  ;;  %v15974_v3 = vpack.c.bf16 %v1949_v61, %v2005_v59  ;;  %v15976_v5 = vpack.c.bf16 %v1949_v61, %v1945_v38  ;;  %v1756_v8 = vpop.f32.mrb[6].mxu0 }
 0x28e   :  { %v1951_v6 = vsel %vm1944_vm3, %v1946_v41, %v1950_v57  ;;  %v1953_v7 = vsel %vm1944_vm3, %v1947_v45, %v1952_v58  ;;  %v13143_v11 = vpop.f32.mrb[22].mxu1  ;;  %v1959_v19 = vsel %vm1944_vm3, %v1952_v58, %v1958_v46  ;;  %v1758_v1 = vpop.f32.mrb[7].mxu0  ;;  %v1908_v23 = vmax.f32 %v1887_v62, 0.0 }
 0x28f   :  { %v15980_v15 = vpack.c.bf16 %v1951_v6, %v2006_v49  ;;  %v15982_v56 = vpack.c.bf16 %v1951_v6, %v1946_v41  ;;  %v15985_v54 = vpack.c.bf16 %v1953_v7, %v2007_v52  ;;  %v1832_v20 = vpop.f32.mrb[23].mxu1  ;;  %v15987_v21 = vpack.c.bf16 %v1965_v47, %v1959_v19 }
 0x290   :  { %v15989_v22 = vpack.c.bf16 %v1953_v7, %v1947_v45  ;;  %v1901_v43 = vadd.f32 %v15952_v17, %v1863_v63  ;;  %v1888_v26 = vadd.f32 %v15955_v18, %v1754_v34  ;;  %v1857_v27 = vadd.f32 %v1829_v53, %v15934_v2 }
 0x291   :  { %v1890_v28 = vadd.f32 %v15949_v16, %v1756_v8  ;;  %v1891_v29 = vadd.f32 %v15955_v18, %v1758_v1  ;;  %v1954_v30 = vrot.slane %v1908_v23, 6  ;;  %v1860_v31 = vadd.f32 %v1832_v20, %v15936_v4  ;;  %v13860_v23 = vld [vmem:[#allocation6 + $0x3c0] ss:$12 sps:$4 sm:$0xff]  }
 0x292   :  { %v1922_v50 = vmax.f32 %v1901_v43, 0.0  ;;  %v1909_v24 = vmax.f32 %v1888_v26, 0.0  ;;  %v1895_v33 = vadd.f32 %v15952_v17, %v1857_v27  ;;  %v2232_v2 = vrot.slane %v15980_v15, 1  ;;  %v13863_v43 = vld [vmem:[#allocation6 + $0x3c8] ss:$12 sps:$4 sm:$0xff]  }
 0x293   :  { %v1911_v35 = vmax.f32 %v1890_v28, 0.0  ;;  %v1912_v25 = vmax.f32 %v1891_v29, 0.0  ;;  %v1955_v37 = vsel %vm1944_vm3, %v1948_v42, %v1954_v30  ;;  %v1898_v51 = vadd.f32 %v15952_v17, %v1860_v31  ;;  %v1762_v38 = vpop.f32.mrb[8].mxu0 }
 0x294   :  { %v1956_v39 = vrot.slane %v1909_v24, 6  ;;  %v1916_v40 = vmax.f32 %v1895_v33, 0.0  ;;  %v1764_v36 = vpop.f32.mrb[9].mxu0  ;;  %v1982_v55 = vrot.slane %v1922_v50, 6  ;;  %v1893_v4 = vadd.f32 %v15949_v16, %v1762_v38 }
 0x295   :  { %v1960_v41 = vrot.slane %v1911_v35, 6  ;;  %v1962_v45 = vrot.slane %v1912_v25, 6  ;;  %v1919_v59 = vmax.f32 %v1898_v51, 0.0  ;;  %v1894_v46 = vadd.f32 %v15955_v18, %v1764_v36  ;;  %v1766_v49 = vpop.f32.mrb[10].mxu0 }
 0x296   :  { %v1957_v52 = vsel %vm1944_vm3, %v1950_v57, %v1956_v39  ;;  %v1970_v42 = vrot.slane %v1916_v40, 6  ;;  %v1768_v44 = vpop.f32.mrb[11].mxu0  ;;  %v1914_v62 = vmax.f32 %v1893_v4, 0.0  ;;  %v1896_v53 = vadd.f32 %v15949_v16, %v1766_v49 }
 0x297   :  { %v1961_v17 = vsel %vm1944_vm3, %v1954_v30, %v1960_v41  ;;  %v1963_v58 = vsel %vm1944_vm3, %v1956_v39, %v1962_v45  ;;  %v1976_v47 = vrot.slane %v1919_v59, 6  ;;  %v1915_v34 = vmax.f32 %v1894_v46, 0.0  ;;  %v13867_v59 = vld [vmem:[#allocation6 + $0x3e0] ss:$12 sps:$4 sm:$0xff]  }
 0x298   :  { %v16006_v60 = vpack.c.bf16 %v1961_v17, %v1955_v37  ;;  %v16008_v61 = vpack.c.bf16 %v1963_v58, %v1957_v52  ;;  %v1971_v63 = vsel %vm1944_vm3, %v15966_v48, %v1970_v42  ;;  %v1897_v57 = vadd.f32 %v15955_v18, %v1768_v44  ;;  %v13866_v37 = vld [vmem:[#allocation6 + $0x3dc] ss:$12 sps:$4 sm:$0xff]   ;;  %v13871_v17 = vld [vmem:[#allocation6 + $0x3f8] ss:$12 sps:$4 sm:$0xff]  }
 0x299   :  { %v1977_v6 = vsel %vm1944_vm3, %v1970_v42, %v1976_v47  ;;  %v16016_v7 = vsel %vm1944_vm3, %v1976_v47, %v1982_v55  ;;  %v1966_v8 = vrot.slane %v1914_v62, 6  ;;  %v1968_v1 = vrot.slane %v1915_v34, 6  ;;  %v13864_v55 = vld [vmem:[#allocation6 + $0x3d8] ss:$12 sps:$4 sm:$0xff]   ;;  %v13868_v52 = vld [vmem:[#allocation6 + $0x3f0] ss:$12 sps:$4 sm:$0xff]  }
 0x29a   :  { %v2233_v11 = vrot.slane %v16008_v61, 1  ;;  %v16019_v19 = vpack.c.bf16 %v1977_v6, %v1971_v63  ;;  %v1917_v20 = vmax.f32 %v1896_v53, 0.0  ;;  %v1918_v26 = vmax.f32 %v1897_v57, 0.0  ;;  %v13874_v63 = vld [vmem:[#allocation6 + $0x40c] ss:$12 sps:$4 sm:$0xff]  }
 0x29b   :  { %v1967_v48 = vsel %vm1944_vm3, %v1960_v41, %v1966_v8  ;;  %v1772_v27 = vpop.f32.mrb[28].mxu0  ;;  %v2229_v29 = vrot.slane %v15974_v3, 1  ;;  %v1969_v30 = vsel %vm1944_vm3, %v1962_v45, %v1968_v1  ;;  %v2230_v33 = vrot.slane %v16006_v60, 1 }
 0x29c   :  { %v2234_v28 = vsel %vm336_vm0, %v2232_v2, %v2233_v11  ;;  %v1972_v50 = vrot.slane %v1917_v20, 6  ;;  %v1861_v31 = vadd.f32 %v1772_v27, %v15940_v10  ;;  %v1774_v24 = vpop.f32.mrb[29].mxu0  ;;  %v1974_v35 = vrot.slane %v1918_v26, 6  ;;  %v13879_v26 = vld [vmem:[#allocation6 + $0x428] ss:$12 sps:$4 sm:$0xff]  }
 0x29d   :  { %2675 = vmatprep.mubr.bf16.mxu0 %v2234_v28  ;;  %2801 = vmatprep.mubr.bf16.mxu1 %v2234_v28  ;;  %v1862_v25 = vadd.f32 %v1774_v24, %v15946_v14  ;;  %v1776_v51 = vpop.f32.mrb[30].mxu0  ;;  %v2231_v39 = vsel %vm336_vm0, %v2229_v29, %v2230_v33  ;;  %v13882_v27 = vld [vmem:[#allocation6 + $0x43c] ss:$12 sps:$4 sm:$0xff]   ;;  %v13880_v29 = vld [vmem:[#allocation6 + $0x438] ss:$12 sps:$4 sm:$0xff]  }
 0x29e   :  { %v1973_v38 = vsel %vm1944_vm3, %v1966_v8, %v1972_v50  ;;  %v1899_v2 = vadd.f32 %v15949_v16, %v1861_v31  ;;  %v1777_v40 = vpop.f32.mrb[31].mxu0  ;;  %v1975_v10 = vsel %vm1944_vm3, %v1968_v1, %v1974_v35  ;;  %2676 = vmatmul.mubr.bf16.vlgmr.msra.gmra.mrb[32].mxu0 %v2231_v39  ;;  %2802 = vmatmul.mubr.bf16.vlgmr.msra.gmra.mrb[24].mxu1 %v2231_v39  ;;  %v13870_v16 = vld [vmem:[#allocation6 + $0x3f4] ss:$12 sps:$4 sm:$0xff]   ;;  %v13878_v1 = vld [vmem:[#allocation6 + $0x424] ss:$12 sps:$4 sm:$0xff]  }
 0x29f   :  { %v16031_v41 = vpack.c.bf16 %v1973_v38, %v1967_v48  ;;  %v1900_v45 = vadd.f32 %v15955_v18, %v1862_v25  ;;  %v16035_v36 = vpack.c.bf16 %v1975_v10, %v1969_v30  ;;  %2707 = vmatpush1.bf16.msra.mxu0 %v13860_v23  ;;  %13145 = vmatpush3.bf16.msra.mxu1 %v13863_v43  ;;  %v13872_v8 = vld [vmem:[#allocation6 + $0x408] ss:$12 sps:$4 sm:$0xff]   ;;  %v13876_v43 = vld [vmem:[#allocation6 + $0x420] ss:$12 sps:$4 sm:$0xff]   ;;  %v13884_v31 = vld [vmem:[#allocation6 + $0x450] ss:$12 sps:$4 sm:$0xff]  }
 0x2a0   :  { %v1920_v14 = vmax.f32 %v1899_v2, 0.0  ;;  %2708 = vmatprep.subr.bf16.mxu0 %v13866_v37  ;;  %13146 = vmatprep.subr.bf16.mxu1 %v15486_v32  ;;  %v13883_v30 = vld [vmem:[#allocation6 + $0x440] ss:$12 sps:$4 sm:$0xff]   ;;  %v13887_v24 = vld [vmem:[#allocation6 + $0x458] ss:$12 sps:$4 sm:$0xff]   ;;  %v2235_v38 = vrot.slane %v15985_v54, 1 }
 0x2a1   :  { %v1921_v4 = vmax.f32 %v1900_v45, 0.0  ;;  %v2240_v49 = vrot.slane %v16035_v36, 1  ;;  %v2238_v18 = vrot.slane %v16031_v41, 1  ;;  %v13891_v25 = vld [vmem:[#allocation6 + $0x470] ss:$12 sps:$4 sm:$0xff]   ;;  %v2236_v2 = vrot.slane %v15987_v21, 1 }
 0x2a2   :  { %v1978_v46 = vrot.slane %v1920_v14, 6  ;;  %v13894_v37 = vld [vmem:[#allocation6 + $0x4] ss:$12 sps:$4 sm:$0xff]   ;;  %v13895_v51 = vld [vmem:[#allocation6 + $0xc8] ss:$12 sps:$4 sm:$0xff]  }
 0x2a3   :  { %v1980_v42 = vrot.slane %v1921_v4, 6  ;;  %2709 = vmatpush1.bf16.msra.mxu0 %v13864_v55  ;;  %13147 = vmatpush3.bf16.msra.mxu1 %v13867_v59  ;;  %v2241_v44 = vsel %vm336_vm0, %v2233_v11, %v2240_v49  ;;  %v2239_v57 = vsel %vm336_vm0, %v2230_v33, %v2238_v18  ;;  %v13875_v11 = vld [vmem:[#allocation6 + $0x410] ss:$12 sps:$4 sm:$0xff]   ;;  %v13890_v33 = vld [vmem:[#allocation6 + $0x46c] ss:$12 sps:$4 sm:$0xff]   ;;  %v2237_v14 = vsel %vm336_vm0, %v2235_v38, %v2236_v2 }
 0x2a4   :  { %v1979_v58 = vsel %vm1944_vm3, %v1972_v50, %v1978_v46  ;;  %2685 = vmatprep.mubr.bf16.mxu0 %v2241_v44  ;;  %2710 = vmatprep.subr.bf16.mxu0 %v13870_v16  ;;  %v13886_v50 = vld [vmem:[#allocation6 + $0x454] ss:$12 sps:$4 sm:$0xff]   ;;  %v13899_v10 = vld [vmem:[#allocation6 + $0x1c] ss:$12 sps:$4 sm:$0xff]   ;;  %v13897_v55 = vld [vmem:[#allocation6 + $0x18] ss:$12 sps:$4 sm:$0xff]  }
 0x2a5   :  { %v2009_v47 = vsel %vm911_vm2, %v1979_v58, 0.0  ;;  %v1981_v62 = vsel %vm1944_vm3, %v1974_v35, %v1980_v42  ;;  %2809 = vmatprep.mubr.bf16.mxu1 %v2241_v44  ;;  %13148 = vmatprep.subr.bf16.mxu1 %v15486_v32  ;;  %v13888_v35 = vld [vmem:[#allocation6 + $0x468] ss:$12 sps:$4 sm:$0xff]   ;;  %v13892_v39 = vld [vmem:[#allocation6] ss:$12 sps:$4 sm:$0xff]   ;;  %v2242_v46 = vrot.slane %v16019_v19, 1 }
 0x2a6   :  { %v16044_v34 = vpack.c.bf16 %v2009_v47, %v2009_v47  ;;  %v2010_v53 = vsel %vm911_vm2, %v1981_v62, 0.0  ;;  %2686 = vmatmul.mubr.bf16.gmra.mrb[36].mxu0 %v2239_v57  ;;  %2810 = vmatmul.mubr.bf16.gmra.mrb[28].mxu1 %v2239_v57  ;;  %v13896_v40 = vld [vmem:[#allocation6 + $0x8] ss:$12 sps:$4 sm:$0xff]   ;;  %v13900_v45 = vld [vmem:[#allocation6 + $0xe0] ss:$12 sps:$4 sm:$0xff]  }
 0x2a7   :  { %v16049_v6 = vpack.c.bf16 %v2010_v53, %v2010_v53  ;;  %2711 = vmatpush1.bf16.msra.mxu0 %v13868_v52  ;;  %13149 = vmatpush3.bf16.msra.mxu1 %v13871_v17  ;;  %v13901_v59 = vld [vmem:[#allocation6 + $0x20] ss:$12 sps:$4 sm:$0xff]   ;;  %v13905_v16 = vld [vmem:[#allocation6 + $0xf8] ss:$12 sps:$4 sm:$0xff]   ;;  %v13910_v17 = vld [vmem:[#allocation6 + $0x110] ss:$12 sps:$4 sm:$0xff]   ;;  %v2243_v44 = vsel %vm336_vm0, %v2236_v2, %v2242_v46 }
 0x2a8   :  { %2712 = vmatprep.subr.bf16.mxu0 %v13874_v63  ;;  %13150 = vmatprep.subr.bf16.mxu1 %v15486_v32  ;;  %v2244_v23 = vrot.slane %v16044_v34, 1  ;;  %v13904_v4 = vld [vmem:[#allocation6 + $0x34] ss:$12 sps:$4 sm:$0xff]   ;;  %v13906_v52 = vld [vmem:[#allocation6 + $0x38] ss:$12 sps:$4 sm:$0xff]  }
 0x2a9   :  { %v2246_v20 = vrot.slane %v16049_v6, 1  ;;  %v13909_v42 = vld [vmem:[#allocation6 + $0x4c] ss:$12 sps:$4 sm:$0xff]   ;;  %v13907_v47 = vld [vmem:[#allocation6 + $0x48] ss:$12 sps:$4 sm:$0xff]  }
 0x2aa   :  { %v2245_v28 = vsel %vm336_vm0, %v2238_v18, %v2244_v23  ;;  %v2011_v18 = vsel %vm911_vm2, %v16016_v7, 0.0  ;;  %v13911_v62 = vld [vmem:[#allocation6 + $0x50] ss:$12 sps:$4 sm:$0xff]   ;;  %v13915_v7 = vld [vmem:[#allocation6 + $0x128] ss:$12 sps:$4 sm:$0xff]  }
 0x2ab   :  { %v2247_v48 = vsel %vm336_vm0, %v2240_v49, %v2246_v20  ;;  %2713 = vmatpush1.bf16.msra.mxu0 %v13872_v8  ;;  %13151 = vmatpush3.bf16.msra.mxu1 %v13875_v11  ;;  %v13902_v49 = vld [vmem:[#allocation6 + $0x30] ss:$12 sps:$4 sm:$0xff]   ;;  %v16072_v58 = vpack.c.bf16 %v2011_v18, %v2011_v18  ;;  %v13912_v57 = vld [vmem:[#allocation6 + $0x60] ss:$12 sps:$4 sm:$0xff]   ;;  %v13916_v8 = vld [vmem:[#allocation6 + $0x68] ss:$12 sps:$4 sm:$0xff]  }
 0x2ac   :  { %2714 = vmatprep.subr.bf16.mxu0 %v13878_v1  ;;  %13152 = vmatprep.subr.bf16.mxu1 %v15486_v32  ;;  %v13914_v63 = vld [vmem:[#allocation6 + $0x64] ss:$12 sps:$4 sm:$0xff]   ;;  %v13919_v23 = vld [vmem:[#allocation6 + $0x7c] ss:$12 sps:$4 sm:$0xff]   ;;  %v13942_v38 = vld [vmem:[#allocation6 + $0xf4] ss:$12 sps:$4 sm:$0xff]  }
 0x2ad   :  { %2695 = vmatprep.mubr.bf16.mxu0 %v2247_v48  ;;  %2817 = vmatprep.mubr.bf16.mxu1 %v2247_v48  ;;  %v2248_v53 = vrot.slane %v16072_v58, 1  ;;  %v13917_v20 = vld [vmem:[#allocation6 + $0x78] ss:$12 sps:$4 sm:$0xff]   ;;  %v13921_v48 = vld [vmem:[#allocation6 + $0x80] ss:$12 sps:$4 sm:$0xff]  }
 0x2ae   :  { %2696 = vmatmul.mubr.bf16.gmra.mrb[40].mxu0 %v2245_v28  ;;  %2818 = vmatmul.mubr.bf16.gmra.mrb[32].mxu1 %v2245_v28  ;;  %v13925_v28 = vld [vmem:[#allocation6 + $0x158] ss:$12 sps:$4 sm:$0xff]   ;;  %v13940_v2 = vld [vmem:[#allocation6 + $0xf0] ss:$12 sps:$4 sm:$0xff]  }
 0x2af   :  { %2715 = vmatpush1.bf16.msra.mxu0 %v13876_v43  ;;  %13153 = vmatpush3.bf16.msra.mxu1 %v13879_v26  ;;  %v2249_v1 = vsel %vm336_vm0, %v2242_v46, %v2248_v53  ;;  %v13920_v43 = vld [vmem:[#allocation6 + $0x140] ss:$12 sps:$4 sm:$0xff]   ;;  %v13959_v18 = vld [vmem:[#allocation6 + $0x218] ss:$12 sps:$4 sm:$0xff]   ;;  %v13971_v53 = vld [vmem:[#allocation6 + $0x19c] ss:$12 sps:$4 sm:$0xff]  }
 0x2b0   :  { %2716 = vmatprep.subr.bf16.mxu0 %v13882_v27  ;;  %13154 = vmatprep.subr.bf16.mxu1 %v15486_v32  ;;  %v13924_v26 = vld [vmem:[#allocation6 + $0x94] ss:$12 sps:$4 sm:$0xff]   ;;  %v13922_v27 = vld [vmem:[#allocation6 + $0x90] ss:$12 sps:$4 sm:$0xff]  }
 0x2b1   :  { %2738 = vmatprep.mubr.bf16.mxu0 %v15485_v0  ;;  %13160 = vmatprep.mubr.msk.bf16.mxu1 %vm15487_vm4, %v15486_v32  ;;  %v13955_v46 = vld [vmem:[#allocation6 + $0x200] ss:$12 sps:$4 sm:$0xff]   ;;  %v14901_v11 = vld [vmem:[#allocation15 + $0x350] ss:$8 sps:$4 sm:$0xff]  }
 0x2b3   :  { %2717 = vmatpush1.bf16.msra.mxu0 %v13880_v29  ;;  %13155 = vmatpush3.bf16.msra.mxu1 %v13883_v30  ;;  %v13926_v29 = vld [vmem:[#allocation6 + $0x98] ss:$12 sps:$4 sm:$0xff]  }
 0x2b4   :  { %2718 = vmatprep.subr.bf16.mxu0 %v13886_v50  ;;  %13156 = vmatprep.subr.bf16.mxu1 %v15486_v32  ;;  %v13929_v30 = vld [vmem:[#allocation6 + $0xac] ss:$12 sps:$4 sm:$0xff]   ;;  %v13927_v50 = vld [vmem:[#allocation6 + $0xa8] ss:$12 sps:$4 sm:$0xff]  }
 0x2b7   :  { %2719 = vmatpush1.bf16.msra.mxu0 %v13884_v31  ;;  %13157 = vmatpush3.bf16.msra.mxu1 %v13887_v24  ;;  %v13930_v31 = vld [vmem:[#allocation6 + $0x170] ss:$12 sps:$4 sm:$0xff]  }
 0x2b8   :  { %2720 = vmatprep.subr.bf16.mxu0 %v13890_v33  ;;  %13158 = vmatprep.subr.bf16.mxu1 %v15486_v32  ;;  %v13931_v24 = vld [vmem:[#allocation6 + $0xb0] ss:$12 sps:$4 sm:$0xff]  }
 0x2b9   :  { %v13934_v33 = vld [vmem:[#allocation6 + $0xc4] ss:$12 sps:$4 sm:$0xff]  }
 0x2bb   :  { %2721 = vmatpush1.bf16.msra.mxu0 %v13888_v35  ;;  %13159 = vmatpush3.bf16.msra.mxu1 %v13891_v25  ;;  %v13935_v35 = vld [vmem:[#allocation6 + $0x188] ss:$12 sps:$4 sm:$0xff]  }
 0x2bc   :  { %3267 = vmatprep.subr.bf16.mxu0 %v13894_v37  ;;  %12662 = vmatprep.subr.bf16.mxu1 %v13895_v51  ;;  %v13938_v25 = vld [vmem:[#allocation6 + $0xdc] ss:$12 sps:$4 sm:$0xff]   ;;  %v13936_v37 = vld [vmem:[#allocation6 + $0xd8] ss:$12 sps:$4 sm:$0xff]   ;;  %v13939_v51 = vld [vmem:[#allocation6 + $0x1a0] ss:$12 sps:$4 sm:$0xff]  }
 0x2be   :  { %2739 = vmatmul.mubr.bf16.vlgmr.msra.gmra.mrb[32].mxu0 %v2237_v14  ;;  %13161 = vmatmul.mubr.bf16.vlgmr.msra.gmra.mrb[36].mxu1 %v2237_v14  ;;  %v13950_v14 = vld [vmem:[#allocation6 + $0x124] ss:$12 sps:$4 sm:$0xff]  }
 0x2bf   :  { %3268 = vmatpush1.bf16.msra.mxu0 %v13892_v39  ;;  %12663 = vmatpush3.bf16.msra.mxu1 %v13896_v40  ;;  %v13943_v39 = vld [vmem:[#allocation6 + $0x1b8] ss:$12 sps:$4 sm:$0xff]   ;;  %v13944_v40 = vld [vmem:[#allocation6 + $0x108] ss:$12 sps:$4 sm:$0xff]  }
 0x2c0   :  { %3269 = vmatprep.subr.bf16.mxu0 %v13899_v10  ;;  %12664 = vmatprep.subr.bf16.mxu1 %v13900_v45  ;;  %v13946_v10 = vld [vmem:[#allocation6 + $0x10c] ss:$12 sps:$4 sm:$0xff]   ;;  %v13947_v45 = vld [vmem:[#allocation6 + $0x1d0] ss:$12 sps:$4 sm:$0xff]  }
 0x2c1   :  { %2748 = vmatprep.mubr.bf16.mxu0 %v15485_v0  ;;  %13164 = vmatprep.mubr.msk.bf16.mxu1 %vm15487_vm4, %v15486_v32 }
 0x2c3   :  { %3270 = vmatpush1.bf16.msra.mxu0 %v13897_v55  ;;  %12665 = vmatpush3.bf16.msra.mxu1 %v13901_v59  ;;  %v13948_v55 = vld [vmem:[#allocation6 + $0x120] ss:$12 sps:$4 sm:$0xff]   ;;  %v13951_v59 = vld [vmem:[#allocation6 + $0x1e8] ss:$12 sps:$4 sm:$0xff]  }
 0x2c4   :  { %3271 = vmatprep.subr.bf16.mxu0 %v13904_v4  ;;  %12666 = vmatprep.subr.bf16.mxu1 %v13905_v16  ;;  %v13954_v4 = vld [vmem:[#allocation6 + $0x13c] ss:$12 sps:$4 sm:$0xff]   ;;  %v13952_v16 = vld [vmem:[#allocation6 + $0x138] ss:$12 sps:$4 sm:$0xff]  }
 0x2c6   :  { %2749 = vmatmul.mubr.bf16.gmra.mrb[36].mxu0 %v2243_v44  ;;  %13165 = vmatmul.mubr.bf16.gmra.mrb[40].mxu1 %v2243_v44  ;;  %v13963_v44 = vld [vmem:[#allocation6 + $0x230] ss:$12 sps:$4 sm:$0xff]  }
 0x2c7   :  { %3272 = vmatpush1.bf16.msra.mxu0 %v13902_v49  ;;  %12667 = vmatpush3.bf16.msra.mxu1 %v13906_v52  ;;  %v13958_v49 = vld [vmem:[#allocation6 + $0x154] ss:$12 sps:$4 sm:$0xff]   ;;  %v13956_v52 = vld [vmem:[#allocation6 + $0x150] ss:$12 sps:$4 sm:$0xff]  }
 0x2c8   :  { %3273 = vmatprep.subr.bf16.mxu0 %v13909_v42  ;;  %12668 = vmatprep.subr.bf16.mxu1 %v13910_v17  ;;  %v13962_v42 = vld [vmem:[#allocation6 + $0x16c] ss:$12 sps:$4 sm:$0xff]   ;;  %v13960_v17 = vld [vmem:[#allocation6 + $0x168] ss:$12 sps:$4 sm:$0xff]  }
 0x2c9   :  { %2758 = vmatprep.mubr.bf16.mxu0 %v15485_v0  ;;  %13168 = vmatprep.mubr.msk.bf16.mxu1 %vm15487_vm4, %v15486_v32 }
 0x2cb   :  { %3274 = vmatpush1.bf16.msra.mxu0 %v13907_v47  ;;  %12669 = vmatpush3.bf16.msra.mxu1 %v13911_v62  ;;  %v13966_v47 = vld [vmem:[#allocation6 + $0x184] ss:$12 sps:$4 sm:$0xff]   ;;  %v13967_v62 = vld [vmem:[#allocation6 + $0x548] ss:$12 sps:$4 sm:$0xff]  }
 0x2cc   :  { %3275 = vmatprep.subr.bf16.mxu0 %v13914_v63  ;;  %12670 = vmatprep.subr.bf16.mxu1 %v13915_v7  ;;  %v13964_v63 = vld [vmem:[#allocation6 + $0x180] ss:$12 sps:$4 sm:$0xff]   ;;  %v13968_v7 = vld [vmem:[#allocation6 + $0x488] ss:$12 sps:$4 sm:$0xff]  }
 0x2ce   :  { %2759 = vmatmul.mubr.bf16.gmra.mrb[40].mxu0 %v2249_v1  ;;  %13169 = vmatmul.mubr.bf16.gmra.mrb[44].mxu1 %v2249_v1  ;;  %v13973_v1 = vld [vmem:[#allocation6 + $0x4a0] ss:$12 sps:$4 sm:$0xff]  }
 0x2cf   :  { %3276 = vmatpush1.bf16.msra.mxu0 %v13912_v57  ;;  %11709 = vmatprep.mubr.msk.bf16.mxu0 %vm16080_vm7, %v15982_v56  ;;  %v13972_v57 = vld [vmem:[#allocation6 + $0x560] ss:$12 sps:$4 sm:$0xff]  }
 0x2d0   :  { %12671 = vmatpush3.bf16.msra.mxu1 %v13916_v8  ;;  %11721 = vmatprep.mubr.msk.bf16.mxu1 %vm16080_vm7, %v15982_v56  ;;  %v13932_v56 = vld [vmem:[#allocation6 + $0xc0] ss:$12 sps:$4 sm:$0xff]   ;;  %v13969_v8 = vld [vmem:[#allocation6 + $0x198] ss:$12 sps:$4 sm:$0xff]  }
 0x2d1   :  { %3277 = vmatprep.subr.bf16.mxu0 %v13919_v23  ;;  %12672 = vmatprep.subr.bf16.mxu1 %v13920_v43  ;;  %v13977_v23 = vld [vmem:[#allocation6 + $0x578] ss:$12 sps:$4 sm:$0xff]   ;;  %v13974_v43 = vld [vmem:[#allocation6 + $0x1b0] ss:$12 sps:$4 sm:$0xff]  }
 0x2d3   :  { %3278 = vmatpush1.bf16.msra.mxu0 %v13917_v20  ;;  %v13976_v20 = vld [vmem:[#allocation6 + $0x1b4] ss:$12 sps:$4 sm:$0xff]  }
 0x2d4   :  { %12673 = vmatpush3.bf16.msra.mxu1 %v13921_v48  ;;  %3279 = vmatprep.subr.bf16.mxu0 %v13924_v26  ;;  %v13978_v48 = vld [vmem:[#allocation6 + $0x4b8] ss:$12 sps:$4 sm:$0xff]   ;;  %v13982_v26 = vld [vmem:[#allocation6 + $0x590] ss:$12 sps:$4 sm:$0xff]  }
 0x2d5   :  { %12674 = vmatprep.subr.bf16.mxu1 %v13925_v28  ;;  %v13983_v28 = vld [vmem:[#allocation6 + $0x4d0] ss:$12 sps:$4 sm:$0xff]  }
 0x2d7   :  { %3280 = vmatpush1.bf16.msra.mxu0 %v13922_v27  ;;  %v13979_v27 = vld [vmem:[#allocation6 + $0x1c8] ss:$12 sps:$4 sm:$0xff]  }
 0x2d8   :  { %12675 = vmatpush3.bf16.msra.mxu1 %v13926_v29  ;;  %3281 = vmatprep.subr.bf16.mxu0 %v13929_v30  ;;  %v13986_v29 = vld [vmem:[#allocation6 + $0x1e4] ss:$12 sps:$4 sm:$0xff]   ;;  %v13987_v30 = vld [vmem:[#allocation6 + $0x5a8] ss:$12 sps:$4 sm:$0xff]  }
 0x2d9   :  { %12676 = vmatprep.subr.bf16.mxu1 %v13930_v31  ;;  %v13988_v31 = vld [vmem:[#allocation6 + $0x4e8] ss:$12 sps:$4 sm:$0xff]  }
 0x2db   :  { %3282 = vmatpush1.bf16.msra.mxu0 %v13927_v50  ;;  %v13984_v50 = vld [vmem:[#allocation6 + $0x1e0] ss:$12 sps:$4 sm:$0xff]  }
 0x2dc   :  { %12677 = vmatpush3.bf16.msra.mxu1 %v13931_v24  ;;  %3283 = vmatprep.subr.bf16.mxu0 %v13934_v33  ;;  %v13991_v24 = vld [vmem:[#allocation6 + $0x1fc] ss:$12 sps:$4 sm:$0xff]   ;;  %v3608_v33 = vrot.slane %v16008_v61, 2 }
 0x2dd   :  { %13172 = vmatprep.subr.bf16.mxu1 %v15486_v32 }
 0x2df   :  { %11725 = vmatmul.mubr.msk.bf16.vlgmr.msra.gmra.mrb[48].mxu1 %vm16080_vm7, %v15976_v5  ;;  %3284 = vmatpush1.bf16.msra.mxu0 %v13932_v56  ;;  %v13992_v56 = vld [vmem:[#allocation6 + $0x5c0] ss:$12 sps:$4 sm:$0xff]  }
 0x2e0   :  { %3433 = vmatprep.mubr.bf16.mxu1 %v16008_v61  ;;  %13173 = vmatpush3.bf16.msra.mxu1 %v13935_v35  ;;  %v3607_v35 = vrot.slane %v15980_v15, 2 }
 0x2e1   :  { %3285 = vmatprep.subr.bf16.mxu0 %v13938_v25  ;;  %13174 = vmatprep.subr.bf16.mxu1 %v15486_v32  ;;  %v13989_v25 = vld [vmem:[#allocation6 + $0x1f8] ss:$12 sps:$4 sm:$0xff]  }
 0x2e3   :  { %3286 = vmatpush1.bf16.msra.mxu0 %v13936_v37  ;;  %v16128_v37 = vsel %vm911_vm2, %v3607_v35, %v3608_v33  ;;  %v14035_v35 = vld [vmem:[#allocation6 + $0x6b0] ss:$12 sps:$4 sm:$0xff]  }
 0x2e4   :  { %13175 = vmatpush3.bf16.msra.mxu1 %v13939_v51  ;;  %3287 = vmatprep.subr.bf16.mxu0 %v13942_v38  ;;  %v13993_v51 = vld [vmem:[#allocation6 + $0x500] ss:$12 sps:$4 sm:$0xff]  }
 0x2e5   :  { %13176 = vmatprep.subr.bf16.mxu1 %v15486_v32  ;;  %v13996_v38 = vld [vmem:[#allocation6 + $0x214] ss:$12 sps:$4 sm:$0xff]  }
 0x2e7   :  { %3434 = vmatmul.mubr.bf16.gmra.mrb[52].mxu1 %v16006_v60  ;;  %3288 = vmatpush1.bf16.msra.mxu0 %v13940_v2  ;;  %v13997_v2 = vld [vmem:[#allocation6 + $0x5d8] ss:$12 sps:$4 sm:$0xff]  }
 0x2e8   :  { %3441 = vmatprep.mubr.bf16.mxu1 %v16035_v36  ;;  %13177 = vmatpush3.bf16.msra.mxu1 %v13943_v39  ;;  %v13994_v39 = vld [vmem:[#allocation6 + $0x210] ss:$12 sps:$4 sm:$0xff]  }
 0x2e9   :  { %3289 = vmatprep.subr.bf16.mxu0 %v13946_v10  ;;  %13178 = vmatprep.subr.bf16.mxu1 %v15486_v32  ;;  %v14001_v10 = vld [vmem:[#allocation6 + $0x22c] ss:$12 sps:$4 sm:$0xff]  }
 0x2eb   :  { %3290 = vmatpush1.bf16.msra.mxu0 %v13944_v40  ;;  %v13998_v40 = vld [vmem:[#allocation6 + $0x518] ss:$12 sps:$4 sm:$0xff]  }
 0x2ec   :  { %13179 = vmatpush3.bf16.msra.mxu1 %v13947_v45  ;;  %3291 = vmatprep.subr.bf16.mxu0 %v13950_v14  ;;  %v14002_v45 = vld [vmem:[#allocation6 + $0x5f0] ss:$12 sps:$4 sm:$0xff]   ;;  %v13999_v14 = vld [vmem:[#allocation6 + $0x228] ss:$12 sps:$4 sm:$0xff]  }
 0x2ed   :  { %13180 = vmatprep.subr.bf16.mxu1 %v15486_v32 }
 0x2ef   :  { %3442 = vmatmul.mubr.bf16.gmra.mrb[56].mxu1 %v16031_v41  ;;  %3292 = vmatpush1.bf16.msra.mxu0 %v13948_v55  ;;  %v14003_v55 = vld [vmem:[#allocation6 + $0x530] ss:$12 sps:$4 sm:$0xff]  }
 0x2f0   :  { %13181 = vmatpush3.bf16.msra.mxu1 %v13951_v59  ;;  %3293 = vmatprep.subr.bf16.mxu0 %v13954_v4  ;;  %v14006_v59 = vld [vmem:[#allocation6 + $0x484] ss:$12 sps:$4 sm:$0xff]   ;;  %v14004_v4 = vld [vmem:[#allocation6 + $0x480] ss:$12 sps:$4 sm:$0xff]  }
 0x2f1   :  { %13182 = vmatprep.subr.bf16.mxu1 %v15486_v32  ;;  %13188 = vmatprep.mubr.msk.bf16.mxu1 %vm15487_vm4, %v15486_v32 }
 0x2f3   :  { %3294 = vmatpush1.bf16.msra.mxu0 %v13952_v16  ;;  %v3605_v16 = vrot.slane %v16006_v60, 2 }
 0x2f4   :  { %13183 = vmatpush3.bf16.msra.mxu1 %v13955_v46  ;;  %3295 = vmatprep.subr.bf16.mxu0 %v13958_v49  ;;  %v3615_v46 = vrot.slane %v16035_v36, 2  ;;  %v14007_v49 = vld [vmem:[#allocation6 + $0x608] ss:$12 sps:$4 sm:$0xff]  }
 0x2f5   :  { %13184 = vmatprep.subr.bf16.mxu1 %v15486_v32 }
 0x2f7   :  { %3296 = vmatpush1.bf16.msra.mxu0 %v13956_v52  ;;  %v3604_v52 = vrot.slane %v15974_v3, 2 }
 0x2f8   :  { %13185 = vmatpush3.bf16.msra.mxu1 %v13959_v18  ;;  %3297 = vmatprep.subr.bf16.mxu0 %v13962_v42  ;;  %v14010_v18 = vld [vmem:[#allocation6 + $0x49c] ss:$12 sps:$4 sm:$0xff]  }
 0x2f9   :  { %13186 = vmatprep.subr.bf16.mxu1 %v15486_v32  ;;  %v16136_v42 = vsel %vm911_vm2, %v3604_v52, %v3605_v16  ;;  %v14053_v52 = vld [vmem:[#allocation6 + $0x58c] ss:$12 sps:$4 sm:$0xff]  }
 0x2fb   :  { %3298 = vmatpush1.bf16.msra.mxu0 %v13960_v17  ;;  %v14008_v17 = vld [vmem:[#allocation6 + $0x498] ss:$12 sps:$4 sm:$0xff]  }
 0x2fc   :  { %13187 = vmatpush3.bf16.msra.mxu1 %v13963_v44  ;;  %3330 = vmatprep.subr.bf16.mxu0 %v13966_v47  ;;  %v16143_v44 = vsel %vm911_vm2, %v3608_v33, %v3615_v46  ;;  %v14011_v47 = vld [vmem:[#allocation6 + $0x620] ss:$12 sps:$4 sm:$0xff]  }
 0x2fd   :  { %12707 = vmatprep.subr.bf16.mxu1 %v13967_v62  ;;  %v14014_v62 = vld [vmem:[#allocation6 + $0x4b4] ss:$12 sps:$4 sm:$0xff]   ;;  %v14034_v33 = vld [vmem:[#allocation6 + $0x52c] ss:$12 sps:$4 sm:$0xff]  }
 0x2fe   :  { %11713 = vmatmul.mubr.msk.bf16.vlgmr.msra.gmra.mrb[32].mxu0 %vm16080_vm7, %v15976_v5  ;;  %v13981_v5 = vld [vmem:[#allocation6 + $0x1cc] ss:$12 sps:$4 sm:$0xff]  }
 0x2ff   :  { %13189 = vmatmul.mubr.msk.bf16.vlgmr.msra.gmra.mrb[60].mxu1 %vm16080_vm7, %v15989_v22  ;;  %3309 = vmatprep.mubr.bf16.mxu0 %v16008_v61 }
 0x300   :  { %3331 = vmatpush1.bf16.msra.mxu0 %v13964_v63  ;;  %12708 = vmatpush3.bf16.msra.mxu1 %v13968_v7  ;;  %v14012_v63 = vld [vmem:[#allocation6 + $0x4b0] ss:$12 sps:$4 sm:$0xff]   ;;  %v3613_v7 = vrot.slane %v16031_v41, 2 }
 0x301   :  { %3332 = vmatprep.subr.bf16.mxu0 %v13971_v53  ;;  %12709 = vmatprep.subr.bf16.mxu1 %v13972_v57  ;;  %v14015_v53 = vld [vmem:[#allocation6 + $0x638] ss:$12 sps:$4 sm:$0xff]  }
 0x302   :  { %13192 = vmatprep.mubr.msk.bf16.mxu1 %vm15487_vm4, %v15486_v32  ;;  %v14018_v57 = vld [vmem:[#allocation6 + $0x4cc] ss:$12 sps:$4 sm:$0xff]  }
 0x304   :  { %3333 = vmatpush1.bf16.msra.mxu0 %v13969_v8  ;;  %12710 = vmatpush3.bf16.msra.mxu1 %v13973_v1  ;;  %v16151_v8 = vsel %vm911_vm2, %v3605_v16, %v3613_v7  ;;  %v14016_v1 = vld [vmem:[#allocation6 + $0x4c8] ss:$12 sps:$4 sm:$0xff]   ;;  %v14046_v16 = vld [vmem:[#allocation6 + $0x570] ss:$12 sps:$4 sm:$0xff]  }
 0x305   :  { %3334 = vmatprep.subr.bf16.mxu0 %v13976_v20  ;;  %12711 = vmatprep.subr.bf16.mxu1 %v13977_v23  ;;  %v14019_v23 = vld [vmem:[#allocation6 + $0x650] ss:$12 sps:$4 sm:$0xff]  }
 0x306   :  { %3310 = vmatmul.mubr.bf16.gmra.mrb[36].mxu0 %v16006_v60 }
 0x307   :  { %13193 = vmatmul.mubr.bf16.gmra.mrb[64].mxu1 %v15987_v21  ;;  %3319 = vmatprep.mubr.bf16.mxu0 %v16035_v36 }
 0x308   :  { %3335 = vmatpush1.bf16.msra.mxu0 %v13974_v43  ;;  %12712 = vmatpush3.bf16.msra.mxu1 %v13978_v48  ;;  %v14022_v43 = vld [vmem:[#allocation6 + $0x4e4] ss:$12 sps:$4 sm:$0xff]   ;;  %v14020_v48 = vld [vmem:[#allocation6 + $0x4e0] ss:$12 sps:$4 sm:$0xff]  }
 0x309   :  { %3336 = vmatprep.subr.bf16.mxu0 %v13981_v5  ;;  %12713 = vmatprep.subr.bf16.mxu1 %v13982_v26  ;;  %v3619_v5 = vrot.slane %v16044_v34, 2  ;;  %v14023_v26 = vld [vmem:[#allocation6 + $0x668] ss:$12 sps:$4 sm:$0xff]  }
 0x30a   :  { %13196 = vmatprep.mubr.msk.bf16.mxu1 %vm15487_vm4, %v15486_v32 }
 0x30c   :  { %3337 = vmatpush1.bf16.msra.mxu0 %v13979_v27  ;;  %12714 = vmatpush3.bf16.msra.mxu1 %v13983_v28  ;;  %v14026_v27 = vld [vmem:[#allocation6 + $0x4fc] ss:$12 sps:$4 sm:$0xff]   ;;  %v16164_v28 = vsel %vm911_vm2, %v3613_v7, %v3619_v5  ;;  %v14056_v7 = vld [vmem:[#allocation6 + $0x5a0] ss:$12 sps:$4 sm:$0xff]   ;;  %v14061_v5 = vld [vmem:[#allocation6 + $0x5b8] ss:$12 sps:$4 sm:$0xff]  }
 0x30d   :  { %3338 = vmatprep.subr.bf16.mxu0 %v13986_v29  ;;  %12715 = vmatprep.subr.bf16.mxu1 %v13987_v30  ;;  %v14024_v29 = vld [vmem:[#allocation6 + $0x4f8] ss:$12 sps:$4 sm:$0xff]   ;;  %v14027_v30 = vld [vmem:[#allocation6 + $0x680] ss:$12 sps:$4 sm:$0xff]  }
 0x30e   :  { %3320 = vmatmul.mubr.bf16.gmra.mrb[40].mxu0 %v16031_v41 }
 0x30f   :  { %13197 = vmatmul.mubr.bf16.gmra.mrb[68].mxu1 %v16019_v19  ;;  %3362 = vmatprep.mubr.bf16.mxu0 %v15485_v0 }
 0x310   :  { %3339 = vmatpush1.bf16.msra.mxu0 %v13984_v50  ;;  %12716 = vmatpush3.bf16.msra.mxu1 %v13988_v31  ;;  %v14030_v50 = vld [vmem:[#allocation6 + $0x514] ss:$12 sps:$4 sm:$0xff]   ;;  %v14028_v31 = vld [vmem:[#allocation6 + $0x510] ss:$12 sps:$4 sm:$0xff]  }
 0x311   :  { %4176 = vmatprep.mubr.bf16.mxu1 %v16128_v37  ;;  %3340 = vmatprep.subr.bf16.mxu0 %v13991_v24  ;;  %v14031_v24 = vld [vmem:[#allocation6 + $0x698] ss:$12 sps:$4 sm:$0xff]  }
 0x312   :  { %12717 = vmatprep.subr.bf16.mxu1 %v13992_v56  ;;  %v14032_v56 = vld [vmem:[#allocation6 + $0x528] ss:$12 sps:$4 sm:$0xff]  }
 0x314   :  { %3341 = vmatpush1.bf16.msra.mxu0 %v13989_v25  ;;  %12718 = vmatpush3.bf16.msra.mxu1 %v13993_v51  ;;  %v14038_v25 = vld [vmem:[#allocation6 + $0x544] ss:$12 sps:$4 sm:$0xff]   ;;  %v14036_v51 = vld [vmem:[#allocation6 + $0x540] ss:$12 sps:$4 sm:$0xff]  }
 0x315   :  { %3342 = vmatprep.subr.bf16.mxu0 %v13996_v38  ;;  %12719 = vmatprep.subr.bf16.mxu1 %v13997_v2  ;;  %v3610_v38 = vrot.slane %v15985_v54, 2  ;;  %v3611_v2 = vrot.slane %v15987_v21, 2 }
 0x318   :  { %3343 = vmatpush1.bf16.msra.mxu0 %v13994_v39  ;;  %12720 = vmatpush3.bf16.msra.mxu1 %v13998_v40  ;;  %v14040_v39 = vld [vmem:[#allocation6 + $0x6c8] ss:$12 sps:$4 sm:$0xff]  }
 0x319   :  { %3344 = vmatprep.subr.bf16.mxu0 %v14001_v10  ;;  %12721 = vmatprep.subr.bf16.mxu1 %v14002_v45  ;;  %v14043_v40 = vld [vmem:[#allocation6 + $0x55c] ss:$12 sps:$4 sm:$0xff]   ;;  %v14044_v10 = vld [vmem:[#allocation6 + $0x7a0] ss:$12 sps:$4 sm:$0xff]   ;;  %v14041_v45 = vld [vmem:[#allocation6 + $0x558] ss:$12 sps:$4 sm:$0xff]  }
 0x31c   :  { %3345 = vmatpush1.bf16.msra.mxu0 %v13999_v14  ;;  %12722 = vmatpush3.bf16.msra.mxu1 %v14003_v55  ;;  %v16178_v14 = vsel %vm911_vm2, %v3610_v38, %v3611_v2  ;;  %v14045_v55 = vld [vmem:[#allocation6 + $0x6e0] ss:$12 sps:$4 sm:$0xff]   ;;  %v4374_v38 = vrot.slane %v16006_v60, 3 }
 0x31d   :  { %4018 = vmatprep.subr.bf16.mxu0 %v14006_v59  ;;  %13200 = vmatprep.subr.bf16.mxu1 %v15486_v32  ;;  %v14048_v59 = vld [vmem:[#allocation6 + $0x574] ss:$12 sps:$4 sm:$0xff]  }
 0x31f   :  { %11717 = vmatmul.mubr.msk.bf16.vlgmr.msra.gmra.mrb[32].mxu0 %vm16080_vm7, %v15989_v22  ;;  %4177 = vmatmul.mubr.bf16.vlgmr.msra.gmra.mrb[72].mxu1 %v16136_v42  ;;  %v3621_v22 = vrot.slane %v16049_v6, 2 }
 0x320   :  { %4019 = vmatpush1.bf16.msra.mxu0 %v14004_v4  ;;  %4184 = vmatprep.mubr.bf16.mxu1 %v16143_v44  ;;  %v14049_v4 = vld [vmem:[#allocation6 + $0x7b8] ss:$12 sps:$4 sm:$0xff]  }
 0x321   :  { %13201 = vmatpush3.bf16.msra.mxu1 %v14007_v49  ;;  %4020 = vmatprep.subr.bf16.mxu0 %v14010_v18  ;;  %v16157_v20 = vsel %vm911_vm2, %v3615_v46, %v3621_v22  ;;  %v3617_v46 = vrot.slane %v16019_v19, 2  ;;  %v14050_v49 = vld [vmem:[#allocation6 + $0x6f8] ss:$12 sps:$4 sm:$0xff]   ;;  %v14054_v18 = vld [vmem:[#allocation6 + $0x7d0] ss:$12 sps:$4 sm:$0xff]  }
 0x322   :  { %13202 = vmatprep.subr.bf16.mxu1 %v15486_v32  ;;  %3372 = vmatprep.mubr.bf16.mxu0 %v15485_v0  ;;  %v14059_v22 = vld [vmem:[#allocation6 + $0x7e8] ss:$12 sps:$4 sm:$0xff]  }
 0x324   :  { %4021 = vmatpush1.bf16.msra.mxu0 %v14008_v17  ;;  %v14051_v17 = vld [vmem:[#allocation6 + $0x588] ss:$12 sps:$4 sm:$0xff]  }
 0x325   :  { %13203 = vmatpush3.bf16.msra.mxu1 %v14011_v47  ;;  %4022 = vmatprep.subr.bf16.mxu0 %v14014_v62  ;;  %v16185_v47 = vsel %vm911_vm2, %v3611_v2, %v3617_v46  ;;  %v14055_v62 = vld [vmem:[#allocation6 + $0x710] ss:$12 sps:$4 sm:$0xff]   ;;  %v4384_v2 = vrot.slane %v16035_v36, 3 }
 0x326   :  { %13204 = vmatprep.subr.bf16.mxu1 %v15486_v32 }
 0x327   :  { %3373 = vmatmul.mubr.bf16.gmra.mrb[36].mxu0 %v15987_v21  ;;  %4185 = vmatmul.mubr.bf16.gmra.mrb[76].mxu1 %v16151_v8 }
 0x328   :  { %4023 = vmatpush1.bf16.msra.mxu0 %v14012_v63  ;;  %4192 = vmatprep.mubr.bf16.mxu1 %v16157_v20  ;;  %v14058_v63 = vld [vmem:[#allocation6 + $0x5a4] ss:$12 sps:$4 sm:$0xff]  }
 0x329   :  { %13205 = vmatpush3.bf16.msra.mxu1 %v14015_v53  ;;  %4024 = vmatprep.subr.bf16.mxu0 %v14018_v57  ;;  %v3623_v53 = vrot.slane %v16072_v58, 2  ;;  %v14060_v57 = vld [vmem:[#allocation6 + $0x728] ss:$12 sps:$4 sm:$0xff]  }
 0x32a   :  { %13206 = vmatprep.subr.bf16.mxu1 %v15486_v32  ;;  %3382 = vmatprep.mubr.bf16.mxu0 %v15485_v0 }
 0x32c   :  { %4025 = vmatpush1.bf16.msra.mxu0 %v14016_v1  ;;  %v4377_v1 = vrot.slane %v16008_v61, 3 }
 0x32d   :  { %13207 = vmatpush3.bf16.msra.mxu1 %v14019_v23  ;;  %4026 = vmatprep.subr.bf16.mxu0 %v14022_v43  ;;  %v14063_v23 = vld [vmem:[#allocation6 + $0x5bc] ss:$12 sps:$4 sm:$0xff]   ;;  %v14064_v43 = vld [vmem:[#allocation6 + $0x800] ss:$12 sps:$4 sm:$0xff]  }
 0x32e   :  { %13208 = vmatprep.subr.bf16.mxu1 %v15486_v32 }
 0x32f   :  { %3383 = vmatmul.mubr.bf16.gmra.mrb[40].mxu0 %v16019_v19  ;;  %4193 = vmatmul.mubr.bf16.gmra.mrb[80].mxu1 %v16164_v28 }
 0x330   :  { %4027 = vmatpush1.bf16.msra.mxu0 %v14020_v48  ;;  %4050 = vmatprep.mubr.bf16.mxu0 %v16128_v37  ;;  %v14039_v37 = vld [vmem:[#allocation6 + $0x788] ss:$12 sps:$4 sm:$0xff]   ;;  %v4376_v48 = vrot.slane %v15980_v15, 3 }
 0x331   :  { %13209 = vmatpush3.bf16.msra.mxu1 %v14023_v26  ;;  %4028 = vmatprep.subr.bf16.mxu0 %v14026_v27  ;;  %v16194_v26 = vsel %vm911_vm2, %v3617_v46, %v3623_v53  ;;  %v14065_v27 = vld [vmem:[#allocation6 + $0x740] ss:$12 sps:$4 sm:$0xff]   ;;  %v4382_v46 = vrot.slane %v16031_v41, 3  ;;  %v14095_v53 = vld [vmem:[#allocation6 + $0x8a8] ss:$12 sps:$4 sm:$0xff]  }
 0x332   :  { %13210 = vmatprep.subr.bf16.mxu1 %v15486_v32  ;;  %13216 = vmatprep.mubr.msk.bf16.mxu1 %vm15487_vm4, %v15486_v32 }
 0x334   :  { %4029 = vmatpush1.bf16.msra.mxu0 %v14024_v29  ;;  %v16198_v29 = vsel %vm1243_vm1, %v4376_v48, %v4377_v1  ;;  %v14099_v48 = vld [vmem:[#allocation6 + $0x8c0] ss:$12 sps:$4 sm:$0xff]  }
 0x335   :  { %13211 = vmatpush3.bf16.msra.mxu1 %v14027_v30  ;;  %4030 = vmatprep.subr.bf16.mxu0 %v14030_v50  ;;  %v14068_v30 = vld [vmem:[#allocation6 + $0x5d4] ss:$12 sps:$4 sm:$0xff]   ;;  %v14069_v50 = vld [vmem:[#allocation6 + $0x818] ss:$12 sps:$4 sm:$0xff]  }
 0x336   :  { %13212 = vmatprep.subr.bf16.mxu1 %v15486_v32 }
 0x338   :  { %4031 = vmatpush1.bf16.msra.mxu0 %v14028_v31  ;;  %v14066_v31 = vld [vmem:[#allocation6 + $0x5d0] ss:$12 sps:$4 sm:$0xff]  }
 0x339   :  { %13213 = vmatpush3.bf16.msra.mxu1 %v14031_v24  ;;  %4032 = vmatprep.subr.bf16.mxu0 %v14034_v33  ;;  %v14070_v24 = vld [vmem:[#allocation6 + $0x758] ss:$12 sps:$4 sm:$0xff]  }
 0x33a   :  { %13214 = vmatprep.subr.bf16.mxu1 %v15486_v32  ;;  %v14073_v33 = vld [vmem:[#allocation6 + $0x5ec] ss:$12 sps:$4 sm:$0xff]  }
 0x33c   :  { %4033 = vmatpush1.bf16.msra.mxu0 %v14032_v56  ;;  %v14071_v56 = vld [vmem:[#allocation6 + $0x5e8] ss:$12 sps:$4 sm:$0xff]  }
 0x33d   :  { %13215 = vmatpush3.bf16.msra.mxu1 %v14035_v35  ;;  %4034 = vmatprep.subr.bf16.mxu0 %v14038_v25  ;;  %v14074_v35 = vld [vmem:[#allocation6 + $0x830] ss:$12 sps:$4 sm:$0xff]  }
 0x33e   :  { %12752 = vmatprep.subr.bf16.mxu1 %v14039_v37  ;;  %v14075_v25 = vld [vmem:[#allocation6 + $0x770] ss:$12 sps:$4 sm:$0xff]  }
 0x33f   :  { %v14078_v37 = vld [vmem:[#allocation6 + $0x604] ss:$12 sps:$4 sm:$0xff]  }
 0x340   :  { %13217 = vmatmul.mubr.bf16.vlgmr.msra.gmra.mrb[84].mxu1 %v16178_v14  ;;  %4035 = vmatpush1.bf16.msra.mxu0 %v14036_v51  ;;  %v14076_v51 = vld [vmem:[#allocation6 + $0x600] ss:$12 sps:$4 sm:$0xff]  }
 0x341   :  { %12753 = vmatpush3.bf16.msra.mxu1 %v14040_v39  ;;  %4036 = vmatprep.subr.bf16.mxu0 %v14043_v40  ;;  %v14079_v39 = vld [vmem:[#allocation6 + $0x848] ss:$12 sps:$4 sm:$0xff]  }
 0x342   :  { %12754 = vmatprep.subr.bf16.mxu1 %v14044_v10  ;;  %13220 = vmatprep.mubr.msk.bf16.mxu1 %vm15487_vm4, %v15486_v32  ;;  %v14082_v40 = vld [vmem:[#allocation6 + $0x61c] ss:$12 sps:$4 sm:$0xff]   ;;  %v4373_v10 = vrot.slane %v15974_v3, 3 }
 0x344   :  { %4037 = vmatpush1.bf16.msra.mxu0 %v14041_v45  ;;  %v16207_v45 = vsel %vm1243_vm1, %v4373_v10, %v4374_v38  ;;  %v4379_v10 = vrot.slane %v15985_v54, 3 }
 0x345   :  { %12755 = vmatpush3.bf16.msra.mxu1 %v14045_v55  ;;  %4038 = vmatprep.subr.bf16.mxu0 %v14048_v59  ;;  %v14080_v55 = vld [vmem:[#allocation6 + $0x618] ss:$12 sps:$4 sm:$0xff]   ;;  %v16212_v59 = vsel %vm1243_vm1, %v4377_v1, %v4384_v2 }
 0x346   :  { %12756 = vmatprep.subr.bf16.mxu1 %v14049_v4  ;;  %v14083_v4 = vld [vmem:[#allocation6 + $0x860] ss:$12 sps:$4 sm:$0xff]  }
 0x348   :  { %13221 = vmatmul.mubr.bf16.gmra.mrb[88].mxu1 %v16185_v47  ;;  %4039 = vmatpush1.bf16.msra.mxu0 %v14046_v16  ;;  %v14086_v16 = vld [vmem:[#allocation6 + $0x634] ss:$12 sps:$4 sm:$0xff]  }
 0x349   :  { %12757 = vmatpush3.bf16.msra.mxu1 %v14050_v49  ;;  %4040 = vmatprep.subr.bf16.mxu0 %v14053_v52  ;;  %v4390_v49 = vrot.slane %v16049_v6, 3  ;;  %v14087_v52 = vld [vmem:[#allocation6 + $0x878] ss:$12 sps:$4 sm:$0xff]  }
 0x34a   :  { %12758 = vmatprep.subr.bf16.mxu1 %v14054_v18  ;;  %13224 = vmatprep.mubr.msk.bf16.mxu1 %vm15487_vm4, %v15486_v32  ;;  %v14090_v18 = vld [vmem:[#allocation6 + $0x64c] ss:$12 sps:$4 sm:$0xff]  }
 0x34c   :  { %4041 = vmatpush1.bf16.msra.mxu0 %v14051_v17  ;;  %v16226_v17 = vsel %vm1243_vm1, %v4384_v2, %v4390_v49  ;;  %v14116_v49 = vld [vmem:[#allocation6 + $0x9e0] ss:$12 sps:$4 sm:$0xff]  }
 0x34d   :  { %12759 = vmatpush3.bf16.msra.mxu1 %v14055_v62  ;;  %4042 = vmatprep.subr.bf16.mxu0 %v14058_v63  ;;  %v14088_v62 = vld [vmem:[#allocation6 + $0x648] ss:$12 sps:$4 sm:$0xff]   ;;  %v4388_v63 = vrot.slane %v16044_v34, 3 }
 0x34e   :  { %12760 = vmatprep.subr.bf16.mxu1 %v14059_v22  ;;  %v14092_v22 = vld [vmem:[#allocation6 + $0x660] ss:$12 sps:$4 sm:$0xff]  }
 0x350   :  { %13225 = vmatmul.mubr.bf16.gmra.mrb[92].mxu1 %v16194_v26  ;;  %4043 = vmatpush1.bf16.msra.mxu0 %v14056_v7  ;;  %v14094_v7 = vld [vmem:[#allocation6 + $0x664] ss:$12 sps:$4 sm:$0xff]  }
 0x351   :  { %12761 = vmatpush3.bf16.msra.mxu1 %v14060_v57  ;;  %4945 = vmatprep.mubr.bf16.mxu1 %v16198_v29  ;;  %v14098_v57 = vld [vmem:[#allocation6 + $0x67c] ss:$12 sps:$4 sm:$0xff]  }
 0x352   :  { %4044 = vmatprep.subr.bf16.mxu0 %v14063_v23  ;;  %12762 = vmatprep.subr.bf16.mxu1 %v14064_v43  ;;  %v14096_v23 = vld [vmem:[#allocation6 + $0x678] ss:$12 sps:$4 sm:$0xff]  }
 0x354   :  { %4045 = vmatpush1.bf16.msra.mxu0 %v14061_v5 }
 0x355   :  { %12763 = vmatpush3.bf16.msra.mxu1 %v14065_v27  ;;  %4046 = vmatprep.subr.bf16.mxu0 %v14068_v30 }
 0x356   :  { %12764 = vmatprep.subr.bf16.mxu1 %v14069_v50 }
 0x358   :  { %4047 = vmatpush1.bf16.msra.mxu0 %v14066_v31  ;;  %v14100_v31 = vld [vmem:[#allocation6 + $0x690] ss:$12 sps:$4 sm:$0xff]  }
 0x359   :  { %12765 = vmatpush3.bf16.msra.mxu1 %v14070_v24  ;;  %4048 = vmatprep.subr.bf16.mxu0 %v14073_v33  ;;  %v14103_v24 = vld [vmem:[#allocation6 + $0x8d8] ss:$12 sps:$4 sm:$0xff]  }
 0x35a   :  { %12766 = vmatprep.subr.bf16.mxu1 %v14074_v35  ;;  %v14106_v33 = vld [vmem:[#allocation6 + $0x6ac] ss:$12 sps:$4 sm:$0xff]   ;;  %v14104_v35 = vld [vmem:[#allocation6 + $0x6a8] ss:$12 sps:$4 sm:$0xff]  }
 0x35c   :  { %4049 = vmatpush1.bf16.msra.mxu0 %v14071_v56 }
 0x35d   :  { %12767 = vmatpush3.bf16.msra.mxu1 %v14075_v25  ;;  %4081 = vmatprep.subr.bf16.mxu0 %v14078_v37  ;;  %v14107_v37 = vld [vmem:[#allocation6 + $0x8f0] ss:$12 sps:$4 sm:$0xff]  }
 0x35e   :  { %13228 = vmatprep.subr.bf16.mxu1 %v15486_v32 }
 0x35f   :  { %4051 = vmatmul.mubr.bf16.vlgmr.msra.gmra.mrb[32].mxu0 %v16136_v42  ;;  %v14084_v42 = vld [vmem:[#allocation6 + $0x630] ss:$12 sps:$4 sm:$0xff]  }
 0x360   :  { %4946 = vmatmul.mubr.bf16.vlgmr.msra.gmra.mrb[96].mxu1 %v16207_v45  ;;  %4060 = vmatprep.mubr.bf16.mxu0 %v16143_v44  ;;  %v16220_v44 = vsel %vm1243_vm1, %v4374_v38, %v4382_v46 }
 0x361   :  { %4082 = vmatpush1.bf16.msra.mxu0 %v14076_v51  ;;  %4953 = vmatprep.mubr.bf16.mxu1 %v16212_v59  ;;  %v14110_v51 = vld [vmem:[#allocation6 + $0x6c4] ss:$12 sps:$4 sm:$0xff]  }
 0x362   :  { %13229 = vmatpush3.bf16.msra.mxu1 %v14079_v39  ;;  %4083 = vmatprep.subr.bf16.mxu0 %v14082_v40  ;;  %v14111_v39 = vld [vmem:[#allocation6 + $0x9c8] ss:$12 sps:$4 sm:$0xff]  }
 0x363   :  { %13230 = vmatprep.subr.bf16.mxu1 %v15486_v32 }
 0x365   :  { %4084 = vmatpush1.bf16.msra.mxu0 %v14080_v55  ;;  %v4380_v55 = vrot.slane %v15987_v21, 3 }
 0x366   :  { %13231 = vmatpush3.bf16.msra.mxu1 %v14083_v4  ;;  %4085 = vmatprep.subr.bf16.mxu0 %v14086_v16  ;;  %v14108_v16 = vld [vmem:[#allocation6 + $0x6c0] ss:$12 sps:$4 sm:$0xff]  }
 0x367   :  { %4061 = vmatmul.mubr.bf16.gmra.mrb[36].mxu0 %v16151_v8  ;;  %13232 = vmatprep.subr.bf16.mxu1 %v15486_v32  ;;  %v14091_v8 = vld [vmem:[#allocation6 + $0x890] ss:$12 sps:$4 sm:$0xff]  }
 0x368   :  { %4954 = vmatmul.mubr.bf16.gmra.mrb[100].mxu1 %v16220_v44  ;;  %4070 = vmatprep.mubr.bf16.mxu0 %v16157_v20  ;;  %v16233_v20 = vsel %vm1243_vm1, %v4382_v46, %v4388_v63  ;;  %v14115_v46 = vld [vmem:[#allocation6 + $0x6dc] ss:$12 sps:$4 sm:$0xff]   ;;  %v14117_v63 = vld [vmem:[#allocation6 + $0x920] ss:$12 sps:$4 sm:$0xff]  }
 0x369   :  { %4086 = vmatpush1.bf16.msra.mxu0 %v14084_v42  ;;  %4961 = vmatprep.mubr.bf16.mxu1 %v16226_v17  ;;  %v14112_v42 = vld [vmem:[#allocation6 + $0x908] ss:$12 sps:$4 sm:$0xff]  }
 0x36a   :  { %13233 = vmatpush3.bf16.msra.mxu1 %v14087_v52  ;;  %4087 = vmatprep.subr.bf16.mxu0 %v14090_v18  ;;  %v16255_v52 = vsel %vm1243_vm1, %v4379_v10, %v4380_v55  ;;  %v14113_v18 = vld [vmem:[#allocation6 + $0x6d8] ss:$12 sps:$4 sm:$0xff]  }
 0x36b   :  { %13234 = vmatprep.subr.bf16.mxu1 %v15486_v32 }
 0x36d   :  { %4088 = vmatpush1.bf16.msra.mxu0 %v14088_v62 }
 0x36e   :  { %13235 = vmatpush3.bf16.msra.mxu1 %v14091_v8  ;;  %4089 = vmatprep.subr.bf16.mxu0 %v14094_v7  ;;  %v14120_v7 = vld [vmem:[#allocation6 + $0x6f4] ss:$12 sps:$4 sm:$0xff]  }
 0x36f   :  { %4071 = vmatmul.mubr.bf16.gmra.mrb[40].mxu0 %v16164_v28  ;;  %13236 = vmatprep.subr.bf16.mxu1 %v15486_v32  ;;  %v14102_v28 = vld [vmem:[#allocation6 + $0x694] ss:$12 sps:$4 sm:$0xff]  }
 0x370   :  { %4962 = vmatmul.mubr.bf16.gmra.mrb[104].mxu1 %v16233_v20  ;;  %4113 = vmatprep.mubr.bf16.mxu0 %v15485_v0 }
 0x371   :  { %4090 = vmatpush1.bf16.msra.mxu0 %v14092_v22  ;;  %v12633_v1 = vpop.f32.mrb[24].mxu1  ;;  %13244 = vmatprep.mubr.msk.bf16.mxu1 %vm15487_vm4, %v15486_v32 }
 0x372   :  { %13237 = vmatpush3.bf16.msra.mxu1 %v14095_v53  ;;  %4091 = vmatprep.subr.bf16.mxu0 %v14098_v57  ;;  %v12634_v43 = vpop.f32.mrb[25].mxu1 }
 0x373   :  { %13238 = vmatprep.subr.bf16.mxu1 %v15486_v32  ;;  %v16241_v5 = vadd.f32 %v12634_v43, %v12633_v1  ;;  %v12636_v27 = vpop.f32.mrb[26].mxu1  ;;  %v4386_v1 = vrot.slane %v16019_v19, 3  ;;  %v14118_v43 = vld [vmem:[#allocation6 + $0x6f0] ss:$12 sps:$4 sm:$0xff]  }
 0x374   :  { %v12637_v30 = vpop.f32.mrb[27].mxu1 }
 0x375   :  { %4092 = vmatpush1.bf16.msra.mxu0 %v14096_v23  ;;  %v16243_v50 = vadd.f32 %v12637_v30, %v12636_v27  ;;  %v14126_v27 = vld [vmem:[#allocation6 + $0xa10] ss:$12 sps:$4 sm:$0xff]   ;;  %v16268_v30 = vsel %vm1243_vm1, %v4380_v55, %v4386_v1  ;;  %v14133_v55 = vld [vmem:[#allocation6 + $0x738] ss:$12 sps:$4 sm:$0xff]  }
 0x376   :  { %13239 = vmatpush3.bf16.msra.mxu1 %v14099_v48  ;;  %4093 = vmatprep.subr.bf16.mxu0 %v14102_v28  ;;  %v14122_v48 = vld [vmem:[#allocation6 + $0x938] ss:$12 sps:$4 sm:$0xff]  }
 0x377   :  { %13240 = vmatprep.subr.bf16.mxu1 %v15486_v32  ;;  %v14125_v28 = vld [vmem:[#allocation6 + $0x70c] ss:$12 sps:$4 sm:$0xff]  }
 0x379   :  { %4094 = vmatpush1.bf16.msra.mxu0 %v14100_v31  ;;  %v12639_v56 = vpop.f32.mrb[28].mxu1  ;;  %v14123_v31 = vld [vmem:[#allocation6 + $0x708] ss:$12 sps:$4 sm:$0xff]  }
 0x37a   :  { %13241 = vmatpush3.bf16.msra.mxu1 %v14103_v24  ;;  %4095 = vmatprep.subr.bf16.mxu0 %v14106_v33  ;;  %v12640_v25 = vpop.f32.mrb[29].mxu1  ;;  %v14127_v24 = vld [vmem:[#allocation6 + $0x950] ss:$12 sps:$4 sm:$0xff]  }
 0x37b   :  { %13242 = vmatprep.subr.bf16.mxu1 %v15486_v32  ;;  %v16247_v38 = vadd.f32 %v12640_v25, %v12639_v56  ;;  %v12642_v2 = vpop.f32.mrb[30].mxu1  ;;  %v14130_v33 = vld [vmem:[#allocation6 + $0x724] ss:$12 sps:$4 sm:$0xff]   ;;  %v14131_v56 = vld [vmem:[#allocation6 + $0xa28] ss:$12 sps:$4 sm:$0xff]  }
 0x37c   :  { %v12643_v40 = vpop.f32.mrb[31].mxu1  ;;  %v14132_v25 = vld [vmem:[#allocation6 + $0x968] ss:$12 sps:$4 sm:$0xff]  }
 0x37d   :  { %4096 = vmatpush1.bf16.msra.mxu0 %v14104_v35  ;;  %v16251_v4 = vadd.f32 %v12643_v40, %v12642_v2  ;;  %v14128_v35 = vld [vmem:[#allocation6 + $0x720] ss:$12 sps:$4 sm:$0xff]  }
 0x37e   :  { %13243 = vmatpush3.bf16.msra.mxu1 %v14107_v37  ;;  %4787 = vmatprep.subr.bf16.mxu0 %v14110_v51  ;;  %v5147_v37 = vrot.slane %v16008_v61, 4  ;;  %v14135_v51 = vld [vmem:[#allocation6 + $0x73c] ss:$12 sps:$4 sm:$0xff]   ;;  %v14136_v40 = vld [vmem:[#allocation6 + $0xa40] ss:$12 sps:$4 sm:$0xff]  }
 0x37f   :  { %12797 = vmatprep.subr.bf16.mxu1 %v14111_v39  ;;  %v5146_v39 = vrot.slane %v15980_v15, 4 }
 0x380   :  { %4114 = vmatmul.mubr.bf16.vlgmr.msra.gmra.mrb[32].mxu0 %v16178_v14  ;;  %v14121_v14 = vld [vmem:[#allocation6 + $0x9f8] ss:$12 sps:$4 sm:$0xff]  }
 0x381   :  { %13245 = vmatmul.mubr.bf16.vlgmr.msra.gmra.mrb[108].mxu1 %v16255_v52  ;;  %4788 = vmatpush1.bf16.msra.mxu0 %v14108_v16  ;;  %v12645_v62 = vpop.f32.mrb[32].mxu1  ;;  %v16284_v61 = vsel %vm5142_vm8, %v5146_v39, %v5147_v37 }
 0x382   :  { %12798 = vmatpush3.bf16.msra.mxu1 %v14112_v42  ;;  %4789 = vmatprep.subr.bf16.mxu0 %v14115_v46  ;;  %v12646_v8 = vpop.f32.mrb[33].mxu1  ;;  %v14137_v42 = vld [vmem:[#allocation6 + $0x980] ss:$12 sps:$4 sm:$0xff]  }
 0x383   :  { %12799 = vmatprep.subr.bf16.mxu1 %v14116_v49  ;;  %v16258_v22 = vadd.f32 %v12646_v8, %v12645_v62  ;;  %v12648_v53 = vpop.f32.mrb[34].mxu1  ;;  %4123 = vmatprep.mubr.bf16.mxu0 %v15485_v0  ;;  %v14140_v46 = vld [vmem:[#allocation6 + $0x754] ss:$12 sps:$4 sm:$0xff]   ;;  %v14141_v49 = vld [vmem:[#allocation6 + $0xa58] ss:$12 sps:$4 sm:$0xff]  }
 0x384   :  { %13248 = vmatprep.mubr.msk.bf16.mxu1 %vm15487_vm4, %v15486_v32  ;;  %v12649_v57 = vpop.f32.mrb[35].mxu1  ;;  %v14138_v62 = vld [vmem:[#allocation6 + $0x750] ss:$12 sps:$4 sm:$0xff]  }
 0x385   :  { %4790 = vmatpush1.bf16.msra.mxu0 %v14113_v18  ;;  %v16264_v23 = vadd.f32 %v12649_v57, %v12648_v53  ;;  %v14146_v8 = vld [vmem:[#allocation6 + $0xa70] ss:$12 sps:$4 sm:$0xff]   ;;  %v14143_v53 = vld [vmem:[#allocation6 + $0x768] ss:$12 sps:$4 sm:$0xff]  }
 0x386   :  { %12800 = vmatpush3.bf16.msra.mxu1 %v14117_v63  ;;  %4791 = vmatprep.subr.bf16.mxu0 %v14120_v7  ;;  %v14142_v63 = vld [vmem:[#allocation6 + $0x998] ss:$12 sps:$4 sm:$0xff]  }
 0x387   :  { %12801 = vmatprep.subr.bf16.mxu1 %v14121_v14 }
 0x388   :  { %4124 = vmatmul.mubr.bf16.gmra.mrb[36].mxu0 %v16185_v47  ;;  %v4392_v47 = vrot.slane %v16072_v58, 3 }
 0x389   :  { %13249 = vmatmul.mubr.bf16.gmra.mrb[112].mxu1 %v16268_v30  ;;  %4792 = vmatpush1.bf16.msra.mxu0 %v14118_v43 }
 0x38a   :  { %12802 = vmatpush3.bf16.msra.mxu1 %v14122_v48  ;;  %4793 = vmatprep.subr.bf16.mxu0 %v14125_v28  ;;  %v16278_v2 = vsel %vm1243_vm1, %v4386_v1, %v4392_v47  ;;  %v14150_v1 = vld [vmem:[#allocation6 + $0x784] ss:$12 sps:$4 sm:$0xff]  }
 0x38b   :  { %12803 = vmatprep.subr.bf16.mxu1 %v14126_v27  ;;  %4133 = vmatprep.mubr.bf16.mxu0 %v15485_v0  ;;  %v5144_v27 = vrot.slane %v16006_v60, 4 }
 0x38c   :  { %13252 = vmatprep.mubr.msk.bf16.mxu1 %vm15487_vm4, %v15486_v32 }
 0x38d   :  { %4794 = vmatpush1.bf16.msra.mxu0 %v14123_v31  ;;  %v14148_v31 = vld [vmem:[#allocation6 + $0x780] ss:$12 sps:$4 sm:$0xff]  }
 0x38e   :  { %12804 = vmatpush3.bf16.msra.mxu1 %v14127_v24  ;;  %4795 = vmatprep.subr.bf16.mxu0 %v14130_v33  ;;  %v5154_v24 = vrot.slane %v16035_v36, 4  ;;  %v14151_v33 = vld [vmem:[#allocation6 + $0xa88] ss:$12 sps:$4 sm:$0xff]  }
 0x38f   :  { %12805 = vmatprep.subr.bf16.mxu1 %v14131_v56  ;;  %v14154_v56 = vld [vmem:[#allocation6 + $0x79c] ss:$12 sps:$4 sm:$0xff]  }
 0x390   :  { %4134 = vmatmul.mubr.bf16.gmra.mrb[40].mxu0 %v16194_v26  ;;  %v16308_v60 = vsel %vm5142_vm8, %v5147_v37, %v5154_v24 }
 0x391   :  { %13253 = vmatmul.mubr.bf16.gmra.mrb[116].mxu1 %v16278_v2  ;;  %4796 = vmatpush1.bf16.msra.mxu0 %v14128_v35  ;;  %v2860_v10 = vpop.f32.mrb[36].mxu1  ;;  %v14152_v35 = vld [vmem:[#allocation6 + $0x798] ss:$12 sps:$4 sm:$0xff]  }
 0x392   :  { %4819 = vmatprep.mubr.bf16.mxu0 %v16198_v29  ;;  %12806 = vmatpush3.bf16.msra.mxu1 %v14132_v25  ;;  %v16287_v26 = vadd.f32 %v16241_v5, %v2860_v10  ;;  %v13162_v16 = vpop.f32.mrb[37].mxu1  ;;  %v14145_v5 = vld [vmem:[#allocation6 + $0x76c] ss:$12 sps:$4 sm:$0xff]   ;;  %v5152_v10 = vrot.slane %v16031_v41, 4  ;;  %v14160_v41 = vld [vmem:[#allocation6 + $0x7c8] ss:$12 sps:$4 sm:$0xff]  }
 0x393   :  { %5715 = vmatprep.mubr.bf16.mxu1 %v16284_v61  ;;  %4797 = vmatprep.subr.bf16.mxu0 %v14135_v51  ;;  %v2863_v15 = vpop.f32.mrb[38].mxu1  ;;  %v14155_v25 = vld [vmem:[#allocation6 + $0xaa0] ss:$12 sps:$4 sm:$0xff]   ;;  %v5160_v16 = vrot.slane %v16049_v6, 4  ;;  %v14163_v6 = vld [vmem:[#allocation6 + $0xad0] ss:$12 sps:$4 sm:$0xff]  }
 0x394   :  { %12807 = vmatprep.subr.bf16.mxu1 %v14136_v40  ;;  %v16291_v18 = vadd.f32 %v16243_v50, %v2863_v15  ;;  %v13163_v29 = vpop.f32.mrb[39].mxu1  ;;  %v14147_v50 = vld [vmem:[#allocation6 + $0x9b0] ss:$12 sps:$4 sm:$0xff]   ;;  %v14158_v51 = vld [vmem:[#allocation6 + $0x7b4] ss:$12 sps:$4 sm:$0xff]  }
 0x395   :  { %4798 = vmatpush1.bf16.msra.mxu0 %v14133_v55  ;;  %v14156_v55 = vld [vmem:[#allocation6 + $0x7b0] ss:$12 sps:$4 sm:$0xff]   ;;  %v14164_v29 = vld [vmem:[#allocation6 + $0x7e0] ss:$12 sps:$4 sm:$0xff]  }
 0x396   :  { %12808 = vmatpush3.bf16.msra.mxu1 %v14137_v42  ;;  %4799 = vmatprep.subr.bf16.mxu0 %v14140_v46  ;;  %v14162_v42 = vld [vmem:[#allocation6 + $0x7cc] ss:$12 sps:$4 sm:$0xff]   ;;  %v16322_v46 = vsel %vm5142_vm8, %v5144_v27, %v5152_v10  ;;  %v14166_v15 = vld [vmem:[#allocation6 + $0x7e4] ss:$12 sps:$4 sm:$0xff]  }
 0x397   :  { %12809 = vmatprep.subr.bf16.mxu1 %v14141_v49  ;;  %v5158_v49 = vrot.slane %v16044_v34, 4  ;;  %v14174_v34 = vld [vmem:[#allocation6 + $0x814] ss:$12 sps:$4 sm:$0xff]  }
 0x399   :  { %4800 = vmatpush1.bf16.msra.mxu0 %v14138_v62  ;;  %v2868_v7 = vpop.f32.mrb[40].mxu1  ;;  %v14167_v62 = vld [vmem:[#allocation6 + $0xae8] ss:$12 sps:$4 sm:$0xff]  }
 0x39a   :  { %12810 = vmatpush3.bf16.msra.mxu1 %v14142_v63  ;;  %v16294_v14 = vadd.f32 %v16247_v38, %v2868_v7  ;;  %v13166_v57 = vpop.f32.mrb[41].mxu1  ;;  %4801 = vmatprep.subr.bf16.mxu0 %v14145_v5  ;;  %v5143_v38 = vrot.slane %v15974_v3, 4  ;;  %v14170_v63 = vld [vmem:[#allocation6 + $0x7fc] ss:$12 sps:$4 sm:$0xff]   ;;  %v16333_v5 = vsel %vm5142_vm8, %v5152_v10, %v5158_v49  ;;  %v5156_v49 = vrot.slane %v16019_v19, 4 }
 0x39b   :  { %12811 = vmatprep.subr.bf16.mxu1 %v14146_v8  ;;  %v2871_v43 = vpop.f32.mrb[42].mxu1  ;;  %v14168_v8 = vld [vmem:[#allocation6 + $0x7f8] ss:$12 sps:$4 sm:$0xff]   ;;  %v14189_v19 = vld [vmem:[#allocation6 + $0x888] ss:$12 sps:$4 sm:$0xff]  }
 0x39c   :  { %v16297_v48 = vadd.f32 %v16251_v4, %v2871_v43  ;;  %v13167_v28 = vpop.f32.mrb[43].mxu1  ;;  %v16304_v47 = vsel %vm5142_vm8, %v5143_v38, %v5144_v27 }
 0x39d   :  { %4802 = vmatpush1.bf16.msra.mxu0 %v14143_v53  ;;  %v14171_v53 = vld [vmem:[#allocation6 + $0xb00] ss:$12 sps:$4 sm:$0xff]   ;;  %v14172_v28 = vld [vmem:[#allocation6 + $0x810] ss:$12 sps:$4 sm:$0xff]  }
 0x39e   :  { %12812 = vmatpush3.bf16.msra.mxu1 %v14147_v50  ;;  %4803 = vmatprep.subr.bf16.mxu0 %v14150_v1 }
 0x39f   :  { %13256 = vmatprep.subr.bf16.mxu1 %v15486_v32 }
 0x3a1   :  { %5716 = vmatmul.mubr.bf16.vlgmr.msra.gmra.mrb[120].mxu1 %v16304_v47  ;;  %4804 = vmatpush1.bf16.msra.mxu0 %v14148_v31  ;;  %v2876_v4 = vpop.f32.mrb[44].mxu1  ;;  %v14175_v31 = vld [vmem:[#allocation6 + $0xb18] ss:$12 sps:$4 sm:$0xff]  }
 0x3a2   :  { %5723 = vmatprep.mubr.bf16.mxu1 %v16308_v60  ;;  %13257 = vmatpush3.bf16.msra.mxu1 %v14151_v33  ;;  %v16312_v3 = vadd.f32 %v16258_v22, %v2876_v4  ;;  %v13170_v36 = vpop.f32.mrb[45].mxu1  ;;  %v14159_v22 = vld [vmem:[#allocation6 + $0xab8] ss:$12 sps:$4 sm:$0xff]  }
 0x3a3   :  { %4805 = vmatprep.subr.bf16.mxu0 %v14154_v56  ;;  %13258 = vmatprep.subr.bf16.mxu1 %v15486_v32  ;;  %v2879_v39 = vpop.f32.mrb[46].mxu1  ;;  %v14176_v56 = vld [vmem:[#allocation6 + $0x828] ss:$12 sps:$4 sm:$0xff]   ;;  %v14182_v36 = vld [vmem:[#allocation6 + $0x844] ss:$12 sps:$4 sm:$0xff]  }
 0x3a4   :  { %v16316_v40 = vadd.f32 %v16264_v23, %v2879_v39  ;;  %v13171_v37 = vpop.f32.mrb[47].mxu1  ;;  %v16326_v23 = vsel %vm5142_vm8, %v5154_v24, %v5160_v16  ;;  %v14178_v24 = vld [vmem:[#allocation6 + $0x82c] ss:$12 sps:$4 sm:$0xff]  }
 0x3a5   :  { %4806 = vmatpush1.bf16.msra.mxu0 %v14152_v35  ;;  %v14179_v35 = vld [vmem:[#allocation6 + $0xb30] ss:$12 sps:$4 sm:$0xff]   ;;  %v5150_v37 = vrot.slane %v15987_v21, 4  ;;  %v14183_v21 = vld [vmem:[#allocation6 + $0x858] ss:$12 sps:$4 sm:$0xff]  }
 0x3a6   :  { %13259 = vmatpush3.bf16.msra.mxu1 %v14155_v25  ;;  %4807 = vmatprep.subr.bf16.mxu0 %v14158_v51 }
 0x3a7   :  { %13260 = vmatprep.subr.bf16.mxu1 %v15486_v32 }
 0x3a9   :  { %5724 = vmatmul.mubr.bf16.gmra.mrb[124].mxu1 %v16322_v46  ;;  %4808 = vmatpush1.bf16.msra.mxu0 %v14156_v55  ;;  %v14180_v55 = vld [vmem:[#allocation6 + $0x840] ss:$12 sps:$4 sm:$0xff]  }
 0x3aa   :  { %5731 = vmatprep.mubr.bf16.mxu1 %v16326_v23  ;;  %13261 = vmatpush3.bf16.msra.mxu1 %v14159_v22  ;;  %v14185_v22 = vld [vmem:[#allocation6 + $0x85c] ss:$12 sps:$4 sm:$0xff]  }
 0x3ab   :  { %4809 = vmatprep.subr.bf16.mxu0 %v14162_v42  ;;  %13262 = vmatprep.subr.bf16.mxu1 %v15486_v32 }
 0x3ad   :  { %4810 = vmatpush1.bf16.msra.mxu0 %v14160_v41 }
 0x3ae   :  { %13263 = vmatpush3.bf16.msra.mxu1 %v14163_v6  ;;  %4811 = vmatprep.subr.bf16.mxu0 %v14166_v15 }
 0x3af   :  { %13264 = vmatprep.subr.bf16.mxu1 %v15486_v32 }
 0x3b1   :  { %5732 = vmatmul.mubr.bf16.gmra.mrb[128].mxu1 %v16333_v5  ;;  %4812 = vmatpush1.bf16.msra.mxu0 %v14164_v29 }
 0x3b2   :  { %13265 = vmatpush3.bf16.msra.mxu1 %v14167_v62  ;;  %v12678_v7 = vpop.f32.mrb[48].mxu1  ;;  %4813 = vmatprep.subr.bf16.mxu0 %v14170_v63  ;;  %v14186_v62 = vld [vmem:[#allocation6 + $0x870] ss:$12 sps:$4 sm:$0xff]  }
 0x3b3   :  { %v12679_v57 = vpop.f32.mrb[49].mxu1  ;;  %13266 = vmatprep.subr.bf16.mxu1 %v15486_v32  ;;  %13272 = vmatprep.mubr.msk.bf16.mxu1 %vm15487_vm4, %v15486_v32 }
 0x3b4   :  { %v12680_v50 = vadd.f32 %v12679_v57, %v12678_v7  ;;  %v12681_v1 = vpop.f32.mrb[50].mxu1  ;;  %v14195_v57 = vld [vmem:[#allocation6 + $0x8b8] ss:$12 sps:$4 sm:$0xff]  }
 0x3b5   :  { %4814 = vmatpush1.bf16.msra.mxu0 %v14168_v8  ;;  %v12682_v43 = vpop.f32.mrb[51].mxu1  ;;  %v16363_v8 = vsel %vm5142_vm8, %v5150_v37, %v5156_v49 }
 0x3b6   :  { %13267 = vmatpush3.bf16.msra.mxu1 %v14171_v53  ;;  %v12683_v27 = vadd.f32 %v12682_v43, %v12681_v1  ;;  %4815 = vmatprep.subr.bf16.mxu0 %v14174_v34  ;;  %v16340_v38 = vadd.f32 %v12680_v50, %v16287_v26  ;;  %v5149_v26 = vrot.slane %v15985_v54, 4  ;;  %v5162_v53 = vrot.slane %v16072_v58, 4  ;;  %v14197_v34 = vld [vmem:[#allocation6 + $0x8bc] ss:$12 sps:$4 sm:$0xff]   ;;  %v14200_v1 = vld [vmem:[#allocation6 + $0x8d4] ss:$12 sps:$4 sm:$0xff]  }
 0x3b7   :  { %13268 = vmatprep.subr.bf16.mxu1 %v15486_v32 }
 0x3b8   :  { %v16344_v33 = vadd.f32 %v12683_v27, %v16291_v18  ;;  %v16352_v42 = vsel %vm5142_vm8, %v5149_v26, %v5150_v37  ;;  %v14198_v27 = vld [vmem:[#allocation6 + $0x8d0] ss:$12 sps:$4 sm:$0xff]   ;;  %v14207_v37 = vld [vmem:[#allocation6 + $0x918] ss:$12 sps:$4 sm:$0xff]  }
 0x3b9   :  { %4816 = vmatpush1.bf16.msra.mxu0 %v14172_v28 }
 0x3ba   :  { %13269 = vmatpush3.bf16.msra.mxu1 %v14175_v31  ;;  %v12684_v4 = vpop.f32.mrb[52].mxu1  ;;  %4817 = vmatprep.subr.bf16.mxu0 %v14178_v24  ;;  %v14203_v31 = vld [vmem:[#allocation6 + $0x8ec] ss:$12 sps:$4 sm:$0xff]  }
 0x3bb   :  { %v12685_v25 = vpop.f32.mrb[53].mxu1  ;;  %13270 = vmatprep.subr.bf16.mxu1 %v15486_v32 }
 0x3bc   :  { %v12686_v51 = vadd.f32 %v12685_v25, %v12684_v4  ;;  %v12687_v39 = vpop.f32.mrb[54].mxu1 }
 0x3bd   :  { %4818 = vmatpush1.bf16.msra.mxu0 %v14176_v56  ;;  %v12688_v10 = vpop.f32.mrb[55].mxu1  ;;  %v14201_v56 = vld [vmem:[#allocation6 + $0x8e8] ss:$12 sps:$4 sm:$0xff]  }
 0x3be   :  { %13271 = vmatpush3.bf16.msra.mxu1 %v14179_v35  ;;  %v12689_v18 = vadd.f32 %v12688_v10, %v12687_v39  ;;  %4850 = vmatprep.subr.bf16.mxu0 %v14182_v36  ;;  %v3436_v16 = vadd.f32 %v12686_v51, %v16294_v14  ;;  %v14188_v14 = vld [vmem:[#allocation6 + $0x874] ss:$12 sps:$4 sm:$0xff]   ;;  %v14209_v39 = vld [vmem:[#allocation6 + $0x91c] ss:$12 sps:$4 sm:$0xff]  }
 0x3c0   :  { %4820 = vmatmul.mubr.bf16.vlgmr.msra.gmra.mrb[32].mxu0 %v16207_v45  ;;  %v3439_v41 = vadd.f32 %v12689_v18, %v16297_v48 }
 0x3c1   :  { %13273 = vmatmul.mubr.bf16.vlgmr.msra.gmra.mrb[132].mxu1 %v16352_v42  ;;  %4829 = vmatprep.mubr.bf16.mxu0 %v16212_v59  ;;  %v14191_v59 = vld [vmem:[#allocation6 + $0x88c] ss:$12 sps:$4 sm:$0xff]  }
 0x3c2   :  { %4851 = vmatpush1.bf16.msra.mxu0 %v14180_v55  ;;  %v12690_v54 = vpop.f32.mrb[56].mxu1  ;;  %13276 = vmatprep.mubr.msk.bf16.mxu1 %vm15487_vm4, %v15486_v32  ;;  %v14212_v55 = vld [vmem:[#allocation6 + $0x934] ss:$12 sps:$4 sm:$0xff]  }
 0x3c3   :  { %v12691_v6 = vpop.f32.mrb[57].mxu1  ;;  %4852 = vmatprep.subr.bf16.mxu0 %v14185_v22 }
 0x3c4   :  { %v12692_v15 = vadd.f32 %v12691_v6, %v12690_v54  ;;  %v12693_v45 = vpop.f32.mrb[58].mxu1  ;;  %v14210_v54 = vld [vmem:[#allocation6 + $0x930] ss:$12 sps:$4 sm:$0xff]  }
 0x3c5   :  { %v12694_v29 = vpop.f32.mrb[59].mxu1  ;;  %v14218_v6 = vld [vmem:[#allocation6 + $0x964] ss:$12 sps:$4 sm:$0xff]  }
 0x3c6   :  { %4853 = vmatpush1.bf16.msra.mxu0 %v14183_v21  ;;  %v12695_v48 = vadd.f32 %v12694_v29, %v12693_v45  ;;  %v3444_v63 = vadd.f32 %v12692_v15, %v16312_v3  ;;  %v14194_v3 = vld [vmem:[#allocation6 + $0x8a4] ss:$12 sps:$4 sm:$0xff]   ;;  %v14215_v21 = vld [vmem:[#allocation6 + $0x94c] ss:$12 sps:$4 sm:$0xff]   ;;  %v14221_v15 = vld [vmem:[#allocation6 + $0x97c] ss:$12 sps:$4 sm:$0xff]  }
 0x3c7   :  { %4854 = vmatprep.subr.bf16.mxu0 %v14188_v14  ;;  %v14216_v14 = vld [vmem:[#allocation6 + $0x960] ss:$12 sps:$4 sm:$0xff]  }
 0x3c8   :  { %4830 = vmatmul.mubr.bf16.gmra.mrb[36].mxu0 %v16220_v44  ;;  %v3447_v7 = vadd.f32 %v12695_v48, %v16316_v40  ;;  %v14192_v44 = vld [vmem:[#allocation6 + $0x8a0] ss:$12 sps:$4 sm:$0xff]   ;;  %v16373_v40 = vsel %vm5142_vm8, %v5156_v49, %v5162_v53  ;;  %v14219_v49 = vld [vmem:[#allocation6 + $0x978] ss:$12 sps:$4 sm:$0xff]  }
 0x3c9   :  { %13277 = vmatmul.mubr.bf16.gmra.mrb[136].mxu1 %v16363_v8  ;;  %4839 = vmatprep.mubr.bf16.mxu0 %v16226_v17 }
 0x3ca   :  { %4855 = vmatpush1.bf16.msra.mxu0 %v14186_v62  ;;  %13280 = vmatprep.mubr.msk.bf16.mxu1 %vm15487_vm4, %v15486_v32 }
 0x3cb   :  { %4856 = vmatprep.subr.bf16.mxu0 %v14191_v59 }
 0x3ce   :  { %4857 = vmatpush1.bf16.msra.mxu0 %v14189_v19  ;;  %v14227_v19 = vld [vmem:[#allocation6 + $0x9ac] ss:$12 sps:$4 sm:$0xff]  }
 0x3cf   :  { %4858 = vmatprep.subr.bf16.mxu0 %v14194_v3  ;;  %v14225_v3 = vld [vmem:[#allocation6 + $0x9a8] ss:$12 sps:$4 sm:$0xff]  }
 0x3d0   :  { %4840 = vmatmul.mubr.bf16.gmra.mrb[40].mxu0 %v16233_v20 }
 0x3d1   :  { %13281 = vmatmul.mubr.bf16.gmra.mrb[140].mxu1 %v16373_v40  ;;  %4882 = vmatprep.mubr.bf16.mxu0 %v15485_v0 }
 0x3d2   :  { %4859 = vmatpush1.bf16.msra.mxu0 %v14192_v44  ;;  %v3484_v17 = vpop.f32.mrb[60].mxu1  ;;  %6260 = vmatprep.mubr.bf16.mxu1 %v15485_v0 }
 0x3d3   :  { %v16379_v58 = vadd.f32 %v3484_v17, %v16340_v38  ;;  %v13190_v50 = vpop.f32.mrb[61].mxu1  ;;  %4860 = vmatprep.subr.bf16.mxu0 %v14197_v34  ;;  %v14206_v38 = vld [vmem:[#allocation6 + $0x904] ss:$12 sps:$4 sm:$0xff]  }
 0x3d4   :  { %v3487_v43 = vpop.f32.mrb[62].mxu1  ;;  %v14228_v50 = vld [vmem:[#allocation6 + $0x9c0] ss:$12 sps:$4 sm:$0xff]  }
 0x3d5   :  { %v16382_v20 = vadd.f32 %v3487_v43, %v16344_v33  ;;  %v13191_v28 = vpop.f32.mrb[63].mxu1  ;;  %v14204_v33 = vld [vmem:[#allocation6 + $0x900] ss:$12 sps:$4 sm:$0xff]  }
 0x3d6   :  { %4861 = vmatpush1.bf16.msra.mxu0 %v14195_v57  ;;  %v14276_v43 = vld [vmem:[#allocation9 + $0x100] ss:$8 sps:$4 sm:$0xff]   ;;  %v14278_v28 = vld [vmem:[#allocation9 + $0x104] ss:$8 sps:$4 sm:$0xff]  }
 0x3d7   :  { %4862 = vmatprep.subr.bf16.mxu0 %v14200_v1  ;;  %v14233_v1 = vld [vmem:[#allocation6 + $0x9dc] ss:$12 sps:$4 sm:$0xff]   ;;  %6228 = vmatprep.subr.bf16.mxu1 %v14278_v28 }
 0x3d8   :  { %6229 = vmatpush1.bf16.msra.mxu1 %v14276_v43 }
 0x3da   :  { %4863 = vmatpush1.bf16.msra.mxu0 %v14198_v27  ;;  %v3492_v24 = vpop.f32.mrb[64].mxu1 }
 0x3db   :  { %v16384_v4 = vadd.f32 %v3492_v24, %v3436_v16  ;;  %v13194_v35 = vpop.f32.mrb[65].mxu1  ;;  %4864 = vmatprep.subr.bf16.mxu0 %v14203_v31  ;;  %v14231_v31 = vld [vmem:[#allocation6 + $0x9d8] ss:$12 sps:$4 sm:$0xff]  }
 0x3dc   :  { %v3495_v36 = vpop.f32.mrb[66].mxu1 }
 0x3dd   :  { %v16386_v25 = vadd.f32 %v3495_v36, %v3439_v41  ;;  %v13195_v51 = vpop.f32.mrb[67].mxu1  ;;  %v14279_v36 = vld [vmem:[#allocation9 + $0x110] ss:$8 sps:$4 sm:$0xff]  }
 0x3de   :  { %4865 = vmatpush1.bf16.msra.mxu0 %v14201_v56  ;;  %v14236_v56 = vld [vmem:[#allocation6 + $0x9f4] ss:$12 sps:$4 sm:$0xff]  }
 0x3df   :  { %5557 = vmatprep.subr.bf16.mxu0 %v14206_v38  ;;  %v14281_v51 = vld [vmem:[#allocation9 + $0x114] ss:$8 sps:$4 sm:$0xff]  }
 0x3e0   :  { %6230 = vmatprep.subr.bf16.mxu1 %v14281_v51  ;;  %v14297_v51 = vld [vmem:[#allocation9 + $0x170] ss:$8 sps:$4 sm:$0xff]  }
 0x3e1   :  { %4883 = vmatmul.mubr.bf16.vlgmr.msra.gmra.mrb[32].mxu0 %v16255_v52  ;;  %v14213_v52 = vld [vmem:[#allocation6 + $0x948] ss:$12 sps:$4 sm:$0xff]   ;;  %6231 = vmatpush1.bf16.msra.mxu1 %v14279_v36 }
 0x3e2   :  { %5558 = vmatpush1.bf16.msra.mxu0 %v14204_v33  ;;  %v3500_v26 = vpop.f32.mrb[68].mxu1  ;;  %4892 = vmatprep.mubr.bf16.mxu0 %v15485_v0 }
 0x3e3   :  { %v16390_v10 = vadd.f32 %v3500_v26, %v3444_v63  ;;  %v13198_v18 = vpop.f32.mrb[69].mxu1  ;;  %5559 = vmatprep.subr.bf16.mxu0 %v14209_v39  ;;  %v14234_v26 = vld [vmem:[#allocation6 + $0x9f0] ss:$12 sps:$4 sm:$0xff]  }
 0x3e4   :  { %v3503_v16 = vpop.f32.mrb[70].mxu1  ;;  %v14282_v18 = vld [vmem:[#allocation9 + $0x120] ss:$8 sps:$4 sm:$0xff]  }
 0x3e5   :  { %v16392_v22 = vadd.f32 %v3503_v16, %v3447_v7  ;;  %v13199_v41 = vpop.f32.mrb[71].mxu1  ;;  %v14222_v7 = vld [vmem:[#allocation6 + $0x990] ss:$12 sps:$4 sm:$0xff]   ;;  %v14287_v16 = vld [vmem:[#allocation9 + $0x134] ss:$8 sps:$4 sm:$0xff]  }
 0x3e6   :  { %5560 = vmatpush1.bf16.msra.mxu0 %v14207_v37  ;;  %v14239_v37 = vld [vmem:[#allocation6 + $0xa0c] ss:$12 sps:$4 sm:$0xff]   ;;  %v14237_v41 = vld [vmem:[#allocation6 + $0xa08] ss:$12 sps:$4 sm:$0xff]  }
 0x3e7   :  { %5561 = vmatprep.subr.bf16.mxu0 %v14212_v55  ;;  %v14284_v55 = vld [vmem:[#allocation9 + $0x124] ss:$8 sps:$4 sm:$0xff]  }
 0x3e8   :  { %6232 = vmatprep.subr.bf16.mxu1 %v14284_v55 }
 0x3e9   :  { %4893 = vmatmul.mubr.bf16.gmra.mrb[36].mxu0 %v16268_v30  ;;  %v14224_v30 = vld [vmem:[#allocation6 + $0x994] ss:$12 sps:$4 sm:$0xff]   ;;  %6233 = vmatpush1.bf16.msra.mxu1 %v14282_v18 }
 0x3ea   :  { %5562 = vmatpush1.bf16.msra.mxu0 %v14210_v54  ;;  %4902 = vmatprep.mubr.bf16.mxu0 %v15485_v0  ;;  %v14242_v54 = vld [vmem:[#allocation6 + $0xa24] ss:$12 sps:$4 sm:$0xff]  }
 0x3eb   :  { %5563 = vmatprep.subr.bf16.mxu0 %v14215_v21  ;;  %v14285_v21 = vld [vmem:[#allocation9 + $0x130] ss:$8 sps:$4 sm:$0xff]   ;;  %6234 = vmatprep.subr.bf16.mxu1 %v14287_v16 }
 0x3ec   :  { %v14258_v16 = vld [vmem:[#allocation6 + $0xab0] ss:$12 sps:$4 sm:$0xff]  }
 0x3ed   :  { %6235 = vmatpush1.bf16.msra.mxu1 %v14285_v21  ;;  %v14269_v21 = vld [vmem:[#allocation6 + $0xafc] ss:$12 sps:$4 sm:$0xff]  }
 0x3ee   :  { %5564 = vmatpush1.bf16.msra.mxu0 %v14213_v52  ;;  %v14290_v52 = vld [vmem:[#allocation9 + $0x144] ss:$8 sps:$4 sm:$0xff]  }
 0x3ef   :  { %5565 = vmatprep.subr.bf16.mxu0 %v14218_v6  ;;  %v14240_v6 = vld [vmem:[#allocation6 + $0xa20] ss:$12 sps:$4 sm:$0xff]   ;;  %6236 = vmatprep.subr.bf16.mxu1 %v14290_v52  ;;  %v14267_v52 = vld [vmem:[#allocation6 + $0xaf8] ss:$12 sps:$4 sm:$0xff]  }
 0x3f1   :  { %4903 = vmatmul.mubr.bf16.gmra.mrb[40].mxu0 %v16278_v2 }
 0x3f2   :  { %5566 = vmatpush1.bf16.msra.mxu0 %v14216_v14  ;;  %5589 = vmatprep.mubr.bf16.mxu0 %v16284_v61  ;;  %v12723_v45 = vpop.f32.mrb[72].mxu1  ;;  %v14230_v61 = vld [vmem:[#allocation6 + $0x9c4] ss:$12 sps:$4 sm:$0xff]   ;;  %v14245_v14 = vld [vmem:[#allocation6 + $0xa3c] ss:$12 sps:$4 sm:$0xff]  }
 0x3f3   :  { %v12724_v29 = vpop.f32.mrb[73].mxu1  ;;  %5567 = vmatprep.subr.bf16.mxu0 %v14221_v15  ;;  %v14288_v15 = vld [vmem:[#allocation9 + $0x140] ss:$8 sps:$4 sm:$0xff]  }
 0x3f4   :  { %v16398_v48 = vadd.f32 %v12724_v29, %v12723_v45  ;;  %v12726_v62 = vpop.f32.mrb[74].mxu1  ;;  %v14243_v45 = vld [vmem:[#allocation6 + $0xa38] ss:$12 sps:$4 sm:$0xff]   ;;  %v14248_v29 = vld [vmem:[#allocation6 + $0xa54] ss:$12 sps:$4 sm:$0xff]   ;;  %6237 = vmatpush1.bf16.msra.mxu1 %v14288_v15 }
 0x3f5   :  { %v12727_v63 = vpop.f32.mrb[75].mxu1 }
 0x3f6   :  { %5568 = vmatpush1.bf16.msra.mxu0 %v14219_v49  ;;  %v16400_v59 = vadd.f32 %v12727_v63, %v12726_v62 }
 0x3f7   :  { %5569 = vmatprep.subr.bf16.mxu0 %v14224_v30 }
 0x3fa   :  { %5570 = vmatpush1.bf16.msra.mxu0 %v14222_v7  ;;  %v12729_v2 = vpop.f32.mrb[76].mxu1 }
 0x3fb   :  { %v12730_v53 = vpop.f32.mrb[77].mxu1  ;;  %5571 = vmatprep.subr.bf16.mxu0 %v14227_v19 }
 0x3fc   :  { %v16402_v44 = vadd.f32 %v12730_v53, %v12729_v2  ;;  %v12732_v34 = vpop.f32.mrb[78].mxu1  ;;  %v14251_v53 = vld [vmem:[#allocation6 + $0xa6c] ss:$12 sps:$4 sm:$0xff]  }
 0x3fd   :  { %v12733_v17 = vpop.f32.mrb[79].mxu1 }
 0x3fe   :  { %5572 = vmatpush1.bf16.msra.mxu0 %v14225_v3  ;;  %v16404_v57 = vadd.f32 %v12733_v17, %v12732_v34  ;;  %v14246_v3 = vld [vmem:[#allocation6 + $0xa50] ss:$12 sps:$4 sm:$0xff]   ;;  %v14249_v34 = vld [vmem:[#allocation6 + $0xa68] ss:$12 sps:$4 sm:$0xff]  }
 0x3ff   :  { %5573 = vmatprep.subr.bf16.mxu0 %v14230_v61  ;;  %v14254_v17 = vld [vmem:[#allocation6 + $0xa84] ss:$12 sps:$4 sm:$0xff]  }
 0x402   :  { %5574 = vmatpush1.bf16.msra.mxu0 %v14228_v50  ;;  %v12735_v27 = vpop.f32.mrb[80].mxu1 }
 0x403   :  { %v12736_v24 = vpop.f32.mrb[81].mxu1  ;;  %5575 = vmatprep.subr.bf16.mxu0 %v14233_v1  ;;  %v14293_v1 = vld [vmem:[#allocation9 + $0x154] ss:$8 sps:$4 sm:$0xff]  }
 0x404   :  { %v16406_v35 = vadd.f32 %v12736_v24, %v12735_v27  ;;  %v12738_v38 = vpop.f32.mrb[82].mxu1  ;;  %6238 = vmatprep.subr.bf16.mxu1 %v14293_v1  ;;  %v14257_v24 = vld [vmem:[#allocation6 + $0xa9c] ss:$12 sps:$4 sm:$0xff]  }
 0x405   :  { %v12739_v33 = vpop.f32.mrb[83].mxu1 }
 0x406   :  { %5576 = vmatpush1.bf16.msra.mxu0 %v14231_v31  ;;  %v16408_v39 = vadd.f32 %v12739_v33, %v12738_v38  ;;  %v14252_v31 = vld [vmem:[#allocation6 + $0xa80] ss:$12 sps:$4 sm:$0xff]   ;;  %v14296_v38 = vld [vmem:[#allocation9 + $0x164] ss:$8 sps:$4 sm:$0xff]  }
 0x407   :  { %5577 = vmatprep.subr.bf16.mxu0 %v14236_v56  ;;  %v14294_v56 = vld [vmem:[#allocation9 + $0x160] ss:$8 sps:$4 sm:$0xff]   ;;  %v14299_v33 = vld [vmem:[#allocation9 + $0x174] ss:$8 sps:$4 sm:$0xff]  }
 0x40a   :  { %5578 = vmatpush1.bf16.msra.mxu0 %v14234_v26 }
 0x40b   :  { %5579 = vmatprep.subr.bf16.mxu0 %v14239_v37 }
 0x40e   :  { %5580 = vmatpush1.bf16.msra.mxu0 %v14237_v41  ;;  %v14263_v41 = vld [vmem:[#allocation6 + $0xacc] ss:$12 sps:$4 sm:$0xff]  }
 0x40f   :  { %5581 = vmatprep.subr.bf16.mxu0 %v14242_v54 }
 0x412   :  { %5582 = vmatpush1.bf16.msra.mxu0 %v14240_v6  ;;  %v14272_v6 = vld [vmem:[#allocation6 + $0xb14] ss:$12 sps:$4 sm:$0xff]  }
 0x413   :  { %v4235_v49 = vpop.f32.mrb[84].mxu1  ;;  %5583 = vmatprep.subr.bf16.mxu0 %v14245_v14 }
 0x414   :  { %v4236_v30 = vadd.f32 %v16398_v48, %v4235_v49  ;;  %v13218_v62 = vpop.f32.mrb[85].mxu1  ;;  %v14291_v48 = vld [vmem:[#allocation9 + $0x150] ss:$8 sps:$4 sm:$0xff]  }
 0x415   :  { %v4238_v63 = vpop.f32.mrb[86].mxu1  ;;  %6239 = vmatpush1.bf16.msra.mxu1 %v14291_v48 }
 0x416   :  { %v16412_v7 = vadd.f32 %v4236_v30, %v16379_v58  ;;  %v4239_v19 = vadd.f32 %v16400_v59, %v4238_v63  ;;  %5584 = vmatpush1.bf16.msra.mxu0 %v14243_v45  ;;  %v13219_v2 = vpop.f32.mrb[87].mxu1  ;;  %6240 = vmatprep.subr.bf16.mxu1 %v14296_v38  ;;  %v14270_v45 = vld [vmem:[#allocation6 + $0xb10] ss:$12 sps:$4 sm:$0xff]   ;;  %v14273_v30 = vld [vmem:[#allocation6 + $0xb28] ss:$12 sps:$4 sm:$0xff]  }
 0x417   :  { %5585 = vmatprep.subr.bf16.mxu0 %v14248_v29  ;;  %v14275_v29 = vld [vmem:[#allocation6 + $0xb2c] ss:$12 sps:$4 sm:$0xff]  }
 0x418   :  { %v16416_v61 = vadd.f32 %v4239_v19, %v16382_v20 }
 0x419   :  { %6241 = vmatpush1.bf16.msra.mxu1 %v14294_v56 }
 0x41a   :  { %5586 = vmatpush1.bf16.msra.mxu0 %v14246_v3  ;;  %6242 = vmatprep.subr.bf16.mxu1 %v14299_v33  ;;  %v14333_v33 = vld [vmem:[#allocation9 + $0x30] ss:$8 sps:$4 sm:$0xff]  }
 0x41b   :  { %v4243_v50 = vpop.f32.mrb[88].mxu1  ;;  %5587 = vmatprep.subr.bf16.mxu0 %v14251_v53 }
 0x41c   :  { %v4244_v58 = vadd.f32 %v16402_v44, %v4243_v50  ;;  %v13222_v43 = vpop.f32.mrb[89].mxu1  ;;  %v14260_v44 = vld [vmem:[#allocation6 + $0xab4] ss:$12 sps:$4 sm:$0xff]  }
 0x41d   :  { %v4246_v28 = vpop.f32.mrb[90].mxu1  ;;  %6243 = vmatpush1.bf16.msra.mxu1 %v14297_v51  ;;  %v14326_v43 = vld [vmem:[#allocation9 + $0x4] ss:$8 sps:$4 sm:$0xff]  }
 0x41e   :  { %v16420_v59 = vadd.f32 %v4244_v58, %v16384_v4  ;;  %v4247_v27 = vadd.f32 %v16404_v57, %v4246_v28  ;;  %5588 = vmatpush1.bf16.msra.mxu0 %v14249_v34  ;;  %v13223_v20 = vpop.f32.mrb[91].mxu1  ;;  %v14255_v4 = vld [vmem:[#allocation6 + $0xa98] ss:$12 sps:$4 sm:$0xff]  }
 0x41f   :  { %5620 = vmatprep.subr.bf16.mxu0 %v14254_v17  ;;  %v14324_v58 = vld [vmem:[#allocation9] ss:$8 sps:$4 sm:$0xff]   ;;  %v14329_v28 = vld [vmem:[#allocation9 + $0x14] ss:$8 sps:$4 sm:$0xff]  }
 0x420   :  { %v16424_v36 = vadd.f32 %v4247_v27, %v16386_v25  ;;  %v14302_v25 = vld [vmem:[#allocation9 + $0x284] ss:$8 sps:$4 sm:$0xff]  }
 0x421   :  { %5590 = vmatmul.mubr.bf16.vlgmr.msra.gmra.mrb[32].mxu0 %v16304_v47  ;;  %6643 = vmatprep.subr.bf16.mxu1 %v14302_v25 }
 0x422   :  { %5599 = vmatprep.mubr.bf16.mxu0 %v16308_v60  ;;  %5621 = vmatpush1.bf16.msra.mxu0 %v14252_v31 }
 0x423   :  { %v4251_v57 = vpop.f32.mrb[92].mxu1  ;;  %5622 = vmatprep.subr.bf16.mxu0 %v14257_v24  ;;  %v14332_v24 = vld [vmem:[#allocation9 + $0x24] ss:$8 sps:$4 sm:$0xff]  }
 0x424   :  { %v4252_v26 = vadd.f32 %v16406_v35, %v4251_v57  ;;  %v13226_v37 = vpop.f32.mrb[93].mxu1  ;;  %v14261_v35 = vld [vmem:[#allocation6 + $0xac8] ss:$12 sps:$4 sm:$0xff]   ;;  %v14335_v57 = vld [vmem:[#allocation9 + $0x34] ss:$8 sps:$4 sm:$0xff]  }
 0x425   :  { %v4254_v18 = vpop.f32.mrb[94].mxu1 }
 0x426   :  { %v16430_v55 = vadd.f32 %v4252_v26, %v16390_v10  ;;  %v4255_v47 = vadd.f32 %v16408_v39, %v4254_v18  ;;  %5623 = vmatpush1.bf16.msra.mxu0 %v14255_v4  ;;  %v13227_v60 = vpop.f32.mrb[95].mxu1  ;;  %v14266_v10 = vld [vmem:[#allocation6 + $0xae4] ss:$12 sps:$4 sm:$0xff]   ;;  %v14264_v39 = vld [vmem:[#allocation6 + $0xae0] ss:$12 sps:$4 sm:$0xff]  }
 0x427   :  { %5624 = vmatprep.subr.bf16.mxu0 %v14260_v44  ;;  %v14330_v44 = vld [vmem:[#allocation9 + $0x20] ss:$8 sps:$4 sm:$0xff]   ;;  %v14338_v18 = vld [vmem:[#allocation9 + $0x44] ss:$8 sps:$4 sm:$0xff]  }
 0x428   :  { %v16434_v54 = vadd.f32 %v4255_v47, %v16392_v22 }
 0x429   :  { %5600 = vmatmul.mubr.bf16.gmra.mrb[36].mxu0 %v16322_v46 }
 0x42a   :  { %5609 = vmatprep.mubr.bf16.mxu0 %v16326_v23  ;;  %5625 = vmatpush1.bf16.msra.mxu0 %v14258_v16  ;;  %v14336_v16 = vld [vmem:[#allocation9 + $0x40] ss:$8 sps:$4 sm:$0xff]  }
 0x42b   :  { %5626 = vmatprep.subr.bf16.mxu0 %v14263_v41  ;;  %v14341_v41 = vld [vmem:[#allocation9 + $0x54] ss:$8 sps:$4 sm:$0xff]  }
 0x42e   :  { %5627 = vmatpush1.bf16.msra.mxu0 %v14261_v35 }
 0x42f   :  { %5628 = vmatprep.subr.bf16.mxu0 %v14266_v10  ;;  %v14339_v10 = vld [vmem:[#allocation9 + $0x50] ss:$8 sps:$4 sm:$0xff]  }
 0x431   :  { %5610 = vmatmul.mubr.bf16.gmra.mrb[40].mxu0 %v16333_v5 }
 0x432   :  { %5629 = vmatpush1.bf16.msra.mxu0 %v14264_v39  ;;  %5652 = vmatprep.mubr.bf16.mxu0 %v15485_v0 }
 0x433   :  { %v12768_v22 = vpop.f32.mrb[96].mxu1  ;;  %5630 = vmatprep.subr.bf16.mxu0 %v14269_v21 }
 0x434   :  { %v12769_v46 = vpop.f32.mrb[97].mxu1 }
 0x435   :  { %v12770_v14 = vadd.f32 %v12769_v46, %v12768_v22  ;;  %v12771_v23 = vpop.f32.mrb[98].mxu1 }
 0x436   :  { %5631 = vmatpush1.bf16.msra.mxu0 %v14267_v52  ;;  %v12772_v15 = vpop.f32.mrb[99].mxu1  ;;  %v14344_v52 = vld [vmem:[#allocation9 + $0x64] ss:$8 sps:$4 sm:$0xff]  }
 0x437   :  { %v12773_v49 = vadd.f32 %v12772_v15, %v12771_v23  ;;  %5632 = vmatprep.subr.bf16.mxu0 %v14272_v6  ;;  %v14347_v23 = vld [vmem:[#allocation9 + $0x74] ss:$8 sps:$4 sm:$0xff]   ;;  %v14345_v15 = vld [vmem:[#allocation9 + $0x70] ss:$8 sps:$4 sm:$0xff]  }
 0x43a   :  { %5633 = vmatpush1.bf16.msra.mxu0 %v14270_v45  ;;  %v14350_v45 = vld [vmem:[#allocation9 + $0x84] ss:$8 sps:$4 sm:$0xff]  }
 0x43b   :  { %v12774_v62 = vpop.f32.mrb[100].mxu1  ;;  %5634 = vmatprep.subr.bf16.mxu0 %v14275_v29  ;;  %v14353_v29 = vld [vmem:[#allocation9 + $0x94] ss:$8 sps:$4 sm:$0xff]  }
 0x43c   :  { %v12775_v5 = vpop.f32.mrb[101].mxu1 }
 0x43d   :  { %v12776_v63 = vadd.f32 %v12775_v5, %v12774_v62  ;;  %v12777_v19 = vpop.f32.mrb[102].mxu1  ;;  %v14356_v5 = vld [vmem:[#allocation9 + $0xa4] ss:$8 sps:$4 sm:$0xff]  }
 0x43e   :  { %5635 = vmatpush1.bf16.msra.mxu0 %v14273_v30  ;;  %v12778_v2 = vpop.f32.mrb[103].mxu1 }
 0x43f   :  { %v12779_v3 = vadd.f32 %v12778_v2, %v12777_v19  ;;  %6165 = vmatprep.subr.bf16.mxu0 %v14326_v43 }
 0x441   :  { %5653 = vmatmul.mubr.bf16.vlgmr.msra.gmra.mrb[32].mxu0 %v16352_v42  ;;  %v14327_v42 = vld [vmem:[#allocation9 + $0x10] ss:$8 sps:$4 sm:$0xff]  }
 0x442   :  { %5662 = vmatprep.mubr.bf16.mxu0 %v15485_v0  ;;  %6166 = vmatpush1.bf16.msra.mxu0 %v14324_v58 }
 0x443   :  { %v12780_v53 = vpop.f32.mrb[104].mxu1  ;;  %6167 = vmatprep.subr.bf16.mxu0 %v14329_v28 }
 0x444   :  { %v12781_v34 = vpop.f32.mrb[105].mxu1 }
 0x445   :  { %v12782_v17 = vadd.f32 %v12781_v34, %v12780_v53  ;;  %v12783_v50 = vpop.f32.mrb[106].mxu1  ;;  %v14359_v53 = vld [vmem:[#allocation9 + $0xb4] ss:$8 sps:$4 sm:$0xff]  }
 0x446   :  { %v12784_v48 = vpop.f32.mrb[107].mxu1  ;;  %6168 = vmatpush1.bf16.msra.mxu0 %v14327_v42  ;;  %v14365_v42 = vld [vmem:[#allocation9 + $0xd4] ss:$8 sps:$4 sm:$0xff]  }
 0x447   :  { %v12785_v1 = vadd.f32 %v12784_v48, %v12783_v50  ;;  %6169 = vmatprep.subr.bf16.mxu0 %v14332_v24  ;;  %v14362_v48 = vld [vmem:[#allocation9 + $0xc4] ss:$8 sps:$4 sm:$0xff]  }
 0x449   :  { %5663 = vmatmul.mubr.bf16.gmra.mrb[36].mxu0 %v16363_v8 }
 0x44a   :  { %5672 = vmatprep.mubr.bf16.mxu0 %v15485_v0  ;;  %6170 = vmatpush1.bf16.msra.mxu0 %v14330_v44 }
 0x44b   :  { %6171 = vmatprep.subr.bf16.mxu0 %v14335_v57  ;;  %v16463_v57 = vld [vmem:[#allocation7] sm:$0x7] }
 0x44e   :  { %6172 = vmatpush1.bf16.msra.mxu0 %v14333_v33 }
 0x44f   :  { %6173 = vmatprep.subr.bf16.mxu0 %v14338_v18 }
 0x451   :  { %5673 = vmatmul.mubr.bf16.gmra.mrb[40].mxu0 %v16373_v40 }
 0x452   :  { %6174 = vmatpush1.bf16.msra.mxu0 %v14336_v16 }
 0x453   :  { %6175 = vmatprep.subr.bf16.mxu0 %v14341_v41 }
 0x454   :  { %v5004_v27 = vpop.f32.mrb[108].mxu1 }
 0x455   :  { %v5005_v20 = vadd.f32 %v12770_v14, %v5004_v27  ;;  %v13246_v31 = vpop.f32.mrb[109].mxu1  ;;  %v14342_v14 = vld [vmem:[#allocation9 + $0x60] ss:$8 sps:$4 sm:$0xff]  }
 0x456   :  { %v5007_v56 = vpop.f32.mrb[110].mxu1  ;;  %6176 = vmatpush1.bf16.msra.mxu0 %v14339_v10  ;;  %v14360_v27 = vld [vmem:[#allocation9 + $0xc0] ss:$8 sps:$4 sm:$0xff]   ;;  %v14363_v31 = vld [vmem:[#allocation9 + $0xd0] ss:$8 sps:$4 sm:$0xff]  }
 0x457   :  { %v16446_v38 = vadd.f32 %v5005_v20, %v16412_v7  ;;  %v5008_v8 = vadd.f32 %v12773_v49, %v5007_v56  ;;  %v13247_v4 = vpop.f32.mrb[111].mxu1  ;;  %6177 = vmatprep.subr.bf16.mxu0 %v14344_v52  ;;  %v14348_v49 = vld [vmem:[#allocation9 + $0x80] ss:$8 sps:$4 sm:$0xff]   ;;  %v14371_v52 = vld [vmem:[#allocation9 + $0xf4] ss:$8 sps:$4 sm:$0xff]  }
 0x458   :  { %v14366_v10 = vld [vmem:[#allocation9 + $0xe0] ss:$8 sps:$4 sm:$0xff]  }
 0x459   :  { %v16449_v40 = vadd.f32 %v5008_v8, %v16416_v61 }
 0x45a   :  { %6178 = vmatpush1.bf16.msra.mxu0 %v14342_v14 }
 0x45b   :  { %6179 = vmatprep.subr.bf16.mxu0 %v14347_v23 }
 0x45c   :  { %v5012_v51 = vpop.f32.mrb[112].mxu1 }
 0x45d   :  { %v5013_v26 = vadd.f32 %v12776_v63, %v5012_v51  ;;  %v13250_v37 = vpop.f32.mrb[113].mxu1 }
 0x45e   :  { %v5015_v25 = vpop.f32.mrb[114].mxu1  ;;  %6180 = vmatpush1.bf16.msra.mxu0 %v14345_v15  ;;  %v14300_v15 = vld [vmem:[#allocation9 + $0x280] ss:$8 sps:$4 sm:$0xff]  }
 0x45f   :  { %v16452_v7 = vadd.f32 %v5013_v26, %v16420_v59  ;;  %v5016_v47 = vadd.f32 %v12779_v3, %v5015_v25  ;;  %v13251_v60 = vpop.f32.mrb[115].mxu1  ;;  %6181 = vmatprep.subr.bf16.mxu0 %v14350_v45  ;;  %v14354_v3 = vld [vmem:[#allocation9 + $0xa0] ss:$8 sps:$4 sm:$0xff]   ;;  %v5828_v26 = vrot.slane %v16463_v57, %v15942_v12 }
 0x461   :  { %v16455_v61 = vadd.f32 %v5016_v47, %v16424_v36 }
 0x462   :  { %6182 = vmatpush1.bf16.msra.mxu0 %v14348_v49 }
 0x463   :  { %6183 = vmatprep.subr.bf16.mxu0 %v14353_v29 }
 0x464   :  { %v5020_v35 = vpop.f32.mrb[116].mxu1 }
 0x465   :  { %v5021_v39 = vadd.f32 %v12782_v17, %v5020_v35  ;;  %v13254_v21 = vpop.f32.mrb[117].mxu1  ;;  %v14357_v17 = vld [vmem:[#allocation9 + $0xb0] ss:$8 sps:$4 sm:$0xff]  }
 0x466   :  { %v5023_v22 = vpop.f32.mrb[118].mxu1 }
 0x467   :  { %v16458_v59 = vadd.f32 %v5021_v39, %v16430_v55  ;;  %v5024_v6 = vadd.f32 %v12785_v1, %v5023_v22  ;;  %v13255_v46 = vpop.f32.mrb[119].mxu1  ;;  %v14351_v55 = vld [vmem:[#allocation9 + $0x90] ss:$8 sps:$4 sm:$0xff]   ;;  %v14368_v39 = vld [vmem:[#allocation9 + $0xe4] ss:$8 sps:$4 sm:$0xff]  }
 0x468   :  { %6184 = vmatpush1.bf16.msra.mxu0 %v14351_v55 }
 0x469   :  { %v16461_v36 = vadd.f32 %v5024_v6, %v16434_v54  ;;  %6185 = vmatprep.subr.bf16.mxu0 %v14356_v5  ;;  %v14303_v5 = vld [vmem:[#allocation9 + $0x290] ss:$8 sps:$4 sm:$0xff]  }
 0x46c   :  { %6186 = vmatpush1.bf16.msra.mxu0 %v14354_v3 }
 0x46d   :  { %6187 = vmatprep.subr.bf16.mxu0 %v14359_v53 }
 0x470   :  { %6188 = vmatpush1.bf16.msra.mxu0 %v14357_v17 }
 0x471   :  { %6189 = vmatprep.subr.bf16.mxu0 %v14362_v48 }
 0x474   :  { %v12813_v30 = vpop.f32.mrb[120].mxu1  ;;  %6190 = vmatpush1.bf16.msra.mxu0 %v14360_v27 }
 0x475   :  { %v12814_v62 = vpop.f32.mrb[121].mxu1  ;;  %6191 = vmatprep.subr.bf16.mxu0 %v14365_v42  ;;  %v14309_v42 = vld [vmem:[#allocation9 + $0x2b0] ss:$8 sps:$4 sm:$0xff]  }
 0x476   :  { %v12815_v63 = vadd.f32 %v12814_v62, %v12813_v30  ;;  %v12816_v19 = vpop.f32.mrb[122].mxu1  ;;  %v14305_v30 = vld [vmem:[#allocation9 + $0x294] ss:$8 sps:$4 sm:$0xff]  }
 0x477   :  { %v12817_v54 = vpop.f32.mrb[123].mxu1 }
 0x478   :  { %v12818_v2 = vadd.f32 %v12817_v54, %v12816_v19  ;;  %6192 = vmatpush1.bf16.msra.mxu0 %v14363_v31  ;;  %v14308_v19 = vld [vmem:[#allocation9 + $0x2a4] ss:$8 sps:$4 sm:$0xff]  }
 0x479   :  { %6193 = vmatprep.subr.bf16.mxu0 %v14368_v39  ;;  %v14374_v54 = vld [vmem:[#allocation9 + $0x184] ss:$8 sps:$4 sm:$0xff]  }
 0x47a   :  { %v14314_v31 = vld [vmem:[#allocation9 + $0x2c4] ss:$8 sps:$4 sm:$0xff]  }
 0x47c   :  { %v12819_v34 = vpop.f32.mrb[124].mxu1  ;;  %6194 = vmatpush1.bf16.msra.mxu0 %v14366_v10 }
 0x47d   :  { %v12820_v50 = vpop.f32.mrb[125].mxu1  ;;  %6195 = vmatprep.subr.bf16.mxu0 %v14371_v52 }
 0x47e   :  { %v12821_v1 = vadd.f32 %v12820_v50, %v12819_v34  ;;  %v12822_v58 = vpop.f32.mrb[126].mxu1  ;;  %v14306_v50 = vld [vmem:[#allocation9 + $0x2a0] ss:$8 sps:$4 sm:$0xff]  }
 0x47f   :  { %v12823_v43 = vpop.f32.mrb[127].mxu1 }
 0x480   :  { %v12824_v28 = vadd.f32 %v12823_v43, %v12822_v58  ;;  %v14311_v43 = vld [vmem:[#allocation9 + $0x2b4] ss:$8 sps:$4 sm:$0xff]  }
 0x484   :  { %v12825_v20 = vpop.f32.mrb[128].mxu1 }
 0x485   :  { %v12826_v24 = vpop.f32.mrb[129].mxu1 }
 0x486   :  { %v12827_v56 = vadd.f32 %v12826_v24, %v12825_v20  ;;  %v12828_v8 = vpop.f32.mrb[130].mxu1 }
 0x487   :  { %v12829_v4 = vpop.f32.mrb[131].mxu1 }
 0x488   :  { %v12830_v44 = vadd.f32 %v12829_v4, %v12828_v8  ;;  %v14317_v4 = vld [vmem:[#allocation9 + $0x2d4] ss:$8 sps:$4 sm:$0xff]  }
 0x494   :  { %v5774_v51 = vpop.f32.mrb[132].mxu1 }
 0x495   :  { %v5775_v33 = vadd.f32 %v12815_v63, %v5774_v51  ;;  %v13274_v37 = vpop.f32.mrb[133].mxu1  ;;  %v14318_v51 = vld [vmem:[#allocation9 + $0x2e0] ss:$8 sps:$4 sm:$0xff]  }
 0x496   :  { %v5777_v18 = vpop.f32.mrb[134].mxu1  ;;  %v5820_v37 = vrot.slane %v16463_v57, %v15938_v9 }
 0x497   :  { %v5799_v25 = vadd.f32 %v5775_v33, %v16446_v38  ;;  %v5778_v47 = vadd.f32 %v12818_v2, %v5777_v18  ;;  %v13275_v60 = vpop.f32.mrb[135].mxu1  ;;  %v14323_v33 = vld [vmem:[#allocation9 + $0x2f4] ss:$8 sps:$4 sm:$0xff]   ;;  %v5824_v18 = vrot.slane %v16463_v57, %v15944_v13 }
 0x498   :  { %v14377_v57 = vld [vmem:[#allocation9 + $0x194] ss:$8 sps:$4 sm:$0xff]  }
 0x499   :  { %v5834_v16 = vadd.f32 %v5828_v26, %v5799_v25  ;;  %v5802_v41 = vadd.f32 %v5778_v47, %v16449_v40  ;;  %v14369_v40 = vld [vmem:[#allocation9 + $0xf0] ss:$8 sps:$4 sm:$0xff]  }
 0x49a   :  { %6196 = vmatpush1.bf16.msra.mxu0 %v14369_v40 }
 0x49b   :  { %v5837_v35 = vadd.f32 %v5828_v26, %v5802_v41  ;;  %v5852_v22 = vmax.f32 %v5834_v16, 0.0  ;;  %6580 = vmatprep.subr.bf16.mxu0 %v14374_v54 }
 0x49c   :  { %v5782_v21 = vpop.f32.mrb[136].mxu1 }
 0x49d   :  { %v5855_v6 = vmax.f32 %v5837_v35, 0.0  ;;  %v5783_v46 = vadd.f32 %v12821_v1, %v5782_v21  ;;  %v13278_v14 = vpop.f32.mrb[137].mxu1 }
 0x49e   :  { %v5785_v23 = vpop.f32.mrb[138].mxu1 }
 0x49f   :  { %v5870_v45 = vpack.c.bf16 %v5855_v6, %v5852_v22  ;;  %v5805_v38 = vadd.f32 %v5783_v46, %v16452_v7  ;;  %v5786_v49 = vadd.f32 %v12824_v28, %v5785_v23  ;;  %v13279_v29 = vpop.f32.mrb[139].mxu1 }
 0x4a1   :  { %v5840_v55 = vadd.f32 %v5828_v26, %v5805_v38  ;;  %v5808_v62 = vadd.f32 %v5786_v49, %v16455_v61  ;;  %6261 = vmatmul.mubr.bf16.vlgmr.msra.gmra.mrb[144].mxu1 %v5870_v45 }
 0x4a2   :  { %6644 = vmatpush1.bf16.msra.mxu1 %v14300_v15  ;;  %6270 = vmatprep.mubr.bf16.mxu1 %v15485_v0  ;;  %v14372_v15 = vld [vmem:[#allocation9 + $0x180] ss:$8 sps:$4 sm:$0xff]  }
 0x4a3   :  { %v5843_v63 = vadd.f32 %v5828_v26, %v5808_v62  ;;  %6645 = vmatprep.subr.bf16.mxu1 %v14305_v30  ;;  %v5858_v7 = vmax.f32 %v5840_v55, 0.0  ;;  %v14375_v62 = vld [vmem:[#allocation9 + $0x190] ss:$8 sps:$4 sm:$0xff]  }
 0x4a4   :  { %v5790_v2 = vpop.f32.mrb[140].mxu1 }
 0x4a5   :  { %v5861_v3 = vmax.f32 %v5843_v63, 0.0  ;;  %v5791_v53 = vadd.f32 %v12827_v56, %v5790_v2  ;;  %v13282_v34 = vpop.f32.mrb[141].mxu1 }
 0x4a6   :  { %6646 = vmatpush1.bf16.msra.mxu1 %v14303_v5  ;;  %v5793_v17 = vpop.f32.mrb[142].mxu1  ;;  %v14378_v34 = vld [vmem:[#allocation9 + $0x1a0] ss:$8 sps:$4 sm:$0xff]  }
 0x4a7   :  { %v5811_v61 = vadd.f32 %v5791_v53, %v16458_v59  ;;  %v5794_v48 = vadd.f32 %v12830_v44, %v5793_v17  ;;  %v13283_v1 = vpop.f32.mrb[143].mxu1  ;;  %6647 = vmatprep.subr.bf16.mxu1 %v14308_v19  ;;  %v5873_v58 = vpack.c.bf16 %v5861_v3, %v5858_v7  ;;  %v14312_v59 = vld [vmem:[#allocation9 + $0x2c0] ss:$8 sps:$4 sm:$0xff]   ;;  %v14315_v44 = vld [vmem:[#allocation9 + $0x2d0] ss:$8 sps:$4 sm:$0xff]  }
 0x4a8   :  { %v14380_v19 = vld [vmem:[#allocation9 + $0x1a4] ss:$8 sps:$4 sm:$0xff]  }
 0x4a9   :  { %v5846_v28 = vadd.f32 %v5828_v26, %v5811_v61  ;;  %v5814_v27 = vadd.f32 %v5794_v48, %v16461_v36  ;;  %6271 = vmatmul.mubr.bf16.gmra.mrb[148].mxu1 %v5873_v58  ;;  %v14320_v36 = vld [vmem:[#allocation9 + $0x2e4] ss:$8 sps:$4 sm:$0xff]   ;;  %v14383_v61 = vld [vmem:[#allocation9 + $0x1b4] ss:$8 sps:$4 sm:$0xff]  }
 0x4aa   :  { %6648 = vmatpush1.bf16.msra.mxu1 %v14306_v50  ;;  %6280 = vmatprep.mubr.bf16.mxu1 %v15485_v0 }
 0x4ab   :  { %v5849_v20 = vadd.f32 %v5828_v26, %v5814_v27  ;;  %6649 = vmatprep.subr.bf16.mxu1 %v14311_v43  ;;  %v5864_v24 = vmax.f32 %v5846_v28, 0.0  ;;  %v14321_v26 = vld [vmem:[#allocation9 + $0x2f0] ss:$8 sps:$4 sm:$0xff]  }
 0x4ac   :  { %v14381_v27 = vld [vmem:[#allocation9 + $0x1b0] ss:$8 sps:$4 sm:$0xff]  }
 0x4ad   :  { %v5867_v56 = vmax.f32 %v5849_v20, 0.0 }
 0x4ae   :  { %6650 = vmatpush1.bf16.msra.mxu1 %v14309_v42 }
 0x4af   :  { %6651 = vmatprep.subr.bf16.mxu1 %v14314_v31  ;;  %v5876_v8 = vpack.c.bf16 %v5867_v56, %v5864_v24  ;;  %v14386_v31 = vld [vmem:[#allocation9 + $0x1c4] ss:$8 sps:$4 sm:$0xff]  }
 0x4b1   :  { %6281 = vmatmul.mubr.bf16.gmra.mrb[152].mxu1 %v5876_v8 }
 0x4b2   :  { %6652 = vmatpush1.bf16.msra.mxu1 %v14312_v59  ;;  %6675 = vmatprep.mubr.bf16.mxu1 %v15485_v0 }
 0x4b3   :  { %6653 = vmatprep.subr.bf16.mxu1 %v14317_v4  ;;  %v14384_v4 = vld [vmem:[#allocation9 + $0x1c0] ss:$8 sps:$4 sm:$0xff]  }
 0x4b6   :  { %6654 = vmatpush1.bf16.msra.mxu1 %v14315_v44  ;;  %v14389_v44 = vld [vmem:[#allocation9 + $0x1d4] ss:$8 sps:$4 sm:$0xff]  }
 0x4b7   :  { %6655 = vmatprep.subr.bf16.mxu1 %v14320_v36  ;;  %v14387_v36 = vld [vmem:[#allocation9 + $0x1d0] ss:$8 sps:$4 sm:$0xff]  }
 0x4ba   :  { %6656 = vmatpush1.bf16.msra.mxu1 %v14318_v51  ;;  %v14392_v51 = vld [vmem:[#allocation9 + $0x1e4] ss:$8 sps:$4 sm:$0xff]  }
 0x4bb   :  { %6657 = vmatprep.subr.bf16.mxu1 %v14323_v33  ;;  %v14390_v33 = vld [vmem:[#allocation9 + $0x1e0] ss:$8 sps:$4 sm:$0xff]  }
 0x4be   :  { %6658 = vmatpush1.bf16.msra.mxu1 %v14321_v26  ;;  %v14395_v26 = vld [vmem:[#allocation9 + $0x1f4] ss:$8 sps:$4 sm:$0xff]  }
 0x4c1   :  { %6676 = vmatmul.mubr.bf16.vlgmr.msra.gmra.mrb[156].mxu1 %v5870_v45 }
 0x4c2   :  { %6685 = vmatprep.mubr.bf16.mxu1 %v15485_v0 }
 0x4c9   :  { %6686 = vmatmul.mubr.bf16.gmra.mrb[160].mxu1 %v5873_v58 }
 0x4ca   :  { %6695 = vmatprep.mubr.bf16.mxu1 %v15485_v0 }
 0x4d1   :  { %6696 = vmatmul.mubr.bf16.gmra.mrb[164].mxu1 %v5876_v8 }
 0x514   :  { %v5654_v25 = vpop.f32.mrb[32].mxu0 }
 0x515   :  { %v5832_v47 = vadd.f32 %v5820_v37, %v5654_v25  ;;  %v5656_v60 = vpop.f32.mrb[33].mxu0  ;;  %v14396_v25 = vld [vmem:[#allocation9 + $0x200] ss:$8 sps:$4 sm:$0xff]  }
 0x516   :  { %v5833_v16 = vadd.f32 %v5824_v18, %v5656_v60  ;;  %v5658_v41 = vpop.f32.mrb[34].mxu0  ;;  %v14399_v60 = vld [vmem:[#allocation9 + $0x210] ss:$8 sps:$4 sm:$0xff]  }
 0x517   :  { %v5835_v35 = vadd.f32 %v5820_v37, %v5658_v41  ;;  %v5660_v10 = vpop.f32.mrb[35].mxu0  ;;  %v5850_v21 = vmax.f32 %v5832_v47, 0.0  ;;  %v14401_v47 = vld [vmem:[#allocation9 + $0x214] ss:$8 sps:$4 sm:$0xff]   ;;  %v14402_v41 = vld [vmem:[#allocation9 + $0x220] ss:$8 sps:$4 sm:$0xff]  }
 0x518   :  { %v5836_v39 = vadd.f32 %v5824_v18, %v5660_v10  ;;  %v5851_v22 = vmax.f32 %v5833_v16, 0.0  ;;  %v14404_v16 = vld [vmem:[#allocation9 + $0x224] ss:$8 sps:$4 sm:$0xff]   ;;  %v14405_v10 = vld [vmem:[#allocation9 + $0x230] ss:$8 sps:$4 sm:$0xff]  }
 0x519   :  { %v5853_v52 = vmax.f32 %v5835_v35, 0.0  ;;  %v14407_v35 = vld [vmem:[#allocation9 + $0x234] ss:$8 sps:$4 sm:$0xff]  }
 0x51a   :  { %v5854_v6 = vmax.f32 %v5836_v39, 0.0  ;;  %v14410_v39 = vld [vmem:[#allocation9 + $0x244] ss:$8 sps:$4 sm:$0xff]  }
 0x51b   :  { %v16482_v46 = vpack.c.bf16 %v5853_v52, %v5850_v21  ;;  %v14408_v21 = vld [vmem:[#allocation9 + $0x240] ss:$8 sps:$4 sm:$0xff]   ;;  %v14413_v52 = vld [vmem:[#allocation9 + $0x254] ss:$8 sps:$4 sm:$0xff]  }
 0x51c   :  { %v5869_v14 = vpack.c.bf16 %v5854_v6, %v5851_v22  ;;  %v5664_v23 = vpop.f32.mrb[36].mxu0  ;;  %v14411_v22 = vld [vmem:[#allocation9 + $0x250] ss:$8 sps:$4 sm:$0xff]   ;;  %v14416_v6 = vld [vmem:[#allocation9 + $0x264] ss:$8 sps:$4 sm:$0xff]  }
 0x51d   :  { %v5838_v45 = vadd.f32 %v5820_v37, %v5664_v23  ;;  %v5666_v38 = vpop.f32.mrb[37].mxu0  ;;  %v14419_v23 = vld [vmem:[#allocation9 + $0x274] ss:$8 sps:$4 sm:$0xff]  }
 0x51e   :  { %v5839_v49 = vadd.f32 %v5824_v18, %v5666_v38  ;;  %v5668_v29 = vpop.f32.mrb[38].mxu0  ;;  %6197 = vmatprep.mubr.bf16.mxu0 %v5869_v14 }
 0x51f   :  { %v5841_v30 = vadd.f32 %v5820_v37, %v5668_v29  ;;  %v5670_v40 = vpop.f32.mrb[39].mxu0  ;;  %6198 = vmatmul.mubr.bf16.vlgmr.msra.gmra.mrb[44].mxu0 %v16482_v46  ;;  %v5856_v5 = vmax.f32 %v5838_v45, 0.0 }
 0x520   :  { %v5842_v55 = vadd.f32 %v5824_v18, %v5670_v40  ;;  %6581 = vmatpush1.bf16.msra.mxu0 %v14372_v15  ;;  %v5857_v54 = vmax.f32 %v5839_v49, 0.0  ;;  %v14417_v15 = vld [vmem:[#allocation9 + $0x270] ss:$8 sps:$4 sm:$0xff]  }
 0x521   :  { %v5859_v63 = vmax.f32 %v5841_v30, 0.0  ;;  %6582 = vmatprep.subr.bf16.mxu0 %v14377_v57 }
 0x522   :  { %v5860_v2 = vmax.f32 %v5842_v55, 0.0 }
 0x523   :  { %v16485_v7 = vpack.c.bf16 %v5859_v63, %v5856_v5 }
 0x524   :  { %v16487_v3 = vpack.c.bf16 %v5860_v2, %v5857_v54  ;;  %6583 = vmatpush1.bf16.msra.mxu0 %v14375_v62  ;;  %v5674_v53 = vpop.f32.mrb[40].mxu0 }
 0x525   :  { %v5844_v17 = vadd.f32 %v5820_v37, %v5674_v53  ;;  %v5676_v50 = vpop.f32.mrb[41].mxu0  ;;  %6584 = vmatprep.subr.bf16.mxu0 %v14380_v19 }
 0x526   :  { %v5845_v48 = vadd.f32 %v5824_v18, %v5676_v50  ;;  %v5678_v1 = vpop.f32.mrb[42].mxu0  ;;  %6207 = vmatprep.mubr.bf16.mxu0 %v16487_v3 }
 0x527   :  { %v5847_v58 = vadd.f32 %v5820_v37, %v5678_v1  ;;  %v5680_v43 = vpop.f32.mrb[43].mxu0  ;;  %6208 = vmatmul.mubr.bf16.gmra.mrb[48].mxu0 %v16485_v7  ;;  %v5862_v42 = vmax.f32 %v5844_v17, 0.0  ;;  %v14393_v37 = vld [vmem:[#allocation9 + $0x1f0] ss:$8 sps:$4 sm:$0xff]  }
 0x528   :  { %v5848_v28 = vadd.f32 %v5824_v18, %v5680_v43  ;;  %6585 = vmatpush1.bf16.msra.mxu0 %v14378_v34  ;;  %v5863_v24 = vmax.f32 %v5845_v48, 0.0  ;;  %v14398_v18 = vld [vmem:[#allocation9 + $0x204] ss:$8 sps:$4 sm:$0xff]  }
 0x529   :  { %v5865_v20 = vmax.f32 %v5847_v58, 0.0  ;;  %6586 = vmatprep.subr.bf16.mxu0 %v14383_v61 }
 0x52a   :  { %v5866_v56 = vmax.f32 %v5848_v28, 0.0 }
 0x52b   :  { %v5874_v59 = vpack.c.bf16 %v5865_v20, %v5862_v42 }
 0x52c   :  { %v5875_v8 = vpack.c.bf16 %v5866_v56, %v5863_v24  ;;  %6587 = vmatpush1.bf16.msra.mxu0 %v14381_v27  ;;  %v14449_v24 = vld [vmem:[#allocation12 + $0x248] ss:$12 sps:$4 sm:$0xff]  }
 0x52d   :  { %6588 = vmatprep.subr.bf16.mxu0 %v14386_v31  ;;  %12842 = vmatprep.subr.bf16.mxu1 %v14449_v24 }
 0x52e   :  { %6217 = vmatprep.mubr.bf16.mxu0 %v5875_v8 }
 0x52f   :  { %6218 = vmatmul.mubr.bf16.gmra.mrb[52].mxu0 %v5874_v59 }
 0x530   :  { %6589 = vmatpush1.bf16.msra.mxu0 %v14384_v4  ;;  %6612 = vmatprep.mubr.bf16.mxu0 %v5869_v14  ;;  %v14414_v14 = vld [vmem:[#allocation9 + $0x260] ss:$8 sps:$4 sm:$0xff]  }
 0x531   :  { %6590 = vmatprep.subr.bf16.mxu0 %v14389_v44 }
 0x534   :  { %6591 = vmatpush1.bf16.msra.mxu0 %v14387_v36 }
 0x535   :  { %6592 = vmatprep.subr.bf16.mxu0 %v14392_v51 }
 0x538   :  { %6593 = vmatpush1.bf16.msra.mxu0 %v14390_v33 }
 0x539   :  { %6594 = vmatprep.subr.bf16.mxu0 %v14395_v26  ;;  %v14455_v26 = vld [vmem:[#allocation12 + $0x1a0] ss:$12 sps:$4 sm:$0xff]  }
 0x53c   :  { %6595 = vmatpush1.bf16.msra.mxu0 %v14393_v37 }
 0x53d   :  { %6596 = vmatprep.subr.bf16.mxu0 %v14398_v18 }
 0x540   :  { %6597 = vmatpush1.bf16.msra.mxu0 %v14396_v25  ;;  %v14459_v25 = vld [vmem:[#allocation12 + $0x278] ss:$12 sps:$4 sm:$0xff]  }
 0x541   :  { %6598 = vmatprep.subr.bf16.mxu0 %v14401_v47 }
 0x544   :  { %6599 = vmatpush1.bf16.msra.mxu0 %v14399_v60  ;;  %v14460_v60 = vld [vmem:[#allocation12 + $0x1b8] ss:$12 sps:$4 sm:$0xff]  }
 0x545   :  { %6600 = vmatprep.subr.bf16.mxu0 %v14404_v16  ;;  %v14464_v16 = vld [vmem:[#allocation12 + $0x290] ss:$12 sps:$4 sm:$0xff]  }
 0x548   :  { %6601 = vmatpush1.bf16.msra.mxu0 %v14402_v41 }
 0x549   :  { %6602 = vmatprep.subr.bf16.mxu0 %v14407_v35 }
 0x54c   :  { %6603 = vmatpush1.bf16.msra.mxu0 %v14405_v10 }
 0x54d   :  { %6604 = vmatprep.subr.bf16.mxu0 %v14410_v39 }
 0x550   :  { %6605 = vmatpush1.bf16.msra.mxu0 %v14408_v21 }
 0x551   :  { %6606 = vmatprep.subr.bf16.mxu0 %v14413_v52  ;;  %v14465_v52 = vld [vmem:[#allocation12 + $0x1d0] ss:$12 sps:$4 sm:$0xff]  }
 0x554   :  { %6607 = vmatpush1.bf16.msra.mxu0 %v14411_v22 }
 0x555   :  { %6608 = vmatprep.subr.bf16.mxu0 %v14416_v6 }
 0x558   :  { %6609 = vmatpush1.bf16.msra.mxu0 %v14414_v14 }
 0x559   :  { %6610 = vmatprep.subr.bf16.mxu0 %v14419_v23 }
 0x55c   :  { %6611 = vmatpush1.bf16.msra.mxu0 %v14417_v15 }
 0x55f   :  { %6613 = vmatmul.mubr.bf16.vlgmr.msra.gmra.mrb[56].mxu0 %v16482_v46 }
 0x560   :  { %6622 = vmatprep.mubr.bf16.mxu0 %v16487_v3 }
 0x567   :  { %6623 = vmatmul.mubr.bf16.gmra.mrb[60].mxu0 %v16485_v7 }
 0x568   :  { %6632 = vmatprep.mubr.bf16.mxu0 %v5875_v8  ;;  %v14454_v8 = vld [vmem:[#allocation12 + $0x260] ss:$12 sps:$4 sm:$0xff]  }
 0x56f   :  { %6633 = vmatmul.mubr.bf16.gmra.mrb[64].mxu0 %v5874_v59  ;;  %v14450_v59 = vld [vmem:[#allocation12 + $0x188] ss:$12 sps:$4 sm:$0xff]  }
 0x570   :  { %6842 = vmatprep.mubr.bf16.mxu0 %v15485_v0  ;;  %12843 = vmatpush3.bf16.msra.mxu1 %v14450_v59 }
 0x571   :  { %12844 = vmatprep.subr.bf16.mxu1 %v14454_v8 }
 0x574   :  { %v6262_v45 = vpop.f32.mrb[144].mxu1  ;;  %12845 = vmatpush3.bf16.msra.mxu1 %v14455_v26 }
 0x575   :  { %v6264_v38 = vpop.f32.mrb[145].mxu1  ;;  %12846 = vmatprep.subr.bf16.mxu1 %v14459_v25 }
 0x576   :  { %v6266_v57 = vpop.f32.mrb[146].mxu1 }
 0x577   :  { %v6268_v49 = vpop.f32.mrb[147].mxu1 }
 0x578   :  { %12847 = vmatpush3.bf16.msra.mxu1 %v14460_v60 }
 0x579   :  { %12848 = vmatprep.subr.bf16.mxu1 %v14464_v16 }
 0x57c   :  { %v6272_v29 = vpop.f32.mrb[148].mxu1  ;;  %12849 = vmatpush3.bf16.msra.mxu1 %v14465_v52 }
 0x57d   :  { %v6274_v30 = vpop.f32.mrb[149].mxu1 }
 0x57e   :  { %v6276_v40 = vpop.f32.mrb[150].mxu1 }
 0x57f   :  { %v6278_v55 = vpop.f32.mrb[151].mxu1 }
 0x584   :  { %v6282_v62 = vpop.f32.mrb[152].mxu1 }
 0x585   :  { %v6284_v5 = vpop.f32.mrb[153].mxu1 }
 0x586   :  { %v6286_v63 = vpop.f32.mrb[154].mxu1 }
 0x587   :  { %v6288_v46 = vpop.f32.mrb[155].mxu1 }
 0x594   :  { %v6677_v19 = vpop.f32.mrb[156].mxu1 }
 0x595   :  { %v6679_v54 = vpop.f32.mrb[157].mxu1 }
 0x596   :  { %v6681_v2 = vpop.f32.mrb[158].mxu1 }
 0x597   :  { %v6683_v7 = vpop.f32.mrb[159].mxu1 }
 0x59c   :  { %v16495_v3 = vpop.f32.mrb[160].mxu1 }
 0x59d   :  { %v16497_v53 = vpop.f32.mrb[161].mxu1 }
 0x59e   :  { %v16499_v34 = vpop.f32.mrb[162].mxu1 }
 0x59f   :  { %v16501_v17 = vpop.f32.mrb[163].mxu1 }
 0x5a4   :  { %v16503_v50 = vpop.f32.mrb[164].mxu1 }
 0x5a5   :  { %v16505_v61 = vpop.f32.mrb[165].mxu1 }
 0x5a6   :  { %v16507_v48 = vpop.f32.mrb[166].mxu1 }
 0x5a7   :  { %v16509_v1 = vpop.f32.mrb[167].mxu1 }
 0x5f2   :  { %v6199_v58 = vpop.f32.mrb[44].mxu0 }
 0x5f3   :  { %v6263_v43 = vadd.f32 %v6262_v45, %v6199_v58  ;;  %v6201_v28 = vpop.f32.mrb[45].mxu0 }
 0x5f4   :  { %v6265_v27 = vadd.f32 %v6264_v38, %v6201_v28  ;;  %v6203_v42 = vpop.f32.mrb[46].mxu0 }
 0x5f5   :  { %v6267_v20 = vadd.f32 %v6266_v57, %v6203_v42  ;;  %v6205_v31 = vpop.f32.mrb[47].mxu0 }
 0x5f6   :  { %v6269_v56 = vadd.f32 %v6268_v49, %v6205_v31 }
 0x5fa   :  { %v6209_v4 = vpop.f32.mrb[48].mxu0 }
 0x5fb   :  { %v6273_v44 = vadd.f32 %v6272_v29, %v6209_v4  ;;  %v6211_v36 = vpop.f32.mrb[49].mxu0 }
 0x5fc   :  { %v6275_v51 = vadd.f32 %v6274_v30, %v6211_v36  ;;  %v6213_v33 = vpop.f32.mrb[50].mxu0 }
 0x5fd   :  { %v6277_v37 = vadd.f32 %v6276_v40, %v6213_v33  ;;  %v6215_v18 = vpop.f32.mrb[51].mxu0 }
 0x5fe   :  { %v6279_v47 = vadd.f32 %v6278_v55, %v6215_v18 }
 0x602   :  { %v6219_v41 = vpop.f32.mrb[52].mxu0 }
 0x603   :  { %v6283_v35 = vadd.f32 %v6282_v62, %v6219_v41  ;;  %v6221_v10 = vpop.f32.mrb[53].mxu0 }
 0x604   :  { %v6285_v39 = vadd.f32 %v6284_v5, %v6221_v10  ;;  %v6223_v21 = vpop.f32.mrb[54].mxu0 }
 0x605   :  { %v6287_v22 = vadd.f32 %v6286_v63, %v6223_v21  ;;  %v6225_v6 = vpop.f32.mrb[55].mxu0 }
 0x606   :  { %v6289_v14 = vadd.f32 %v6288_v46, %v6225_v6 }
 0x632   :  { %v6614_v23 = vpop.f32.mrb[56].mxu0 }
 0x633   :  { %v6678_v15 = vadd.f32 %v6677_v19, %v6614_v23  ;;  %v6616_v45 = vpop.f32.mrb[57].mxu0 }
 0x634   :  { %v6680_v38 = vadd.f32 %v6679_v54, %v6616_v45  ;;  %v6618_v57 = vpop.f32.mrb[58].mxu0 }
 0x635   :  { %v6706_v49 = vmax.f32 %v6263_v43, %v6678_v15  ;;  %v6682_v29 = vadd.f32 %v6681_v2, %v6618_v57  ;;  %v6620_v30 = vpop.f32.mrb[59].mxu0 }
 0x636   :  { %v6707_v40 = vmax.f32 %v6265_v27, %v6680_v38  ;;  %v6684_v55 = vadd.f32 %v6683_v7, %v6620_v30 }
 0x637   :  { %v6708_v62 = vmax.f32 %v6267_v20, %v6682_v29  ;;  %v6730_v28 = vrot.slane %v6706_v49, 2 }
 0x638   :  { %v6709_v58 = vmax.f32 %v6269_v56, %v6684_v55  ;;  %v6733_v42 = vrot.slane %v6707_v40, 2 }
 0x639   :  { %v6731_v5 = vrot.slane %v6708_v62, 2 }
 0x63a   :  { %v6734_v31 = vrot.slane %v6709_v58, 2  ;;  %v6624_v63 = vpop.f32.mrb[60].mxu0 }
 0x63b   :  { %v6732_v46 = vsel %vm911_vm2, %v6730_v28, %v6731_v5  ;;  %v6688_v24 = vadd.f32 %v16495_v3, %v6624_v63  ;;  %v6626_v19 = vpop.f32.mrb[61].mxu0 }
 0x63c   :  { %v6690_v54 = vadd.f32 %v16497_v53, %v6626_v19  ;;  %v6628_v59 = vpop.f32.mrb[62].mxu0  ;;  %v6735_v2 = vsel %vm911_vm2, %v6733_v42, %v6734_v31  ;;  %v6764_v43 = vmax.f32 %v6706_v49, %v6732_v46 }
 0x63d   :  { %v6710_v27 = vmax.f32 %v6273_v44, %v6688_v24  ;;  %v6692_v7 = vadd.f32 %v16499_v34, %v6628_v59  ;;  %v6630_v20 = vpop.f32.mrb[63].mxu0  ;;  %v6765_v56 = vmax.f32 %v6707_v40, %v6735_v2  ;;  %v14424_v24 = vld [vmem:[#allocation12 + $0x184] ss:$12 sps:$4 sm:$0xff]   ;;  %v14422_v59 = vld [vmem:[#allocation12 + $0x180] ss:$12 sps:$4 sm:$0xff]  }
 0x63e   :  { %v6711_v8 = vmax.f32 %v6275_v51, %v6690_v54  ;;  %v6694_v4 = vadd.f32 %v16501_v17, %v6630_v20  ;;  %v14420_v54 = vld [vmem:[#allocation10] sm:$0xff]   ;;  %v14427_v2 = vld [vmem:[#allocation12 + $0x19c] ss:$12 sps:$4 sm:$0xff]  }
 0x63f   :  { %v6736_v36 = vrot.slane %v6710_v27, 2  ;;  %v6712_v33 = vmax.f32 %v6277_v37, %v6692_v7  ;;  %v14421_v7 = vld [vmem:[#allocation10 + $0x8] sm:$0x3f]  }
 0x640   :  { %v6738_v26 = vrot.slane %v6711_v8, 2  ;;  %v6713_v18 = vmax.f32 %v6279_v47, %v6694_v4  ;;  %v14428_v20 = vld [vmem:[#allocation12 + $0x1b0] ss:$12 sps:$4 sm:$0xff]  }
 0x641   :  { %v6737_v3 = vsel %vm911_vm2, %v6731_v5, %v6736_v36  ;;  %v6740_v25 = vrot.slane %v6712_v33, 2  ;;  %v14436_v4 = vld [vmem:[#allocation12 + $0x1e4] ss:$12 sps:$4 sm:$0xff]  }
 0x642   :  { %v6742_v53 = vrot.slane %v6713_v18, 2  ;;  %v6634_v60 = vpop.f32.mrb[64].mxu0  ;;  %v6739_v16 = vsel %vm911_vm2, %v6734_v31, %v6738_v26  ;;  %v6766_v41 = vmax.f32 %v6708_v62, %v6737_v3  ;;  %v14440_v3 = vld [vmem:[#allocation12 + $0x210] ss:$12 sps:$4 sm:$0xff]  }
 0x643   :  { %v6741_v44 = vsel %vm911_vm2, %v6736_v36, %v6740_v25  ;;  %v6698_v34 = vadd.f32 %v16503_v50, %v6634_v60  ;;  %v6636_v10 = vpop.f32.mrb[65].mxu0  ;;  %v6767_v51 = vmax.f32 %v6709_v58, %v6739_v16  ;;  %v14434_v36 = vld [vmem:[#allocation12 + $0x1e0] ss:$12 sps:$4 sm:$0xff]   ;;  %v14448_v60 = vld [vmem:[#allocation12 + $0x244] ss:$12 sps:$4 sm:$0xff]  }
 0x644   :  { %v6700_v17 = vadd.f32 %v16505_v61, %v6636_v10  ;;  %v6638_v21 = vpop.f32.mrb[66].mxu0  ;;  %v6776_v37 = vpack.c.bf16 %v6766_v41, %v6764_v43  ;;  %v6743_v47 = vsel %vm911_vm2, %v6738_v26, %v6742_v53  ;;  %v6768_v52 = vmax.f32 %v6710_v27, %v6741_v44  ;;  %v14425_v43 = vld [vmem:[#allocation12 + $0x198] ss:$12 sps:$4 sm:$0xff]   ;;  %v14430_v27 = vld [vmem:[#allocation12 + $0x1b4] ss:$12 sps:$4 sm:$0xff]  }
 0x645   :  { %v6714_v6 = vmax.f32 %v6283_v35, %v6698_v34  ;;  %v6702_v23 = vadd.f32 %v16507_v48, %v6638_v21  ;;  %v6640_v15 = vpop.f32.mrb[67].mxu0  ;;  %v6777_v45 = vpack.c.bf16 %v6767_v51, %v6765_v56  ;;  %v6769_v38 = vmax.f32 %v6711_v8, %v6743_v47  ;;  %v14433_v56 = vld [vmem:[#allocation12 + $0x1cc] ss:$12 sps:$4 sm:$0xff]   ;;  %v14431_v8 = vld [vmem:[#allocation12 + $0x1c8] ss:$12 sps:$4 sm:$0xff]  }
 0x646   :  { %v6715_v57 = vmax.f32 %v6285_v39, %v6700_v17  ;;  %v6704_v49 = vadd.f32 %v16509_v1, %v6640_v15  ;;  %v14437_v26 = vld [vmem:[#allocation12 + $0x1f8] ss:$12 sps:$4 sm:$0xff]   ;;  %v14446_v16 = vld [vmem:[#allocation12 + $0x240] ss:$12 sps:$4 sm:$0xff]   ;;  %v14453_v41 = vld [vmem:[#allocation12 + $0x25c] ss:$12 sps:$4 sm:$0xff]  }
 0x647   :  { %v6744_v29 = vrot.slane %v6714_v6, 2  ;;  %v6716_v50 = vmax.f32 %v6287_v22, %v6702_v23  ;;  %6810 = vmatprep.subr.bf16.mxu0 %v6777_v45  ;;  %v14451_v44 = vld [vmem:[#allocation12 + $0x258] ss:$12 sps:$4 sm:$0xff]   ;;  %v14458_v34 = vld [vmem:[#allocation12 + $0x274] ss:$12 sps:$4 sm:$0xff]  }
 0x648   :  { %v6746_v30 = vrot.slane %v6715_v57, 2  ;;  %v6717_v40 = vmax.f32 %v6289_v14, %v6704_v49  ;;  %6811 = vmatpush1.bf16.msra.mxu0 %v6776_v37  ;;  %v14456_v10 = vld [vmem:[#allocation12 + $0x270] ss:$12 sps:$4 sm:$0xff]   ;;  %v14463_v51 = vld [vmem:[#allocation12 + $0x28c] ss:$12 sps:$4 sm:$0xff]  }
 0x649   :  { %v6745_v61 = vsel %vm911_vm2, %v6740_v25, %v6744_v29  ;;  %v6748_v55 = vrot.slane %v6716_v50, 2  ;;  %v14445_v25 = vld [vmem:[#allocation12 + $0x22c] ss:$12 sps:$4 sm:$0xff]   ;;  %v14461_v17 = vld [vmem:[#allocation12 + $0x288] ss:$12 sps:$4 sm:$0xff]  }
 0x64a   :  { %v6750_v62 = vrot.slane %v6717_v40, 2  ;;  %v6747_v35 = vsel %vm911_vm2, %v6742_v53, %v6746_v30  ;;  %v6770_v58 = vmax.f32 %v6712_v33, %v6745_v61  ;;  %v14439_v33 = vld [vmem:[#allocation12 + $0x1fc] ss:$12 sps:$4 sm:$0xff]   ;;  %v14466_v21 = vld [vmem:[#allocation12 + $0x2a0] ss:$12 sps:$4 sm:$0xff]  }
 0x64b   :  { %v6774_v48 = vmax.f32 %v6716_v50, %v6748_v55  ;;  %v6771_v28 = vmax.f32 %v6713_v18, %v6747_v35  ;;  %v6749_v5 = vsel %vm911_vm2, %v6744_v29, %v6748_v55  ;;  %v14442_v18 = vld [vmem:[#allocation12 + $0x214] ss:$12 sps:$4 sm:$0xff]   ;;  %v14468_v37 = vld [vmem:[#allocation12 + $0x2a4] ss:$12 sps:$4 sm:$0xff]   ;;  %v14473_v23 = vld [vmem:[#allocation12 + $0x2bc] ss:$12 sps:$4 sm:$0xff]  }
 0x64c   :  { %v6751_v39 = vsel %vm911_vm2, %v6746_v30, %v6750_v62  ;;  %v6775_v1 = vmax.f32 %v6717_v40, %v6750_v62  ;;  %v6778_v42 = vpack.c.bf16 %v6770_v58, %v6768_v52  ;;  %v6772_v22 = vmax.f32 %v6714_v6, %v6749_v5  ;;  %v14443_v53 = vld [vmem:[#allocation12 + $0x228] ss:$12 sps:$4 sm:$0xff]   ;;  %v14471_v6 = vld [vmem:[#allocation12 + $0x2b8] ss:$12 sps:$4 sm:$0xff]   ;;  %v14474_v15 = vld [vmem:[#allocation12 + $0x2c0] ss:$12 sps:$4 sm:$0xff]  }
 0x64d   :  { %v6773_v31 = vmax.f32 %v6715_v57, %v6751_v39  ;;  %v6779_v63 = vpack.c.bf16 %v6771_v28, %v6769_v38  ;;  %v14469_v47 = vld [vmem:[#allocation12 + $0x2a8] ss:$12 sps:$4 sm:$0xff]   ;;  %v14475_v45 = vld [vmem:[#allocation12 + $0x200] ss:$12 sps:$4 sm:$0xff]   ;;  %v14476_v38 = vld [vmem:[#allocation12 + $0x2d0] ss:$12 sps:$4 sm:$0xff]  }
 0x64e   :  { %v6780_v14 = vpack.c.bf16 %v6774_v48, %v6772_v22  ;;  %v14470_v52 = vld [vmem:[#allocation12 + $0x1e8] ss:$12 sps:$4 sm:$0xff]   ;;  %12850 = vmatprep.subr.bf16.mxu1 %v14469_v47  ;;  %v14479_v49 = vld [vmem:[#allocation12 + $0x2d8] ss:$12 sps:$4 sm:$0xff]   ;;  %v14484_v40 = vld [vmem:[#allocation12 + $0x2f0] ss:$12 sps:$4 sm:$0xff]  }
 0x64f   :  { %v6781_v46 = vpack.c.bf16 %v6775_v1, %v6773_v31  ;;  %6812 = vmatprep.subr.bf16.mxu0 %v6779_v63  ;;  %12851 = vmatpush3.bf16.msra.mxu1 %v14470_v52  ;;  %v14478_v57 = vld [vmem:[#allocation12 + $0x2d4] ss:$12 sps:$4 sm:$0xff]   ;;  %v14480_v29 = vld [vmem:[#allocation12 + $0x218] ss:$12 sps:$4 sm:$0xff]   ;;  %v14485_v61 = vld [vmem:[#allocation12 + $0x230] ss:$12 sps:$4 sm:$0xff]  }
 0x650   :  { %6813 = vmatpush1.bf16.msra.mxu0 %v6778_v42  ;;  %v6805_v19 = vsel %vm336_vm0, %v6780_v14, 0  ;;  %12852 = vmatprep.subr.bf16.mxu1 %v14474_v15  ;;  %v14481_v50 = vld [vmem:[#allocation12 + $0x2e8] ss:$12 sps:$4 sm:$0xff]   ;;  %v14483_v30 = vld [vmem:[#allocation12 + $0x2ec] ss:$12 sps:$4 sm:$0xff]  }
 0x651   :  { %12044 = vmatprep.subr.msk.bf16.mxu0 %vm336_vm0, %v6781_v46  ;;  %v14488_v55 = vld [vmem:[#allocation12 + $0x4] ss:$12 sps:$4 sm:$0xff]   ;;  %v14489_v62 = vld [vmem:[#allocation12 + $0xc8] ss:$12 sps:$4 sm:$0xff]  }
 0x652   :  { %v14516_v47 = vld [vmem:[#allocation12 + $0x90] ss:$12 sps:$4 sm:$0xff]   ;;  %v14520_v52 = vld [vmem:[#allocation12 + $0x98] ss:$12 sps:$4 sm:$0xff]   ;;  %v14521_v15 = vld [vmem:[#allocation12 + $0xa8] ss:$12 sps:$4 sm:$0xff]  }
 0x653   :  { %12853 = vmatpush3.bf16.msra.mxu1 %v14475_v45  ;;  %v14525_v45 = vld [vmem:[#allocation12 + $0xb0] ss:$12 sps:$4 sm:$0xff]  }
 0x654   :  { %6815 = vmatpush1.bf16.msra.mxu0 %v6805_v19  ;;  %12854 = vmatprep.subr.bf16.mxu1 %v14479_v49  ;;  %v14526_v49 = vld [vmem:[#allocation12 + $0xc0] ss:$12 sps:$4 sm:$0xff]  }
 0x655   :  { %7266 = vmatprep.subr.bf16.mxu0 %v14424_v24 }
 0x657   :  { %12045 = vmatmul.mubr.msk.bf16.vlgmr.msra.gmra.mrb[68].mxu0 %vm6796_vm9, %v14420_v54  ;;  %12855 = vmatpush3.bf16.msra.mxu1 %v14480_v29  ;;  %v14486_v54 = vld [vmem:[#allocation12] ss:$12 sps:$4 sm:$0xff]   ;;  %v14530_v29 = vld [vmem:[#allocation12 + $0x308] ss:$12 sps:$4 sm:$0xff]  }
 0x658   :  { %6852 = vmatprep.mubr.bf16.mxu0 %v15485_v0  ;;  %7267 = vmatpush1.bf16.msra.mxu0 %v14422_v59 }
 0x659   :  { %7268 = vmatprep.subr.bf16.mxu0 %v14427_v2  ;;  %12856 = vmatprep.subr.bf16.mxu1 %v14484_v40  ;;  %v14490_v2 = vld [vmem:[#allocation12 + $0x8] ss:$12 sps:$4 sm:$0xff]   ;;  %v14531_v40 = vld [vmem:[#allocation12 + $0xd8] ss:$12 sps:$4 sm:$0xff]  }
 0x65b   :  { %12857 = vmatpush3.bf16.msra.mxu1 %v14485_v61  ;;  %v14535_v61 = vld [vmem:[#allocation12 + $0x320] ss:$12 sps:$4 sm:$0xff]  }
 0x65c   :  { %7269 = vmatpush1.bf16.msra.mxu0 %v14425_v43  ;;  %12870 = vmatprep.subr.bf16.mxu1 %v14489_v62  ;;  %v14539_v62 = vld [vmem:[#allocation12 + $0x3f8] ss:$12 sps:$4 sm:$0xff]  }
 0x65d   :  { %7270 = vmatprep.subr.bf16.mxu0 %v14430_v27 }
 0x65f   :  { %12046 = vmatmul.mubr.msk.bf16.gmra.mrb[72].mxu0 %vm6796_vm9, %v14421_v7  ;;  %v14493_v7 = vld [vmem:[#allocation12 + $0x1c] ss:$12 sps:$4 sm:$0xff]  }
 0x660   :  { %7271 = vmatpush1.bf16.msra.mxu0 %v14428_v20  ;;  %v14494_v20 = vld [vmem:[#allocation12 + $0xe0] ss:$12 sps:$4 sm:$0xff]  }
 0x661   :  { %7272 = vmatprep.subr.bf16.mxu0 %v14433_v56  ;;  %v14491_v56 = vld [vmem:[#allocation12 + $0x18] ss:$12 sps:$4 sm:$0xff]  }
 0x664   :  { %7273 = vmatpush1.bf16.msra.mxu0 %v14431_v8  ;;  %v14495_v8 = vld [vmem:[#allocation12 + $0x20] ss:$12 sps:$4 sm:$0xff]  }
 0x665   :  { %7274 = vmatprep.subr.bf16.mxu0 %v14436_v4  ;;  %v14498_v4 = vld [vmem:[#allocation12 + $0x34] ss:$12 sps:$4 sm:$0xff]  }
 0x668   :  { %7275 = vmatpush1.bf16.msra.mxu0 %v14434_v36  ;;  %v14499_v36 = vld [vmem:[#allocation12 + $0xf8] ss:$12 sps:$4 sm:$0xff]  }
 0x669   :  { %7276 = vmatprep.subr.bf16.mxu0 %v14439_v33  ;;  %v14496_v33 = vld [vmem:[#allocation12 + $0x30] ss:$12 sps:$4 sm:$0xff]  }
 0x66c   :  { %7277 = vmatpush1.bf16.msra.mxu0 %v14437_v26  ;;  %v14500_v26 = vld [vmem:[#allocation12 + $0x38] ss:$12 sps:$4 sm:$0xff]  }
 0x66d   :  { %7278 = vmatprep.subr.bf16.mxu0 %v14442_v18  ;;  %v14503_v18 = vld [vmem:[#allocation12 + $0x4c] ss:$12 sps:$4 sm:$0xff]  }
 0x670   :  { %7279 = vmatpush1.bf16.msra.mxu0 %v14440_v3  ;;  %v14504_v3 = vld [vmem:[#allocation12 + $0x110] ss:$12 sps:$4 sm:$0xff]  }
 0x671   :  { %7280 = vmatprep.subr.bf16.mxu0 %v14445_v25  ;;  %v14501_v25 = vld [vmem:[#allocation12 + $0x48] ss:$12 sps:$4 sm:$0xff]  }
 0x674   :  { %7281 = vmatpush1.bf16.msra.mxu0 %v14443_v53  ;;  %v14505_v53 = vld [vmem:[#allocation12 + $0x50] ss:$12 sps:$4 sm:$0xff]  }
 0x675   :  { %7282 = vmatprep.subr.bf16.mxu0 %v14448_v60  ;;  %v14508_v60 = vld [vmem:[#allocation12 + $0x64] ss:$12 sps:$4 sm:$0xff]  }
 0x678   :  { %7283 = vmatpush1.bf16.msra.mxu0 %v14446_v16  ;;  %v14509_v16 = vld [vmem:[#allocation12 + $0x128] ss:$12 sps:$4 sm:$0xff]  }
 0x679   :  { %7284 = vmatprep.subr.bf16.mxu0 %v14453_v41  ;;  %v14506_v41 = vld [vmem:[#allocation12 + $0x60] ss:$12 sps:$4 sm:$0xff]  }
 0x67c   :  { %7285 = vmatpush1.bf16.msra.mxu0 %v14451_v44  ;;  %v14510_v44 = vld [vmem:[#allocation12 + $0x68] ss:$12 sps:$4 sm:$0xff]  }
 0x67d   :  { %7286 = vmatprep.subr.bf16.mxu0 %v14458_v34  ;;  %v14513_v34 = vld [vmem:[#allocation12 + $0x7c] ss:$12 sps:$4 sm:$0xff]  }
 0x680   :  { %7287 = vmatpush1.bf16.msra.mxu0 %v14456_v10  ;;  %v14514_v10 = vld [vmem:[#allocation12 + $0x140] ss:$12 sps:$4 sm:$0xff]  }
 0x681   :  { %7288 = vmatprep.subr.bf16.mxu0 %v14463_v51  ;;  %v14511_v51 = vld [vmem:[#allocation12 + $0x78] ss:$12 sps:$4 sm:$0xff]  }
 0x684   :  { %7289 = vmatpush1.bf16.msra.mxu0 %v14461_v17  ;;  %v14515_v17 = vld [vmem:[#allocation12 + $0x80] ss:$12 sps:$4 sm:$0xff]  }
 0x685   :  { %7290 = vmatprep.subr.bf16.mxu0 %v14468_v37  ;;  %v14519_v37 = vld [vmem:[#allocation12 + $0x158] ss:$12 sps:$4 sm:$0xff]  }
 0x688   :  { %7291 = vmatpush1.bf16.msra.mxu0 %v14466_v21  ;;  %v14518_v21 = vld [vmem:[#allocation12 + $0x94] ss:$12 sps:$4 sm:$0xff]  }
 0x689   :  { %7292 = vmatprep.subr.bf16.mxu0 %v14473_v23  ;;  %v14524_v23 = vld [vmem:[#allocation12 + $0x170] ss:$12 sps:$4 sm:$0xff]  }
 0x68c   :  { %7293 = vmatpush1.bf16.msra.mxu0 %v14471_v6  ;;  %v14523_v6 = vld [vmem:[#allocation12 + $0xac] ss:$12 sps:$4 sm:$0xff]  }
 0x68d   :  { %7294 = vmatprep.subr.bf16.mxu0 %v14478_v57  ;;  %v14529_v57 = vld [vmem:[#allocation12 + $0x3c8] ss:$12 sps:$4 sm:$0xff]  }
 0x690   :  { %7295 = vmatpush1.bf16.msra.mxu0 %v14476_v38  ;;  %v14528_v38 = vld [vmem:[#allocation12 + $0xc4] ss:$12 sps:$4 sm:$0xff]  }
 0x691   :  { %7296 = vmatprep.subr.bf16.mxu0 %v14483_v30  ;;  %v14534_v30 = vld [vmem:[#allocation12 + $0x3e0] ss:$12 sps:$4 sm:$0xff]  }
 0x694   :  { %7297 = vmatpush1.bf16.msra.mxu0 %v14481_v50  ;;  %v14533_v50 = vld [vmem:[#allocation12 + $0xdc] ss:$12 sps:$4 sm:$0xff]  }
 0x695   :  { %7621 = vmatprep.subr.bf16.mxu0 %v14488_v55  ;;  %v14538_v55 = vld [vmem:[#allocation12 + $0xf4] ss:$12 sps:$4 sm:$0xff]  }
 0x72a   :  { %v6844_v35 = vpop.f32.mrb[68].mxu0 }
 0x72b   :  { %v6846_v58 = vpop.f32.mrb[69].mxu0 }
 0x72c   :  { %v6848_v48 = vpop.f32.mrb[70].mxu0 }
 0x72d   :  { %v16532_v28 = vpack.c.bf16 %v6848_v48, %v6844_v35  ;;  %v6850_v5 = vpop.f32.mrb[71].mxu0  ;;  %v14540_v48 = vld [vmem:[#allocation12 + $0x338] ss:$12 sps:$4 sm:$0xff]  }
 0x72e   :  { %v16534_v39 = vpack.c.bf16 %v6850_v5, %v6846_v58  ;;  %v14536_v58 = vld [vmem:[#allocation12 + $0xf0] ss:$12 sps:$4 sm:$0xff]  }
 0x72f   :  { %v7000_v59 = vrot.slane %v16532_v28, 1 }
 0x730   :  { %v7003_v24 = vrot.slane %v16534_v39, 1  ;;  %v7788_v5 = vrot.slane %v16534_v39, 2 }
 0x732   :  { %v6854_v1 = vpop.f32.mrb[72].mxu0 }
 0x733   :  { %v6856_v42 = vpop.f32.mrb[73].mxu0 }
 0x734   :  { %v6858_v22 = vpop.f32.mrb[74].mxu0 }
 0x735   :  { %v16536_v31 = vpack.c.bf16 %v6858_v22, %v6854_v1  ;;  %v6860_v63 = vpop.f32.mrb[75].mxu0  ;;  %v14543_v1 = vld [vmem:[#allocation12 + $0x10c] ss:$12 sps:$4 sm:$0xff]  }
 0x736   :  { %v16538_v14 = vpack.c.bf16 %v6860_v63, %v6856_v42  ;;  %v14544_v42 = vld [vmem:[#allocation12 + $0x410] ss:$12 sps:$4 sm:$0xff]   ;;  %v14541_v63 = vld [vmem:[#allocation12 + $0x108] ss:$12 sps:$4 sm:$0xff]  }
 0x737   :  { %v7001_v46 = vrot.slane %v16536_v31, 1 }
 0x738   :  { %v7004_v19 = vrot.slane %v16538_v14, 1  ;;  %v16551_v35 = vrot.slane %v16538_v14, 2 }
 0x739   :  { %v7002_v27 = vsel %vm336_vm0, %v7000_v59, %v7001_v46  ;;  %v14550_v59 = vld [vmem:[#allocation12 + $0x368] ss:$12 sps:$4 sm:$0xff]  }
 0x73a   :  { %v7005_v43 = vsel %vm336_vm0, %v7003_v24, %v7004_v19  ;;  %v16557_v22 = vsel %vm911_vm2, %v7788_v5, %v16551_v35  ;;  %v14548_v24 = vld [vmem:[#allocation12 + $0x124] ss:$12 sps:$4 sm:$0xff]  }
 0x73b   :  { %7298 = vmatprep.mubr.bf16.mxu0 %v7005_v43  ;;  %7349 = vmatprep.mubr.bf16.mxu1 %v7005_v43  ;;  %v14554_v43 = vld [vmem:[#allocation12 + $0x440] ss:$12 sps:$4 sm:$0xff]   ;;  %v14599_v5 = vld [vmem:[#allocation12 + $0x5d8] ss:$12 sps:$4 sm:$0xff]  }
 0x73c   :  { %7299 = vmatmul.mubr.bf16.vlgmr.msra.gmra.mrb[76].mxu0 %v7002_v27  ;;  %7350 = vmatmul.mubr.bf16.vlgmr.msra.gmra.mrb[168].mxu1 %v7002_v27  ;;  %v14551_v27 = vld [vmem:[#allocation12 + $0x138] ss:$12 sps:$4 sm:$0xff]  }
 0x73d   :  { %7622 = vmatpush1.bf16.msra.mxu0 %v14486_v54  ;;  %12871 = vmatpush3.bf16.msra.mxu1 %v14490_v2  ;;  %v14546_v54 = vld [vmem:[#allocation12 + $0x120] ss:$12 sps:$4 sm:$0xff]   ;;  %v14553_v2 = vld [vmem:[#allocation12 + $0x13c] ss:$12 sps:$4 sm:$0xff]  }
 0x73e   :  { %7308 = vmatprep.mubr.bf16.mxu0 %v7004_v19  ;;  %7357 = vmatprep.mubr.bf16.mxu1 %v7004_v19  ;;  %v14549_v19 = vld [vmem:[#allocation12 + $0x428] ss:$12 sps:$4 sm:$0xff]  }
 0x73f   :  { %7623 = vmatprep.subr.bf16.mxu0 %v14493_v7  ;;  %12872 = vmatprep.subr.bf16.mxu1 %v14494_v20  ;;  %v14555_v7 = vld [vmem:[#allocation12 + $0x380] ss:$12 sps:$4 sm:$0xff]  }
 0x740   :  { %v14558_v20 = vld [vmem:[#allocation12 + $0x154] ss:$12 sps:$4 sm:$0xff]  }
 0x741   :  { %7624 = vmatpush1.bf16.msra.mxu0 %v14491_v56  ;;  %12873 = vmatpush3.bf16.msra.mxu1 %v14495_v8  ;;  %v14559_v56 = vld [vmem:[#allocation12 + $0x458] ss:$12 sps:$4 sm:$0xff]   ;;  %v14556_v8 = vld [vmem:[#allocation12 + $0x150] ss:$12 sps:$4 sm:$0xff]  }
 0x742   :  { %7625 = vmatprep.subr.bf16.mxu0 %v14498_v4  ;;  %12874 = vmatprep.subr.bf16.mxu1 %v14499_v36  ;;  %v14560_v4 = vld [vmem:[#allocation12 + $0x398] ss:$12 sps:$4 sm:$0xff]  }
 0x743   :  { %v14563_v36 = vld [vmem:[#allocation12 + $0x16c] ss:$12 sps:$4 sm:$0xff]  }
 0x744   :  { %7309 = vmatmul.mubr.bf16.gmra.mrb[80].mxu0 %v7001_v46  ;;  %7358 = vmatmul.mubr.bf16.gmra.mrb[172].mxu1 %v7001_v46  ;;  %v14545_v46 = vld [vmem:[#allocation12 + $0x350] ss:$12 sps:$4 sm:$0xff]  }
 0x745   :  { %7626 = vmatpush1.bf16.msra.mxu0 %v14496_v33  ;;  %12875 = vmatpush3.bf16.msra.mxu1 %v14500_v26  ;;  %v14564_v33 = vld [vmem:[#allocation12 + $0x470] ss:$12 sps:$4 sm:$0xff]   ;;  %v14561_v26 = vld [vmem:[#allocation12 + $0x168] ss:$12 sps:$4 sm:$0xff]  }
 0x746   :  { %7653 = vmatprep.mubr.bf16.mxu0 %v16534_v39  ;;  %7704 = vmatprep.mubr.bf16.mxu1 %v16534_v39 }
 0x747   :  { %7627 = vmatprep.subr.bf16.mxu0 %v14503_v18  ;;  %12876 = vmatprep.subr.bf16.mxu1 %v14504_v3  ;;  %v14565_v18 = vld [vmem:[#allocation12 + $0x3b0] ss:$12 sps:$4 sm:$0xff]  }
 0x748   :  { %v14568_v3 = vld [vmem:[#allocation12 + $0x304] ss:$12 sps:$4 sm:$0xff]  }
 0x749   :  { %7628 = vmatpush1.bf16.msra.mxu0 %v14501_v25  ;;  %12877 = vmatpush3.bf16.msra.mxu1 %v14505_v53  ;;  %v14569_v25 = vld [vmem:[#allocation12 + $0x548] ss:$12 sps:$4 sm:$0xff]   ;;  %v16561_v53 = vrot.slane %v16536_v31, 2 }
 0x74a   :  { %7629 = vmatprep.subr.bf16.mxu0 %v14508_v60  ;;  %12878 = vmatprep.subr.bf16.mxu1 %v14509_v16  ;;  %v14566_v60 = vld [vmem:[#allocation12 + $0x300] ss:$12 sps:$4 sm:$0xff]   ;;  %v7785_v16 = vrot.slane %v16532_v28, 2 }
 0x74d   :  { %7630 = vmatpush1.bf16.msra.mxu0 %v14506_v41  ;;  %12879 = vmatpush3.bf16.msra.mxu1 %v14510_v44  ;;  %v14570_v41 = vld [vmem:[#allocation12 + $0x488] ss:$12 sps:$4 sm:$0xff]  }
 0x74e   :  { %7631 = vmatprep.subr.bf16.mxu0 %v14513_v34  ;;  %12880 = vmatprep.subr.bf16.mxu1 %v14514_v10  ;;  %v14573_v44 = vld [vmem:[#allocation12 + $0x31c] ss:$12 sps:$4 sm:$0xff]   ;;  %v16567_v34 = vsel %vm911_vm2, %v7785_v16, %v16561_v53  ;;  %v14574_v10 = vld [vmem:[#allocation12 + $0x560] ss:$12 sps:$4 sm:$0xff]  }
 0x74f   :  { %v14624_v16 = vld [vmem:[#allocation12 + $0x710] ss:$12 sps:$4 sm:$0xff]  }
 0x751   :  { %7632 = vmatpush1.bf16.msra.mxu0 %v14511_v51  ;;  %12881 = vmatpush3.bf16.msra.mxu1 %v14515_v17  ;;  %v14571_v51 = vld [vmem:[#allocation12 + $0x318] ss:$12 sps:$4 sm:$0xff]   ;;  %v14575_v17 = vld [vmem:[#allocation12 + $0x4a0] ss:$12 sps:$4 sm:$0xff]  }
 0x752   :  { %7633 = vmatprep.subr.bf16.mxu0 %v14518_v21  ;;  %12882 = vmatprep.subr.bf16.mxu1 %v14519_v37  ;;  %v14578_v21 = vld [vmem:[#allocation12 + $0x334] ss:$12 sps:$4 sm:$0xff]   ;;  %v14579_v37 = vld [vmem:[#allocation12 + $0x578] ss:$12 sps:$4 sm:$0xff]  }
 0x755   :  { %7634 = vmatpush1.bf16.msra.mxu0 %v14516_v47  ;;  %12883 = vmatpush3.bf16.msra.mxu1 %v14520_v52  ;;  %v16573_v47 = vrot.slane %v16538_v14, 3  ;;  %v14576_v52 = vld [vmem:[#allocation12 + $0x330] ss:$12 sps:$4 sm:$0xff]  }
 0x756   :  { %7635 = vmatprep.subr.bf16.mxu0 %v14523_v6  ;;  %12884 = vmatprep.subr.bf16.mxu1 %v14524_v23  ;;  %v14580_v6 = vld [vmem:[#allocation12 + $0x4b8] ss:$12 sps:$4 sm:$0xff]   ;;  %v8227_v23 = vrot.slane %v16534_v39, 3 }
 0x759   :  { %7636 = vmatpush1.bf16.msra.mxu0 %v14521_v15  ;;  %12885 = vmatpush3.bf16.msra.mxu1 %v14525_v45  ;;  %v14583_v15 = vld [vmem:[#allocation12 + $0x34c] ss:$12 sps:$4 sm:$0xff]   ;;  %v14584_v45 = vld [vmem:[#allocation12 + $0x590] ss:$12 sps:$4 sm:$0xff]  }
 0x75a   :  { %7637 = vmatprep.subr.bf16.mxu0 %v14528_v38  ;;  %12898 = vmatprep.subr.bf16.mxu1 %v14529_v57  ;;  %v16581_v38 = vsel %vm1243_vm1, %v8227_v23, %v16573_v47  ;;  %v14581_v57 = vld [vmem:[#allocation12 + $0x348] ss:$12 sps:$4 sm:$0xff]  }
 0x75b   :  { %v14638_v23 = vld [vmem:[#allocation12 + $0x454] ss:$12 sps:$4 sm:$0xff]  }
 0x75c   :  { %7705 = vmatmul.mubr.bf16.vlgmr.msra.gmra.mrb[176].mxu1 %v16532_v28 }
 0x75d   :  { %7638 = vmatpush1.bf16.msra.mxu0 %v14526_v49  ;;  %7712 = vmatprep.mubr.bf16.mxu1 %v16538_v14  ;;  %v14585_v49 = vld [vmem:[#allocation12 + $0x4d0] ss:$12 sps:$4 sm:$0xff]  }
 0x75e   :  { %12899 = vmatpush3.bf16.msra.mxu1 %v14530_v29  ;;  %7639 = vmatprep.subr.bf16.mxu0 %v14533_v50  ;;  %v14588_v29 = vld [vmem:[#allocation12 + $0x364] ss:$12 sps:$4 sm:$0xff]   ;;  %v14589_v50 = vld [vmem:[#allocation12 + $0x5a8] ss:$12 sps:$4 sm:$0xff]  }
 0x75f   :  { %12900 = vmatprep.subr.bf16.mxu1 %v14534_v30  ;;  %v14586_v30 = vld [vmem:[#allocation12 + $0x360] ss:$12 sps:$4 sm:$0xff]  }
 0x761   :  { %7640 = vmatpush1.bf16.msra.mxu0 %v14531_v40  ;;  %v14590_v40 = vld [vmem:[#allocation12 + $0x4e8] ss:$12 sps:$4 sm:$0xff]  }
 0x762   :  { %12901 = vmatpush3.bf16.msra.mxu1 %v14535_v61  ;;  %7641 = vmatprep.subr.bf16.mxu0 %v14538_v55  ;;  %v14593_v61 = vld [vmem:[#allocation12 + $0x37c] ss:$12 sps:$4 sm:$0xff]   ;;  %v14594_v55 = vld [vmem:[#allocation12 + $0x5c0] ss:$12 sps:$4 sm:$0xff]  }
 0x763   :  { %12902 = vmatprep.subr.bf16.mxu1 %v14539_v62  ;;  %v14591_v62 = vld [vmem:[#allocation12 + $0x378] ss:$12 sps:$4 sm:$0xff]  }
 0x764   :  { %7713 = vmatmul.mubr.bf16.gmra.mrb[180].mxu1 %v16536_v31 }
 0x765   :  { %7642 = vmatpush1.bf16.msra.mxu0 %v14536_v58  ;;  %8134 = vmatprep.mubr.bf16.mxu1 %v16557_v22  ;;  %v14595_v58 = vld [vmem:[#allocation12 + $0x500] ss:$12 sps:$4 sm:$0xff]  }
 0x766   :  { %12903 = vmatpush3.bf16.msra.mxu1 %v14540_v48  ;;  %7643 = vmatprep.subr.bf16.mxu0 %v14543_v1  ;;  %v14598_v48 = vld [vmem:[#allocation12 + $0x394] ss:$12 sps:$4 sm:$0xff]   ;;  %v14596_v1 = vld [vmem:[#allocation12 + $0x390] ss:$12 sps:$4 sm:$0xff]  }
 0x767   :  { %12904 = vmatprep.subr.bf16.mxu1 %v14544_v42  ;;  %v14600_v42 = vld [vmem:[#allocation12 + $0x518] ss:$12 sps:$4 sm:$0xff]  }
 0x769   :  { %7644 = vmatpush1.bf16.msra.mxu0 %v14541_v63  ;;  %v14604_v63 = vld [vmem:[#allocation12 + $0x5f0] ss:$12 sps:$4 sm:$0xff]  }
 0x76a   :  { %12905 = vmatpush3.bf16.msra.mxu1 %v14545_v46  ;;  %7645 = vmatprep.subr.bf16.mxu0 %v14548_v24  ;;  %v14601_v46 = vld [vmem:[#allocation12 + $0x3a8] ss:$12 sps:$4 sm:$0xff]   ;;  %v14605_v24 = vld [vmem:[#allocation12 + $0x530] ss:$12 sps:$4 sm:$0xff]  }
 0x76b   :  { %12906 = vmatprep.subr.bf16.mxu1 %v14549_v19  ;;  %v14608_v19 = vld [vmem:[#allocation12 + $0x3c4] ss:$12 sps:$4 sm:$0xff]  }
 0x76d   :  { %7646 = vmatpush1.bf16.msra.mxu0 %v14546_v54  ;;  %v14609_v54 = vld [vmem:[#allocation12 + $0x6c8] ss:$12 sps:$4 sm:$0xff]  }
 0x76e   :  { %12907 = vmatpush3.bf16.msra.mxu1 %v14550_v59  ;;  %7647 = vmatprep.subr.bf16.mxu0 %v14553_v2  ;;  %v16585_v59 = vrot.slane %v16536_v31, 3  ;;  %v14606_v2 = vld [vmem:[#allocation12 + $0x3c0] ss:$12 sps:$4 sm:$0xff]  }
 0x76f   :  { %12908 = vmatprep.subr.bf16.mxu1 %v14554_v43  ;;  %v8224_v43 = vrot.slane %v16532_v28, 3 }
 0x771   :  { %7648 = vmatpush1.bf16.msra.mxu0 %v14551_v27  ;;  %v14610_v27 = vld [vmem:[#allocation12 + $0x608] ss:$12 sps:$4 sm:$0xff]  }
 0x772   :  { %12909 = vmatpush3.bf16.msra.mxu1 %v14555_v7  ;;  %7649 = vmatprep.subr.bf16.mxu0 %v14558_v20  ;;  %v14613_v7 = vld [vmem:[#allocation12 + $0x3dc] ss:$12 sps:$4 sm:$0xff]   ;;  %v14614_v20 = vld [vmem:[#allocation12 + $0x6e0] ss:$12 sps:$4 sm:$0xff]  }
 0x773   :  { %12910 = vmatprep.subr.bf16.mxu1 %v14559_v56  ;;  %v16590_v56 = vsel %vm1243_vm1, %v8224_v43, %v16585_v59  ;;  %v14673_v43 = vld [vmem:[#allocation12 + $0x558] ss:$12 sps:$4 sm:$0xff]  }
 0x775   :  { %7650 = vmatpush1.bf16.msra.mxu0 %v14556_v8  ;;  %v14611_v8 = vld [vmem:[#allocation12 + $0x3d8] ss:$12 sps:$4 sm:$0xff]  }
 0x776   :  { %12911 = vmatpush3.bf16.msra.mxu1 %v14560_v4  ;;  %7651 = vmatprep.subr.bf16.mxu0 %v14563_v36  ;;  %v14615_v4 = vld [vmem:[#allocation12 + $0x620] ss:$12 sps:$4 sm:$0xff]  }
 0x777   :  { %12912 = vmatprep.subr.bf16.mxu1 %v14564_v33  ;;  %v14618_v36 = vld [vmem:[#allocation12 + $0x3f4] ss:$12 sps:$4 sm:$0xff]   ;;  %v14619_v33 = vld [vmem:[#allocation12 + $0x6f8] ss:$12 sps:$4 sm:$0xff]  }
 0x779   :  { %7652 = vmatpush1.bf16.msra.mxu0 %v14561_v26  ;;  %v14616_v26 = vld [vmem:[#allocation12 + $0x3f0] ss:$12 sps:$4 sm:$0xff]  }
 0x77a   :  { %12913 = vmatpush3.bf16.msra.mxu1 %v14565_v18  ;;  %8051 = vmatprep.subr.bf16.mxu0 %v14568_v3  ;;  %v16595_v18 = vrot.slane %v16538_v14, 4  ;;  %v14620_v3 = vld [vmem:[#allocation12 + $0x638] ss:$12 sps:$4 sm:$0xff]  }
 0x77b   :  { %12926 = vmatprep.subr.bf16.mxu1 %v14569_v25  ;;  %v8666_v25 = vrot.slane %v16534_v39, 4  ;;  %v14626_v39 = vld [vmem:[#allocation12 + $0x420] ss:$12 sps:$4 sm:$0xff]  }
 0x77c   :  { %7654 = vmatmul.mubr.bf16.vlgmr.msra.gmra.mrb[76].mxu0 %v16532_v28 }
 0x77d   :  { %8135 = vmatmul.mubr.bf16.vlgmr.msra.gmra.mrb[184].mxu1 %v16567_v34  ;;  %7663 = vmatprep.mubr.bf16.mxu0 %v16538_v14  ;;  %v14625_v14 = vld [vmem:[#allocation12 + $0x650] ss:$12 sps:$4 sm:$0xff]  }
 0x77e   :  { %8052 = vmatpush1.bf16.msra.mxu0 %v14566_v60  ;;  %8142 = vmatprep.mubr.bf16.mxu1 %v16551_v35  ;;  %v14623_v60 = vld [vmem:[#allocation12 + $0x40c] ss:$12 sps:$4 sm:$0xff]  }
 0x77f   :  { %12927 = vmatpush3.bf16.msra.mxu1 %v14570_v41  ;;  %8053 = vmatprep.subr.bf16.mxu0 %v14573_v44  ;;  %v16601_v41 = vsel %vm5142_vm8, %v8666_v25, %v16595_v18  ;;  %v14621_v44 = vld [vmem:[#allocation12 + $0x408] ss:$12 sps:$4 sm:$0xff]   ;;  %v14688_v25 = vld [vmem:[#allocation12 + $0x5d0] ss:$12 sps:$4 sm:$0xff]  }
 0x780   :  { %12928 = vmatprep.subr.bf16.mxu1 %v14574_v10  ;;  %v14628_v10 = vld [vmem:[#allocation12 + $0x424] ss:$12 sps:$4 sm:$0xff]  }
 0x782   :  { %8054 = vmatpush1.bf16.msra.mxu0 %v14571_v51  ;;  %v14629_v51 = vld [vmem:[#allocation12 + $0x728] ss:$12 sps:$4 sm:$0xff]  }
 0x783   :  { %12929 = vmatpush3.bf16.msra.mxu1 %v14575_v17  ;;  %8055 = vmatprep.subr.bf16.mxu0 %v14578_v21  ;;  %v14630_v17 = vld [vmem:[#allocation12 + $0x668] ss:$12 sps:$4 sm:$0xff]  }
 0x784   :  { %7664 = vmatmul.mubr.bf16.gmra.mrb[84].mxu0 %v16536_v31  ;;  %12930 = vmatprep.subr.bf16.mxu1 %v14579_v37  ;;  %v14633_v21 = vld [vmem:[#allocation12 + $0x43c] ss:$12 sps:$4 sm:$0xff]   ;;  %v14634_v37 = vld [vmem:[#allocation12 + $0x740] ss:$12 sps:$4 sm:$0xff]  }
 0x785   :  { %8143 = vmatmul.mubr.bf16.gmra.mrb[188].mxu1 %v16561_v53  ;;  %8083 = vmatprep.mubr.bf16.mxu0 %v16557_v22  ;;  %v14603_v22 = vld [vmem:[#allocation12 + $0x3ac] ss:$12 sps:$4 sm:$0xff]  }
 0x786   :  { %8056 = vmatpush1.bf16.msra.mxu0 %v14576_v52  ;;  %8573 = vmatprep.mubr.bf16.mxu1 %v16581_v38  ;;  %v14631_v52 = vld [vmem:[#allocation12 + $0x438] ss:$12 sps:$4 sm:$0xff]  }
 0x787   :  { %12931 = vmatpush3.bf16.msra.mxu1 %v14580_v6  ;;  %8057 = vmatprep.subr.bf16.mxu0 %v14583_v15  ;;  %v14635_v6 = vld [vmem:[#allocation12 + $0x680] ss:$12 sps:$4 sm:$0xff]   ;;  %v14639_v15 = vld [vmem:[#allocation12 + $0x758] ss:$12 sps:$4 sm:$0xff]  }
 0x788   :  { %12932 = vmatprep.subr.bf16.mxu1 %v14584_v45  ;;  %v14636_v45 = vld [vmem:[#allocation12 + $0x450] ss:$12 sps:$4 sm:$0xff]  }
 0x78a   :  { %8058 = vmatpush1.bf16.msra.mxu0 %v14581_v57  ;;  %v14640_v57 = vld [vmem:[#allocation12 + $0x698] ss:$12 sps:$4 sm:$0xff]  }
 0x78b   :  { %12933 = vmatpush3.bf16.msra.mxu1 %v14585_v49  ;;  %8059 = vmatprep.subr.bf16.mxu0 %v14588_v29  ;;  %v14643_v49 = vld [vmem:[#allocation12 + $0x46c] ss:$12 sps:$4 sm:$0xff]   ;;  %v14644_v29 = vld [vmem:[#allocation12 + $0x770] ss:$12 sps:$4 sm:$0xff]  }
 0x78c   :  { %12934 = vmatprep.subr.bf16.mxu1 %v14589_v50  ;;  %v14641_v50 = vld [vmem:[#allocation12 + $0x468] ss:$12 sps:$4 sm:$0xff]  }
 0x78e   :  { %8060 = vmatpush1.bf16.msra.mxu0 %v14586_v30  ;;  %v14645_v30 = vld [vmem:[#allocation12 + $0x6b0] ss:$12 sps:$4 sm:$0xff]  }
 0x78f   :  { %12935 = vmatpush3.bf16.msra.mxu1 %v14590_v40  ;;  %8061 = vmatprep.subr.bf16.mxu0 %v14593_v61  ;;  %v14648_v40 = vld [vmem:[#allocation12 + $0x484] ss:$12 sps:$4 sm:$0xff]   ;;  %v16605_v61 = vrot.slane %v16536_v31, 4 }
 0x790   :  { %12936 = vmatprep.subr.bf16.mxu1 %v14594_v55  ;;  %v14646_v55 = vld [vmem:[#allocation12 + $0x480] ss:$12 sps:$4 sm:$0xff]   ;;  %v14649_v31 = vld [vmem:[#allocation12 + $0x498] ss:$12 sps:$4 sm:$0xff]  }
 0x792   :  { %8062 = vmatpush1.bf16.msra.mxu0 %v14591_v62  ;;  %v8663_v62 = vrot.slane %v16532_v28, 4  ;;  %v14657_v28 = vld [vmem:[#allocation12 + $0x4cc] ss:$12 sps:$4 sm:$0xff]  }
 0x793   :  { %12937 = vmatpush3.bf16.msra.mxu1 %v14595_v58  ;;  %8063 = vmatprep.subr.bf16.mxu0 %v14598_v48  ;;  %v14651_v58 = vld [vmem:[#allocation12 + $0x49c] ss:$12 sps:$4 sm:$0xff]  }
 0x794   :  { %12938 = vmatprep.subr.bf16.mxu1 %v14599_v5  ;;  %v16611_v48 = vsel %vm5142_vm8, %v8663_v62, %v16605_v61  ;;  %v14654_v5 = vld [vmem:[#allocation12 + $0x4b4] ss:$12 sps:$4 sm:$0xff]  }
 0x796   :  { %8064 = vmatpush1.bf16.msra.mxu0 %v14596_v1  ;;  %v14652_v1 = vld [vmem:[#allocation12 + $0x4b0] ss:$12 sps:$4 sm:$0xff]  }
 0x797   :  { %12939 = vmatpush3.bf16.msra.mxu1 %v14600_v42  ;;  %8065 = vmatprep.subr.bf16.mxu0 %v14603_v22  ;;  %v14658_v42 = vld [vmem:[#allocation12 + $0x4e0] ss:$12 sps:$4 sm:$0xff]   ;;  %v14663_v22 = vld [vmem:[#allocation12 + $0x4fc] ss:$12 sps:$4 sm:$0xff]  }
 0x798   :  { %12940 = vmatprep.subr.bf16.mxu1 %v14604_v63  ;;  %v14661_v63 = vld [vmem:[#allocation12 + $0x4f8] ss:$12 sps:$4 sm:$0xff]  }
 0x79a   :  { %8066 = vmatpush1.bf16.msra.mxu0 %v14601_v46  ;;  %v14666_v46 = vld [vmem:[#allocation12 + $0x514] ss:$12 sps:$4 sm:$0xff]  }
 0x79b   :  { %12941 = vmatpush3.bf16.msra.mxu1 %v14605_v24  ;;  %8067 = vmatprep.subr.bf16.mxu0 %v14608_v19  ;;  %v14664_v24 = vld [vmem:[#allocation12 + $0x510] ss:$12 sps:$4 sm:$0xff]   ;;  %v14667_v19 = vld [vmem:[#allocation12 + $0x528] ss:$12 sps:$4 sm:$0xff]  }
 0x79c   :  { %12954 = vmatprep.subr.bf16.mxu1 %v14609_v54  ;;  %v14670_v54 = vld [vmem:[#allocation12 + $0x540] ss:$12 sps:$4 sm:$0xff]  }
 0x79e   :  { %8574 = vmatmul.mubr.bf16.vlgmr.msra.gmra.mrb[192].mxu1 %v16590_v56  ;;  %8068 = vmatpush1.bf16.msra.mxu0 %v14606_v2  ;;  %v14675_v2 = vld [vmem:[#allocation12 + $0x55c] ss:$12 sps:$4 sm:$0xff]  }
 0x79f   :  { %8581 = vmatprep.mubr.bf16.mxu1 %v16573_v47  ;;  %12955 = vmatpush3.bf16.msra.mxu1 %v14610_v27  ;;  %v14678_v27 = vld [vmem:[#allocation12 + $0x574] ss:$12 sps:$4 sm:$0xff]  }
 0x7a0   :  { %8069 = vmatprep.subr.bf16.mxu0 %v14613_v7  ;;  %12956 = vmatprep.subr.bf16.mxu1 %v14614_v20  ;;  %v14676_v7 = vld [vmem:[#allocation12 + $0x570] ss:$12 sps:$4 sm:$0xff]   ;;  %v14681_v20 = vld [vmem:[#allocation12 + $0x58c] ss:$12 sps:$4 sm:$0xff]  }
 0x7a2   :  { %8070 = vmatpush1.bf16.msra.mxu0 %v14611_v8  ;;  %v14679_v8 = vld [vmem:[#allocation12 + $0x588] ss:$12 sps:$4 sm:$0xff]  }
 0x7a3   :  { %12957 = vmatpush3.bf16.msra.mxu1 %v14615_v4  ;;  %8071 = vmatprep.subr.bf16.mxu0 %v14618_v36  ;;  %v14684_v4 = vld [vmem:[#allocation12 + $0x5a4] ss:$12 sps:$4 sm:$0xff]   ;;  %v14682_v36 = vld [vmem:[#allocation12 + $0x5a0] ss:$12 sps:$4 sm:$0xff]  }
 0x7a4   :  { %12958 = vmatprep.subr.bf16.mxu1 %v14619_v33  ;;  %v14687_v33 = vld [vmem:[#allocation12 + $0x5bc] ss:$12 sps:$4 sm:$0xff]  }
 0x7a6   :  { %8582 = vmatmul.mubr.bf16.gmra.mrb[196].mxu1 %v16585_v59  ;;  %8072 = vmatpush1.bf16.msra.mxu0 %v14616_v26  ;;  %v14685_v26 = vld [vmem:[#allocation12 + $0x5b8] ss:$12 sps:$4 sm:$0xff]  }
 0x7a7   :  { %12959 = vmatpush3.bf16.msra.mxu1 %v14620_v3  ;;  %9012 = vmatprep.mubr.bf16.mxu1 %v16601_v41  ;;  %v14690_v3 = vld [vmem:[#allocation12 + $0x5d4] ss:$12 sps:$4 sm:$0xff]  }
 0x7a8   :  { %8073 = vmatprep.subr.bf16.mxu0 %v14623_v60  ;;  %12960 = vmatprep.subr.bf16.mxu1 %v14624_v16  ;;  %v14693_v60 = vld [vmem:[#allocation12 + $0x5ec] ss:$12 sps:$4 sm:$0xff]   ;;  %v14691_v16 = vld [vmem:[#allocation12 + $0x5e8] ss:$12 sps:$4 sm:$0xff]  }
 0x7aa   :  { %8074 = vmatpush1.bf16.msra.mxu0 %v14621_v44  ;;  %v14696_v44 = vld [vmem:[#allocation12 + $0x604] ss:$12 sps:$4 sm:$0xff]  }
 0x7ab   :  { %12961 = vmatpush3.bf16.msra.mxu1 %v14625_v14  ;;  %8075 = vmatprep.subr.bf16.mxu0 %v14628_v10  ;;  %v14694_v14 = vld [vmem:[#allocation12 + $0x600] ss:$12 sps:$4 sm:$0xff]   ;;  %v14699_v10 = vld [vmem:[#allocation12 + $0x61c] ss:$12 sps:$4 sm:$0xff]  }
 0x7ac   :  { %12962 = vmatprep.subr.bf16.mxu1 %v14629_v51  ;;  %v14697_v51 = vld [vmem:[#allocation12 + $0x618] ss:$12 sps:$4 sm:$0xff]  }
 0x7ae   :  { %8076 = vmatpush1.bf16.msra.mxu0 %v14626_v39  ;;  %v14702_v39 = vld [vmem:[#allocation12 + $0x634] ss:$12 sps:$4 sm:$0xff]  }
 0x7af   :  { %12963 = vmatpush3.bf16.msra.mxu1 %v14630_v17  ;;  %8077 = vmatprep.subr.bf16.mxu0 %v14633_v21  ;;  %v14700_v17 = vld [vmem:[#allocation12 + $0x630] ss:$12 sps:$4 sm:$0xff]   ;;  %v14705_v21 = vld [vmem:[#allocation12 + $0x64c] ss:$12 sps:$4 sm:$0xff]  }
 0x7b0   :  { %12964 = vmatprep.subr.bf16.mxu1 %v14634_v37  ;;  %v14703_v37 = vld [vmem:[#allocation12 + $0x648] ss:$12 sps:$4 sm:$0xff]  }
 0x7b2   :  { %8078 = vmatpush1.bf16.msra.mxu0 %v14631_v52  ;;  %v14708_v52 = vld [vmem:[#allocation12 + $0x664] ss:$12 sps:$4 sm:$0xff]  }
 0x7b3   :  { %12965 = vmatpush3.bf16.msra.mxu1 %v14635_v6  ;;  %8079 = vmatprep.subr.bf16.mxu0 %v14638_v23  ;;  %v14709_v23 = vld [vmem:[#allocation12 + $0x678] ss:$12 sps:$4 sm:$0xff]  }
 0x7b4   :  { %12966 = vmatprep.subr.bf16.mxu1 %v14639_v15 }
 0x7b6   :  { %8080 = vmatpush1.bf16.msra.mxu0 %v14636_v45  ;;  %v14714_v45 = vld [vmem:[#allocation12 + $0x694] ss:$12 sps:$4 sm:$0xff]  }
 0x7b7   :  { %12967 = vmatpush3.bf16.msra.mxu1 %v14640_v57  ;;  %8081 = vmatprep.subr.bf16.mxu0 %v14643_v49 }
 0x7b8   :  { %12968 = vmatprep.subr.bf16.mxu1 %v14644_v29 }
 0x7ba   :  { %8082 = vmatpush1.bf16.msra.mxu0 %v14641_v50  ;;  %v14712_v50 = vld [vmem:[#allocation12 + $0x690] ss:$12 sps:$4 sm:$0xff]  }
 0x7bb   :  { %12969 = vmatpush3.bf16.msra.mxu1 %v14645_v30  ;;  %8490 = vmatprep.subr.bf16.mxu0 %v14648_v40 }
 0x7bd   :  { %8084 = vmatmul.mubr.bf16.vlgmr.msra.gmra.mrb[76].mxu0 %v16567_v34  ;;  %v14655_v34 = vld [vmem:[#allocation12 + $0x4c8] ss:$12 sps:$4 sm:$0xff]  }
 0x7be   :  { %9013 = vmatmul.mubr.bf16.vlgmr.msra.gmra.mrb[200].mxu1 %v16611_v48  ;;  %8093 = vmatprep.mubr.bf16.mxu0 %v16551_v35  ;;  %v14660_v35 = vld [vmem:[#allocation12 + $0x4e4] ss:$12 sps:$4 sm:$0xff]  }
 0x7bf   :  { %8491 = vmatpush1.bf16.msra.mxu0 %v14646_v55  ;;  %9020 = vmatprep.mubr.bf16.mxu1 %v16595_v18  ;;  %v14715_v55 = vld [vmem:[#allocation12 + $0x6a8] ss:$12 sps:$4 sm:$0xff]  }
 0x7c0   :  { %8492 = vmatprep.subr.bf16.mxu0 %v14651_v58 }
 0x7c3   :  { %8493 = vmatpush1.bf16.msra.mxu0 %v14649_v31  ;;  %v14720_v31 = vld [vmem:[#allocation12 + $0x6c4] ss:$12 sps:$4 sm:$0xff]  }
 0x7c4   :  { %8494 = vmatprep.subr.bf16.mxu0 %v14654_v5 }
 0x7c5   :  { %8094 = vmatmul.mubr.bf16.gmra.mrb[88].mxu0 %v16561_v53  ;;  %v14669_v53 = vld [vmem:[#allocation12 + $0x52c] ss:$12 sps:$4 sm:$0xff]  }
 0x7c6   :  { %9021 = vmatmul.mubr.bf16.gmra.mrb[204].mxu1 %v16605_v61  ;;  %8522 = vmatprep.mubr.bf16.mxu0 %v16581_v38  ;;  %v14672_v38 = vld [vmem:[#allocation12 + $0x544] ss:$12 sps:$4 sm:$0xff]  }
 0x7c7   :  { %8495 = vmatpush1.bf16.msra.mxu0 %v14652_v1 }
 0x7c8   :  { %8496 = vmatprep.subr.bf16.mxu0 %v14657_v28 }
 0x7cb   :  { %8497 = vmatpush1.bf16.msra.mxu0 %v14655_v34 }
 0x7cc   :  { %8498 = vmatprep.subr.bf16.mxu0 %v14660_v35 }
 0x7cf   :  { %8499 = vmatpush1.bf16.msra.mxu0 %v14658_v42  ;;  %v14718_v42 = vld [vmem:[#allocation12 + $0x6c0] ss:$12 sps:$4 sm:$0xff]  }
 0x7d0   :  { %8500 = vmatprep.subr.bf16.mxu0 %v14663_v22  ;;  %v14723_v22 = vld [vmem:[#allocation12 + $0x6dc] ss:$12 sps:$4 sm:$0xff]  }
 0x7d3   :  { %8501 = vmatpush1.bf16.msra.mxu0 %v14661_v63  ;;  %v14721_v63 = vld [vmem:[#allocation12 + $0x6d8] ss:$12 sps:$4 sm:$0xff]  }
 0x7d4   :  { %8502 = vmatprep.subr.bf16.mxu0 %v14666_v46  ;;  %v14726_v46 = vld [vmem:[#allocation12 + $0x6f4] ss:$12 sps:$4 sm:$0xff]  }
 0x7d7   :  { %8503 = vmatpush1.bf16.msra.mxu0 %v14664_v24  ;;  %v14724_v24 = vld [vmem:[#allocation12 + $0x6f0] ss:$12 sps:$4 sm:$0xff]  }
 0x7d8   :  { %8504 = vmatprep.subr.bf16.mxu0 %v14669_v53  ;;  %v14729_v53 = vld [vmem:[#allocation12 + $0x70c] ss:$12 sps:$4 sm:$0xff]  }
 0x7db   :  { %8505 = vmatpush1.bf16.msra.mxu0 %v14667_v19  ;;  %v14727_v19 = vld [vmem:[#allocation12 + $0x708] ss:$12 sps:$4 sm:$0xff]  }
 0x7dc   :  { %8506 = vmatprep.subr.bf16.mxu0 %v14672_v38  ;;  %v14732_v38 = vld [vmem:[#allocation12 + $0x724] ss:$12 sps:$4 sm:$0xff]  }
 0x7df   :  { %8507 = vmatpush1.bf16.msra.mxu0 %v14670_v54  ;;  %v14730_v54 = vld [vmem:[#allocation12 + $0x720] ss:$12 sps:$4 sm:$0xff]  }
 0x7e0   :  { %8508 = vmatprep.subr.bf16.mxu0 %v14675_v2  ;;  %v14735_v2 = vld [vmem:[#allocation12 + $0x73c] ss:$12 sps:$4 sm:$0xff]  }
 0x7e3   :  { %8509 = vmatpush1.bf16.msra.mxu0 %v14673_v43 }
 0x7e4   :  { %8510 = vmatprep.subr.bf16.mxu0 %v14678_v27  ;;  %v14733_v27 = vld [vmem:[#allocation12 + $0x738] ss:$12 sps:$4 sm:$0xff]  }
 0x7e7   :  { %8511 = vmatpush1.bf16.msra.mxu0 %v14676_v7 }
 0x7e8   :  { %8512 = vmatprep.subr.bf16.mxu0 %v14681_v20  ;;  %v14738_v20 = vld [vmem:[#allocation12 + $0x754] ss:$12 sps:$4 sm:$0xff]  }
 0x7eb   :  { %8513 = vmatpush1.bf16.msra.mxu0 %v14679_v8 }
 0x7ec   :  { %8514 = vmatprep.subr.bf16.mxu0 %v14684_v4 }
 0x7ef   :  { %8515 = vmatpush1.bf16.msra.mxu0 %v14682_v36 }
 0x7f0   :  { %8516 = vmatprep.subr.bf16.mxu0 %v14687_v33 }
 0x7f3   :  { %8517 = vmatpush1.bf16.msra.mxu0 %v14685_v26 }
 0x7f4   :  { %8518 = vmatprep.subr.bf16.mxu0 %v14690_v3  ;;  %v14736_v3 = vld [vmem:[#allocation12 + $0x750] ss:$12 sps:$4 sm:$0xff]  }
 0x7f7   :  { %8519 = vmatpush1.bf16.msra.mxu0 %v14688_v25  ;;  %v14741_v25 = vld [vmem:[#allocation12 + $0x76c] ss:$12 sps:$4 sm:$0xff]  }
 0x7f8   :  { %8520 = vmatprep.subr.bf16.mxu0 %v14693_v60 }
 0x7fb   :  { %8521 = vmatpush1.bf16.msra.mxu0 %v14691_v16 }
 0x7fc   :  { %8929 = vmatprep.subr.bf16.mxu0 %v14696_v44  ;;  %v14739_v44 = vld [vmem:[#allocation12 + $0x768] ss:$12 sps:$4 sm:$0xff]  }
 0x7fe   :  { %8523 = vmatmul.mubr.bf16.vlgmr.msra.gmra.mrb[76].mxu0 %v16590_v56  ;;  %v14706_v56 = vld [vmem:[#allocation12 + $0x660] ss:$12 sps:$4 sm:$0xff]  }
 0x7ff   :  { %8532 = vmatprep.mubr.bf16.mxu0 %v16573_v47  ;;  %8930 = vmatpush1.bf16.msra.mxu0 %v14694_v14  ;;  %v14711_v47 = vld [vmem:[#allocation12 + $0x67c] ss:$12 sps:$4 sm:$0xff]  }
 0x800   :  { %8931 = vmatprep.subr.bf16.mxu0 %v14699_v10 }
 0x803   :  { %8932 = vmatpush1.bf16.msra.mxu0 %v14697_v51 }
 0x804   :  { %8933 = vmatprep.subr.bf16.mxu0 %v14702_v39 }
 0x806   :  { %8533 = vmatmul.mubr.bf16.gmra.mrb[92].mxu0 %v16585_v59 }
 0x807   :  { %8934 = vmatpush1.bf16.msra.mxu0 %v14700_v17  ;;  %8961 = vmatprep.mubr.bf16.mxu0 %v16601_v41  ;;  %v14717_v41 = vld [vmem:[#allocation12 + $0x6ac] ss:$12 sps:$4 sm:$0xff]  }
 0x808   :  { %8935 = vmatprep.subr.bf16.mxu0 %v14705_v21 }
 0x80b   :  { %8936 = vmatpush1.bf16.msra.mxu0 %v14703_v37 }
 0x80c   :  { %8937 = vmatprep.subr.bf16.mxu0 %v14708_v52 }
 0x80f   :  { %8938 = vmatpush1.bf16.msra.mxu0 %v14706_v56  ;;  %v12858_v6 = vpop.f32.mrb[168].mxu1 }
 0x810   :  { %8939 = vmatprep.subr.bf16.mxu0 %v14711_v47  ;;  %v12859_v15 = vpop.f32.mrb[169].mxu1 }
 0x811   :  { %v12860_v57 = vadd.f32 %v12859_v15, %v12858_v6  ;;  %v12861_v49 = vpop.f32.mrb[170].mxu1 }
 0x812   :  { %v12862_v29 = vpop.f32.mrb[171].mxu1 }
 0x813   :  { %8940 = vmatpush1.bf16.msra.mxu0 %v14709_v23  ;;  %v12863_v59 = vadd.f32 %v12862_v29, %v12861_v49 }
 0x814   :  { %8941 = vmatprep.subr.bf16.mxu0 %v14714_v45 }
 0x817   :  { %8942 = vmatpush1.bf16.msra.mxu0 %v14712_v50  ;;  %v16623_v30 = vpop.f32.mrb[80].mxu0  ;;  %v12864_v40 = vpop.f32.mrb[172].mxu1 }
 0x818   :  { %8943 = vmatprep.subr.bf16.mxu0 %v14717_v41  ;;  %v16625_v62 = vpop.f32.mrb[81].mxu0  ;;  %v12865_v58 = vpop.f32.mrb[173].mxu1 }
 0x819   :  { %v12866_v5 = vadd.f32 %v12865_v58, %v12864_v40  ;;  %v7314_v1 = vpop.f32.mrb[82].mxu0  ;;  %v12867_v28 = vpop.f32.mrb[174].mxu1  ;;  %v14742_v58 = vld [vmem:[#allocation15 + $0x180] ss:$8 sps:$4 sm:$0xff]  }
 0x81a   :  { %v7315_v34 = vpop.f32.mrb[83].mxu0  ;;  %v12868_v35 = vpop.f32.mrb[175].mxu1  ;;  %v14745_v1 = vld [vmem:[#allocation15 + $0x190] ss:$8 sps:$4 sm:$0xff]   ;;  %v14748_v28 = vld [vmem:[#allocation15 + $0x1a0] ss:$8 sps:$4 sm:$0xff]  }
 0x81b   :  { %8944 = vmatpush1.bf16.msra.mxu0 %v14715_v55  ;;  %v14751_v34 = vld [vmem:[#allocation15 + $0x1b0] ss:$8 sps:$4 sm:$0xff]   ;;  %v14756_v35 = vld [vmem:[#allocation15 + $0x1c4] ss:$8 sps:$4 sm:$0xff]  }
 0x81c   :  { %8945 = vmatprep.subr.bf16.mxu0 %v14720_v31  ;;  %v14744_v31 = vld [vmem:[#allocation15 + $0x184] ss:$8 sps:$4 sm:$0xff]  }
 0x81d   :  { %9472 = vmatprep.subr.bf16.mxu1 %v14744_v31 }
 0x81e   :  { %9473 = vmatpush1.bf16.msra.mxu1 %v14742_v58 }
 0x81f   :  { %8946 = vmatpush1.bf16.msra.mxu0 %v14718_v42  ;;  %v14754_v42 = vld [vmem:[#allocation15 + $0x1c0] ss:$8 sps:$4 sm:$0xff]  }
 0x820   :  { %8947 = vmatprep.subr.bf16.mxu0 %v14723_v22  ;;  %v14759_v22 = vld [vmem:[#allocation15 + $0x1d4] ss:$8 sps:$4 sm:$0xff]  }
 0x823   :  { %8948 = vmatpush1.bf16.msra.mxu0 %v14721_v63  ;;  %v14757_v63 = vld [vmem:[#allocation15 + $0x1d0] ss:$8 sps:$4 sm:$0xff]  }
 0x824   :  { %8949 = vmatprep.subr.bf16.mxu0 %v14726_v46  ;;  %v14762_v46 = vld [vmem:[#allocation15 + $0x1e4] ss:$8 sps:$4 sm:$0xff]  }
 0x827   :  { %8950 = vmatpush1.bf16.msra.mxu0 %v14724_v24 }
 0x828   :  { %8951 = vmatprep.subr.bf16.mxu0 %v14729_v53 }
 0x82b   :  { %8952 = vmatpush1.bf16.msra.mxu0 %v14727_v19 }
 0x82c   :  { %8953 = vmatprep.subr.bf16.mxu0 %v14732_v38 }
 0x82f   :  { %8954 = vmatpush1.bf16.msra.mxu0 %v14730_v54  ;;  %v12886_v43 = vpop.f32.mrb[176].mxu1  ;;  %v14760_v54 = vld [vmem:[#allocation15 + $0x1e0] ss:$8 sps:$4 sm:$0xff]  }
 0x830   :  { %v12887_v7 = vpop.f32.mrb[177].mxu1  ;;  %8955 = vmatprep.subr.bf16.mxu0 %v14735_v2 }
 0x831   :  { %v12888_v8 = vadd.f32 %v12887_v7, %v12886_v43  ;;  %v12889_v4 = vpop.f32.mrb[178].mxu1  ;;  %v14765_v43 = vld [vmem:[#allocation15 + $0x1f4] ss:$8 sps:$4 sm:$0xff]  }
 0x832   :  { %v12890_v36 = vpop.f32.mrb[179].mxu1 }
 0x833   :  { %v7707_v33 = vadd.f32 %v12888_v8, %v12860_v57  ;;  %8956 = vmatpush1.bf16.msra.mxu0 %v14733_v27  ;;  %v12891_v26 = vadd.f32 %v12890_v36, %v12889_v4  ;;  %v14763_v8 = vld [vmem:[#allocation15 + $0x1f0] ss:$8 sps:$4 sm:$0xff]   ;;  %v14768_v4 = vld [vmem:[#allocation15 + $0x204] ss:$8 sps:$4 sm:$0xff]  }
 0x834   :  { %8957 = vmatprep.subr.bf16.mxu0 %v14738_v20 }
 0x835   :  { %v7710_v60 = vadd.f32 %v12891_v26, %v12863_v59 }
 0x837   :  { %8958 = vmatpush1.bf16.msra.mxu0 %v14736_v3  ;;  %v12892_v16 = vpop.f32.mrb[180].mxu1 }
 0x838   :  { %v12893_v14 = vpop.f32.mrb[181].mxu1  ;;  %8959 = vmatprep.subr.bf16.mxu0 %v14741_v25  ;;  %v14766_v25 = vld [vmem:[#allocation15 + $0x200] ss:$8 sps:$4 sm:$0xff]  }
 0x839   :  { %v12894_v10 = vadd.f32 %v12893_v14, %v12892_v16  ;;  %v12895_v51 = vpop.f32.mrb[182].mxu1  ;;  %v14771_v16 = vld [vmem:[#allocation15 + $0x214] ss:$8 sps:$4 sm:$0xff]   ;;  %v14769_v14 = vld [vmem:[#allocation15 + $0x210] ss:$8 sps:$4 sm:$0xff]  }
 0x83a   :  { %v12896_v39 = vpop.f32.mrb[183].mxu1 }
 0x83b   :  { %v7715_v17 = vadd.f32 %v12894_v10, %v12866_v5  ;;  %8960 = vmatpush1.bf16.msra.mxu0 %v14739_v44  ;;  %v14747_v5 = vld [vmem:[#allocation15 + $0x194] ss:$8 sps:$4 sm:$0xff]  }
 0x83c   :  { %9474 = vmatprep.subr.bf16.mxu1 %v14747_v5  ;;  %v16636_v10 = vld [vmem:[#allocation13] sm:$0x7] }
 0x83d   :  { %9475 = vmatpush1.bf16.msra.mxu1 %v14745_v1 }
 0x83e   :  { %8962 = vmatmul.mubr.bf16.vlgmr.msra.gmra.mrb[76].mxu0 %v16611_v48 }
 0x83f   :  { %8971 = vmatprep.mubr.bf16.mxu0 %v16595_v18 }
 0x846   :  { %8972 = vmatmul.mubr.bf16.gmra.mrb[96].mxu0 %v16605_v61 }
 0x850   :  { %v12914_v21 = vpop.f32.mrb[184].mxu1 }
 0x851   :  { %v12915_v37 = vpop.f32.mrb[185].mxu1 }
 0x852   :  { %v12916_v52 = vadd.f32 %v12915_v37, %v12914_v21  ;;  %v12917_v56 = vpop.f32.mrb[186].mxu1  ;;  %v9050_v21 = vrot.slane %v16636_v10, %v15942_v12  ;;  %v14774_v12 = vld [vmem:[#allocation15 + $0x224] ss:$8 sps:$4 sm:$0xff]  }
 0x853   :  { %v12918_v47 = vpop.f32.mrb[187].mxu1 }
 0x854   :  { %v8152_v6 = vadd.f32 %v12916_v52, %v7707_v33  ;;  %v12919_v23 = vadd.f32 %v12918_v47, %v12917_v56 }
 0x856   :  { %v8155_v15 = vadd.f32 %v12919_v23, %v7710_v60 }
 0x857   :  { %v7665_v45 = vpop.f32.mrb[84].mxu0 }
 0x858   :  { %v16631_v57 = vadd.f32 %v7665_v45, %v16623_v30  ;;  %v12920_v49 = vpop.f32.mrb[188].mxu1  ;;  %v7667_v29 = vpop.f32.mrb[85].mxu0  ;;  %v14750_v30 = vld [vmem:[#allocation15 + $0x1a4] ss:$8 sps:$4 sm:$0xff]  }
 0x859   :  { %v16634_v48 = vadd.f32 %v7667_v29, %v16625_v62  ;;  %v12921_v18 = vpop.f32.mrb[189].mxu1  ;;  %v7669_v59 = vpop.f32.mrb[86].mxu0  ;;  %9476 = vmatprep.subr.bf16.mxu1 %v14750_v30  ;;  %v14753_v62 = vld [vmem:[#allocation15 + $0x1b4] ss:$8 sps:$4 sm:$0xff]  }
 0x85a   :  { %v12922_v61 = vadd.f32 %v12921_v18, %v12920_v49  ;;  %v12923_v50 = vpop.f32.mrb[190].mxu1  ;;  %v7670_v41 = vpop.f32.mrb[87].mxu0  ;;  %9477 = vmatpush1.bf16.msra.mxu1 %v14748_v28  ;;  %v14777_v28 = vld [vmem:[#allocation15 + $0x234] ss:$8 sps:$4 sm:$0xff]  }
 0x85b   :  { %v12924_v40 = vpop.f32.mrb[191].mxu1  ;;  %9478 = vmatprep.subr.bf16.mxu1 %v14753_v62 }
 0x85c   :  { %v8158_v55 = vadd.f32 %v12922_v61, %v7715_v17  ;;  %v14772_v61 = vld [vmem:[#allocation15 + $0x220] ss:$8 sps:$4 sm:$0xff]  }
 0x85e   :  { %9479 = vmatpush1.bf16.msra.mxu1 %v14751_v34  ;;  %v14775_v34 = vld [vmem:[#allocation15 + $0x230] ss:$8 sps:$4 sm:$0xff]  }
 0x85f   :  { %9480 = vmatprep.subr.bf16.mxu1 %v14756_v35 }
 0x862   :  { %9481 = vmatpush1.bf16.msra.mxu1 %v14754_v42 }
 0x863   :  { %9482 = vmatprep.subr.bf16.mxu1 %v14759_v22 }
 0x866   :  { %9483 = vmatpush1.bf16.msra.mxu1 %v14757_v63 }
 0x867   :  { %9484 = vmatprep.subr.bf16.mxu1 %v14762_v46 }
 0x86a   :  { %9485 = vmatpush1.bf16.msra.mxu1 %v14760_v54 }
 0x86b   :  { %9486 = vmatprep.subr.bf16.mxu1 %v14765_v43 }
 0x86e   :  { %9487 = vmatpush1.bf16.msra.mxu1 %v14763_v8 }
 0x86f   :  { %9488 = vmatprep.subr.bf16.mxu1 %v14768_v4 }
 0x871   :  { %v12942_v24 = vpop.f32.mrb[192].mxu1 }
 0x872   :  { %v12943_v53 = vpop.f32.mrb[193].mxu1  ;;  %9489 = vmatpush1.bf16.msra.mxu1 %v14766_v25 }
 0x873   :  { %v12944_v19 = vadd.f32 %v12943_v53, %v12942_v24  ;;  %v12945_v38 = vpop.f32.mrb[194].mxu1  ;;  %9490 = vmatprep.subr.bf16.mxu1 %v14771_v16 }
 0x874   :  { %v12946_v2 = vpop.f32.mrb[195].mxu1 }
 0x875   :  { %v8591_v27 = vadd.f32 %v12944_v19, %v8152_v6  ;;  %v12947_v7 = vadd.f32 %v12946_v2, %v12945_v38  ;;  %v14778_v19 = vld [vmem:[#allocation15 + $0x240] ss:$8 sps:$4 sm:$0xff]   ;;  %v14780_v38 = vld [vmem:[#allocation15 + $0x244] ss:$8 sps:$4 sm:$0xff]   ;;  %v14783_v2 = vld [vmem:[#allocation15 + $0x254] ss:$8 sps:$4 sm:$0xff]  }
 0x876   :  { %9491 = vmatpush1.bf16.msra.mxu1 %v14769_v14 }
 0x877   :  { %v8594_v20 = vadd.f32 %v12947_v7, %v8155_v15  ;;  %9492 = vmatprep.subr.bf16.mxu1 %v14774_v12 }
 0x879   :  { %v12948_v36 = vpop.f32.mrb[196].mxu1 }
 0x87a   :  { %v12949_v33 = vpop.f32.mrb[197].mxu1  ;;  %9493 = vmatpush1.bf16.msra.mxu1 %v14772_v61 }
 0x87b   :  { %v12950_v26 = vadd.f32 %v12949_v33, %v12948_v36  ;;  %v12951_v3 = vpop.f32.mrb[198].mxu1  ;;  %9494 = vmatprep.subr.bf16.mxu1 %v14777_v28  ;;  %v14786_v36 = vld [vmem:[#allocation15 + $0x264] ss:$8 sps:$4 sm:$0xff]  }
 0x87c   :  { %v12952_v60 = vpop.f32.mrb[199].mxu1 }
 0x87d   :  { %v8597_v44 = vadd.f32 %v12950_v26, %v8158_v55 }
 0x87e   :  { %9495 = vmatpush1.bf16.msra.mxu1 %v14775_v34 }
 0x87f   :  { %9496 = vmatprep.subr.bf16.mxu1 %v14780_v38 }
 0x882   :  { %9497 = vmatpush1.bf16.msra.mxu1 %v14778_v19 }
 0x883   :  { %9498 = vmatprep.subr.bf16.mxu1 %v14783_v2 }
 0x891   :  { %v12970_v51 = vpop.f32.mrb[200].mxu1 }
 0x892   :  { %v12971_v39 = vpop.f32.mrb[201].mxu1 }
 0x893   :  { %v12972_v17 = vadd.f32 %v12971_v39, %v12970_v51  ;;  %v12973_v37 = vpop.f32.mrb[202].mxu1  ;;  %v14784_v51 = vld [vmem:[#allocation15 + $0x260] ss:$8 sps:$4 sm:$0xff]   ;;  %v14789_v39 = vld [vmem:[#allocation15 + $0x274] ss:$8 sps:$4 sm:$0xff]  }
 0x894   :  { %v12974_v52 = vpop.f32.mrb[203].mxu1 }
 0x895   :  { %v9030_v56 = vadd.f32 %v12972_v17, %v8591_v27  ;;  %v12975_v47 = vadd.f32 %v12974_v52, %v12973_v37  ;;  %v14781_v27 = vld [vmem:[#allocation15 + $0x250] ss:$8 sps:$4 sm:$0xff]  }
 0x896   :  { %9499 = vmatpush1.bf16.msra.mxu1 %v14781_v27  ;;  %v14787_v17 = vld [vmem:[#allocation15 + $0x270] ss:$8 sps:$4 sm:$0xff]  }
 0x897   :  { %v9056_v6 = vadd.f32 %v9050_v21, %v9030_v56  ;;  %v9033_v23 = vadd.f32 %v12975_v47, %v8594_v20  ;;  %9500 = vmatprep.subr.bf16.mxu1 %v14786_v36 }
 0x898   :  { %v8095_v15 = vpop.f32.mrb[88].mxu0 }
 0x899   :  { %v9065_v45 = vmax.f32 %v9056_v6, 0.0  ;;  %v9059_v49 = vadd.f32 %v9050_v21, %v9033_v23  ;;  %v16641_v29 = vadd.f32 %v8095_v15, %v16631_v57  ;;  %v12976_v18 = vpop.f32.mrb[204].mxu1  ;;  %v8097_v59 = vpop.f32.mrb[89].mxu0  ;;  %v9042_v15 = vrot.slane %v16636_v10, %v15938_v9 }
 0x89a   :  { %v8157_v50 = vadd.f32 %v8097_v59, %v16634_v48  ;;  %v12977_v41 = vpop.f32.mrb[205].mxu1  ;;  %v8099_v40 = vpop.f32.mrb[90].mxu0  ;;  %9501 = vmatpush1.bf16.msra.mxu1 %v14784_v51 }
 0x89b   :  { %v16644_v55 = vrot.slane %v9065_v45, 6  ;;  %v9068_v58 = vmax.f32 %v9059_v49, 0.0  ;;  %v12978_v31 = vadd.f32 %v12977_v41, %v12976_v18  ;;  %v12979_v5 = vpop.f32.mrb[206].mxu1  ;;  %v8100_v1 = vpop.f32.mrb[91].mxu0  ;;  %9502 = vmatprep.subr.bf16.mxu1 %v14789_v39  ;;  %v9046_v45 = vrot.slane %v16636_v10, %v15944_v13 }
 0x89c   :  { %v12980_v30 = vpop.f32.mrb[207].mxu1 }
 0x89d   :  { %v9088_v62 = vrot.slane %v9068_v58, 6  ;;  %v9036_v57 = vadd.f32 %v12978_v31, %v8597_v44  ;;  %v9107_v48 = vsel %vm1944_vm3, 0.0, %v16644_v55 }
 0x89e   :  { %9503 = vmatpush1.bf16.msra.mxu1 %v14787_v17 }
 0x89f   :  { %v16650_v35 = vsel %vm1944_vm3, %v16644_v55, %v9088_v62  ;;  %v9062_v42 = vadd.f32 %v9050_v21, %v9036_v57  ;;  %v14792_v21 = vld [vmem:[#allocation15 + $0x284] ss:$8 sps:$4 sm:$0xff]  }
 0x8a0   :  { %v9113_v22 = vpack.c.bf16 %v16650_v35, %v9107_v48  ;;  %v12393_v63 = vpack.c.bf16 %v16650_v35, %v16644_v55  ;;  %9515 = vmatprep.subr.bf16.mxu1 %v14792_v21  ;;  %v14903_v55 = vld [vmem:[#allocation15 + $0x354] ss:$8 sps:$4 sm:$0xff]   ;;  %v14906_v35 = vld [vmem:[#allocation15 + $0x364] ss:$8 sps:$4 sm:$0xff]  }
 0x8a1   :  { %v9071_v46 = vmax.f32 %v9062_v42, 0.0 }
 0x8a2   :  { %v9226_v7 = vrot.slane %v9113_v22, 1  ;;  %v9939_v20 = vrot.slane %v9113_v22, 2  ;;  %v10330_v8 = vrot.slane %v9113_v22, 3  ;;  %v10721_v4 = vrot.slane %v9113_v22, 4 }
 0x8a3   :  { %v9094_v24 = vrot.slane %v9071_v46, 6 }
 0x8a5   :  { %v9095_v53 = vsel %vm1944_vm3, %v9088_v62, %v9094_v24 }
 0x8a6   :  { %v9110_v54 = vsel %vm911_vm2, %v9095_v53, 0.0 }
 0x8a7   :  { %v9116_v43 = vpack.c.bf16 %v9110_v54, %v9110_v54 }
 0x8a9   :  { %v9227_v33 = vrot.slane %v9116_v43, 1  ;;  %v9940_v26 = vrot.slane %v9116_v43, 2  ;;  %v10331_v3 = vrot.slane %v9116_v43, 3  ;;  %v10722_v25 = vrot.slane %v9116_v43, 4 }
 0x8ab   :  { %v16658_v60 = vsel %vm336_vm0, %v9226_v7, %v9227_v33  ;;  %v16661_v16 = vsel %vm911_vm2, %v9939_v20, %v9940_v26  ;;  %v16664_v44 = vsel %vm1243_vm1, %v10330_v8, %v10331_v3  ;;  %v16667_v14 = vsel %vm5142_vm8, %v10721_v4, %v10722_v25 }
 0x8d9   :  { %v8534_v37 = vpop.f32.mrb[92].mxu0 }
 0x8da   :  { %v8595_v52 = vadd.f32 %v8534_v37, %v16641_v29  ;;  %v8536_v56 = vpop.f32.mrb[93].mxu0 }
 0x8db   :  { %v8596_v47 = vadd.f32 %v8536_v56, %v8157_v50  ;;  %v8538_v6 = vpop.f32.mrb[94].mxu0 }
 0x8dc   :  { %v8539_v23 = vpop.f32.mrb[95].mxu0 }
 0x911   :  { %v8963_v49 = vpop.f32.mrb[76].mxu0 }
 0x912   :  { %v9054_v18 = vadd.f32 %v9042_v15, %v8963_v49  ;;  %v8965_v59 = vpop.f32.mrb[77].mxu0 }
 0x913   :  { %v9055_v61 = vadd.f32 %v9046_v45, %v8965_v59  ;;  %v8967_v41 = vpop.f32.mrb[78].mxu0 }
 0x914   :  { %v9063_v40 = vmax.f32 %v9054_v18, 0.0  ;;  %v9057_v12 = vadd.f32 %v9042_v15, %v8967_v41  ;;  %v8969_v58 = vpop.f32.mrb[79].mxu0 }
 0x915   :  { %v9064_v31 = vmax.f32 %v9055_v61, 0.0  ;;  %v9058_v29 = vadd.f32 %v9046_v45, %v8969_v58 }
 0x916   :  { %v16674_v5 = vrot.slane %v9063_v40, 6  ;;  %v9066_v50 = vmax.f32 %v9057_v12, 0.0  ;;  %v14790_v12 = vld [vmem:[#allocation15 + $0x280] ss:$8 sps:$4 sm:$0xff]  }
 0x917   :  { %v16676_v1 = vrot.slane %v9064_v31, 6  ;;  %v9067_v30 = vmax.f32 %v9058_v29, 0.0 }
 0x918   :  { %v9084_v28 = vrot.slane %v9066_v50, 6  ;;  %v9105_v10 = vsel %vm1944_vm3, 0.0, %v16674_v5 }
 0x919   :  { %v9086_v62 = vrot.slane %v9067_v30, 6  ;;  %v8973_v57 = vpop.f32.mrb[96].mxu0  ;;  %v9106_v34 = vsel %vm1944_vm3, 0.0, %v16676_v1 }
 0x91a   :  { %v16684_v48 = vsel %vm1944_vm3, %v16674_v5, %v9084_v28  ;;  %v9034_v42 = vadd.f32 %v8973_v57, %v8595_v52  ;;  %v8975_v22 = vpop.f32.mrb[97].mxu0 }
 0x91b   :  { %v9111_v46 = vpack.c.bf16 %v16684_v48, %v9105_v10  ;;  %v12389_v24 = vpack.c.bf16 %v16684_v48, %v16674_v5  ;;  %v16691_v53 = vsel %vm1944_vm3, %v16676_v1, %v9086_v62  ;;  %v9035_v19 = vadd.f32 %v8975_v22, %v8596_v47  ;;  %v8977_v38 = vpop.f32.mrb[98].mxu0  ;;  %v14796_v22 = vld [vmem:[#allocation15 + $0x2a0] ss:$8 sps:$4 sm:$0xff]   ;;  %v14879_v5 = vld [vmem:[#allocation15 + $0x154] ss:$8 sps:$4 sm:$0xff]  }
 0x91c   :  { %v9112_v54 = vpack.c.bf16 %v16691_v53, %v9106_v34  ;;  %v12385_v2 = vpack.c.bf16 %v16691_v53, %v16676_v1  ;;  %v9060_v43 = vadd.f32 %v9042_v15, %v9034_v42  ;;  %v8978_v27 = vpop.f32.mrb[99].mxu0  ;;  %v14793_v34 = vld [vmem:[#allocation15 + $0x290] ss:$8 sps:$4 sm:$0xff]   ;;  %v14798_v42 = vld [vmem:[#allocation15 + $0x2a4] ss:$8 sps:$4 sm:$0xff]  }
 0x91d   :  { %v9061_v7 = vadd.f32 %v9046_v45, %v9035_v19  ;;  %v9220_v26 = vrot.slane %v9111_v46, 1  ;;  %v9933_v51 = vrot.slane %v9111_v46, 2  ;;  %v10324_v39 = vrot.slane %v9111_v46, 3  ;;  %v14799_v19 = vld [vmem:[#allocation15 + $0x2b0] ss:$8 sps:$4 sm:$0xff]  }
 0x91e   :  { %v9069_v20 = vmax.f32 %v9060_v43, 0.0  ;;  %v9223_v37 = vrot.slane %v9112_v54, 1  ;;  %v9936_v52 = vrot.slane %v9112_v54, 2  ;;  %v10327_v47 = vrot.slane %v9112_v54, 3  ;;  %v14804_v38 = vld [vmem:[#allocation15 + $0x2c4] ss:$8 sps:$4 sm:$0xff]  }
 0x91f   :  { %v9070_v8 = vmax.f32 %v9061_v7, 0.0  ;;  %v10718_v6 = vrot.slane %v9112_v54, 4  ;;  %v10715_v23 = vrot.slane %v9111_v46, 4  ;;  %v14801_v46 = vld [vmem:[#allocation15 + $0x2b4] ss:$8 sps:$4 sm:$0xff]  }
 0x920   :  { %v9090_v4 = vrot.slane %v9069_v20, 6  ;;  %v14802_v54 = vld [vmem:[#allocation15 + $0x2c0] ss:$8 sps:$4 sm:$0xff]   ;;  %v14807_v43 = vld [vmem:[#allocation15 + $0x2d4] ss:$8 sps:$4 sm:$0xff]  }
 0x921   :  { %v9092_v36 = vrot.slane %v9070_v8, 6  ;;  %v14805_v27 = vld [vmem:[#allocation15 + $0x2d0] ss:$8 sps:$4 sm:$0xff]   ;;  %v14810_v7 = vld [vmem:[#allocation15 + $0x2e4] ss:$8 sps:$4 sm:$0xff]  }
 0x922   :  { %v9091_v33 = vsel %vm1944_vm3, %v9084_v28, %v9090_v4  ;;  %v14795_v28 = vld [vmem:[#allocation15 + $0x294] ss:$8 sps:$4 sm:$0xff]   ;;  %v14808_v20 = vld [vmem:[#allocation15 + $0x2e0] ss:$8 sps:$4 sm:$0xff]   ;;  %v14811_v4 = vld [vmem:[#allocation15 + $0x2f0] ss:$8 sps:$4 sm:$0xff]  }
 0x923   :  { %v9108_v3 = vsel %vm911_vm2, %v9091_v33, 0.0  ;;  %v9093_v25 = vsel %vm1944_vm3, %v9086_v62, %v9092_v36  ;;  %v14813_v8 = vld [vmem:[#allocation15 + $0x2f4] ss:$8 sps:$4 sm:$0xff]   ;;  %v14816_v36 = vld [vmem:[#allocation15 + $0x4] ss:$8 sps:$4 sm:$0xff]  }
 0x924   :  { %v9114_v17 = vpack.c.bf16 %v9108_v3, %v9108_v3  ;;  %v9109_v21 = vsel %vm911_vm2, %v9093_v25, 0.0  ;;  %v14814_v33 = vld [vmem:[#allocation15] ss:$8 sps:$4 sm:$0xff]   ;;  %v14817_v3 = vld [vmem:[#allocation15 + $0x10] ss:$8 sps:$4 sm:$0xff]  }
 0x925   :  { %v9115_v56 = vpack.c.bf16 %v9109_v21, %v9109_v21  ;;  %v14822_v25 = vld [vmem:[#allocation15 + $0x24] ss:$8 sps:$4 sm:$0xff]   ;;  %v14829_v1 = vld [vmem:[#allocation15 + $0x50] ss:$8 sps:$4 sm:$0xff]  }
 0x926   :  { %v9221_v15 = vrot.slane %v9114_v17, 1  ;;  %v9934_v45 = vrot.slane %v9114_v17, 2  ;;  %v10325_v49 = vrot.slane %v9114_v17, 3  ;;  %v10716_v18 = vrot.slane %v9114_v17, 4  ;;  %v14823_v17 = vld [vmem:[#allocation15 + $0x30] ss:$8 sps:$4 sm:$0xff]  }
 0x927   :  { %v9224_v59 = vrot.slane %v9115_v56, 1  ;;  %v9937_v61 = vrot.slane %v9115_v56, 2  ;;  %v10328_v41 = vrot.slane %v9115_v56, 3  ;;  %v10719_v40 = vrot.slane %v9115_v56, 4  ;;  %v14828_v21 = vld [vmem:[#allocation15 + $0x44] ss:$8 sps:$4 sm:$0xff]  }
 0x928   :  { %v9222_v58 = vsel %vm336_vm0, %v9220_v26, %v9221_v15  ;;  %v16702_v31 = vsel %vm911_vm2, %v9933_v51, %v9934_v45  ;;  %v16705_v29 = vsel %vm1243_vm1, %v10324_v39, %v10325_v49  ;;  %v16708_v50 = vsel %vm5142_vm8, %v10715_v23, %v10716_v18  ;;  %v14819_v26 = vld [vmem:[#allocation15 + $0x14] ss:$8 sps:$4 sm:$0xff]   ;;  %v14820_v51 = vld [vmem:[#allocation15 + $0x20] ss:$8 sps:$4 sm:$0xff]   ;;  %v14834_v53 = vld [vmem:[#allocation15 + $0x64] ss:$8 sps:$4 sm:$0xff]  }
 0x929   :  { %v9225_v30 = vsel %vm336_vm0, %v9223_v37, %v9224_v59  ;;  %v16712_v62 = vsel %vm911_vm2, %v9936_v52, %v9937_v61  ;;  %v16715_v57 = vsel %vm1243_vm1, %v10327_v47, %v10328_v41  ;;  %v16718_v10 = vsel %vm5142_vm8, %v10718_v6, %v10719_v40  ;;  %v14825_v39 = vld [vmem:[#allocation15 + $0x34] ss:$8 sps:$4 sm:$0xff]   ;;  %v14835_v56 = vld [vmem:[#allocation15 + $0x70] ss:$8 sps:$4 sm:$0xff]   ;;  %v14840_v47 = vld [vmem:[#allocation15 + $0x84] ss:$8 sps:$4 sm:$0xff]  }
 0x92a   :  { %9504 = vmatprep.mubr.bf16.mxu1 %v9225_v30  ;;  %v14831_v37 = vld [vmem:[#allocation15 + $0x54] ss:$8 sps:$4 sm:$0xff]   ;;  %v14838_v6 = vld [vmem:[#allocation15 + $0x80] ss:$8 sps:$4 sm:$0xff]   ;;  %v14841_v15 = vld [vmem:[#allocation15 + $0x90] ss:$8 sps:$4 sm:$0xff]  }
 0x92b   :  { %9505 = vmatmul.mubr.bf16.vlgmr.msra.gmra.mrb[208].mxu1 %v9222_v58  ;;  %v14837_v52 = vld [vmem:[#allocation15 + $0x74] ss:$8 sps:$4 sm:$0xff]   ;;  %v14846_v45 = vld [vmem:[#allocation15 + $0xa4] ss:$8 sps:$4 sm:$0xff]   ;;  %v14844_v49 = vld [vmem:[#allocation15 + $0xa0] ss:$8 sps:$4 sm:$0xff]  }
 0x92c   :  { %9516 = vmatpush1.bf16.msra.mxu1 %v14790_v12  ;;  %9547 = vmatprep.mubr.bf16.mxu1 %v15485_v0  ;;  %v14843_v23 = vld [vmem:[#allocation15 + $0x94] ss:$8 sps:$4 sm:$0xff]   ;;  %v14847_v59 = vld [vmem:[#allocation15 + $0xb0] ss:$8 sps:$4 sm:$0xff]   ;;  %v14852_v61 = vld [vmem:[#allocation15 + $0xc4] ss:$8 sps:$4 sm:$0xff]  }
 0x92d   :  { %9517 = vmatprep.subr.bf16.mxu1 %v14795_v28  ;;  %v14849_v18 = vld [vmem:[#allocation15 + $0xb4] ss:$8 sps:$4 sm:$0xff]   ;;  %v14850_v41 = vld [vmem:[#allocation15 + $0xc0] ss:$8 sps:$4 sm:$0xff]   ;;  %v14853_v12 = vld [vmem:[#allocation15 + $0xd0] ss:$8 sps:$4 sm:$0xff]  }
 0x92e   :  { %v14855_v40 = vld [vmem:[#allocation15 + $0xd4] ss:$8 sps:$4 sm:$0xff]   ;;  %v14858_v58 = vld [vmem:[#allocation15 + $0xe4] ss:$8 sps:$4 sm:$0xff]   ;;  %v14856_v30 = vld [vmem:[#allocation15 + $0xe0] ss:$8 sps:$4 sm:$0xff]  }
 0x92f   :  { %v14861_v28 = vld [vmem:[#allocation15 + $0xf4] ss:$8 sps:$4 sm:$0xff]   ;;  %v14877_v48 = vld [vmem:[#allocation15 + $0x150] ss:$8 sps:$4 sm:$0xff]  }
 0x930   :  { %9518 = vmatpush1.bf16.msra.mxu1 %v14793_v34  ;;  %v14859_v34 = vld [vmem:[#allocation15 + $0xf0] ss:$8 sps:$4 sm:$0xff]  }
 0x931   :  { %9519 = vmatprep.subr.bf16.mxu1 %v14798_v42  ;;  %v14864_v42 = vld [vmem:[#allocation15 + $0x104] ss:$8 sps:$4 sm:$0xff]  }
 0x934   :  { %9520 = vmatpush1.bf16.msra.mxu1 %v14796_v22  ;;  %v14862_v22 = vld [vmem:[#allocation15 + $0x100] ss:$8 sps:$4 sm:$0xff]  }
 0x935   :  { %9521 = vmatprep.subr.bf16.mxu1 %v14801_v46  ;;  %v14867_v46 = vld [vmem:[#allocation15 + $0x114] ss:$8 sps:$4 sm:$0xff]  }
 0x938   :  { %9522 = vmatpush1.bf16.msra.mxu1 %v14799_v19  ;;  %v14865_v19 = vld [vmem:[#allocation15 + $0x110] ss:$8 sps:$4 sm:$0xff]  }
 0x939   :  { %9523 = vmatprep.subr.bf16.mxu1 %v14804_v38  ;;  %v14870_v38 = vld [vmem:[#allocation15 + $0x124] ss:$8 sps:$4 sm:$0xff]  }
 0x93c   :  { %9524 = vmatpush1.bf16.msra.mxu1 %v14802_v54  ;;  %v14868_v54 = vld [vmem:[#allocation15 + $0x120] ss:$8 sps:$4 sm:$0xff]  }
 0x93d   :  { %9525 = vmatprep.subr.bf16.mxu1 %v14807_v43  ;;  %v14873_v43 = vld [vmem:[#allocation15 + $0x134] ss:$8 sps:$4 sm:$0xff]  }
 0x940   :  { %9526 = vmatpush1.bf16.msra.mxu1 %v14805_v27  ;;  %v14871_v27 = vld [vmem:[#allocation15 + $0x130] ss:$8 sps:$4 sm:$0xff]  }
 0x941   :  { %9527 = vmatprep.subr.bf16.mxu1 %v14810_v7  ;;  %v14876_v7 = vld [vmem:[#allocation15 + $0x144] ss:$8 sps:$4 sm:$0xff]  }
 0x944   :  { %9528 = vmatpush1.bf16.msra.mxu1 %v14808_v20  ;;  %v14874_v20 = vld [vmem:[#allocation15 + $0x140] ss:$8 sps:$4 sm:$0xff]  }
 0x945   :  { %9529 = vmatprep.subr.bf16.mxu1 %v14813_v8  ;;  %v14880_v8 = vld [vmem:[#allocation15 + $0x160] ss:$8 sps:$4 sm:$0xff]  }
 0x948   :  { %9530 = vmatpush1.bf16.msra.mxu1 %v14811_v4  ;;  %v14885_v4 = vld [vmem:[#allocation15 + $0x174] ss:$8 sps:$4 sm:$0xff]  }
 0x949   :  { %9798 = vmatprep.subr.bf16.mxu1 %v14816_v36  ;;  %v14883_v36 = vld [vmem:[#allocation15 + $0x170] ss:$8 sps:$4 sm:$0xff]  }
 0x94b   :  { %9548 = vmatmul.mubr.bf16.vlgmr.msra.gmra.mrb[208].mxu1 %v16658_v60  ;;  %v14826_v60 = vld [vmem:[#allocation15 + $0x40] ss:$8 sps:$4 sm:$0xff]  }
 0x94c   :  { %9799 = vmatpush1.bf16.msra.mxu1 %v14814_v33  ;;  %12386 = vmatprep.mubr.msk.bf16.mxu1 %vm16080_vm7, %v12385_v2  ;;  %v14832_v2 = vld [vmem:[#allocation15 + $0x60] ss:$8 sps:$4 sm:$0xff]   ;;  %v14888_v33 = vld [vmem:[#allocation15 + $0x304] ss:$8 sps:$4 sm:$0xff]  }
 0x94d   :  { %9800 = vmatprep.subr.bf16.mxu1 %v14819_v26  ;;  %v14886_v26 = vld [vmem:[#allocation15 + $0x300] ss:$8 sps:$4 sm:$0xff]  }
 0x950   :  { %9801 = vmatpush1.bf16.msra.mxu1 %v14817_v3  ;;  %v14891_v3 = vld [vmem:[#allocation15 + $0x314] ss:$8 sps:$4 sm:$0xff]  }
 0x951   :  { %9802 = vmatprep.subr.bf16.mxu1 %v14822_v25  ;;  %v14889_v25 = vld [vmem:[#allocation15 + $0x310] ss:$8 sps:$4 sm:$0xff]  }
 0x954   :  { %9803 = vmatpush1.bf16.msra.mxu1 %v14820_v51  ;;  %v14894_v51 = vld [vmem:[#allocation15 + $0x324] ss:$8 sps:$4 sm:$0xff]  }
 0x955   :  { %9804 = vmatprep.subr.bf16.mxu1 %v14825_v39  ;;  %v14892_v39 = vld [vmem:[#allocation15 + $0x320] ss:$8 sps:$4 sm:$0xff]  }
 0x958   :  { %9805 = vmatpush1.bf16.msra.mxu1 %v14823_v17  ;;  %v14897_v17 = vld [vmem:[#allocation15 + $0x334] ss:$8 sps:$4 sm:$0xff]  }
 0x959   :  { %9806 = vmatprep.subr.bf16.mxu1 %v14828_v21  ;;  %v14895_v21 = vld [vmem:[#allocation15 + $0x330] ss:$8 sps:$4 sm:$0xff]  }
 0x95c   :  { %9807 = vmatpush1.bf16.msra.mxu1 %v14826_v60  ;;  %v14900_v60 = vld [vmem:[#allocation15 + $0x344] ss:$8 sps:$4 sm:$0xff]  }
 0x95d   :  { %9808 = vmatprep.subr.bf16.mxu1 %v14831_v37  ;;  %v14898_v37 = vld [vmem:[#allocation15 + $0x340] ss:$8 sps:$4 sm:$0xff]  }
 0x960   :  { %9809 = vmatpush1.bf16.msra.mxu1 %v14829_v1  ;;  %v14907_v1 = vld [vmem:[#allocation15 + $0x370] ss:$8 sps:$4 sm:$0xff]  }
 0x961   :  { %9810 = vmatprep.subr.bf16.mxu1 %v14834_v53  ;;  %v14912_v53 = vld [vmem:[#allocation15 + $0x384] ss:$8 sps:$4 sm:$0xff]  }
 0x964   :  { %9811 = vmatpush1.bf16.msra.mxu1 %v14832_v2  ;;  %v14910_v2 = vld [vmem:[#allocation15 + $0x380] ss:$8 sps:$4 sm:$0xff]  }
 0x965   :  { %9812 = vmatprep.subr.bf16.mxu1 %v14837_v52  ;;  %v14915_v52 = vld [vmem:[#allocation15 + $0x394] ss:$8 sps:$4 sm:$0xff]  }
 0x968   :  { %9813 = vmatpush1.bf16.msra.mxu1 %v14835_v56  ;;  %v14913_v56 = vld [vmem:[#allocation15 + $0x390] ss:$8 sps:$4 sm:$0xff]  }
 0x969   :  { %9814 = vmatprep.subr.bf16.mxu1 %v14840_v47  ;;  %v14918_v47 = vld [vmem:[#allocation15 + $0x3a4] ss:$8 sps:$4 sm:$0xff]  }
 0x96c   :  { %9815 = vmatpush1.bf16.msra.mxu1 %v14838_v6  ;;  %v14916_v6 = vld [vmem:[#allocation15 + $0x3a0] ss:$8 sps:$4 sm:$0xff]  }
 0x96d   :  { %9816 = vmatprep.subr.bf16.mxu1 %v14843_v23  ;;  %v14921_v23 = vld [vmem:[#allocation15 + $0x3b4] ss:$8 sps:$4 sm:$0xff]  }
 0x970   :  { %9817 = vmatpush1.bf16.msra.mxu1 %v14841_v15  ;;  %v14919_v15 = vld [vmem:[#allocation15 + $0x3b0] ss:$8 sps:$4 sm:$0xff]  }
 0x971   :  { %9818 = vmatprep.subr.bf16.mxu1 %v14846_v45  ;;  %v14924_v45 = vld [vmem:[#allocation15 + $0x3c4] ss:$8 sps:$4 sm:$0xff]  }
 0x974   :  { %9819 = vmatpush1.bf16.msra.mxu1 %v14844_v49  ;;  %v14922_v49 = vld [vmem:[#allocation15 + $0x3c0] ss:$8 sps:$4 sm:$0xff]  }
 0x975   :  { %9820 = vmatprep.subr.bf16.mxu1 %v14849_v18  ;;  %v14927_v18 = vld [vmem:[#allocation15 + $0x3d4] ss:$8 sps:$4 sm:$0xff]  }
 0x978   :  { %9821 = vmatpush1.bf16.msra.mxu1 %v14847_v59  ;;  %v14925_v59 = vld [vmem:[#allocation15 + $0x3d0] ss:$8 sps:$4 sm:$0xff]  }
 0x979   :  { %9822 = vmatprep.subr.bf16.mxu1 %v14852_v61  ;;  %v14930_v61 = vld [vmem:[#allocation15 + $0x3e4] ss:$8 sps:$4 sm:$0xff]  }
 0x97c   :  { %9823 = vmatpush1.bf16.msra.mxu1 %v14850_v41  ;;  %v14928_v41 = vld [vmem:[#allocation15 + $0x3e0] ss:$8 sps:$4 sm:$0xff]  }
 0x97d   :  { %9824 = vmatprep.subr.bf16.mxu1 %v14855_v40  ;;  %v14933_v40 = vld [vmem:[#allocation15 + $0x3f4] ss:$8 sps:$4 sm:$0xff]  }
 0x980   :  { %9825 = vmatpush1.bf16.msra.mxu1 %v14853_v12  ;;  %v14931_v12 = vld [vmem:[#allocation15 + $0x3f0] ss:$8 sps:$4 sm:$0xff]  }
 0x981   :  { %9826 = vmatprep.subr.bf16.mxu1 %v14858_v58  ;;  %v14936_v58 = vld [vmem:[#allocation15 + $0x404] ss:$8 sps:$4 sm:$0xff]  }
 0x984   :  { %9827 = vmatpush1.bf16.msra.mxu1 %v14856_v30  ;;  %v14934_v30 = vld [vmem:[#allocation15 + $0x400] ss:$8 sps:$4 sm:$0xff]  }
 0x985   :  { %9828 = vmatprep.subr.bf16.mxu1 %v14861_v28  ;;  %v14939_v28 = vld [vmem:[#allocation15 + $0x414] ss:$8 sps:$4 sm:$0xff]  }
 0x988   :  { %9829 = vmatpush1.bf16.msra.mxu1 %v14859_v34  ;;  %v14937_v34 = vld [vmem:[#allocation15 + $0x410] ss:$8 sps:$4 sm:$0xff]  }
 0x989   :  { %9841 = vmatprep.subr.bf16.mxu1 %v14864_v42  ;;  %v14942_v42 = vld [vmem:[#allocation15 + $0x424] ss:$8 sps:$4 sm:$0xff]  }
 0x98b   :  { %12390 = vmatmul.mubr.msk.bf16.vlgmr.msra.gmra.mrb[208].mxu1 %vm16080_vm7, %v12389_v24  ;;  %v14882_v24 = vld [vmem:[#allocation15 + $0x164] ss:$8 sps:$4 sm:$0xff]  }
 0x98c   :  { %9842 = vmatpush1.bf16.msra.mxu1 %v14862_v22  ;;  %9873 = vmatprep.mubr.bf16.mxu1 %v15485_v0  ;;  %v14940_v22 = vld [vmem:[#allocation15 + $0x420] ss:$8 sps:$4 sm:$0xff]  }
 0x98d   :  { %9843 = vmatprep.subr.bf16.mxu1 %v14867_v46  ;;  %v14945_v46 = vld [vmem:[#allocation15 + $0x434] ss:$8 sps:$4 sm:$0xff]  }
 0x990   :  { %9844 = vmatpush1.bf16.msra.mxu1 %v14865_v19  ;;  %v14943_v19 = vld [vmem:[#allocation15 + $0x430] ss:$8 sps:$4 sm:$0xff]  }
 0x991   :  { %9845 = vmatprep.subr.bf16.mxu1 %v14870_v38  ;;  %v14948_v38 = vld [vmem:[#allocation15 + $0x444] ss:$8 sps:$4 sm:$0xff]  }
 0x994   :  { %9846 = vmatpush1.bf16.msra.mxu1 %v14868_v54  ;;  %v14946_v54 = vld [vmem:[#allocation15 + $0x440] ss:$8 sps:$4 sm:$0xff]  }
 0x995   :  { %9847 = vmatprep.subr.bf16.mxu1 %v14873_v43  ;;  %v14951_v43 = vld [vmem:[#allocation15 + $0x454] ss:$8 sps:$4 sm:$0xff]  }
 0x998   :  { %9848 = vmatpush1.bf16.msra.mxu1 %v14871_v27  ;;  %v14954_v27 = vld [vmem:[#allocation15 + $0x464] ss:$8 sps:$4 sm:$0xff]  }
 0x999   :  { %9849 = vmatprep.subr.bf16.mxu1 %v14876_v7  ;;  %v14952_v7 = vld [vmem:[#allocation15 + $0x460] ss:$8 sps:$4 sm:$0xff]  }
 0x99c   :  { %9850 = vmatpush1.bf16.msra.mxu1 %v14874_v20  ;;  %v14957_v20 = vld [vmem:[#allocation15 + $0x474] ss:$8 sps:$4 sm:$0xff]  }
 0x99d   :  { %9851 = vmatprep.subr.bf16.mxu1 %v14879_v5  ;;  %v14955_v5 = vld [vmem:[#allocation15 + $0x470] ss:$8 sps:$4 sm:$0xff]  }
 0x9a0   :  { %9852 = vmatpush1.bf16.msra.mxu1 %v14877_v48  ;;  %v14960_v48 = vld [vmem:[#allocation15 + $0x484] ss:$8 sps:$4 sm:$0xff]  }
 0x9a1   :  { %9853 = vmatprep.subr.bf16.mxu1 %v14882_v24  ;;  %v14958_v24 = vld [vmem:[#allocation15 + $0x480] ss:$8 sps:$4 sm:$0xff]  }
 0x9a4   :  { %9854 = vmatpush1.bf16.msra.mxu1 %v14880_v8  ;;  %v14963_v8 = vld [vmem:[#allocation15 + $0x494] ss:$8 sps:$4 sm:$0xff]  }
 0x9a5   :  { %9855 = vmatprep.subr.bf16.mxu1 %v14885_v4  ;;  %v14961_v4 = vld [vmem:[#allocation15 + $0x490] ss:$8 sps:$4 sm:$0xff]  }
 0x9a8   :  { %9856 = vmatpush1.bf16.msra.mxu1 %v14883_v36  ;;  %v14966_v36 = vld [vmem:[#allocation15 + $0x4a4] ss:$8 sps:$4 sm:$0xff]  }
 0x9a9   :  { %10185 = vmatprep.subr.bf16.mxu1 %v14888_v33  ;;  %v14964_v33 = vld [vmem:[#allocation15 + $0x4a0] ss:$8 sps:$4 sm:$0xff]  }
 0x9ab   :  { %12394 = vmatmul.mubr.msk.bf16.vlgmr.msra.gmra.mrb[208].mxu1 %vm16080_vm7, %v12393_v63  ;;  %v14904_v63 = vld [vmem:[#allocation15 + $0x360] ss:$8 sps:$4 sm:$0xff]  }
 0x9ac   :  { %10186 = vmatpush1.bf16.msra.mxu1 %v14886_v26  ;;  %10217 = vmatprep.mubr.bf16.mxu1 %v16712_v62  ;;  %v14909_v62 = vld [vmem:[#allocation15 + $0x374] ss:$8 sps:$4 sm:$0xff]  }
 0x9ad   :  { %10187 = vmatprep.subr.bf16.mxu1 %v14891_v3  ;;  %v14969_v26 = vld [vmem:[#allocation15 + $0x4b4] ss:$8 sps:$4 sm:$0xff]   ;;  %v14967_v3 = vld [vmem:[#allocation15 + $0x4b0] ss:$8 sps:$4 sm:$0xff]  }
 0x9b0   :  { %10188 = vmatpush1.bf16.msra.mxu1 %v14889_v25  ;;  %v14972_v25 = vld [vmem:[#allocation15 + $0x4c4] ss:$8 sps:$4 sm:$0xff]  }
 0x9b1   :  { %10189 = vmatprep.subr.bf16.mxu1 %v14894_v51  ;;  %v14970_v51 = vld [vmem:[#allocation15 + $0x4c0] ss:$8 sps:$4 sm:$0xff]  }
 0x9b4   :  { %10190 = vmatpush1.bf16.msra.mxu1 %v14892_v39  ;;  %v14975_v39 = vld [vmem:[#allocation15 + $0x4d4] ss:$8 sps:$4 sm:$0xff]  }
 0x9b5   :  { %10191 = vmatprep.subr.bf16.mxu1 %v14897_v17  ;;  %v14978_v17 = vld [vmem:[#allocation15 + $0x4e4] ss:$8 sps:$4 sm:$0xff]  }
 0x9b8   :  { %10192 = vmatpush1.bf16.msra.mxu1 %v14895_v21  ;;  %v14981_v21 = vld [vmem:[#allocation15 + $0x4f4] ss:$8 sps:$4 sm:$0xff]  }
 0x9b9   :  { %10193 = vmatprep.subr.bf16.mxu1 %v14900_v60  ;;  %v14979_v60 = vld [vmem:[#allocation15 + $0x4f0] ss:$8 sps:$4 sm:$0xff]  }
 0x9bc   :  { %10194 = vmatpush1.bf16.msra.mxu1 %v14898_v37  ;;  %v14984_v37 = vld [vmem:[#allocation15 + $0x504] ss:$8 sps:$4 sm:$0xff]  }
 0x9bd   :  { %10195 = vmatprep.subr.bf16.mxu1 %v14903_v55  ;;  %v14982_v55 = vld [vmem:[#allocation15 + $0x500] ss:$8 sps:$4 sm:$0xff]  }
 0x9c0   :  { %10196 = vmatpush1.bf16.msra.mxu1 %v14901_v11  ;;  %v14987_v11 = vld [vmem:[#allocation15 + $0x514] ss:$8 sps:$4 sm:$0xff]  }
 0x9c1   :  { %10197 = vmatprep.subr.bf16.mxu1 %v14906_v35  ;;  %v14985_v35 = vld [vmem:[#allocation15 + $0x510] ss:$8 sps:$4 sm:$0xff]  }
 0x9c4   :  { %10198 = vmatpush1.bf16.msra.mxu1 %v14904_v63  ;;  %v14990_v63 = vld [vmem:[#allocation15 + $0x524] ss:$8 sps:$4 sm:$0xff]  }
 0x9c5   :  { %10199 = vmatprep.subr.bf16.mxu1 %v14909_v62  ;;  %v14988_v62 = vld [vmem:[#allocation15 + $0x520] ss:$8 sps:$4 sm:$0xff]  }
 0x9c8   :  { %10200 = vmatpush1.bf16.msra.mxu1 %v14907_v1  ;;  %v14993_v1 = vld [vmem:[#allocation15 + $0x534] ss:$8 sps:$4 sm:$0xff]  }
 0x9c9   :  { %10201 = vmatprep.subr.bf16.mxu1 %v14912_v53  ;;  %v14991_v53 = vld [vmem:[#allocation15 + $0x530] ss:$8 sps:$4 sm:$0xff]  }
 0x9cc   :  { %10202 = vmatpush1.bf16.msra.mxu1 %v14910_v2  ;;  %v14996_v2 = vld [vmem:[#allocation15 + $0x544] ss:$8 sps:$4 sm:$0xff]  }
 0x9cd   :  { %10203 = vmatprep.subr.bf16.mxu1 %v14915_v52  ;;  %v14994_v52 = vld [vmem:[#allocation15 + $0x540] ss:$8 sps:$4 sm:$0xff]  }
 0x9d0   :  { %10204 = vmatpush1.bf16.msra.mxu1 %v14913_v56  ;;  %v14999_v56 = vld [vmem:[#allocation15 + $0x554] ss:$8 sps:$4 sm:$0xff]  }
 0x9d1   :  { %10205 = vmatprep.subr.bf16.mxu1 %v14918_v47  ;;  %v14997_v47 = vld [vmem:[#allocation15 + $0x550] ss:$8 sps:$4 sm:$0xff]  }
 0x9d4   :  { %10206 = vmatpush1.bf16.msra.mxu1 %v14916_v6  ;;  %v15002_v6 = vld [vmem:[#allocation15 + $0x564] ss:$8 sps:$4 sm:$0xff]  }
 0x9d5   :  { %10207 = vmatprep.subr.bf16.mxu1 %v14921_v23  ;;  %v15000_v23 = vld [vmem:[#allocation15 + $0x560] ss:$8 sps:$4 sm:$0xff]  }
 0x9d8   :  { %10208 = vmatpush1.bf16.msra.mxu1 %v14919_v15  ;;  %v15005_v15 = vld [vmem:[#allocation15 + $0x574] ss:$8 sps:$4 sm:$0xff]  }
 0x9d9   :  { %10209 = vmatprep.subr.bf16.mxu1 %v14924_v45  ;;  %v15003_v45 = vld [vmem:[#allocation15 + $0x570] ss:$8 sps:$4 sm:$0xff]  }
 0x9dc   :  { %10210 = vmatpush1.bf16.msra.mxu1 %v14922_v49  ;;  %v15008_v49 = vld [vmem:[#allocation15 + $0x584] ss:$8 sps:$4 sm:$0xff]  }
 0x9dd   :  { %10211 = vmatprep.subr.bf16.mxu1 %v14927_v18  ;;  %v15006_v18 = vld [vmem:[#allocation15 + $0x580] ss:$8 sps:$4 sm:$0xff]  }
 0x9e0   :  { %10212 = vmatpush1.bf16.msra.mxu1 %v14925_v59  ;;  %v15011_v59 = vld [vmem:[#allocation15 + $0x594] ss:$8 sps:$4 sm:$0xff]  }
 0x9e1   :  { %10213 = vmatprep.subr.bf16.mxu1 %v14930_v61  ;;  %v15102_v61 = vld [vmem:[#allocation18 + $0x40] sm:$0xff]  }
 0x9e2   :  { %12982 = vmatprep.subr.bf16.mxu0 %v15102_v61  ;;  %v15083_v61 = vld [vmem:[#allocation15 + $0x714] ss:$8 sps:$4 sm:$0xff]  }
 0x9e4   :  { %10214 = vmatpush1.bf16.msra.mxu1 %v14928_v41  ;;  %v15103_v41 = vld [vmem:[#allocation18] sm:$0xff]  }
 0x9e5   :  { %10215 = vmatprep.subr.bf16.mxu1 %v14933_v40  ;;  %v15104_v40 = vld [vmem:[#allocation18 + $0x48] sm:$0xff]   ;;  %12983 = vmatpush3.bf16.msra.mxu0 %v15103_v41 }
 0x9e6   :  { %12984 = vmatprep.subr.bf16.mxu0 %v15104_v40  ;;  %v15081_v41 = vld [vmem:[#allocation15 + $0x710] ss:$8 sps:$4 sm:$0xff]   ;;  %v15086_v40 = vld [vmem:[#allocation15 + $0x724] ss:$8 sps:$4 sm:$0xff]  }
 0x9e8   :  { %10216 = vmatpush1.bf16.msra.mxu1 %v14931_v12  ;;  %v15009_v12 = vld [vmem:[#allocation15 + $0x590] ss:$8 sps:$4 sm:$0xff]  }
 0x9e9   :  { %10228 = vmatprep.subr.bf16.mxu1 %v14936_v58  ;;  %v15014_v58 = vld [vmem:[#allocation15 + $0x5a4] ss:$8 sps:$4 sm:$0xff]  }
 0x9eb   :  { %10218 = vmatmul.mubr.bf16.vlgmr.msra.gmra.mrb[208].mxu1 %v16702_v31  ;;  %v14949_v31 = vld [vmem:[#allocation15 + $0x450] ss:$8 sps:$4 sm:$0xff]  }
 0x9ec   :  { %10229 = vmatpush1.bf16.msra.mxu1 %v14934_v30  ;;  %10260 = vmatprep.mubr.bf16.mxu1 %v15485_v0  ;;  %v15105_v30 = vld [vmem:[#allocation18 + $0x8] sm:$0xff]  }
 0x9ed   :  { %10230 = vmatprep.subr.bf16.mxu1 %v14939_v28  ;;  %v15106_v28 = vld [vmem:[#allocation18 + $0x50] sm:$0xff]   ;;  %12985 = vmatpush3.bf16.msra.mxu0 %v15105_v30 }
 0x9ee   :  { %12986 = vmatprep.subr.bf16.mxu0 %v15106_v28  ;;  %v15087_v30 = vld [vmem:[#allocation15 + $0x730] ss:$8 sps:$4 sm:$0xff]   ;;  %v15092_v28 = vld [vmem:[#allocation15 + $0x744] ss:$8 sps:$4 sm:$0xff]  }
 0x9f0   :  { %10231 = vmatpush1.bf16.msra.mxu1 %v14937_v34  ;;  %v15012_v34 = vld [vmem:[#allocation15 + $0x5a0] ss:$8 sps:$4 sm:$0xff]  }
 0x9f1   :  { %10232 = vmatprep.subr.bf16.mxu1 %v14942_v42  ;;  %v15017_v42 = vld [vmem:[#allocation15 + $0x5b4] ss:$8 sps:$4 sm:$0xff]  }
 0x9f4   :  { %10233 = vmatpush1.bf16.msra.mxu1 %v14940_v22  ;;  %v15108_v22 = vld [vmem:[#allocation18 + $0x58] sm:$0xff]  }
 0x9f5   :  { %10234 = vmatprep.subr.bf16.mxu1 %v14945_v46  ;;  %v15015_v46 = vld [vmem:[#allocation15 + $0x5b0] ss:$8 sps:$4 sm:$0xff]  }
 0x9f8   :  { %10235 = vmatpush1.bf16.msra.mxu1 %v14943_v19  ;;  %v15020_v19 = vld [vmem:[#allocation15 + $0x5c4] ss:$8 sps:$4 sm:$0xff]  }
 0x9f9   :  { %10236 = vmatprep.subr.bf16.mxu1 %v14948_v38  ;;  %v15109_v38 = vld [vmem:[#allocation18 + $0x18] sm:$0xff]  }
 0x9fc   :  { %10237 = vmatpush1.bf16.msra.mxu1 %v14946_v54  ;;  %v15110_v54 = vld [vmem:[#allocation18 + $0x60] sm:$0xff]  }
 0x9fd   :  { %10238 = vmatprep.subr.bf16.mxu1 %v14951_v43  ;;  %v15018_v43 = vld [vmem:[#allocation15 + $0x5c0] ss:$8 sps:$4 sm:$0xff]  }
 0xa00   :  { %10239 = vmatpush1.bf16.msra.mxu1 %v14949_v31  ;;  %v15023_v31 = vld [vmem:[#allocation15 + $0x5d4] ss:$8 sps:$4 sm:$0xff]  }
 0xa01   :  { %10240 = vmatprep.subr.bf16.mxu1 %v14954_v27  ;;  %v15111_v27 = vld [vmem:[#allocation18 + $0x20] sm:$0xff]  }
 0xa04   :  { %10241 = vmatpush1.bf16.msra.mxu1 %v14952_v7  ;;  %v15112_v7 = vld [vmem:[#allocation18 + $0x68] sm:$0xff]  }
 0xa05   :  { %10242 = vmatprep.subr.bf16.mxu1 %v14957_v20  ;;  %v15021_v20 = vld [vmem:[#allocation15 + $0x5d0] ss:$8 sps:$4 sm:$0xff]  }
 0xa08   :  { %10243 = vmatpush1.bf16.msra.mxu1 %v14955_v5  ;;  %v15026_v5 = vld [vmem:[#allocation15 + $0x5e4] ss:$8 sps:$4 sm:$0xff]  }
 0xa09   :  { %10576 = vmatprep.subr.bf16.mxu1 %v14960_v48  ;;  %v15024_v48 = vld [vmem:[#allocation15 + $0x5e0] ss:$8 sps:$4 sm:$0xff]  }
 0xa0b   :  { %10261 = vmatmul.mubr.bf16.vlgmr.msra.gmra.mrb[208].mxu1 %v16661_v16  ;;  %v14973_v16 = vld [vmem:[#allocation15 + $0x4d0] ss:$8 sps:$4 sm:$0xff]  }
 0xa0c   :  { %10577 = vmatpush1.bf16.msra.mxu1 %v14958_v24  ;;  %10608 = vmatprep.mubr.bf16.mxu1 %v16715_v57  ;;  %v14976_v57 = vld [vmem:[#allocation15 + $0x4e0] ss:$8 sps:$4 sm:$0xff]   ;;  %v15029_v24 = vld [vmem:[#allocation15 + $0x5f4] ss:$8 sps:$4 sm:$0xff]  }
 0xa0d   :  { %10578 = vmatprep.subr.bf16.mxu1 %v14963_v8  ;;  %v15027_v8 = vld [vmem:[#allocation15 + $0x5f0] ss:$8 sps:$4 sm:$0xff]  }
 0xa10   :  { %10579 = vmatpush1.bf16.msra.mxu1 %v14961_v4  ;;  %v15032_v4 = vld [vmem:[#allocation15 + $0x604] ss:$8 sps:$4 sm:$0xff]  }
 0xa11   :  { %10580 = vmatprep.subr.bf16.mxu1 %v14966_v36  ;;  %v15030_v36 = vld [vmem:[#allocation15 + $0x600] ss:$8 sps:$4 sm:$0xff]  }
 0xa14   :  { %10581 = vmatpush1.bf16.msra.mxu1 %v14964_v33  ;;  %v15035_v33 = vld [vmem:[#allocation15 + $0x614] ss:$8 sps:$4 sm:$0xff]  }
 0xa15   :  { %10582 = vmatprep.subr.bf16.mxu1 %v14969_v26  ;;  %v15033_v26 = vld [vmem:[#allocation15 + $0x610] ss:$8 sps:$4 sm:$0xff]  }
 0xa18   :  { %10583 = vmatpush1.bf16.msra.mxu1 %v14967_v3  ;;  %v15038_v3 = vld [vmem:[#allocation15 + $0x624] ss:$8 sps:$4 sm:$0xff]  }
 0xa19   :  { %10584 = vmatprep.subr.bf16.mxu1 %v14972_v25  ;;  %v15036_v25 = vld [vmem:[#allocation15 + $0x620] ss:$8 sps:$4 sm:$0xff]  }
 0xa1c   :  { %10585 = vmatpush1.bf16.msra.mxu1 %v14970_v51  ;;  %v15041_v51 = vld [vmem:[#allocation15 + $0x634] ss:$8 sps:$4 sm:$0xff]  }
 0xa1d   :  { %10586 = vmatprep.subr.bf16.mxu1 %v14975_v39  ;;  %v15039_v39 = vld [vmem:[#allocation15 + $0x630] ss:$8 sps:$4 sm:$0xff]  }
 0xa20   :  { %10587 = vmatpush1.bf16.msra.mxu1 %v14973_v16  ;;  %v15044_v16 = vld [vmem:[#allocation15 + $0x644] ss:$8 sps:$4 sm:$0xff]  }
 0xa21   :  { %10588 = vmatprep.subr.bf16.mxu1 %v14978_v17  ;;  %v15042_v17 = vld [vmem:[#allocation15 + $0x640] ss:$8 sps:$4 sm:$0xff]  }
 0xa24   :  { %10589 = vmatpush1.bf16.msra.mxu1 %v14976_v57  ;;  %v15047_v57 = vld [vmem:[#allocation15 + $0x654] ss:$8 sps:$4 sm:$0xff]  }
 0xa25   :  { %10590 = vmatprep.subr.bf16.mxu1 %v14981_v21  ;;  %v15050_v21 = vld [vmem:[#allocation15 + $0x664] ss:$8 sps:$4 sm:$0xff]  }
 0xa28   :  { %10591 = vmatpush1.bf16.msra.mxu1 %v14979_v60  ;;  %v15053_v60 = vld [vmem:[#allocation15 + $0x674] ss:$8 sps:$4 sm:$0xff]  }
 0xa29   :  { %10592 = vmatprep.subr.bf16.mxu1 %v14984_v37  ;;  %v15051_v37 = vld [vmem:[#allocation15 + $0x670] ss:$8 sps:$4 sm:$0xff]  }
 0xa2c   :  { %10593 = vmatpush1.bf16.msra.mxu1 %v14982_v55  ;;  %v15056_v55 = vld [vmem:[#allocation15 + $0x684] ss:$8 sps:$4 sm:$0xff]  }
 0xa2d   :  { %10594 = vmatprep.subr.bf16.mxu1 %v14987_v11  ;;  %v15054_v11 = vld [vmem:[#allocation15 + $0x680] ss:$8 sps:$4 sm:$0xff]  }
 0xa30   :  { %10595 = vmatpush1.bf16.msra.mxu1 %v14985_v35  ;;  %v15059_v35 = vld [vmem:[#allocation15 + $0x694] ss:$8 sps:$4 sm:$0xff]  }
 0xa31   :  { %10596 = vmatprep.subr.bf16.mxu1 %v14990_v63  ;;  %v15057_v63 = vld [vmem:[#allocation15 + $0x690] ss:$8 sps:$4 sm:$0xff]  }
 0xa34   :  { %10597 = vmatpush1.bf16.msra.mxu1 %v14988_v62  ;;  %v15062_v62 = vld [vmem:[#allocation15 + $0x6a4] ss:$8 sps:$4 sm:$0xff]  }
 0xa35   :  { %10598 = vmatprep.subr.bf16.mxu1 %v14993_v1  ;;  %v15060_v1 = vld [vmem:[#allocation15 + $0x6a0] ss:$8 sps:$4 sm:$0xff]  }
 0xa38   :  { %10599 = vmatpush1.bf16.msra.mxu1 %v14991_v53  ;;  %v15065_v53 = vld [vmem:[#allocation15 + $0x6b4] ss:$8 sps:$4 sm:$0xff]  }
 0xa39   :  { %10600 = vmatprep.subr.bf16.mxu1 %v14996_v2  ;;  %v15063_v2 = vld [vmem:[#allocation15 + $0x6b0] ss:$8 sps:$4 sm:$0xff]  }
 0xa3c   :  { %10601 = vmatpush1.bf16.msra.mxu1 %v14994_v52  ;;  %v15068_v52 = vld [vmem:[#allocation15 + $0x6c4] ss:$8 sps:$4 sm:$0xff]  }
 0xa3d   :  { %10602 = vmatprep.subr.bf16.mxu1 %v14999_v56  ;;  %v15066_v56 = vld [vmem:[#allocation15 + $0x6c0] ss:$8 sps:$4 sm:$0xff]  }
 0xa40   :  { %10603 = vmatpush1.bf16.msra.mxu1 %v14997_v47  ;;  %v15071_v47 = vld [vmem:[#allocation15 + $0x6d4] ss:$8 sps:$4 sm:$0xff]  }
 0xa41   :  { %10604 = vmatprep.subr.bf16.mxu1 %v15002_v6  ;;  %v15069_v6 = vld [vmem:[#allocation15 + $0x6d0] ss:$8 sps:$4 sm:$0xff]  }
 0xa44   :  { %10605 = vmatpush1.bf16.msra.mxu1 %v15000_v23  ;;  %v15074_v23 = vld [vmem:[#allocation15 + $0x6e4] ss:$8 sps:$4 sm:$0xff]  }
 0xa45   :  { %10606 = vmatprep.subr.bf16.mxu1 %v15005_v15  ;;  %v15072_v15 = vld [vmem:[#allocation15 + $0x6e0] ss:$8 sps:$4 sm:$0xff]  }
 0xa48   :  { %10607 = vmatpush1.bf16.msra.mxu1 %v15003_v45  ;;  %v15077_v45 = vld [vmem:[#allocation15 + $0x6f4] ss:$8 sps:$4 sm:$0xff]  }
 0xa49   :  { %10619 = vmatprep.subr.bf16.mxu1 %v15008_v49  ;;  %v15075_v49 = vld [vmem:[#allocation15 + $0x6f0] ss:$8 sps:$4 sm:$0xff]  }
 0xa4b   :  { %10609 = vmatmul.mubr.bf16.vlgmr.msra.gmra.mrb[208].mxu1 %v16705_v29  ;;  %v15107_v29 = vld [vmem:[#allocation18 + $0x10] sm:$0xff]  }
 0xa4c   :  { %10620 = vmatpush1.bf16.msra.mxu1 %v15006_v18  ;;  %10651 = vmatprep.mubr.bf16.mxu1 %v15485_v0  ;;  %v15080_v18 = vld [vmem:[#allocation15 + $0x704] ss:$8 sps:$4 sm:$0xff]  }
 0xa4d   :  { %10621 = vmatprep.subr.bf16.mxu1 %v15011_v59  ;;  %12987 = vmatpush3.bf16.msra.mxu0 %v15107_v29  ;;  %v15078_v59 = vld [vmem:[#allocation15 + $0x700] ss:$8 sps:$4 sm:$0xff]   ;;  %v15098_v29 = vld [vmem:[#allocation15 + $0x764] ss:$8 sps:$4 sm:$0xff]  }
 0xa4e   :  { %12988 = vmatprep.subr.bf16.mxu0 %v15108_v22  ;;  %v15101_v22 = vld [vmem:[#allocation15 + $0x774] ss:$8 sps:$4 sm:$0xff]  }
 0xa50   :  { %10622 = vmatpush1.bf16.msra.mxu1 %v15009_v12  ;;  %v15084_v12 = vld [vmem:[#allocation15 + $0x720] ss:$8 sps:$4 sm:$0xff]  }
 0xa51   :  { %10623 = vmatprep.subr.bf16.mxu1 %v15014_v58  ;;  %12989 = vmatpush3.bf16.msra.mxu0 %v15109_v38  ;;  %v15089_v58 = vld [vmem:[#allocation15 + $0x734] ss:$8 sps:$4 sm:$0xff]  }
 0xa52   :  { %12990 = vmatprep.subr.bf16.mxu0 %v15110_v54  ;;  %v15114_v38 = vld [vmem:[#allocation18 + $0x70] sm:$0xff]  }
 0xa53   :  { %v15115_v54 = vld [vmem:[#allocation18 + $0x30] sm:$0xff]  }
 0xa54   :  { %10624 = vmatpush1.bf16.msra.mxu1 %v15012_v34  ;;  %v15090_v34 = vld [vmem:[#allocation15 + $0x740] ss:$8 sps:$4 sm:$0xff]  }
 0xa55   :  { %10625 = vmatprep.subr.bf16.mxu1 %v15017_v42  ;;  %12991 = vmatpush3.bf16.msra.mxu0 %v15111_v27  ;;  %v15095_v42 = vld [vmem:[#allocation15 + $0x754] ss:$8 sps:$4 sm:$0xff]   ;;  %v11057_v27 = vld [vmem:[#allocation16] sm:$0x3] }
 0xa56   :  { %12992 = vmatprep.subr.bf16.mxu0 %v15112_v7  ;;  %v11062_v7 = vrot.slane %v11057_v27, %v15938_v9  ;;  %v15489_v9 = vmov 0.0|0.0  }
 0xa58   :  { %10626 = vmatpush1.bf16.msra.mxu1 %v15015_v46  ;;  %v15099_v46 = vld [vmem:[#allocation15 + $0x770] ss:$8 sps:$4 sm:$0xff]  }
 0xa59   :  { %10627 = vmatprep.subr.bf16.mxu1 %v15020_v19  ;;  %v15113_v19 = vld [vmem:[#allocation18 + $0x28] sm:$0xff]  }
 0xa5a   :  { %12993 = vmatpush3.bf16.msra.mxu0 %v15113_v19 }
 0xa5b   :  { %12994 = vmatprep.subr.bf16.mxu0 %v15114_v38 }
 0xa5c   :  { %10628 = vmatpush1.bf16.msra.mxu1 %v15018_v43  ;;  %v15116_v43 = vld [vmem:[#allocation18 + $0x78] sm:$0xff]  }
 0xa5d   :  { %10629 = vmatprep.subr.bf16.mxu1 %v15023_v31  ;;  %v15117_v31 = vld [vmem:[#allocation18 + $0x38] sm:$0xff]  }
 0xa5e   :  { %12995 = vmatpush3.bf16.msra.mxu0 %v15115_v54 }
 0xa5f   :  { %12996 = vmatprep.subr.bf16.mxu0 %v15116_v43 }
 0xa60   :  { %10630 = vmatpush1.bf16.msra.mxu1 %v15021_v20  ;;  %v11066_v20 = vrot.slane %v11057_v27, %v15944_v13 }
 0xa61   :  { %10631 = vmatprep.subr.bf16.mxu1 %v15026_v5 }
 0xa62   :  { %12997 = vmatpush3.bf16.msra.mxu0 %v15117_v31 }
 0xa63   :  { %13326 = vmatprep.subr.bf16.mxu0 %v15489_v9 }
 0xa64   :  { %10632 = vmatpush1.bf16.msra.mxu1 %v15024_v48 }
 0xa65   :  { %10633 = vmatprep.subr.bf16.mxu1 %v15029_v24 }
 0xa68   :  { %10634 = vmatpush1.bf16.msra.mxu1 %v15027_v8 }
 0xa69   :  { %10967 = vmatprep.subr.bf16.mxu1 %v15032_v4 }
 0xa6b   :  { %10652 = vmatmul.mubr.bf16.vlgmr.msra.gmra.mrb[208].mxu1 %v16664_v44  ;;  %v15045_v44 = vld [vmem:[#allocation15 + $0x650] ss:$8 sps:$4 sm:$0xff]  }
 0xa6c   :  { %10968 = vmatpush1.bf16.msra.mxu1 %v15030_v36  ;;  %10999 = vmatprep.mubr.bf16.mxu1 %v16718_v10  ;;  %v15048_v10 = vld [vmem:[#allocation15 + $0x660] ss:$8 sps:$4 sm:$0xff]  }
 0xa6d   :  { %10969 = vmatprep.subr.bf16.mxu1 %v15035_v33 }
 0xa70   :  { %10970 = vmatpush1.bf16.msra.mxu1 %v15033_v26 }
 0xa71   :  { %10971 = vmatprep.subr.bf16.mxu1 %v15038_v3 }
 0xa74   :  { %10972 = vmatpush1.bf16.msra.mxu1 %v15036_v25 }
 0xa75   :  { %10973 = vmatprep.subr.bf16.mxu1 %v15041_v51 }
 0xa78   :  { %10974 = vmatpush1.bf16.msra.mxu1 %v15039_v39 }
 0xa79   :  { %10975 = vmatprep.subr.bf16.mxu1 %v15044_v16 }
 0xa7c   :  { %10976 = vmatpush1.bf16.msra.mxu1 %v15042_v17 }
 0xa7d   :  { %10977 = vmatprep.subr.bf16.mxu1 %v15047_v57 }
 0xa80   :  { %10978 = vmatpush1.bf16.msra.mxu1 %v15045_v44 }
 0xa81   :  { %10979 = vmatprep.subr.bf16.mxu1 %v15050_v21  ;;  %v11248_v21 = vld [vmem:[#allocation19] sm:$0xff] }
 0xa84   :  { %10980 = vmatpush1.bf16.msra.mxu1 %v15048_v10 }
 0xa85   :  { %10981 = vmatprep.subr.bf16.mxu1 %v15053_v60  ;;  %v11249_v60 = vld [vmem:[#allocation19 + $0x8] sm:$0xff] }
 0xa88   :  { %10982 = vmatpush1.bf16.msra.mxu1 %v15051_v37 }
 0xa89   :  { %10983 = vmatprep.subr.bf16.mxu1 %v15056_v55 }
 0xa8c   :  { %10984 = vmatpush1.bf16.msra.mxu1 %v15054_v11 }
 0xa8d   :  { %10985 = vmatprep.subr.bf16.mxu1 %v15059_v35  ;;  %v11327_v35 = vld [vmem:[#allocation22] sm:$0xff] }
 0xa90   :  { %10986 = vmatpush1.bf16.msra.mxu1 %v15057_v63  ;;  %v11328_v63 = vld [vmem:[#allocation22 + $0x8] sm:$0xff] }
 0xa91   :  { %10987 = vmatprep.subr.bf16.mxu1 %v15062_v62 }
 0xa94   :  { %10988 = vmatpush1.bf16.msra.mxu1 %v15060_v1  ;;  %v11252_v1 = vld [vmem:[#allocation21] sm:$0xff] }
 0xa95   :  { %10989 = vmatprep.subr.bf16.mxu1 %v15065_v53  ;;  %v13330_v53 = vpack.c.bf16 %v11328_v63, %v11327_v35 }
 0xa98   :  { %10990 = vmatpush1.bf16.msra.mxu1 %v15063_v2  ;;  %v11329_v2 = vld [vmem:[#allocation22 + $0x10] sm:$0xff] }
 0xa99   :  { %10991 = vmatprep.subr.bf16.mxu1 %v15068_v52  ;;  %v11330_v52 = vld [vmem:[#allocation22 + $0x18] sm:$0xff] }
 0xa9c   :  { %10992 = vmatpush1.bf16.msra.mxu1 %v15066_v56  ;;  %v13333_v56 = vpack.c.bf16 %v11330_v52, %v11329_v2 }
 0xa9d   :  { %10993 = vmatprep.subr.bf16.mxu1 %v15071_v47  ;;  %v11331_v47 = vld [vmem:[#allocation22 + $0x20] sm:$0xff] }
 0xaa0   :  { %10994 = vmatpush1.bf16.msra.mxu1 %v15069_v6  ;;  %v11332_v6 = vld [vmem:[#allocation22 + $0x28] sm:$0xff] }
 0xaa1   :  { %10995 = vmatprep.subr.bf16.mxu1 %v15074_v23  ;;  %v13336_v23 = vpack.c.bf16 %v11332_v6, %v11331_v47 }
 0xaa4   :  { %10996 = vmatpush1.bf16.msra.mxu1 %v15072_v15  ;;  %v11333_v15 = vld [vmem:[#allocation22 + $0x30] sm:$0xff] }
 0xaa5   :  { %10997 = vmatprep.subr.bf16.mxu1 %v15077_v45  ;;  %v11334_v45 = vld [vmem:[#allocation22 + $0x38] sm:$0xff] }
 0xaa8   :  { %10998 = vmatpush1.bf16.msra.mxu1 %v15075_v49  ;;  %v13339_v49 = vpack.c.bf16 %v11334_v45, %v11333_v15 }
 0xaa9   :  { %11010 = vmatprep.subr.bf16.mxu1 %v15080_v18  ;;  %v11335_v18 = vld [vmem:[#allocation22 + $0x40] sm:$0xff] }
 0xaab   :  { %11000 = vmatmul.mubr.bf16.vlgmr.msra.gmra.mrb[208].mxu1 %v16708_v50  ;;  %v15093_v50 = vld [vmem:[#allocation15 + $0x750] ss:$8 sps:$4 sm:$0xff]  }
 0xaac   :  { %11011 = vmatpush1.bf16.msra.mxu1 %v15078_v59  ;;  %11042 = vmatprep.mubr.bf16.mxu1 %v15485_v0  ;;  %v15096_v0 = vld [vmem:[#allocation15 + $0x760] ss:$8 sps:$4 sm:$0xff]  }
 0xaad   :  { %11012 = vmatprep.subr.bf16.mxu1 %v15083_v61  ;;  %v11336_v59 = vld [vmem:[#allocation22 + $0x48] sm:$0xff] }
 0xaae   :  { %v13342_v61 = vpack.c.bf16 %v11336_v59, %v11335_v18 }
 0xab0   :  { %11013 = vmatpush1.bf16.msra.mxu1 %v15081_v41  ;;  %v11337_v41 = vld [vmem:[#allocation22 + $0x50] sm:$0xff] }
 0xab1   :  { %11014 = vmatprep.subr.bf16.mxu1 %v15086_v40  ;;  %v11338_v40 = vld [vmem:[#allocation22 + $0x58] sm:$0xff] }
 0xab4   :  { %11015 = vmatpush1.bf16.msra.mxu1 %v15084_v12  ;;  %v11339_v12 = vld [vmem:[#allocation22 + $0x60] sm:$0xff] }
 0xab5   :  { %11016 = vmatprep.subr.bf16.mxu1 %v15089_v58  ;;  %v11340_v58 = vld [vmem:[#allocation22 + $0x68] sm:$0xff] }
 0xab8   :  { %11017 = vmatpush1.bf16.msra.mxu1 %v15087_v30  ;;  %v13348_v30 = vpack.c.bf16 %v11340_v58, %v11339_v12 }
 0xab9   :  { %11018 = vmatprep.subr.bf16.mxu1 %v15092_v28  ;;  %v11341_v28 = vld [vmem:[#allocation22 + $0x70] sm:$0xff] }
 0xabc   :  { %11019 = vmatpush1.bf16.msra.mxu1 %v15090_v34  ;;  %v11342_v34 = vld [vmem:[#allocation22 + $0x78] sm:$0xff] }
 0xabd   :  { %11020 = vmatprep.subr.bf16.mxu1 %v15095_v42  ;;  %v13351_v42 = vpack.c.bf16 %v11342_v34, %v11341_v28 }
 0xac0   :  { %11021 = vmatpush1.bf16.msra.mxu1 %v15093_v50 }
 0xac1   :  { %11022 = vmatprep.subr.bf16.mxu1 %v15098_v29 }
 0xac4   :  { %11023 = vmatpush1.bf16.msra.mxu1 %v15096_v0  ;;  %v12556_v0 = vld [vmem:[#allocation24] ss:$0 sm:$0xff] }
 0xac5   :  { %11024 = vmatprep.subr.bf16.mxu1 %v15101_v22 }
 0xac8   :  { %11025 = vmatpush1.bf16.msra.mxu1 %v15099_v46 }
 0xacb   :  { %11043 = vmatmul.mubr.bf16.vlgmr.msra.gmra.mrb[208].mxu1 %v16667_v14 }
 0xb9e   :  { %v11044_v5 = vpop.f32.mrb[208].mxu1 }
 0xb9f   :  { %v11069_v48 = vadd.f32 %v11062_v7, %v11044_v5  ;;  %v11046_v24 = vpop.f32.mrb[209].mxu1 }
 0xba0   :  { %v11070_v8 = vadd.f32 %v11066_v20, %v11046_v24  ;;  %v11048_v14 = vpop.f32.mrb[210].mxu1 }
 0xba1   :  { %v11071_v4 = vadd.f32 %v11062_v7, %v11048_v14  ;;  %v11050_v36 = vpop.f32.mrb[211].mxu1  ;;  %v11073_v26 = vmax.f32 %v11069_v48, 0.0 }
 0xba2   :  { %v11072_v33 = vadd.f32 %v11066_v20, %v11050_v36  ;;  %v11074_v25 = vmax.f32 %v11070_v8, 0.0 }
 0xba3   :  { %v11075_v3 = vmax.f32 %v11071_v4, 0.0 }
 0xba4   :  { %v11076_v51 = vmax.f32 %v11072_v33, 0.0 }
 0xba5   :  { %v11077_v39 = vpack.c.bf16 %v11075_v3, %v11073_v26 }
 0xba6   :  { %v11078_v16 = vpack.c.bf16 %v11076_v51, %v11074_v25 }
 0xba8   :  { %11239 = vmatprep.mubr.bf16.mxu0 %v11078_v16 }
 0xba9   :  { %11240 = vmatmul.mubr.bf16.vlgmr.msra.gmra.mrb[100].mxu0 %v11077_v39 }
 0xbaa   :  { %13288 = vmatprep.mubr.msk.f32.mxu0 %vm15487_vm4, %v15486_v32 }
 0xc7c   :  { %v12998_v13 = vpop.f32.mrb[100].mxu0 }
 0xc7d   :  { %v12999_v17 = vpop.f32.mrb[101].mxu0 }
 0xc7e   :  { %v13000_v57 = vadd.f32 %v12999_v17, %v12998_v13  ;;  %v13001_v44 = vpop.f32.mrb[102].mxu0 }
 0xc7f   :  { %v13002_v10 = vpop.f32.mrb[103].mxu0 }
 0xc80   :  { %v13003_v37 = vadd.f32 %v13002_v10, %v13001_v44  ;;  %v11250_v55 = vmul.f32 %v13000_v57, %v11248_v21 }
 0xc82   :  { %v11251_v11 = vmul.f32 %v13003_v37, %v11249_v60 }
 0xc84   :  { %v13327_v62 = vpack.c.bf16 %v11251_v11, %v11250_v55 }
 0xc86   :  { %13328 = vmatpush3.bf16.msra.mxu0 %v13327_v62 }
 0xc87   :  { %13329 = vmatprep.subr.bf16.mxu0 %v15489_v9 }
 0xc89   :  { %13289 = vmatmul.mubr.msk.f32.vlgmr.msra.gmra.mrb[104].mxu0 %vm11253_vm10, %v11252_v1 }
 0xc8a   :  { %13331 = vmatpush3.bf16.msra.mxu0 %v13330_v53  ;;  %13323 = vmatprep.mubr.msk.f32.mxu0 %vm15487_vm4, %v15486_v32  ;;  %v13345_v32 = vpack.c.bf16 %v11338_v40, %v11337_v41 }
 0xc8b   :  { %13332 = vmatprep.subr.bf16.mxu0 %v15489_v9 }
 0xc8e   :  { %13334 = vmatpush3.bf16.msra.mxu0 %v13333_v56 }
 0xc8f   :  { %13335 = vmatprep.subr.bf16.mxu0 %v15489_v9 }
 0xc92   :  { %13337 = vmatpush3.bf16.msra.mxu0 %v13336_v23 }
 0xc93   :  { %13338 = vmatprep.subr.bf16.mxu0 %v15489_v9 }
 0xc96   :  { %13340 = vmatpush3.bf16.msra.mxu0 %v13339_v49 }
 0xc97   :  { %13341 = vmatprep.subr.bf16.mxu0 %v15489_v9 }
 0xc9a   :  { %13343 = vmatpush3.bf16.msra.mxu0 %v13342_v61 }
 0xc9b   :  { %13344 = vmatprep.subr.bf16.mxu0 %v15489_v9 }
 0xc9e   :  { %13346 = vmatpush3.bf16.msra.mxu0 %v13345_v32 }
 0xc9f   :  { %13347 = vmatprep.subr.bf16.mxu0 %v15489_v9 }
 0xca2   :  { %13349 = vmatpush3.bf16.msra.mxu0 %v13348_v30 }
 0xca3   :  { %13350 = vmatprep.subr.bf16.mxu0 %v15489_v9 }
 0xca6   :  { %13352 = vmatpush3.bf16.msra.mxu0 %v13351_v42 }
 0xd5c   :  { %v11323_v50 = vpop.f32.mrb[104].mxu0 }
 0xd5d   :  { %v13290_v29 = vpop.f32.mrb[105].mxu0  ;;  %13324 = vmatmul.mubr.f32.vlgmr.msra.gmra.mrb[106].mxu0 %v11323_v50 }
 0xe30   :  { %v11416_v22 = vpop.f32.mrb[106].mxu0 }
 0xe31   :  { %v11417_v46 = vadd.f32 %v12556_v0, %v11416_v22  ;;  %v13325_v19 = vpop.f32.mrb[107].mxu0 }
 0xe33   :  { %11420 = vst [vmem:[%s16775_s16] sm:$0xff] %v11417_v46 }
 0xe34   :  { %11425 = vsyncpa [#allocation3], 1 }
 0xe35   :  { %11426 = vsyncpa [#allocation5], 1 }
 0xe36   :  { %11427 = vsyncpa [#allocation8], 1 }
 0xe37   :  { %11428 = vsyncpa [#allocation11], 1 }
 0xe38   :  { %11429 = vsyncpa [#allocation14], 1 }
 0xe39   :  { %11430 = vsyncpa [#allocation17], 1 }
 0xe3a   :  { %11431 = vsyncpa [#allocation20], 1 }
 0xe3b   :  { %11432 = vsyncpa [#allocation23], 1 }

</bundles_post_ra>
